<compile_context>
chip_gen: v7x
topology: tpu7x:2x2x1
jax: 0.10.0
libtpu: 0.0.40
codegen_flags: <defaults>
</compile_context>

<pallas_src>
import jax
import jax.numpy as jnp
from jax import lax
from jax.experimental import pallas as pl
from jax.experimental.pallas import tpu as pltpu

LEAKY_SLOPE = 0.01   # PyTorch nn.LeakyReLU default
BN_EPS = 1e-5        # PyTorch nn.BatchNorm2d default


# --------------------------------------------------------------------------- #
# VMEM budgeting (per generation)                                              #
# --------------------------------------------------------------------------- #
def _vmem_budget_and_limit():
    """Per-grid-step working-set budget and scoped-VMEM limit (bytes)."""
    try:
        phys = int(pltpu.get_tpu_info().vmem_capacity_bytes)
    except Exception:
        phys = 64 * 1024 * 1024            # conservative (v7x has 64 MiB / TC)
    # working-set target: ~56 MiB on v5e/v6e (128 MiB VMEM), ~24 MiB on v7x (64 MiB)
    budget = max(min(phys // 2 - 8 * 1024 * 1024, 56 * 1024 * 1024), 12 * 1024 * 1024)
    # raise the scoped VMEM limit well above the default 16/32 MiB, with headroom
    limit = max(min(phys - 16 * 1024 * 1024, 100 * 1024 * 1024), 32 * 1024 * 1024)
    return budget, limit


def _round_up(x, m):
    return (x + m - 1) // m * m


def _pick_batch_block(n, per_sample_bytes, budget):
    """Largest divisor of n whose per-step footprint stays under the budget."""
    nb = 1
    for cand in range(1, n + 1):
        if n % cand == 0 and cand * per_sample_bytes <= budget:
            nb = cand
    return nb


# --------------------------------------------------------------------------- #
# shared in-kernel helpers                                                     #
# --------------------------------------------------------------------------- #
def _zero_halo(pad_ref):
    """Zero only the 1-pixel border of the padded activation scratch."""
    NB, Hp2, Wp2, C = pad_ref.shape
    dt = pad_ref.dtype
    pad_ref[:, 0:1, :, :] = jnp.zeros((NB, 1, Wp2, C), dt)
    pad_ref[:, Hp2 - 1:Hp2, :, :] = jnp.zeros((NB, 1, Wp2, C), dt)
    pad_ref[:, :, 0:1, :] = jnp.zeros((NB, Hp2, 1, C), dt)
    pad_ref[:, :, Wp2 - 1:Wp2, :] = jnp.zeros((NB, Hp2, 1, C), dt)


def _im2col_dot(pad_ref, patch_ref, w_ref, cp):
    """3x3 conv as one wide MXU matmul with lane-aligned patch columns.

    pad_ref:   (NB, Ho+2, Wo+2, C) bf16 zero-halo activations (VMEM scratch)
    patch_ref: (NB*Ho*Wo, 9*cp)    bf16 im2col patch matrix   (VMEM scratch)
    w_ref:     (9*cp, Cout)        bf16 packed weights (padded rows are zero)
    cp:        per-tap column stride = round_up(C, 128) (or C if already aligned)
    returns:   (NB*Ho*Wo, Cout)    f32
    """
    NB, Hp2, Wp2, C = pad_ref.shape
    Ho, Wo = Hp2 - 2, Wp2 - 2
    M = NB * Ho * Wo
    pad_cols = cp - C
    zpad = jnp.zeros((M, pad_cols), pad_ref.dtype) if pad_cols else None  # hoisted

    t = 0
    for dy in range(3):
        for dx in range(3):
            tap = pad_ref[:, dy:dy + Ho, dx:dx + Wo, :].reshape(M, C)
            if pad_cols:
                tap = jnp.concatenate([tap, zpad], axis=-1)   # lane-dense (M, cp)
            patch_ref[:, t * cp:(t + 1) * cp] = tap            # lane-aligned store
            t += 1
    # single MXU contraction: K = 9*cp, bf16 inputs, f32 accumulation
    return jnp.dot(patch_ref[...], w_ref[...], preferred_element_type=jnp.float32)


def _store_partial_bn_stats(st_ref, acc):
    # per-grid-block partial BatchNorm statistics: (sum, sum of squares) per channel
    s = jnp.sum(acc, axis=0, keepdims=True)
    ss = jnp.sum(acc * acc, axis=0, keepdims=True)
    st_ref[0] = jnp.concatenate([s, ss], axis=0)               # (2, Cout)


# --------------------------------------------------------------------------- #
# Kernel 1: fused MaxPool2d(2) + conv1 (im2col matmul) + partial BN1 stats     #
# --------------------------------------------------------------------------- #
def _make_pool_conv_stats_kernel(cp):
    def kernel(x_ref, w_ref, o_ref, st_ref, pad_ref, patch_ref):
        # x_ref: (NB, Ho, 2, Wo, 2*Cin) f32  -- pooling-window view of raw input
        # w_ref: (9*cp, Cmid) bf16 ; o_ref: (NB, Ho, Wo, Cmid) bf16
        # st_ref: (1, 2, Cmid) f32
        NB, Hp2, Wp2, Cin = pad_ref.shape
        Ho, Wo = Hp2 - 2, Wp2 - 2

        x = x_ref[...]
        m = jnp.maximum(x[:, :, 0], x[:, :, 1])           # pool H-pair -> (NB,Ho,Wo,2Cin)
        pooled = jnp.maximum(m[..., :Cin], m[..., Cin:])  # pool W-pair -> (NB,Ho,Wo,Cin)

        _zero_halo(pad_ref)                               # border only; interior follows
        pad_ref[:, 1:Ho + 1, 1:Wo + 1, :] = pooled.astype(pad_ref.dtype)

        acc = _im2col_dot(pad_ref, patch_ref, w_ref, cp)  # (NB*Ho*Wo, Cmid) f32
        o_ref[...] = acc.reshape(NB, Ho, Wo, acc.shape[-1]).astype(o_ref.dtype)
        _store_partial_bn_stats(st_ref, acc)
    return kernel


# --------------------------------------------------------------------------- #
# Kernel 2: fused BN1-affine + LeakyReLU + conv2 (im2col) + partial BN2 stats  #
# --------------------------------------------------------------------------- #
def _make_bn_act_conv_stats_kernel(cp):
    def kernel(y_ref, sc_ref, sh_ref, w_ref, o_ref, st_ref, pad_ref, patch_ref):
        # y_ref: (NB, Ho, Wo, Cmid) bf16 ; sc/sh: (1,1,1,Cmid) f32 folded BN scale/shift
        NB, Hp2, Wp2, C = pad_ref.shape
        Ho, Wo = Hp2 - 2, Wp2 - 2

        z = y_ref[...].astype(jnp.float32) * sc_ref[...] + sh_ref[...]
        z = jnp.where(z > 0, z, LEAKY_SLOPE * z)

        _zero_halo(pad_ref)
        pad_ref[:, 1:Ho + 1, 1:Wo + 1, :] = z.astype(pad_ref.dtype)

        acc = _im2col_dot(pad_ref, patch_ref, w_ref, cp)  # (NB*Ho*Wo, Cout) f32
        o_ref[...] = acc.reshape(NB, Ho, Wo, acc.shape[-1]).astype(o_ref.dtype)
        _store_partial_bn_stats(st_ref, acc)
    return kernel


# --------------------------------------------------------------------------- #
# Kernel 3: BN2-affine + LeakyReLU (gridded elementwise, lane-dense)           #
# --------------------------------------------------------------------------- #
def _bn_act_kernel(y_ref, sc_ref, sh_ref, o_ref):
    z = y_ref[...].astype(jnp.float32) * sc_ref[...] + sh_ref[...]
    o_ref[...] = jnp.where(z > 0, z, LEAKY_SLOPE * z).astype(o_ref.dtype)


# --------------------------------------------------------------------------- #
# wrappers                                                                     #
# --------------------------------------------------------------------------- #
def _pack_conv_weights(w):
    """(3,3,Cin,Cout) HWIO f32 -> (9*cp, Cout) bf16 with zero padded K rows."""
    kh, kw, cin, cout = w.shape
    cp = cin if cin % 128 == 0 else _round_up(cin, 128)
    wp = jnp.zeros((kh * kw, cp, cout), w.dtype)
    wp = wp.at[:, :cin, :].set(w.reshape(kh * kw, cin, cout))
    return wp.reshape(kh * kw * cp, cout).astype(jnp.bfloat16), cp


def fused_pool_conv1(x, w_packed, cp_in):
    """x: (N,H,W,Cin) f32; w_packed: (9*cp_in, Cmid) bf16.
       Returns (y1 (N,Ho,Wo,Cmid) bf16, partial BN stats (nblk, 2, Cmid) f32)."""
    N, H, W, Cin = x.shape
    Ho, Wo = H // 2, W // 2
    Cmid = w_packed.shape[-1]
    budget, limit = _vmem_budget_and_limit()
    fixed = 2 * w_packed.size * 2                                   # buffered weights
    per_sample = (2 * H * W * Cin * 4                               # input (f32) x2 bufs
                  + 2 * Ho * Wo * Cmid * 2                          # y1 out (bf16) x2 bufs
                  + (Ho + 2) * (Wo + 2) * Cin * 2                   # halo scratch (bf16)
                  + Ho * Wo * 9 * cp_in * 2)                        # patch scratch (bf16)
    NB = _pick_batch_block(N, per_sample, budget - fixed)
    nblk = N // NB

    # free, contiguous reshape exposing the 2x2 pooling windows (W-pair in lanes)
    x5 = x.reshape(N, Ho, 2, Wo, 2 * Cin)

    return pl.pallas_call(
        _make_pool_conv_stats_kernel(cp_in),
        out_shape=(jax.ShapeDtypeStruct((N, Ho, Wo, Cmid), jnp.bfloat16),
                   jax.ShapeDtypeStruct((nblk, 2, Cmid), jnp.float32)),
        grid=(nblk,),
        in_specs=[
            pl.BlockSpec((NB, Ho, 2, Wo, 2 * Cin), lambda b: (b, 0, 0, 0, 0)),
            pl.BlockSpec((9 * cp_in, Cmid), lambda b: (0, 0)),
        ],
        out_specs=(
            pl.BlockSpec((NB, Ho, Wo, Cmid), lambda b: (b, 0, 0, 0)),
            pl.BlockSpec((1, 2, Cmid), lambda b: (b, 0, 0)),
        ),
        scratch_shapes=[
            pltpu.VMEM((NB, Ho + 2, Wo + 2, Cin), jnp.bfloat16),
            pltpu.VMEM((NB * Ho * Wo, 9 * cp_in), jnp.bfloat16),
        ],
        compiler_params=pltpu.CompilerParams(
            dimension_semantics=("parallel",), vmem_limit_bytes=limit),
    )(x5, w_packed)


def fused_bn_act_conv2(y, scale, shift, w_packed, cp_mid):
    """y: (N,Ho,Wo,Cmid) bf16; scale/shift: (Cmid,) f32; w_packed: (9*cp_mid, Cout) bf16."""
    N, Ho, Wo, Cmid = y.shape
    Cout = w_packed.shape[-1]
    budget, limit = _vmem_budget_and_limit()
    fixed = 2 * w_packed.size * 2
    per_sample = (2 * Ho * Wo * Cmid * 2                            # y1 in (bf16) x2 bufs
                  + 2 * Ho * Wo * Cout * 2                          # y2 out (bf16) x2 bufs
                  + (Ho + 2) * (Wo + 2) * Cmid * 2
                  + Ho * Wo * 9 * cp_mid * 2)
    NB = _pick_batch_block(N, per_sample, budget - fixed)
    nblk = N // NB

    return pl.pallas_call(
        _make_bn_act_conv_stats_kernel(cp_mid),
        out_shape=(jax.ShapeDtypeStruct((N, Ho, Wo, Cout), jnp.bfloat16),
                   jax.ShapeDtypeStruct((nblk, 2, Cout), jnp.float32)),
        grid=(nblk,),
        in_specs=[
            pl.BlockSpec((NB, Ho, Wo, Cmid), lambda b: (b, 0, 0, 0)),
            pl.BlockSpec((1, 1, 1, Cmid), lambda b: (0, 0, 0, 0)),
            pl.BlockSpec((1, 1, 1, Cmid), lambda b: (0, 0, 0, 0)),
            pl.BlockSpec((9 * cp_mid, Cout), lambda b: (0, 0)),
        ],
        out_specs=(
            pl.BlockSpec((NB, Ho, Wo, Cout), lambda b: (b, 0, 0, 0)),
            pl.BlockSpec((1, 2, Cout), lambda b: (b, 0, 0)),
        ),
        scratch_shapes=[
            pltpu.VMEM((NB, Ho + 2, Wo + 2, Cmid), jnp.bfloat16),
            pltpu.VMEM((NB * Ho * Wo, 9 * cp_mid), jnp.bfloat16),
        ],
        compiler_params=pltpu.CompilerParams(
            dimension_semantics=("parallel",), vmem_limit_bytes=limit),
    )(y, scale.reshape(1, 1, 1, Cmid), shift.reshape(1, 1, 1, Cmid), w_packed)  # w_packed now passed (bug fix)


def bn_act(y, scale, shift):
    """BN-affine + LeakyReLU.  Uses a lane-dense (M*C/128, 128) view when possible."""
    N, Ho, Wo, C = y.shape
    M = N * Ho * Wo
    budget, limit = _vmem_budget_and_limit()

    if C < 128 and 128 % C == 0 and (M * C) % 128 == 0:
        # lane-dense view: every row is 128 lanes of full channel periods
        C2 = 128
        M2 = (M * C) // 128
        y2d = y.reshape(M2, C2)
        sc2 = jnp.tile(scale, C2 // C).reshape(1, C2)
        sh2 = jnp.tile(shift, C2 // C).reshape(1, C2)
    else:
        C2, M2 = C, M
        y2d = y.reshape(M, C)
        sc2 = scale.reshape(1, C)
        sh2 = shift.reshape(1, C)

    # row tile sized against the VMEM budget (bf16 in + f32 out, double-buffered)
    bytes_per_row = C2 * (2 + 4) * 2
    TM = max((budget // bytes_per_row) // 8 * 8, 8)
    TM = min(TM, M2)

    out = pl.pallas_call(
        _bn_act_kernel,
        out_shape=jax.ShapeDtypeStruct((M2, C2), jnp.float32),
        grid=(pl.cdiv(M2, TM),),
        in_specs=[pl.BlockSpec((TM, C2), lambda i: (i, 0)),
                  pl.BlockSpec((1, C2), lambda i: (0, 0)),
                  pl.BlockSpec((1, C2), lambda i: (0, 0))],
        out_specs=pl.BlockSpec((TM, C2), lambda i: (i, 0)),
        compiler_params=pltpu.CompilerParams(
            dimension_semantics=("parallel",), vmem_limit_bytes=limit),
    )(y2d, sc2, sh2)
    return out.reshape(N, Ho, Wo, C)


def _bn_fold(stats, count, gamma, beta):
    """Fold per-block partial (sum, sumsq) into per-channel (scale, shift). O(C) work."""
    s = jnp.sum(stats, axis=0)                               # (2, C)
    mean = s[0] / count
    var = jnp.maximum(s[1] / count - mean * mean, 0.0)       # biased variance (PyTorch BN)
    scale = gamma * lax.rsqrt(var + BN_EPS)
    shift = beta - mean * scale
    return scale, shift


# --------------------------------------------------------------------------- #
# Down module                                                                  #
# --------------------------------------------------------------------------- #
def init_down_params(key, in_channels, out_channels):
    mid = out_channels  # DoubleConv: mid_channels defaults to out_channels
    k1, k2, k3, k4 = jax.random.split(key, 4)
    return {
        "w1": 0.1 * jax.random.normal(k1, (3, 3, in_channels, mid), jnp.float32),
        "b1": 0.1 * jax.random.normal(k2, (mid,), jnp.float32),   # cancelled by BN
        "g1": jnp.ones((mid,), jnp.float32),                      # BN weight default
        "be1": jnp.zeros((mid,), jnp.float32),                    # BN bias default
        "w2": 0.1 * jax.random.normal(k3, (3, 3, mid, out_channels), jnp.float32),
        "b2": 0.1 * jax.random.normal(k4, (out_channels,), jnp.float32),  # cancelled by BN
        "g2": jnp.ones((out_channels,), jnp.float32),
        "be2": jnp.zeros((out_channels,), jnp.float32),
    }


@jax.jit
def down_forward(x_nchw, params):
    x = jnp.transpose(x_nchw, (0, 2, 3, 1)).astype(jnp.float32)   # NCHW -> NHWC
    N, H, W, _ = x.shape
    count = N * (H // 2) * (W // 2)                               # BN reduction size

    # Pack 3x3 HWIO weights into (9*cp, Cout) bf16 with lane-aligned (padded) K rows.
    # Conv biases are exactly cancelled by the following training-mode BatchNorm
    # (mean subtraction), so they are intentionally not applied in the kernels.
    # TODO(synk): re-apply b1/b2 if this is ever used with eval-mode running stats.
    w1p, cp1 = _pack_conv_weights(params["w1"])
    w2p, cp2 = _pack_conv_weights(params["w2"])

    y1, st1 = fused_pool_conv1(x, w1p, cp1)                       # pool + conv1 + stats
    sc1, sh1 = _bn_fold(st1, count, params["g1"], params["be1"])
    y2, st2 = fused_bn_act_conv2(y1, sc1, sh1, w2p, cp2)          # BN1+act + conv2 + stats
    sc2, sh2 = _bn_fold(st2, count, params["g2"], params["be2"])
    out = bn_act(y2, sc2, sh2)                                    # BN2 + act
    return jnp.transpose(out, (0, 3, 1, 2))                       # NHWC -> NCHW


# --------------------------------------------------------------------------- #
# pure-JAX reference (biases included; BN cancels them)                        #
# --------------------------------------------------------------------------- #
def reference_forward(x_nchw, params):
    x = jnp.transpose(x_nchw, (0, 2, 3, 1))
    N, H, W, C = x.shape
    x = x.reshape(N, H // 2, 2, W // 2, 2, C).max(axis=(2, 4))

    def conv(x, w, b):
        y = lax.conv_general_dilated(
            x, w, (1, 1), "SAME", dimension_numbers=("NHWC", "HWIO", "NHWC"))
        return y + b

    def bn_lrelu(x, g, be):
        mean = x.mean(axis=(0, 1, 2), keepdims=True)
        var = jnp.square(x - mean).mean(axis=(0, 1, 2), keepdims=True)
        y = (x - mean) * lax.rsqrt(var + BN_EPS) * g + be
        return jnp.where(y > 0, y, LEAKY_SLOPE * y)

    x = bn_lrelu(conv(x, params["w1"], params["b1"]), params["g1"], params["be1"])
    x = bn_lrelu(conv(x, params["w2"], params["b2"]), params["g2"], params["be2"])
    return jnp.transpose(x, (0, 3, 1, 2))


if __name__ == "__main__":
    key = jax.random.PRNGKey(0)
    kx, kp = jax.random.split(key)
    in_channels, out_channels = 4, 8
    x = jax.random.normal(kx, (2, in_channels, 16, 16), jnp.float32)  # NCHW
    params = init_down_params(kp, in_channels, out_channels)

    out = jax.block_until_ready(down_forward(x, params))
    assert out.shape == (2, out_channels, 8, 8), out.shape

    ref = reference_forward(x, params)
    err = float(jnp.max(jnp.abs(out - ref)))
    # bf16 MXU inputs + bf16 HBM intermediates (f32 accumulation / f32 BN stats)
    assert err < 5e-2, f"max abs diff vs reference too large: {err}"
    print("KERNEL_OK")
</pallas_src>

<mosaic_0001>
module attributes {stable_mosaic.version = 11 : i64} {
  func.func @kernel(%arg0: i32, %arg1: memref<2x8x2x8x8xf32, #tpu.memory_space<vmem>>, %arg2: memref<1152x8xbf16, #tpu.memory_space<vmem>>, %arg3: memref<2x8x8x8xbf16, #tpu.memory_space<vmem>>, %arg4: memref<1x2x8xf32, #tpu.memory_space<vmem>>, %arg5: memref<2x10x10x4xbf16, #tpu.memory_space<vmem>>, %arg6: memref<128x1152xbf16, #tpu.memory_space<vmem>>) attributes {dimension_semantics = [#tpu.dimension_semantics<parallel>], iteration_bounds = array<i64: 1>, scalar_prefetch = 0 : i64, scratch_operands = 2 : i64, tpu.core_type = #tpu.core_type<tc>, window_params = [{transform_indices = @transform_0, window_bounds = array<i64: 2, 8, 2, 8, 8>}, {pipeline_mode = #tpu.pipeline_mode<synchronous>, transform_indices = @transform_1, window_bounds = array<i64: 1152, 8>}, {transform_indices = @transform_2, window_bounds = array<i64: 2, 8, 8, 8>}, {transform_indices = @transform_3, window_bounds = array<i64: 1, 2, 8>}]} {
    %c0 = arith.constant 0 : index
    %c0_0 = arith.constant 0 : index
    %c0_1 = arith.constant 0 : index
    %c0_2 = arith.constant 0 : index
    %c0_3 = arith.constant 0 : index
    %0 = vector.load %arg1[%c0, %c0_0, %c0_1, %c0_2, %c0_3] : memref<2x8x2x8x8xf32, #tpu.memory_space<vmem>>, vector<2x8x2x8x8xf32>
    %1 = vector.extract_strided_slice %0 {offsets = [0, 0, 0, 0, 0], sizes = [2, 8, 1, 8, 8], strides = [1, 1, 1, 1, 1]} : vector<2x8x2x8x8xf32> to vector<2x8x1x8x8xf32>
    %2 = vector.shape_cast %1 : vector<2x8x1x8x8xf32> to vector<2x8x8x8xf32>
    %3 = vector.extract_strided_slice %0 {offsets = [0, 0, 1, 0, 0], sizes = [2, 8, 1, 8, 8], strides = [1, 1, 1, 1, 1]} : vector<2x8x2x8x8xf32> to vector<2x8x1x8x8xf32>
    %4 = vector.shape_cast %3 : vector<2x8x1x8x8xf32> to vector<2x8x8x8xf32>
    %5 = arith.maximumf %2, %4 : vector<2x8x8x8xf32>
    %6 = vector.extract_strided_slice %5 {offsets = [0, 0, 0, 0], sizes = [2, 8, 8, 4], strides = [1, 1, 1, 1]} : vector<2x8x8x8xf32> to vector<2x8x8x4xf32>
    %7 = vector.extract_strided_slice %5 {offsets = [0, 0, 0, 4], sizes = [2, 8, 8, 4], strides = [1, 1, 1, 1]} : vector<2x8x8x8xf32> to vector<2x8x8x4xf32>
    %8 = arith.maximumf %6, %7 : vector<2x8x8x4xf32>
    %cst = arith.constant 0.000000e+00 : bf16
    %9 = vector.broadcast %cst : bf16 to vector<2x1x10x4xbf16>
    %c0_4 = arith.constant 0 : index
    %c0_5 = arith.constant 0 : index
    %c0_6 = arith.constant 0 : index
    %c0_7 = arith.constant 0 : index
    %10 = vector.load %arg5[%c0_4, %c0_5, %c0_6, %c0_7] : memref<2x10x10x4xbf16, #tpu.memory_space<vmem>>, vector<2x1x10x4xbf16>
    tpu.vector_store %arg5[%c0_4, %c0_5, %c0_6, %c0_7], %9 {strides = array<i32>} : memref<2x10x10x4xbf16, #tpu.memory_space<vmem>>, vector<2x1x10x4xbf16>,
    %cst_8 = arith.constant 0.000000e+00 : bf16
    %11 = vector.broadcast %cst_8 : bf16 to vector<2x1x10x4xbf16>
    %c0_9 = arith.constant 0 : index
    %c9 = arith.constant 9 : index
    %c0_10 = arith.constant 0 : index
    %c0_11 = arith.constant 0 : index
    %12 = vector.load %arg5[%c0_9, %c9, %c0_10, %c0_11] : memref<2x10x10x4xbf16, #tpu.memory_space<vmem>>, vector<2x1x10x4xbf16>
    tpu.vector_store %arg5[%c0_9, %c9, %c0_10, %c0_11], %11 {strides = array<i32>} : memref<2x10x10x4xbf16, #tpu.memory_space<vmem>>, vector<2x1x10x4xbf16>,
    %cst_12 = arith.constant 0.000000e+00 : bf16
    %13 = vector.broadcast %cst_12 : bf16 to vector<2x10x1x4xbf16>
    %c0_13 = arith.constant 0 : index
    %c0_14 = arith.constant 0 : index
    %c0_15 = arith.constant 0 : index
    %c0_16 = arith.constant 0 : index
    %14 = vector.load %arg5[%c0_13, %c0_14, %c0_15, %c0_16] : memref<2x10x10x4xbf16, #tpu.memory_space<vmem>>, vector<2x10x1x4xbf16>
    tpu.vector_store %arg5[%c0_13, %c0_14, %c0_15, %c0_16], %13 {strides = array<i32>} : memref<2x10x10x4xbf16, #tpu.memory_space<vmem>>, vector<2x10x1x4xbf16>,
    %cst_17 = arith.constant 0.000000e+00 : bf16
    %15 = vector.broadcast %cst_17 : bf16 to vector<2x10x1x4xbf16>
    %c0_18 = arith.constant 0 : index
    %c0_19 = arith.constant 0 : index
    %c9_20 = arith.constant 9 : index
    %c0_21 = arith.constant 0 : index
    %16 = vector.load %arg5[%c0_18, %c0_19, %c9_20, %c0_21] : memref<2x10x10x4xbf16, #tpu.memory_space<vmem>>, vector<2x10x1x4xbf16>
    tpu.vector_store %arg5[%c0_18, %c0_19, %c9_20, %c0_21], %15 {strides = array<i32>} : memref<2x10x10x4xbf16, #tpu.memory_space<vmem>>, vector<2x10x1x4xbf16>,
    %17 = arith.truncf %8 : vector<2x8x8x4xf32> to vector<2x8x8x4xbf16>
    %c0_22 = arith.constant 0 : index
    %c1 = arith.constant 1 : index
    %c1_23 = arith.constant 1 : index
    %c0_24 = arith.constant 0 : index
    %18 = vector.load %arg5[%c0_22, %c1, %c1_23, %c0_24] : memref<2x10x10x4xbf16, #tpu.memory_space<vmem>>, vector<2x8x8x4xbf16>
    tpu.vector_store %arg5[%c0_22, %c1, %c1_23, %c0_24], %17 {strides = array<i32>} : memref<2x10x10x4xbf16, #tpu.memory_space<vmem>>, vector<2x8x8x4xbf16>,
    %cst_25 = arith.constant 0.000000e+00 : bf16
    %19 = vector.broadcast %cst_25 : bf16 to vector<128x124xbf16>
    %c0_26 = arith.constant 0 : index
    %c0_27 = arith.constant 0 : index
    %c0_28 = arith.constant 0 : index
    %c0_29 = arith.constant 0 : index
    %20 = vector.load %arg5[%c0_26, %c0_27, %c0_28, %c0_29] : memref<2x10x10x4xbf16, #tpu.memory_space<vmem>>, vector<2x8x8x4xbf16>
    %21 = vector.shape_cast %20 : vector<2x8x8x4xbf16> to vector<128x4xbf16>
    %22 = tpu.concatenate %21, %19 in 1 : vector<128x4xbf16>, vector<128x124xbf16> -> vector<128x128xbf16>
    %c0_30 = arith.constant 0 : index
    %c0_31 = arith.constant 0 : index
    %23 = vector.load %arg6[%c0_30, %c0_31] : memref<128x1152xbf16, #tpu.memory_space<vmem>>, vector<128x128xbf16>
    tpu.vector_store %arg6[%c0_30, %c0_31], %22 {strides = array<i32>} : memref<128x1152xbf16, #tpu.memory_space<vmem>>, vector<128x128xbf16>,
    %c0_32 = arith.constant 0 : index
    %c0_33 = arith.constant 0 : index
    %c1_34 = arith.constant 1 : index
    %c0_35 = arith.constant 0 : index
    %24 = vector.load %arg5[%c0_32, %c0_33, %c1_34, %c0_35] : memref<2x10x10x4xbf16, #tpu.memory_space<vmem>>, vector<2x8x8x4xbf16>
    %25 = vector.shape_cast %24 : vector<2x8x8x4xbf16> to vector<128x4xbf16>
    %26 = tpu.concatenate %25, %19 in 1 : vector<128x4xbf16>, vector<128x124xbf16> -> vector<128x128xbf16>
    %c0_36 = arith.constant 0 : index
    %c128 = arith.constant 128 : index
    %27 = vector.load %arg6[%c0_36, %c128] : memref<128x1152xbf16, #tpu.memory_space<vmem>>, vector<128x128xbf16>
    tpu.vector_store %arg6[%c0_36, %c128], %26 {strides = array<i32>} : memref<128x1152xbf16, #tpu.memory_space<vmem>>, vector<128x128xbf16>,
    %c0_37 = arith.constant 0 : index
    %c0_38 = arith.constant 0 : index
    %c2 = arith.constant 2 : index
    %c0_39 = arith.constant 0 : index
    %28 = vector.load %arg5[%c0_37, %c0_38, %c2, %c0_39] : memref<2x10x10x4xbf16, #tpu.memory_space<vmem>>, vector<2x8x8x4xbf16>
    %29 = vector.shape_cast %28 : vector<2x8x8x4xbf16> to vector<128x4xbf16>
    %30 = tpu.concatenate %29, %19 in 1 : vector<128x4xbf16>, vector<128x124xbf16> -> vector<128x128xbf16>
    %c0_40 = arith.constant 0 : index
    %c256 = arith.constant 256 : index
    %31 = vector.load %arg6[%c0_40, %c256] : memref<128x1152xbf16, #tpu.memory_space<vmem>>, vector<128x128xbf16>
    tpu.vector_store %arg6[%c0_40, %c256], %30 {strides = array<i32>} : memref<128x1152xbf16, #tpu.memory_space<vmem>>, vector<128x128xbf16>,
    %c0_41 = arith.constant 0 : index
    %c1_42 = arith.constant 1 : index
    %c0_43 = arith.constant 0 : index
    %c0_44 = arith.constant 0 : index
    %32 = vector.load %arg5[%c0_41, %c1_42, %c0_43, %c0_44] : memref<2x10x10x4xbf16, #tpu.memory_space<vmem>>, vector<2x8x8x4xbf16>
    %33 = vector.shape_cast %32 : vector<2x8x8x4xbf16> to vector<128x4xbf16>
    %34 = tpu.concatenate %33, %19 in 1 : vector<128x4xbf16>, vector<128x124xbf16> -> vector<128x128xbf16>
    %c0_45 = arith.constant 0 : index
    %c384 = arith.constant 384 : index
    %35 = vector.load %arg6[%c0_45, %c384] : memref<128x1152xbf16, #tpu.memory_space<vmem>>, vector<128x128xbf16>
    tpu.vector_store %arg6[%c0_45, %c384], %34 {strides = array<i32>} : memref<128x1152xbf16, #tpu.memory_space<vmem>>, vector<128x128xbf16>,
    %c0_46 = arith.constant 0 : index
    %c1_47 = arith.constant 1 : index
    %c1_48 = arith.constant 1 : index
    %c0_49 = arith.constant 0 : index
    %36 = vector.load %arg5[%c0_46, %c1_47, %c1_48, %c0_49] : memref<2x10x10x4xbf16, #tpu.memory_space<vmem>>, vector<2x8x8x4xbf16>
    %37 = vector.shape_cast %36 : vector<2x8x8x4xbf16> to vector<128x4xbf16>
    %38 = tpu.concatenate %37, %19 in 1 : vector<128x4xbf16>, vector<128x124xbf16> -> vector<128x128xbf16>
    %c0_50 = arith.constant 0 : index
    %c512 = arith.constant 512 : index
    %39 = vector.load %arg6[%c0_50, %c512] : memref<128x1152xbf16, #tpu.memory_space<vmem>>, vector<128x128xbf16>
    tpu.vector_store %arg6[%c0_50, %c512], %38 {strides = array<i32>} : memref<128x1152xbf16, #tpu.memory_space<vmem>>, vector<128x128xbf16>,
    %c0_51 = arith.constant 0 : index
    %c1_52 = arith.constant 1 : index
    %c2_53 = arith.constant 2 : index
    %c0_54 = arith.constant 0 : index
    %40 = vector.load %arg5[%c0_51, %c1_52, %c2_53, %c0_54] : memref<2x10x10x4xbf16, #tpu.memory_space<vmem>>, vector<2x8x8x4xbf16>
    %41 = vector.shape_cast %40 : vector<2x8x8x4xbf16> to vector<128x4xbf16>
    %42 = tpu.concatenate %41, %19 in 1 : vector<128x4xbf16>, vector<128x124xbf16> -> vector<128x128xbf16>
    %c0_55 = arith.constant 0 : index
    %c640 = arith.constant 640 : index
    %43 = vector.load %arg6[%c0_55, %c640] : memref<128x1152xbf16, #tpu.memory_space<vmem>>, vector<128x128xbf16>
    tpu.vector_store %arg6[%c0_55, %c640], %42 {strides = array<i32>} : memref<128x1152xbf16, #tpu.memory_space<vmem>>, vector<128x128xbf16>,
    %c0_56 = arith.constant 0 : index
    %c2_57 = arith.constant 2 : index
    %c0_58 = arith.constant 0 : index
    %c0_59 = arith.constant 0 : index
    %44 = vector.load %arg5[%c0_56, %c2_57, %c0_58, %c0_59] : memref<2x10x10x4xbf16, #tpu.memory_space<vmem>>, vector<2x8x8x4xbf16>
    %45 = vector.shape_cast %44 : vector<2x8x8x4xbf16> to vector<128x4xbf16>
    %46 = tpu.concatenate %45, %19 in 1 : vector<128x4xbf16>, vector<128x124xbf16> -> vector<128x128xbf16>
    %c0_60 = arith.constant 0 : index
    %c768 = arith.constant 768 : index
    %47 = vector.load %arg6[%c0_60, %c768] : memref<128x1152xbf16, #tpu.memory_space<vmem>>, vector<128x128xbf16>
    tpu.vector_store %arg6[%c0_60, %c768], %46 {strides = array<i32>} : memref<128x1152xbf16, #tpu.memory_space<vmem>>, vector<128x128xbf16>,
    %c0_61 = arith.constant 0 : index
    %c2_62 = arith.constant 2 : index
    %c1_63 = arith.constant 1 : index
    %c0_64 = arith.constant 0 : index
    %48 = vector.load %arg5[%c0_61, %c2_62, %c1_63, %c0_64] : memref<2x10x10x4xbf16, #tpu.memory_space<vmem>>, vector<2x8x8x4xbf16>
    %49 = vector.shape_cast %48 : vector<2x8x8x4xbf16> to vector<128x4xbf16>
    %50 = tpu.concatenate %49, %19 in 1 : vector<128x4xbf16>, vector<128x124xbf16> -> vector<128x128xbf16>
    %c0_65 = arith.constant 0 : index
    %c896 = arith.constant 896 : index
    %51 = vector.load %arg6[%c0_65, %c896] : memref<128x1152xbf16, #tpu.memory_space<vmem>>, vector<128x128xbf16>
    tpu.vector_store %arg6[%c0_65, %c896], %50 {strides = array<i32>} : memref<128x1152xbf16, #tpu.memory_space<vmem>>, vector<128x128xbf16>,
    %c0_66 = arith.constant 0 : index
    %c2_67 = arith.constant 2 : index
    %c2_68 = arith.constant 2 : index
    %c0_69 = arith.constant 0 : index
    %52 = vector.load %arg5[%c0_66, %c2_67, %c2_68, %c0_69] : memref<2x10x10x4xbf16, #tpu.memory_space<vmem>>, vector<2x8x8x4xbf16>
    %53 = vector.shape_cast %52 : vector<2x8x8x4xbf16> to vector<128x4xbf16>
    %54 = tpu.concatenate %53, %19 in 1 : vector<128x4xbf16>, vector<128x124xbf16> -> vector<128x128xbf16>
    %c0_70 = arith.constant 0 : index
    %c1024 = arith.constant 1024 : index
    %55 = vector.load %arg6[%c0_70, %c1024] : memref<128x1152xbf16, #tpu.memory_space<vmem>>, vector<128x128xbf16>
    tpu.vector_store %arg6[%c0_70, %c1024], %54 {strides = array<i32>} : memref<128x1152xbf16, #tpu.memory_space<vmem>>, vector<128x128xbf16>,
    %c0_71 = arith.constant 0 : index
    %c0_72 = arith.constant 0 : index
    %56 = vector.load %arg6[%c0_71, %c0_72] : memref<128x1152xbf16, #tpu.memory_space<vmem>>, vector<128x1152xbf16>
    %c0_73 = arith.constant 0 : index
    %c0_74 = arith.constant 0 : index
    %57 = vector.load %arg2[%c0_73, %c0_74] : memref<1152x8xbf16, #tpu.memory_space<vmem>>, vector<1152x8xbf16>
    %cst_75 = arith.constant dense<0.000000e+00> : vector<128x8xf32>
    %58 = tpu.matmul %56, %57, %cst_75 {dimension_numbers = #tpu.dot_dimension_numbers<[1], [0], [0], [1], [0, 0, 1, 1], [], []>} : vector<128x1152xbf16>, vector<1152x8xbf16>, vector<128x8xf32> -> vector<128x8xf32>
    %59 = vector.shape_cast %58 : vector<128x8xf32> to vector<2x8x8x8xf32>
    %60 = arith.truncf %59 : vector<2x8x8x8xf32> to vector<2x8x8x8xbf16>
    %c0_76 = arith.constant 0 : index
    %c0_77 = arith.constant 0 : index
    %c0_78 = arith.constant 0 : index
    %c0_79 = arith.constant 0 : index
    %61 = vector.load %arg3[%c0_76, %c0_77, %c0_78, %c0_79] : memref<2x8x8x8xbf16, #tpu.memory_space<vmem>>, vector<2x8x8x8xbf16>
    tpu.vector_store %arg3[%c0_76, %c0_77, %c0_78, %c0_79], %60 {strides = array<i32>} : memref<2x8x8x8xbf16, #tpu.memory_space<vmem>>, vector<2x8x8x8xbf16>,
    %cst_80 = arith.constant dense<0.000000e+00> : vector<8xf32>
    %62 = vector.multi_reduction <add>, %58, %cst_80 [0] : vector<128x8xf32> to vector<8xf32>
    %63 = vector.shape_cast %62 : vector<8xf32> to vector<1x8xf32>
    %64 = arith.mulf %58, %58 : vector<128x8xf32>
    %cst_81 = arith.constant dense<0.000000e+00> : vector<8xf32>
    %65 = vector.multi_reduction <add>, %64, %cst_81 [0] : vector<128x8xf32> to vector<8xf32>
    %66 = vector.shape_cast %65 : vector<8xf32> to vector<1x8xf32>
    %67 = tpu.concatenate %63, %66 in 0 : vector<1x8xf32>, vector<1x8xf32> -> vector<2x8xf32>
    %c0_82 = arith.constant 0 : index
    %c0_83 = arith.constant 0 : index
    %c0_84 = arith.constant 0 : index
    %68 = vector.load %arg4[%c0_82, %c0_83, %c0_84] : memref<1x2x8xf32, #tpu.memory_space<vmem>>, vector<1x2x8xf32>
    %69 = vector.shape_cast %68 : vector<1x2x8xf32> to vector<2x8xf32>
    %70 = vector.shape_cast %67 : vector<2x8xf32> to vector<1x2x8xf32>
    tpu.vector_store %arg4[%c0_82, %c0_83, %c0_84], %70 {strides = array<i32>} : memref<1x2x8xf32, #tpu.memory_space<vmem>>, vector<1x2x8xf32>,
    return
  }
  func.func @transform_0(%arg0: i32) -> (i32, i32, i32, i32, i32) {
    %c0_i32 = arith.constant 0 : i32
    %c0_i32_0 = arith.constant 0 : i32
    %c0_i32_1 = arith.constant 0 : i32
    %c0_i32_2 = arith.constant 0 : i32
    %c0_i32_3 = arith.constant 0 : i32
    return %arg0, %c0_i32, %c0_i32_0, %c0_i32_1, %c0_i32_2 : i32, i32, i32, i32, i32
  }
  func.func @transform_1(%arg0: i32) -> (i32, i32) {
    %c0_i32 = arith.constant 0 : i32
    %c0_i32_0 = arith.constant 0 : i32
    %c0_i32_1 = arith.constant 0 : i32
    return %c0_i32, %c0_i32_0 : i32, i32
  }
  func.func @transform_2(%arg0: i32) -> (i32, i32, i32, i32) {
    %c0_i32 = arith.constant 0 : i32
    %c0_i32_0 = arith.constant 0 : i32
    %c0_i32_1 = arith.constant 0 : i32
    %c0_i32_2 = arith.constant 0 : i32
    return %arg0, %c0_i32, %c0_i32_0, %c0_i32_1 : i32, i32, i32, i32
  }
  func.func @transform_3(%arg0: i32) -> (i32, i32, i32) {
    %c0_i32 = arith.constant 0 : i32
    %c0_i32_0 = arith.constant 0 : i32
    %c0_i32_1 = arith.constant 0 : i32
    return %arg0, %c0_i32, %c0_i32_0 : i32, i32, i32
  }
}

module attributes {stable_mosaic.version = 11 : i64} {
  func.func @kernel(%arg0: i32, %arg1: memref<2x8x8x8xbf16, #tpu.memory_space<vmem>>, %arg2: memref<1x1x1x8xf32, #tpu.memory_space<vmem>>, %arg3: memref<1x1x1x8xf32, #tpu.memory_space<vmem>>, %arg4: memref<1152x8xbf16, #tpu.memory_space<vmem>>, %arg5: memref<2x8x8x8xbf16, #tpu.memory_space<vmem>>, %arg6: memref<1x2x8xf32, #tpu.memory_space<vmem>>, %arg7: memref<2x10x10x8xbf16, #tpu.memory_space<vmem>>, %arg8: memref<128x1152xbf16, #tpu.memory_space<vmem>>) attributes {dimension_semantics = [#tpu.dimension_semantics<parallel>], iteration_bounds = array<i64: 1>, scalar_prefetch = 0 : i64, scratch_operands = 2 : i64, tpu.core_type = #tpu.core_type<tc>, window_params = [{transform_indices = @transform_0, window_bounds = array<i64: 2, 8, 8, 8>}, {pipeline_mode = #tpu.pipeline_mode<synchronous>, transform_indices = @transform_1, window_bounds = array<i64: 1, 1, 1, 8>}, {pipeline_mode = #tpu.pipeline_mode<synchronous>, transform_indices = @transform_2, window_bounds = array<i64: 1, 1, 1, 8>}, {pipeline_mode = #tpu.pipeline_mode<synchronous>, transform_indices = @transform_3, window_bounds = array<i64: 1152, 8>}, {transform_indices = @transform_4, window_bounds = array<i64: 2, 8, 8, 8>}, {transform_indices = @transform_5, window_bounds = array<i64: 1, 2, 8>}]} {
    %c0 = arith.constant 0 : index
    %c0_0 = arith.constant 0 : index
    %c0_1 = arith.constant 0 : index
    %c0_2 = arith.constant 0 : index
    %0 = vector.load %arg1[%c0, %c0_0, %c0_1, %c0_2] : memref<2x8x8x8xbf16, #tpu.memory_space<vmem>>, vector<2x8x8x8xbf16>
    %1 = arith.extf %0 : vector<2x8x8x8xbf16> to vector<2x8x8x8xf32>
    %c0_3 = arith.constant 0 : index
    %c0_4 = arith.constant 0 : index
    %c0_5 = arith.constant 0 : index
    %c0_6 = arith.constant 0 : index
    %2 = vector.load %arg2[%c0_3, %c0_4, %c0_5, %c0_6] : memref<1x1x1x8xf32, #tpu.memory_space<vmem>>, vector<1x1x1x8xf32>
    %3 = vector.broadcast %2 : vector<1x1x1x8xf32> to vector<2x8x8x8xf32>
    %4 = arith.mulf %1, %3 : vector<2x8x8x8xf32>
    %c0_7 = arith.constant 0 : index
    %c0_8 = arith.constant 0 : index
    %c0_9 = arith.constant 0 : index
    %c0_10 = arith.constant 0 : index
    %5 = vector.load %arg3[%c0_7, %c0_8, %c0_9, %c0_10] : memref<1x1x1x8xf32, #tpu.memory_space<vmem>>, vector<1x1x1x8xf32>
    %6 = vector.broadcast %5 : vector<1x1x1x8xf32> to vector<2x8x8x8xf32>
    %7 = arith.addf %4, %6 : vector<2x8x8x8xf32>
    %cst = arith.constant 0.000000e+00 : f32
    %8 = vector.broadcast %cst : f32 to vector<2x8x8x8xf32>
    %9 = arith.cmpf ogt, %7, %8 : vector<2x8x8x8xf32>
    %cst_11 = arith.constant 0.00999999977 : f32
    %10 = vector.broadcast %cst_11 : f32 to vector<2x8x8x8xf32>
    %11 = arith.mulf %10, %7 : vector<2x8x8x8xf32>
    %12 = arith.select %9, %7, %11 : vector<2x8x8x8xi1>, vector<2x8x8x8xf32>
    %cst_12 = arith.constant 0.000000e+00 : bf16
    %13 = vector.broadcast %cst_12 : bf16 to vector<2x1x10x8xbf16>
    %c0_13 = arith.constant 0 : index
    %c0_14 = arith.constant 0 : index
    %c0_15 = arith.constant 0 : index
    %c0_16 = arith.constant 0 : index
    %14 = vector.load %arg7[%c0_13, %c0_14, %c0_15, %c0_16] : memref<2x10x10x8xbf16, #tpu.memory_space<vmem>>, vector<2x1x10x8xbf16>
    tpu.vector_store %arg7[%c0_13, %c0_14, %c0_15, %c0_16], %13 {strides = array<i32>} : memref<2x10x10x8xbf16, #tpu.memory_space<vmem>>, vector<2x1x10x8xbf16>,
    %cst_17 = arith.constant 0.000000e+00 : bf16
    %15 = vector.broadcast %cst_17 : bf16 to vector<2x1x10x8xbf16>
    %c0_18 = arith.constant 0 : index
    %c9 = arith.constant 9 : index
    %c0_19 = arith.constant 0 : index
    %c0_20 = arith.constant 0 : index
    %16 = vector.load %arg7[%c0_18, %c9, %c0_19, %c0_20] : memref<2x10x10x8xbf16, #tpu.memory_space<vmem>>, vector<2x1x10x8xbf16>
    tpu.vector_store %arg7[%c0_18, %c9, %c0_19, %c0_20], %15 {strides = array<i32>} : memref<2x10x10x8xbf16, #tpu.memory_space<vmem>>, vector<2x1x10x8xbf16>,
    %cst_21 = arith.constant 0.000000e+00 : bf16
    %17 = vector.broadcast %cst_21 : bf16 to vector<2x10x1x8xbf16>
    %c0_22 = arith.constant 0 : index
    %c0_23 = arith.constant 0 : index
    %c0_24 = arith.constant 0 : index
    %c0_25 = arith.constant 0 : index
    %18 = vector.load %arg7[%c0_22, %c0_23, %c0_24, %c0_25] : memref<2x10x10x8xbf16, #tpu.memory_space<vmem>>, vector<2x10x1x8xbf16>
    tpu.vector_store %arg7[%c0_22, %c0_23, %c0_24, %c0_25], %17 {strides = array<i32>} : memref<2x10x10x8xbf16, #tpu.memory_space<vmem>>, vector<2x10x1x8xbf16>,
    %cst_26 = arith.constant 0.000000e+00 : bf16
    %19 = vector.broadcast %cst_26 : bf16 to vector<2x10x1x8xbf16>
    %c0_27 = arith.constant 0 : index
    %c0_28 = arith.constant 0 : index
    %c9_29 = arith.constant 9 : index
    %c0_30 = arith.constant 0 : index
    %20 = vector.load %arg7[%c0_27, %c0_28, %c9_29, %c0_30] : memref<2x10x10x8xbf16, #tpu.memory_space<vmem>>, vector<2x10x1x8xbf16>
    tpu.vector_store %arg7[%c0_27, %c0_28, %c9_29, %c0_30], %19 {strides = array<i32>} : memref<2x10x10x8xbf16, #tpu.memory_space<vmem>>, vector<2x10x1x8xbf16>,
    %21 = arith.truncf %12 : vector<2x8x8x8xf32> to vector<2x8x8x8xbf16>
    %c0_31 = arith.constant 0 : index
    %c1 = arith.constant 1 : index
    %c1_32 = arith.constant 1 : index
    %c0_33 = arith.constant 0 : index
    %22 = vector.load %arg7[%c0_31, %c1, %c1_32, %c0_33] : memref<2x10x10x8xbf16, #tpu.memory_space<vmem>>, vector<2x8x8x8xbf16>
    tpu.vector_store %arg7[%c0_31, %c1, %c1_32, %c0_33], %21 {strides = array<i32>} : memref<2x10x10x8xbf16, #tpu.memory_space<vmem>>, vector<2x8x8x8xbf16>,
    %cst_34 = arith.constant 0.000000e+00 : bf16
    %23 = vector.broadcast %cst_34 : bf16 to vector<128x120xbf16>
    %c0_35 = arith.constant 0 : index
    %c0_36 = arith.constant 0 : index
    %c0_37 = arith.constant 0 : index
    %c0_38 = arith.constant 0 : index
    %24 = vector.load %arg7[%c0_35, %c0_36, %c0_37, %c0_38] : memref<2x10x10x8xbf16, #tpu.memory_space<vmem>>, vector<2x8x8x8xbf16>
    %25 = vector.shape_cast %24 : vector<2x8x8x8xbf16> to vector<128x8xbf16>
    %26 = tpu.concatenate %25, %23 in 1 : vector<128x8xbf16>, vector<128x120xbf16> -> vector<128x128xbf16>
    %c0_39 = arith.constant 0 : index
    %c0_40 = arith.constant 0 : index
    %27 = vector.load %arg8[%c0_39, %c0_40] : memref<128x1152xbf16, #tpu.memory_space<vmem>>, vector<128x128xbf16>
    tpu.vector_store %arg8[%c0_39, %c0_40], %26 {strides = array<i32>} : memref<128x1152xbf16, #tpu.memory_space<vmem>>, vector<128x128xbf16>,
    %c0_41 = arith.constant 0 : index
    %c0_42 = arith.constant 0 : index
    %c1_43 = arith.constant 1 : index
    %c0_44 = arith.constant 0 : index
    %28 = vector.load %arg7[%c0_41, %c0_42, %c1_43, %c0_44] : memref<2x10x10x8xbf16, #tpu.memory_space<vmem>>, vector<2x8x8x8xbf16>
    %29 = vector.shape_cast %28 : vector<2x8x8x8xbf16> to vector<128x8xbf16>
    %30 = tpu.concatenate %29, %23 in 1 : vector<128x8xbf16>, vector<128x120xbf16> -> vector<128x128xbf16>
    %c0_45 = arith.constant 0 : index
    %c128 = arith.constant 128 : index
    %31 = vector.load %arg8[%c0_45, %c128] : memref<128x1152xbf16, #tpu.memory_space<vmem>>, vector<128x128xbf16>
    tpu.vector_store %arg8[%c0_45, %c128], %30 {strides = array<i32>} : memref<128x1152xbf16, #tpu.memory_space<vmem>>, vector<128x128xbf16>,
    %c0_46 = arith.constant 0 : index
    %c0_47 = arith.constant 0 : index
    %c2 = arith.constant 2 : index
    %c0_48 = arith.constant 0 : index
    %32 = vector.load %arg7[%c0_46, %c0_47, %c2, %c0_48] : memref<2x10x10x8xbf16, #tpu.memory_space<vmem>>, vector<2x8x8x8xbf16>
    %33 = vector.shape_cast %32 : vector<2x8x8x8xbf16> to vector<128x8xbf16>
    %34 = tpu.concatenate %33, %23 in 1 : vector<128x8xbf16>, vector<128x120xbf16> -> vector<128x128xbf16>
    %c0_49 = arith.constant 0 : index
    %c256 = arith.constant 256 : index
    %35 = vector.load %arg8[%c0_49, %c256] : memref<128x1152xbf16, #tpu.memory_space<vmem>>, vector<128x128xbf16>
    tpu.vector_store %arg8[%c0_49, %c256], %34 {strides = array<i32>} : memref<128x1152xbf16, #tpu.memory_space<vmem>>, vector<128x128xbf16>,
    %c0_50 = arith.constant 0 : index
    %c1_51 = arith.constant 1 : index
    %c0_52 = arith.constant 0 : index
    %c0_53 = arith.constant 0 : index
    %36 = vector.load %arg7[%c0_50, %c1_51, %c0_52, %c0_53] : memref<2x10x10x8xbf16, #tpu.memory_space<vmem>>, vector<2x8x8x8xbf16>
    %37 = vector.shape_cast %36 : vector<2x8x8x8xbf16> to vector<128x8xbf16>
    %38 = tpu.concatenate %37, %23 in 1 : vector<128x8xbf16>, vector<128x120xbf16> -> vector<128x128xbf16>
    %c0_54 = arith.constant 0 : index
    %c384 = arith.constant 384 : index
    %39 = vector.load %arg8[%c0_54, %c384] : memref<128x1152xbf16, #tpu.memory_space<vmem>>, vector<128x128xbf16>
    tpu.vector_store %arg8[%c0_54, %c384], %38 {strides = array<i32>} : memref<128x1152xbf16, #tpu.memory_space<vmem>>, vector<128x128xbf16>,
    %c0_55 = arith.constant 0 : index
    %c1_56 = arith.constant 1 : index
    %c1_57 = arith.constant 1 : index
    %c0_58 = arith.constant 0 : index
    %40 = vector.load %arg7[%c0_55, %c1_56, %c1_57, %c0_58] : memref<2x10x10x8xbf16, #tpu.memory_space<vmem>>, vector<2x8x8x8xbf16>
    %41 = vector.shape_cast %40 : vector<2x8x8x8xbf16> to vector<128x8xbf16>
    %42 = tpu.concatenate %41, %23 in 1 : vector<128x8xbf16>, vector<128x120xbf16> -> vector<128x128xbf16>
    %c0_59 = arith.constant 0 : index
    %c512 = arith.constant 512 : index
    %43 = vector.load %arg8[%c0_59, %c512] : memref<128x1152xbf16, #tpu.memory_space<vmem>>, vector<128x128xbf16>
    tpu.vector_store %arg8[%c0_59, %c512], %42 {strides = array<i32>} : memref<128x1152xbf16, #tpu.memory_space<vmem>>, vector<128x128xbf16>,
    %c0_60 = arith.constant 0 : index
    %c1_61 = arith.constant 1 : index
    %c2_62 = arith.constant 2 : index
    %c0_63 = arith.constant 0 : index
    %44 = vector.load %arg7[%c0_60, %c1_61, %c2_62, %c0_63] : memref<2x10x10x8xbf16, #tpu.memory_space<vmem>>, vector<2x8x8x8xbf16>
    %45 = vector.shape_cast %44 : vector<2x8x8x8xbf16> to vector<128x8xbf16>
    %46 = tpu.concatenate %45, %23 in 1 : vector<128x8xbf16>, vector<128x120xbf16> -> vector<128x128xbf16>
    %c0_64 = arith.constant 0 : index
    %c640 = arith.constant 640 : index
    %47 = vector.load %arg8[%c0_64, %c640] : memref<128x1152xbf16, #tpu.memory_space<vmem>>, vector<128x128xbf16>
    tpu.vector_store %arg8[%c0_64, %c640], %46 {strides = array<i32>} : memref<128x1152xbf16, #tpu.memory_space<vmem>>, vector<128x128xbf16>,
    %c0_65 = arith.constant 0 : index
    %c2_66 = arith.constant 2 : index
    %c0_67 = arith.constant 0 : index
    %c0_68 = arith.constant 0 : index
    %48 = vector.load %arg7[%c0_65, %c2_66, %c0_67, %c0_68] : memref<2x10x10x8xbf16, #tpu.memory_space<vmem>>, vector<2x8x8x8xbf16>
    %49 = vector.shape_cast %48 : vector<2x8x8x8xbf16> to vector<128x8xbf16>
    %50 = tpu.concatenate %49, %23 in 1 : vector<128x8xbf16>, vector<128x120xbf16> -> vector<128x128xbf16>
    %c0_69 = arith.constant 0 : index
    %c768 = arith.constant 768 : index
    %51 = vector.load %arg8[%c0_69, %c768] : memref<128x1152xbf16, #tpu.memory_space<vmem>>, vector<128x128xbf16>
    tpu.vector_store %arg8[%c0_69, %c768], %50 {strides = array<i32>} : memref<128x1152xbf16, #tpu.memory_space<vmem>>, vector<128x128xbf16>,
    %c0_70 = arith.constant 0 : index
    %c2_71 = arith.constant 2 : index
    %c1_72 = arith.constant 1 : index
    %c0_73 = arith.constant 0 : index
    %52 = vector.load %arg7[%c0_70, %c2_71, %c1_72, %c0_73] : memref<2x10x10x8xbf16, #tpu.memory_space<vmem>>, vector<2x8x8x8xbf16>
    %53 = vector.shape_cast %52 : vector<2x8x8x8xbf16> to vector<128x8xbf16>
    %54 = tpu.concatenate %53, %23 in 1 : vector<128x8xbf16>, vector<128x120xbf16> -> vector<128x128xbf16>
    %c0_74 = arith.constant 0 : index
    %c896 = arith.constant 896 : index
    %55 = vector.load %arg8[%c0_74, %c896] : memref<128x1152xbf16, #tpu.memory_space<vmem>>, vector<128x128xbf16>
    tpu.vector_store %arg8[%c0_74, %c896], %54 {strides = array<i32>} : memref<128x1152xbf16, #tpu.memory_space<vmem>>, vector<128x128xbf16>,
    %c0_75 = arith.constant 0 : index
    %c2_76 = arith.constant 2 : index
    %c2_77 = arith.constant 2 : index
    %c0_78 = arith.constant 0 : index
    %56 = vector.load %arg7[%c0_75, %c2_76, %c2_77, %c0_78] : memref<2x10x10x8xbf16, #tpu.memory_space<vmem>>, vector<2x8x8x8xbf16>
    %57 = vector.shape_cast %56 : vector<2x8x8x8xbf16> to vector<128x8xbf16>
    %58 = tpu.concatenate %57, %23 in 1 : vector<128x8xbf16>, vector<128x120xbf16> -> vector<128x128xbf16>
    %c0_79 = arith.constant 0 : index
    %c1024 = arith.constant 1024 : index
    %59 = vector.load %arg8[%c0_79, %c1024] : memref<128x1152xbf16, #tpu.memory_space<vmem>>, vector<128x128xbf16>
    tpu.vector_store %arg8[%c0_79, %c1024], %58 {strides = array<i32>} : memref<128x1152xbf16, #tpu.memory_space<vmem>>, vector<128x128xbf16>,
    %c0_80 = arith.constant 0 : index
    %c0_81 = arith.constant 0 : index
    %60 = vector.load %arg8[%c0_80, %c0_81] : memref<128x1152xbf16, #tpu.memory_space<vmem>>, vector<128x1152xbf16>
    %c0_82 = arith.constant 0 : index
    %c0_83 = arith.constant 0 : index
    %61 = vector.load %arg4[%c0_82, %c0_83] : memref<1152x8xbf16, #tpu.memory_space<vmem>>, vector<1152x8xbf16>
    %cst_84 = arith.constant dense<0.000000e+00> : vector<128x8xf32>
    %62 = tpu.matmul %60, %61, %cst_84 {dimension_numbers = #tpu.dot_dimension_numbers<[1], [0], [0], [1], [0, 0, 1, 1], [], []>} : vector<128x1152xbf16>, vector<1152x8xbf16>, vector<128x8xf32> -> vector<128x8xf32>
    %63 = vector.shape_cast %62 : vector<128x8xf32> to vector<2x8x8x8xf32>
    %64 = arith.truncf %63 : vector<2x8x8x8xf32> to vector<2x8x8x8xbf16>
    %c0_85 = arith.constant 0 : index
    %c0_86 = arith.constant 0 : index
    %c0_87 = arith.constant 0 : index
    %c0_88 = arith.constant 0 : index
    %65 = vector.load %arg5[%c0_85, %c0_86, %c0_87, %c0_88] : memref<2x8x8x8xbf16, #tpu.memory_space<vmem>>, vector<2x8x8x8xbf16>
    tpu.vector_store %arg5[%c0_85, %c0_86, %c0_87, %c0_88], %64 {strides = array<i32>} : memref<2x8x8x8xbf16, #tpu.memory_space<vmem>>, vector<2x8x8x8xbf16>,
    %cst_89 = arith.constant dense<0.000000e+00> : vector<8xf32>
    %66 = vector.multi_reduction <add>, %62, %cst_89 [0] : vector<128x8xf32> to vector<8xf32>
    %67 = vector.shape_cast %66 : vector<8xf32> to vector<1x8xf32>
    %68 = arith.mulf %62, %62 : vector<128x8xf32>
    %cst_90 = arith.constant dense<0.000000e+00> : vector<8xf32>
    %69 = vector.multi_reduction <add>, %68, %cst_90 [0] : vector<128x8xf32> to vector<8xf32>
    %70 = vector.shape_cast %69 : vector<8xf32> to vector<1x8xf32>
    %71 = tpu.concatenate %67, %70 in 0 : vector<1x8xf32>, vector<1x8xf32> -> vector<2x8xf32>
    %c0_91 = arith.constant 0 : index
    %c0_92 = arith.constant 0 : index
    %c0_93 = arith.constant 0 : index
    %72 = vector.load %arg6[%c0_91, %c0_92, %c0_93] : memref<1x2x8xf32, #tpu.memory_space<vmem>>, vector<1x2x8xf32>
    %73 = vector.shape_cast %72 : vector<1x2x8xf32> to vector<2x8xf32>
    %74 = vector.shape_cast %71 : vector<2x8xf32> to vector<1x2x8xf32>
    tpu.vector_store %arg6[%c0_91, %c0_92, %c0_93], %74 {strides = array<i32>} : memref<1x2x8xf32, #tpu.memory_space<vmem>>, vector<1x2x8xf32>,
    return
  }
  func.func @transform_0(%arg0: i32) -> (i32, i32, i32, i32) {
    %c0_i32 = arith.constant 0 : i32
    %c0_i32_0 = arith.constant 0 : i32
    %c0_i32_1 = arith.constant 0 : i32
    %c0_i32_2 = arith.constant 0 : i32
    return %arg0, %c0_i32, %c0_i32_0, %c0_i32_1 : i32, i32, i32, i32
  }
  func.func @transform_1(%arg0: i32) -> (i32, i32, i32, i32) {
    %c0_i32 = arith.constant 0 : i32
    %c0_i32_0 = arith.constant 0 : i32
    %c0_i32_1 = arith.constant 0 : i32
    %c0_i32_2 = arith.constant 0 : i32
    %c0_i32_3 = arith.constant 0 : i32
    return %c0_i32, %c0_i32_0, %c0_i32_1, %c0_i32_2 : i32, i32, i32, i32
  }
  func.func @transform_2(%arg0: i32) -> (i32, i32, i32, i32) {
    %c0_i32 = arith.constant 0 : i32
    %c0_i32_0 = arith.constant 0 : i32
    %c0_i32_1 = arith.constant 0 : i32
    %c0_i32_2 = arith.constant 0 : i32
    %c0_i32_3 = arith.constant 0 : i32
    return %c0_i32, %c0_i32_0, %c0_i32_1, %c0_i32_2 : i32, i32, i32, i32
  }
  func.func @transform_3(%arg0: i32) -> (i32, i32) {
    %c0_i32 = arith.constant 0 : i32
    %c0_i32_0 = arith.constant 0 : i32
    %c0_i32_1 = arith.constant 0 : i32
    return %c0_i32, %c0_i32_0 : i32, i32
  }
  func.func @transform_4(%arg0: i32) -> (i32, i32, i32, i32) {
    %c0_i32 = arith.constant 0 : i32
    %c0_i32_0 = arith.constant 0 : i32
    %c0_i32_1 = arith.constant 0 : i32
    %c0_i32_2 = arith.constant 0 : i32
    return %arg0, %c0_i32, %c0_i32_0, %c0_i32_1 : i32, i32, i32, i32
  }
  func.func @transform_5(%arg0: i32) -> (i32, i32, i32) {
    %c0_i32 = arith.constant 0 : i32
    %c0_i32_0 = arith.constant 0 : i32
    %c0_i32_1 = arith.constant 0 : i32
    return %arg0, %c0_i32, %c0_i32_0 : i32, i32, i32
  }
}

module attributes {stable_mosaic.version = 11 : i64} {
  func.func @_bn_act_kernel(%arg0: i32, %arg1: memref<8x128xbf16, #tpu.memory_space<vmem>>, %arg2: memref<1x128xf32, #tpu.memory_space<vmem>>, %arg3: memref<1x128xf32, #tpu.memory_space<vmem>>, %arg4: memref<8x128xf32, #tpu.memory_space<vmem>>) attributes {dimension_semantics = [#tpu.dimension_semantics<parallel>], iteration_bounds = array<i64: 1>, scalar_prefetch = 0 : i64, scratch_operands = 0 : i64, tpu.core_type = #tpu.core_type<tc>, window_params = [{transform_indices = @transform_0, window_bounds = array<i64: 8, 128>}, {pipeline_mode = #tpu.pipeline_mode<synchronous>, transform_indices = @transform_1, window_bounds = array<i64: 1, 128>}, {pipeline_mode = #tpu.pipeline_mode<synchronous>, transform_indices = @transform_2, window_bounds = array<i64: 1, 128>}, {transform_indices = @transform_3, window_bounds = array<i64: 8, 128>}]} {
    %c0 = arith.constant 0 : index
    %c0_0 = arith.constant 0 : index
    %0 = vector.load %arg1[%c0, %c0_0] : memref<8x128xbf16, #tpu.memory_space<vmem>>, vector<8x128xbf16>
    %1 = arith.extf %0 : vector<8x128xbf16> to vector<8x128xf32>
    %c0_1 = arith.constant 0 : index
    %c0_2 = arith.constant 0 : index
    %2 = vector.load %arg2[%c0_1, %c0_2] : memref<1x128xf32, #tpu.memory_space<vmem>>, vector<1x128xf32>
    %3 = vector.broadcast %2 : vector<1x128xf32> to vector<8x128xf32>
    %4 = arith.mulf %1, %3 : vector<8x128xf32>
    %c0_3 = arith.constant 0 : index
    %c0_4 = arith.constant 0 : index
    %5 = vector.load %arg3[%c0_3, %c0_4] : memref<1x128xf32, #tpu.memory_space<vmem>>, vector<1x128xf32>
    %6 = vector.broadcast %5 : vector<1x128xf32> to vector<8x128xf32>
    %7 = arith.addf %4, %6 : vector<8x128xf32>
    %cst = arith.constant 0.000000e+00 : f32
    %8 = vector.broadcast %cst : f32 to vector<8x128xf32>
    %9 = arith.cmpf ogt, %7, %8 : vector<8x128xf32>
    %cst_5 = arith.constant 0.00999999977 : f32
    %10 = vector.broadcast %cst_5 : f32 to vector<8x128xf32>
    %11 = arith.mulf %10, %7 : vector<8x128xf32>
    %12 = arith.select %9, %7, %11 : vector<8x128xi1>, vector<8x128xf32>
    %c0_6 = arith.constant 0 : index
    %c0_7 = arith.constant 0 : index
    %13 = vector.load %arg4[%c0_6, %c0_7] : memref<8x128xf32, #tpu.memory_space<vmem>>, vector<8x128xf32>
    tpu.vector_store %arg4[%c0_6, %c0_7], %12 {strides = array<i32>} : memref<8x128xf32, #tpu.memory_space<vmem>>, vector<8x128xf32>,
    return
  }
  func.func @transform_0(%arg0: i32) -> (i32, i32) {
    %c0_i32 = arith.constant 0 : i32
    %c0_i32_0 = arith.constant 0 : i32
    return %arg0, %c0_i32 : i32, i32
  }
  func.func @transform_1(%arg0: i32) -> (i32, i32) {
    %c0_i32 = arith.constant 0 : i32
    %c0_i32_0 = arith.constant 0 : i32
    %c0_i32_1 = arith.constant 0 : i32
    return %c0_i32, %c0_i32_0 : i32, i32
  }
  func.func @transform_2(%arg0: i32) -> (i32, i32) {
    %c0_i32 = arith.constant 0 : i32
    %c0_i32_0 = arith.constant 0 : i32
    %c0_i32_1 = arith.constant 0 : i32
    return %c0_i32, %c0_i32_0 : i32, i32
  }
  func.func @transform_3(%arg0: i32) -> (i32, i32) {
    %c0_i32 = arith.constant 0 : i32
    %c0_i32_0 = arith.constant 0 : i32
    return %arg0, %c0_i32 : i32, i32
  }
}

</mosaic_0001>

<bundles_post_ra>
// kernel: tile.13
= control target key start
LH: loop header
LB: loop body
LE: loop exit
PB: predicated region body
PF: predicated region fallthrough
CT: control target
= control target key end

     0   :  { %s28_s0 = inlined_call_operand.vmem [shape: f32[8], index: 0, kind: input, shape index: {}]   ;;  %s29_s1 = inlined_call_operand.vmem [shape: f32[16,8], index: 1, kind: output, shape index: {}]  }
   0x1   :  { %v4_v0 = vld [vmem:[%s28_s0] ss:$0 sm:$0xff] }
   0x2   :  { %5 = vst [vmem:[%s29_s1] sm:$0xff] %v4_v0  ;;  %8 = vst [vmem:[%s29_s1 + $0x8] sm:$0xff] %v4_v0 }

// kernel: tile.14
= control target key start
LH: loop header
LB: loop body
LE: loop exit
PB: predicated region body
PF: predicated region fallthrough
CT: control target
= control target key end

     0   :  { %s131_s10 = smov 120   ;;  %s132_s11 = smov 104   ;;  %vm3_vm0 = vcmask 64512   ;;  %vm9_vm1 = vcmask 1048512   ;;  %vm15_vm2 = vcmask 982912   ;;  %vm21_vm3 = vcmask 917312   ;;  %s207_s0 = inlined_call_operand.vmem [shape: f32[16,8], index: 0, kind: input, shape index: {}]   ;;  %s208_s1 = inlined_call_operand.vmem [shape: f32[1,128], index: 1, kind: output, shape index: {}]  }
   0x1   :  { %v101_v0 = vld [vmem:[%s207_s0 + $0xf] sm:$0x1]   ;;  %v103_v1 = vld [vmem:[%s207_s0 + $0xd] sm:$0x1]   ;;  %v102_v2 = vld [vmem:[%s207_s0 + $0xe] sm:$0x1]  }
   0x2   :  { %7 = vrot.lane.b32.xlu0 %v101_v0, %s131_s10  ;;  %19 = vrot.lane.b32.xlu1 %v103_v1, %s132_s11  ;;  %v104_v3 = vld [vmem:[%s207_s0 + $0xc] sm:$0x1]   ;;  %s133_s16 = smov 112   ;;  %s134_s17 = smov 96   ;;  %v105_v4 = vld [vmem:[%s207_s0 + $0xb] sm:$0x1]  }
   0x3   :  { %v106_v5 = vld [vmem:[%s207_s0 + $0xa] sm:$0x1]   ;;  %v2_v6 = vld [vmem:[%s207_s0] sm:$0x1]   ;;  %s135_s24 = smov 88   ;;  %s136_s25 = smov 80  }
   0x4   :  { %4 = vst.msk [vmem:[#allocation0] sm:$0x1] %vm3_vm0, %v2_v6   ;;  %v107_v7 = vld [vmem:[%s207_s0 + $0x9] sm:$0x1]   ;;  %v108_v8 = vld [vmem:[%s207_s0 + $0x8] sm:$0x1]  }
   0x5   :  { %s137_s30 = smov 72   ;;  %s138_s2 = smov 64   ;;  %v109_v9 = vld [vmem:[%s207_s0 + $0x7] sm:$0x1]   ;;  %v110_v10 = vld [vmem:[%s207_s0 + $0x6] sm:$0x1]  }
   0x6   :  { %13 = vrot.lane.b32.xlu0 %v102_v2, %s133_s16  ;;  %25 = vrot.lane.b32.xlu1 %v104_v3, %s134_s17  ;;  %s139_s7 = smov 56   ;;  %s140_s8 = smov 48   ;;  %v111_v11 = vld [vmem:[%s207_s0 + $0x5] sm:$0x1]   ;;  %v112_v12 = vld [vmem:[%s207_s0 + $0x4] sm:$0x1]  }
   0x7   :  { %s141_s13 = smov 40   ;;  %s142_s14 = smov 32   ;;  %v113_v13 = vld [vmem:[%s207_s0 + $0x3] sm:$0x1]   ;;  %v114_v14 = vld [vmem:[%s207_s0 + $0x2] sm:$0x1]  }
   0x8   :  { %s143_s19 = smov 24   ;;  %s144_s20 = smov 16   ;;  %v115_v15 = vld [vmem:[%s207_s0 + $0x1] sm:$0x1]   ;;  %vm27_vm4 = vcmask 851712   ;;  %vm33_vm5 = vcmask 786112  }
   0x9   :  { %s145_s0 = smov 8   ;;  %vm39_vm6 = vcmask 720512   ;;  %vm45_vm7 = vcmask 654912   ;;  %vm51_vm8 = vcmask 589312   ;;  %vm57_vm9 = vcmask 523712  }
   0xa   :  { %31 = vrot.lane.b32.xlu0 %v105_v4, %s135_s24  ;;  %37 = vrot.lane.b32.xlu1 %v106_v5, %s136_s25  ;;  %vm63_vm10 = vcmask 458112   ;;  %vm69_vm11 = vcmask 392512   ;;  %vm75_vm12 = vcmask 326912   ;;  %vm81_vm13 = vcmask 261312  }
   0xb   :  { %vm87_vm14 = vcmask 195712   ;;  %vm93_vm15 = vcmask 130112  }
   0xe   :  { %43 = vrot.lane.b32.xlu0 %v107_v7, %s137_s30  ;;  %49 = vrot.lane.b32.xlu1 %v108_v8, %s138_s2 }
  0x12   :  { %55 = vrot.lane.b32.xlu0 %v109_v9, %s139_s7  ;;  %61 = vrot.lane.b32.xlu1 %v110_v10, %s140_s8 }
  0x16   :  { %67 = vrot.lane.b32.xlu0 %v111_v11, %s141_s13  ;;  %73 = vrot.lane.b32.xlu1 %v112_v12, %s142_s14 }
  0x1a   :  { %79 = vrot.lane.b32.xlu0 %v113_v13, %s143_s19  ;;  %85 = vrot.lane.b32.xlu1 %v114_v14, %s144_s20 }
  0x1e   :  { %91 = vrot.lane.b32.xlu0 %v115_v15, %s145_s0 }
  0x74   :  { %v8_v16 = vpop.permute.xlu0 %7   ;;  %v20_v17 = vpop.permute.xlu1 %19  }
  0x75   :  { %10 = vst.msk [vmem:[#allocation0] sm:$0x1] %vm9_vm1, %v8_v16  }
  0x78   :  { %v14_v18 = vpop.permute.xlu0 %13   ;;  %v26_v19 = vpop.permute.xlu1 %25  }
  0x79   :  { %16 = vst.msk [vmem:[#allocation0] sm:$0x1] %vm15_vm2, %v14_v18  }
  0x7a   :  { %22 = vst.msk [vmem:[#allocation0] sm:$0x1] %vm21_vm3, %v20_v17  }
  0x7b   :  { %28 = vst.msk [vmem:[#allocation0] sm:$0x1] %vm27_vm4, %v26_v19  }
  0x7c   :  { %v32_v20 = vpop.permute.xlu0 %31   ;;  %v38_v21 = vpop.permute.xlu1 %37  }
  0x7d   :  { %34 = vst.msk [vmem:[#allocation0] sm:$0x1] %vm33_vm5, %v32_v20  }
  0x7e   :  { %40 = vst.msk [vmem:[#allocation0] sm:$0x1] %vm39_vm6, %v38_v21  }
  0x80   :  { %v44_v22 = vpop.permute.xlu0 %43   ;;  %v50_v23 = vpop.permute.xlu1 %49  }
  0x81   :  { %46 = vst.msk [vmem:[#allocation0] sm:$0x1] %vm45_vm7, %v44_v22  }
  0x82   :  { %52 = vst.msk [vmem:[#allocation0] sm:$0x1] %vm51_vm8, %v50_v23  }
  0x84   :  { %v56_v24 = vpop.permute.xlu0 %55   ;;  %v62_v25 = vpop.permute.xlu1 %61  }
  0x85   :  { %58 = vst.msk [vmem:[#allocation0] sm:$0x1] %vm57_vm9, %v56_v24  }
  0x86   :  { %64 = vst.msk [vmem:[#allocation0] sm:$0x1] %vm63_vm10, %v62_v25  }
  0x88   :  { %v68_v26 = vpop.permute.xlu0 %67   ;;  %v74_v27 = vpop.permute.xlu1 %73  }
  0x89   :  { %70 = vst.msk [vmem:[#allocation0] sm:$0x1] %vm69_vm11, %v68_v26  }
  0x8a   :  { %76 = vst.msk [vmem:[#allocation0] sm:$0x1] %vm75_vm12, %v74_v27  }
  0x8c   :  { %v80_v28 = vpop.permute.xlu0 %79   ;;  %v86_v29 = vpop.permute.xlu1 %85  }
  0x8d   :  { %82 = vst.msk [vmem:[#allocation0] sm:$0x1] %vm81_vm13, %v80_v28  }
  0x8e   :  { %88 = vst.msk [vmem:[#allocation0] sm:$0x1] %vm87_vm14, %v86_v29  }
  0x90   :  { %v92_v30 = vpop.permute.xlu0 %91  }
  0x91   :  { %94 = vst.msk [vmem:[#allocation0] sm:$0x1] %vm93_vm15, %v92_v30  }
  0x98   :  { %v98_v31 = vld [vmem:[#allocation0] sm:$0x1] }
  0x99   :  { %100 = vst [vmem:[%s208_s1] sm:$0x1] %v98_v31 }

// kernel: down_forward.5
= control target key start
LH: loop header
LB: loop body
LE: loop exit
PB: predicated region body
PF: predicated region fallthrough
CT: control target
= control target key end

     0   :  { %s74_s0 = inlined_call_operand.vmem [shape: bf16[8,128], index: 0, kind: input, shape index: {}]   ;;  %s75_s1 = inlined_call_operand.vmem [shape: f32[1,128], index: 1, kind: input, shape index: {}]   ;;  %s76_s2 = inlined_call_operand.vmem [shape: f32[1,128], index: 2, kind: input, shape index: {}]   ;;  %s77_s3 = inlined_call_operand.vmem [shape: f32[8,128], index: 3, kind: output, shape index: {}]  }
   0x1   :  { %v14_v0 = vld [vmem:[%s74_s0] sm:$0xf] }
   0x2   :  { %v40_v1 = vld [vmem:[%s75_s1] ss:$0 sm:$0xff]  ;;  %v15_v2 = vunpack.c.l.bf16 %v14_v0 }
   0x3   :  { %v41_v3 = vld [vmem:[%s76_s2] ss:$0 sm:$0xff] }
   0x4   :  { %v23_v4 = vmul.f32 %v40_v1, %v15_v2 }
   0x6   :  { %v31_v5 = vadd.f32 %v41_v3, %v23_v4 }
   0x8   :  { %vm32_vm0 = vcmp.gt.f32.partialorder %v31_v5, 0.0  ;;  %v33_v6 = vmul.f32 0.01, %v31_v5 }
   0xa   :  { %v34_v7 = vsel %vm32_vm0, %v31_v5, %v33_v6 }
   0xb   :  { %35 = vst [vmem:[%s77_s3] sm:$0xff] %v34_v7 }

// kernel: down_forward.4
= control target key start
LH: loop header
LB: loop body
LE: loop exit
PB: predicated region body
PF: predicated region fallthrough
CT: control target
= control target key end

     0   :  { %vm146_vm0 = vcmask 60416   ;;  %vm148_vm1 = vcmask 57344   ;;  %v4389_v3 = vmov 0   ;;  %vm158_vm2 = vsmask.f32 256  ;;  %s5571_s3 = inlined_call_operand.vmem [shape: bf16[1152,8], index: 3, kind: input, shape index: {}]   ;;  %s5572_s0 = inlined_call_operand.vmem [shape: bf16[2,8,8,8], index: 0, kind: input, shape index: {}]   ;;  %s5573_s1 = inlined_call_operand.vmem [shape: f32[1,1,1,8], index: 1, kind: input, shape index: {}]   ;;  %s5574_s2 = inlined_call_operand.vmem [shape: f32[1,1,1,8], index: 2, kind: input, shape index: {}]   ;;  %s5575_s4 = inlined_call_operand.vmem [shape: bf16[2,8,8,8], index: 4, kind: output, shape index: {0}]   ;;  %s5576_s5 = inlined_call_operand.vmem [shape: f32[1,2,8], index: 5, kind: output, shape index: {1}]  }
   0x1   :  { %v4291_v0 = vld [vmem:[%s5571_s3 + $0xc0] sm:$0xff]   ;;  %147 = vst.msk [vmem:[#allocation2] sm:$0xf] %vm146_vm0, %v4389_v3  ;;  %150 = vst.msk [vmem:[#allocation2 + $0x50] sm:$0xf] %vm146_vm0, %v4389_v3  ;;  %v4295_v5 = vld [vmem:[%s5571_s3 + $0xc8] sm:$0xff]  }
   0x2   :  { %v4292_v1 = vld [vmem:[%s5571_s3 + $0x80] sm:$0xff]   ;;  %4034 = vmatprep.subr.bf16.mxu1 %v4291_v0  ;;  %149 = vst.msk [vmem:[#allocation2 + $0x4] sm:$0x1] %vm148_vm1, %v4389_v3  ;;  %151 = vst.msk [vmem:[#allocation2 + $0x54] sm:$0x1] %vm148_vm1, %v4389_v3  ;;  %v4296_v6 = vld [vmem:[%s5571_s3 + $0x88] sm:$0xff]  }
   0x3   :  { %v4293_v2 = vld [vmem:[%s5571_s3 + $0x40] sm:$0xff]   ;;  %153 = vst.msk [vmem:[#allocation2 + $0x48] sm:$0xf] %vm146_vm0, %v4389_v3  ;;  %155 = vst.msk [vmem:[#allocation2 + $0x98] sm:$0xf] %vm146_vm0, %v4389_v3  ;;  %4035 = vmatpush3.bf16.msra.mxu1 %v4292_v1  ;;  %v4297_v7 = vld [vmem:[%s5571_s3 + $0x48] sm:$0xff]  }
   0x4   :  { %154 = vst.msk [vmem:[#allocation2 + $0x4c] sm:$0x1] %vm148_vm1, %v4389_v3  ;;  %156 = vst.msk [vmem:[#allocation2 + $0x9c] sm:$0x1] %vm148_vm1, %v4389_v3  ;;  %v4294_v4 = vld [vmem:[%s5571_s3] sm:$0xff]   ;;  %3970 = vmatprep.subr.bf16.mxu0 %v4293_v2  ;;  %4036 = vmatprep.subr.bf16.mxu1 %v4295_v5  ;;  %v4298_v8 = vld [vmem:[%s5571_s3 + $0x8] sm:$0xff]  }
   0x5   :  { %3971 = vmatpush3.bf16.msra.mxu0 %v4294_v4  ;;  %v4299_v9 = vld [vmem:[%s5571_s3 + $0xd0] sm:$0xff]   ;;  %v4303_v13 = vld [vmem:[%s5571_s3 + $0xd8] sm:$0xff]   ;;  %v4307_v17 = vld [vmem:[%s5571_s3 + $0xe0] sm:$0xff]   ;;  %vm220_vm4 = vsmask.f32 7938  ;;  %vm1074_vm8 = vcmask 1042432  }
   0x6   :  { %3972 = vmatprep.subr.bf16.mxu0 %v4297_v7  ;;  %v4300_v10 = vld [vmem:[%s5571_s3 + $0x90] sm:$0xff]   ;;  %v4304_v14 = vld [vmem:[%s5571_s3 + $0x98] sm:$0xff]   ;;  %v4308_v18 = vld [vmem:[%s5571_s3 + $0xa0] sm:$0xff]   ;;  %vm1075_vm9 = vcmask 1046532   ;;  %vm727_vm10 = vsmask.f32 3328 }
   0x7   :  { %4037 = vmatpush3.bf16.msra.mxu1 %v4296_v6  ;;  %v4301_v11 = vld [vmem:[%s5571_s3 + $0x50] sm:$0xff]   ;;  %v4305_v15 = vld [vmem:[%s5571_s3 + $0x58] sm:$0xff]   ;;  %v4309_v19 = vld [vmem:[%s5571_s3 + $0x60] sm:$0xff]   ;;  %vm728_vm11 = vsmask.f32 7440 }
   0x8   :  { %4038 = vmatprep.subr.bf16.mxu1 %v4299_v9  ;;  %v4302_v12 = vld [vmem:[%s5571_s3 + $0x10] sm:$0xff]   ;;  %v4306_v16 = vld [vmem:[%s5571_s3 + $0x18] sm:$0xff]   ;;  %v4310_v20 = vld [vmem:[%s5571_s3 + $0x20] sm:$0xff]  }
   0x9   :  { %3973 = vmatpush3.bf16.msra.mxu0 %v4298_v8  ;;  %v4311_v21 = vld [vmem:[%s5571_s3 + $0xe8] sm:$0xff]   ;;  %v4315_v25 = vld [vmem:[%s5571_s3 + $0xf0] sm:$0xff]   ;;  %v4319_v29 = vld [vmem:[%s5571_s3 + $0xf8] sm:$0xff]  }
   0xa   :  { %3974 = vmatprep.subr.bf16.mxu0 %v4301_v11  ;;  %v4312_v22 = vld [vmem:[%s5571_s3 + $0xa8] sm:$0xff]   ;;  %v4316_v26 = vld [vmem:[%s5571_s3 + $0xb0] sm:$0xff]   ;;  %v4320_v31 = vld [vmem:[%s5571_s3 + $0xb8] sm:$0xff]  }
   0xb   :  { %4039 = vmatpush3.bf16.msra.mxu1 %v4300_v10  ;;  %v4313_v23 = vld [vmem:[%s5571_s3 + $0x68] sm:$0xff]   ;;  %v4317_v27 = vld [vmem:[%s5571_s3 + $0x70] sm:$0xff]   ;;  %v4321_v32 = vld [vmem:[%s5571_s3 + $0x78] sm:$0xff]  }
   0xc   :  { %4040 = vmatprep.subr.bf16.mxu1 %v4303_v13  ;;  %v4314_v24 = vld [vmem:[%s5571_s3 + $0x28] sm:$0xff]   ;;  %v4318_v28 = vld [vmem:[%s5571_s3 + $0x30] sm:$0xff]   ;;  %v3860_v33 = vld [vmem:[%s5572_s0] sm:$0xff]  }
   0xd   :  { %3975 = vmatpush3.bf16.msra.mxu0 %v4302_v12  ;;  %v163_v30 = vld [vmem:[#allocation2 + $0x8] sm:$0x1]  ;;  %v4527_v34 = vld [vmem:[%s5573_s1] ss:$0 sm:$0xff]  ;;  %v3861_v36 = vunpack.c.l.bf16 %v3860_v33  ;;  %v3862_v37 = vunpack.c.h.bf16 %v3860_v33  ;;  %vm4536_vm3 = vmand %vm148_vm1, %vm158_vm2 }
   0xe   :  { %3976 = vmatprep.subr.bf16.mxu0 %v4305_v15  ;;  %v4532_v35 = vld [vmem:[%s5574_s2] ss:$0 sm:$0xff]  ;;  %v166_v39 = vld [vmem:[#allocation2 + $0x10] sm:$0x1]  ;;  %v164_v40 = vsel %vm4536_vm3, 0, %v163_v30  ;;  %vm4546_vm5 = vmand %vm148_vm1, %vm220_vm4  ;;  %vm661_vm1 = vcmask 64512  }
   0xf   :  { %4041 = vmatpush3.bf16.msra.mxu1 %v4304_v14  ;;  %v167_v41 = vsel %vm4536_vm3, 0, %v166_v39  ;;  %v4323_v43 = vld [vmem:[%s5571_s3 + $0x38] sm:$0xff]   ;;  %v59_v44 = vmul.f32 %v3861_v36, %v4527_v34  ;;  %v60_v45 = vmul.f32 %v3862_v37, %v4527_v34  ;;  %165 = vst [vmem:[#allocation2 + $0x8] sm:$0x1] %v164_v40  ;;  %v222_v46 = vld [vmem:[#allocation2 + $0x4] sm:$0x1]  ;;  %vm4588_vm12 = vmand %vm146_vm0, %vm220_vm4 }
  0x10   :  { %4042 = vmatprep.subr.bf16.mxu1 %v4307_v17  ;;  %168 = vst [vmem:[#allocation2 + $0x10] sm:$0x1] %v167_v41  ;;  %v225_v47 = vld [vmem:[#allocation2 + $0xc] sm:$0x1]  ;;  %v223_v48 = vsel %vm4546_vm5, 0, %v222_v46  ;;  %v4324_v54 = vld [vmem:[%s5571_s3 + $0x140] sm:$0xff]   ;;  %vm4622_vm15 = vmor %vm1074_vm8, %vm1075_vm9 }
  0x11   :  { %3977 = vmatpush3.bf16.msra.mxu0 %v4306_v16  ;;  %v226_v49 = vsel %vm4546_vm5, 0, %v225_v47  ;;  %v160_v50 = vld [vmem:[#allocation2] sm:$0x1]  ;;  %v82_v51 = vadd.f32 %v4532_v35, %v59_v44  ;;  %v83_v52 = vadd.f32 %v4532_v35, %v60_v45  ;;  %224 = vst [vmem:[#allocation2 + $0x4] sm:$0x1] %v223_v48  ;;  %v3891_v57 = vld [vmem:[%s5572_s0 + $0x8] sm:$0xff]   ;;  %vm4629_vm2 = vmor %vm727_vm10, %vm728_vm11 }
  0x12   :  { %3978 = vmatprep.subr.bf16.mxu0 %v4309_v19  ;;  %227 = vst [vmem:[#allocation2 + $0xc] sm:$0x1] %v226_v49  ;;  %v161_v53 = vsel %vm4536_vm3, 0, %v160_v50  ;;  %v169_v58 = vld [vmem:[#allocation2 + $0x18] sm:$0x1]  ;;  %v3865_v61 = vunpack.c.l.bf16 %v3891_v57  ;;  %v3866_v62 = vunpack.c.h.bf16 %v3891_v57  ;;  %v3892_v40 = vld [vmem:[%s5572_s0 + $0x10] sm:$0xff]  }
  0x13   :  { %4043 = vmatpush3.bf16.msra.mxu1 %v4308_v18  ;;  %162 = vst [vmem:[#allocation2] sm:$0x1] %v161_v53  ;;  %vm98_vm6 = vcmp.gt.f32.partialorder %v82_v51, 0.0  ;;  %vm99_vm7 = vcmp.gt.f32.partialorder %v83_v52, 0.0  ;;  %v114_v55 = vmul.f32 0.01, %v82_v51 }
  0x14   :  { %4044 = vmatprep.subr.bf16.mxu1 %v4311_v21  ;;  %v115_v56 = vmul.f32 0.01, %v83_v52  ;;  %v172_v63 = vld [vmem:[#allocation2 + $0x20] sm:$0x1]  ;;  %v228_v0 = vld [vmem:[#allocation2 + $0x14] sm:$0x1]  ;;  %v61_v7 = vmul.f32 %v3865_v61, %v4527_v34  ;;  %v62_v8 = vmul.f32 %v3866_v62, %v4527_v34 }
  0x15   :  { %3979 = vmatpush3.bf16.msra.mxu0 %v4310_v20  ;;  %v130_v59 = vsel %vm98_vm6, %v82_v51, %v114_v55  ;;  %v231_v1 = vld [vmem:[#allocation2 + $0x1c] sm:$0x1]  ;;  %v4569_v4 = vld [vmem:[#allocation2] sm:$0xe]  ;;  %v170_v5 = vsel %vm4536_vm3, 0, %v169_v58  ;;  %v173_v6 = vsel %vm4536_vm3, 0, %v172_v63  ;;  %v3869_v51 = vunpack.c.l.bf16 %v3892_v40 }
  0x16   :  { %3980 = vmatprep.subr.bf16.mxu0 %v4313_v23  ;;  %v131_v60 = vsel %vm99_vm7, %v83_v52, %v115_v56  ;;  %v3843_v2 = vpack.c.bf16 %v130_v59, %v130_v59  ;;  %171 = vst [vmem:[#allocation2 + $0x18] sm:$0x1] %v170_v5  ;;  %174 = vst [vmem:[#allocation2 + $0x20] sm:$0x1] %v173_v6  ;;  %v229_v9 = vsel %vm4546_vm5, 0, %v228_v0  ;;  %v232_v10 = vsel %vm4546_vm5, 0, %v231_v1 }
  0x17   :  { %4045 = vmatpush3.bf16.msra.mxu1 %v4312_v22  ;;  %v3844_v3 = vpack.c.bf16 %v131_v60, %v131_v60  ;;  %230 = vst [vmem:[#allocation2 + $0x14] sm:$0x1] %v229_v9  ;;  %233 = vst [vmem:[#allocation2 + $0x1c] sm:$0x1] %v232_v10  ;;  %v509_v15 = vld [vmem:[#allocation2 + $0x8] sm:$0xf]  ;;  %v84_v20 = vadd.f32 %v4532_v35, %v61_v7  ;;  %v85_v21 = vadd.f32 %v4532_v35, %v62_v8 }
  0x18   :  { %4046 = vmatprep.subr.bf16.mxu1 %v4315_v25  ;;  %v347_v11 = vshrl.u32 %v3843_v2, 16  ;;  %v350_v12 = vshll.u32 %v3843_v2, 16  ;;  %v515_v16 = vld [vmem:[#allocation2 + $0x10] sm:$0xf]  ;;  %v4581_v17 = vld [vmem:[#allocation2 + $0x4] sm:$0x1]  ;;  %v63_v61 = vmul.f32 %v3869_v51, %v4527_v34 }
  0x19   :  { %3981 = vmatpush3.bf16.msra.mxu0 %v4314_v24  ;;  %v355_v13 = vshrl.u32 %v3844_v3, 16  ;;  %v358_v14 = vshll.u32 %v3844_v3, 16  ;;  %v696_v19 = vld [vmem:[#allocation2 + $0x4] sm:$0x1]  ;;  %v3667_v24 = vrot.slane %v4569_v4, 9  ;;  %vm100_vm13 = vcmp.gt.f32.partialorder %v84_v20, 0.0 }
  0x1a   :  { %3982 = vmatprep.subr.bf16.mxu0 %v4317_v27  ;;  %v695_v18 = vld [vmem:[#allocation2] sm:$0xf]  ;;  %v349_v22 = vrot.slane %v347_v11, 7  ;;  %v512_v27 = vld [vmem:[#allocation2 + $0xc] sm:$0x1]  ;;  %v740_v30 = vshll.u32 %v696_v19, 16  ;;  %v86_v7 = vadd.f32 %v4532_v35, %v63_v61 }
  0x1b   :  { %4047 = vmatpush3.bf16.msra.mxu1 %v4316_v26  ;;  %v357_v23 = vrot.slane %v355_v13, 7  ;;  %v731_v25 = vshrl.u32 %v695_v18, 16  ;;  %vm101_vm14 = vcmp.gt.f32.partialorder %v85_v21, 0.0  ;;  %v175_v41 = vld [vmem:[#allocation2 + $0x28] sm:$0x1]  ;;  %v4333_v63 = vld [vmem:[%s5571_s3 + $0x1c0] sm:$0xff]  }
  0x1c   :  { %4048 = vmatprep.subr.bf16.mxu1 %v4319_v29  ;;  %v734_v29 = vshll.u32 %v695_v18, 16  ;;  %v116_v46 = vmul.f32 0.01, %v84_v20  ;;  %v4602_v48 = vrot.slane %v740_v30, 5  ;;  %v117_v49 = vmul.f32 0.01, %v85_v21 }
  0x1d   :  { %3983 = vmatpush3.bf16.msra.mxu0 %v4318_v28  ;;  %v1079_v28 = vrot.slane %v4581_v17, 5  ;;  %v360_v33 = vor.u32 %v358_v14, %v357_v23  ;;  %v361_v36 = vrot.slane %v357_v23, 4  ;;  %v733_v37 = vrot.slane %v731_v25, 4  ;;  %v178_v56 = vld [vmem:[#allocation2 + $0x30] sm:$0x1] }
  0x1e   :  { %3984 = vmatprep.subr.bf16.mxu0 %v4321_v32  ;;  %v353_v32 = vrot.slane %v349_v22, 4  ;;  %v736_v39 = vrot.slane %v734_v29, 5  ;;  %v518_v50 = vld [vmem:[#allocation2 + $0x14] sm:$0x1]  ;;  %v132_v52 = vsel %vm100_vm13, %v84_v20, %v116_v46  ;;  %v176_v55 = vsel %vm4536_vm3, 0, %v175_v41 }
  0x1f   :  { %4049 = vmatpush3.bf16.msra.mxu1 %v4320_v31  ;;  %v352_v31 = vor.u32 %v350_v12, %v349_v22  ;;  %v516_v44 = vsel %vm4588_vm12, %v360_v33, %v515_v16  ;;  %v519_v53 = vsel %vm4536_vm3, %v361_v36, %v518_v50  ;;  %v234_v57 = vld [vmem:[#allocation2 + $0x24] sm:$0x1]  ;;  %v133_v59 = vsel %vm101_vm14, %v85_v21, %v117_v49  ;;  %v237_v62 = vld [vmem:[#allocation2 + $0x2c] sm:$0x1]  ;;  %v521_v11 = vld [vmem:[#allocation2 + $0x18] sm:$0xf] }
  0x20   :  { %v513_v45 = vsel %vm4536_vm3, %v353_v32, %v512_v27  ;;  %517 = vst [vmem:[#allocation2 + $0x10] sm:$0xf] %v516_v44  ;;  %v737_v47 = vor.u32 %v736_v39, %v733_v37  ;;  %v3845_v60 = vpack.c.bf16 %v132_v52, %v132_v52  ;;  %520 = vst [vmem:[#allocation2 + $0x14] sm:$0x1] %v519_v53  ;;  %v179_v1 = vsel %vm4536_vm3, 0, %v178_v56  ;;  %v4336_v44 = vld [vmem:[%s5571_s3 + $0x180] sm:$0xff]  }
  0x21   :  { %3985 = vmatpush3.bf16.msra.mxu0 %v4323_v43  ;;  %v510_v43 = vsel %vm4588_vm12, %v352_v31, %v509_v15  ;;  %514 = vst [vmem:[#allocation2 + $0xc] sm:$0x1] %v513_v45  ;;  %177 = vst [vmem:[#allocation2 + $0x28] sm:$0x1] %v176_v55  ;;  %v3846_v0 = vpack.c.bf16 %v133_v59, %v133_v59  ;;  %v235_v2 = vsel %vm4546_vm5, 0, %v234_v57  ;;  %4162 = vmatprep.subr.bf16.mxu1 %v4333_v63  ;;  %v4663_v63 = vld [vmem:[%s5572_s0 + $0x18] sm:$0xff]  }
  0x22   :  { %4098 = vmatprep.subr.bf16.mxu0 %v4324_v54  ;;  %511 = vst [vmem:[#allocation2 + $0x8] sm:$0xf] %v510_v43  ;;  %v3870_v54 = vunpack.c.h.bf16 %v3892_v40  ;;  %v4609_v58 = vrot.slane %v737_v47, 4  ;;  %v363_v5 = vshrl.u32 %v3845_v60, 16  ;;  %v366_v6 = vshll.u32 %v3845_v60, 16 }
  0x23   :  { %180 = vst [vmem:[#allocation2 + $0x30] sm:$0x1] %v179_v1  ;;  %236 = vst [vmem:[#allocation2 + $0x24] sm:$0x1] %v235_v2  ;;  %v371_v9 = vshrl.u32 %v3846_v0, 16  ;;  %v374_v10 = vshll.u32 %v3846_v0, 16  ;;  %v1080_v21 = vsel %vm4622_vm15, %v3667_v24, %v1079_v28 }
  0x24   :  { %v238_v12 = vsel %vm4546_vm5, 0, %v237_v62  ;;  %v365_v13 = vrot.slane %v363_v5, 7  ;;  %v64_v14 = vmul.f32 %v3870_v54, %v4527_v34  ;;  %vm102_vm4 = vcmp.gt.f32.partialorder %v86_v7, 0.0  ;;  %v524_v18 = vld [vmem:[#allocation2 + $0x1c] sm:$0x1]  ;;  %v4326_v0 = vld [vmem:[%s5571_s3 + $0x100] sm:$0xff]  }
  0x25   :  { %v118_v15 = vmul.f32 0.01, %v86_v7  ;;  %239 = vst [vmem:[#allocation2 + $0x2c] sm:$0x1] %v238_v12  ;;  %v743_v23 = vsel %vm4629_vm2, %v4609_v58, %v4602_v48  ;;  %v527_v28 = vld [vmem:[#allocation2 + $0x20] sm:$0xf] }
  0x26   :  { %v368_v25 = vor.u32 %v366_v6, %v365_v13  ;;  %v369_v4 = vrot.slane %v365_v13, 4  ;;  %v87_v36 = vadd.f32 %v4532_v35, %v64_v14  ;;  %v373_v41 = vrot.slane %v371_v9, 7 }
  0x27   :  { %v134_v27 = vsel %vm102_vm4, %v86_v7, %v118_v15  ;;  %v1014_v43 = vld [vmem:[#allocation2 + $0x10] sm:$0xe]  ;;  %v1015_v48 = vld [vmem:[#allocation2 + $0x14] sm:$0x1] }
  0x28   :  { %v1013_v20 = vld [vmem:[#allocation2 + $0xc] sm:$0x1]  ;;  %v522_v24 = vsel %vm4588_vm12, %v368_v25, %v521_v11  ;;  %v525_v47 = vsel %vm4536_vm3, %v369_v4, %v524_v18  ;;  %v699_v49 = vld [vmem:[#allocation2 + $0x10] sm:$0xf]  ;;  %v3847_v50 = vpack.c.bf16 %v134_v27, %v134_v27  ;;  %v376_v52 = vor.u32 %v374_v10, %v373_v41  ;;  %v700_v55 = vld [vmem:[#allocation2 + $0x14] sm:$0x1] }
  0x29   :  { %v4322_v16 = vld [vmem:[#allocation2 + $0x8] ss:$8 sps:$4 sm:$0xff]   ;;  %v1083_v30 = vrot.slane %v1013_v20, 5  ;;  %v698_v31 = vld [vmem:[#allocation2 + $0xc] sm:$0x1]  ;;  %v377_v53 = vrot.slane %v373_v41, 4  ;;  %v3874_v4 = vunpack.c.h.bf16 %v4663_v63 }
  0x2a   :  { %v1012_v19 = vld [vmem:[#allocation2 + $0x8] sm:$0xe]  ;;  %3914 = vmatprep.mubr.msk.bf16.mxu1 %vm661_vm1, %v4322_v16  ;;  %v754_v33 = vshll.u32 %v698_v31, 16  ;;  %523 = vst [vmem:[#allocation2 + $0x18] sm:$0xf] %v522_v24  ;;  %v3669_v54 = vrot.slane %v1014_v43, 9  ;;  %v528_v60 = vsel %vm4588_vm12, %v376_v52, %v527_v28 }
  0x2b   :  { %v697_v22 = vld [vmem:[#allocation2 + $0x8] sm:$0xf]  ;;  %v3668_v29 = vrot.slane %v1012_v19, 9  ;;  %526 = vst [vmem:[#allocation2 + $0x1c] sm:$0x1] %v525_v47  ;;  %v759_v56 = vshrl.u32 %v699_v49, 16 }
  0x2c   :  { %v745_v32 = vshrl.u32 %v697_v22, 16  ;;  %v748_v17 = vshll.u32 %v697_v22, 16  ;;  %v756_v46 = vrot.slane %v754_v33, 5  ;;  %v762_v57 = vshll.u32 %v699_v49, 16  ;;  %529 = vst [vmem:[#allocation2 + $0x20] sm:$0xf] %v528_v60 }
  0x2d   :  { %v1084_v37 = vsel %vm4622_vm15, %v3668_v29, %v1083_v30  ;;  %v768_v58 = vshll.u32 %v700_v55, 16  ;;  %vm103_vm6 = vcmp.gt.f32.partialorder %v87_v36, 0.0  ;;  %v1087_v61 = vrot.slane %v1015_v48, 5  ;;  %v530_v7 = vld [vmem:[#allocation2 + $0x24] sm:$0x1]  ;;  %v4328_v11 = vld [vmem:[%s5571_s3 + $0x148] sm:$0xff]  }
  0x2e   :  { %v747_v39 = vrot.slane %v745_v32, 4  ;;  %v750_v40 = vrot.slane %v748_v17, 5  ;;  %v3683_v45 = vcombine.low %v1080_v21, %v1084_v37  ;;  %v119_v62 = vmul.f32 0.01, %v87_v36  ;;  %v4325_v10 = vld [vmem:[#allocation2] ss:$8 sps:$4 sm:$0xff]  }
  0x2f   :  { %v761_v1 = vrot.slane %v759_v56, 4  ;;  %v764_v2 = vrot.slane %v762_v57, 5  ;;  %v4668_v5 = vrot.slane %v768_v58, 5  ;;  %v379_v6 = vshrl.u32 %v3847_v50, 16  ;;  %v533_v30 = vld [vmem:[#allocation2 + $0x28] sm:$0xf] }
  0x30   :  { %v751_v51 = vor.u32 %v750_v40, %v747_v39  ;;  %3915 = vmatmul.mubr.msk.bf16.vlgmr.msra.gmra.mrb[0].mxu1 %vm661_vm1, %v3683_v45  ;;  %v135_v12 = vsel %vm103_vm6, %v87_v36, %v119_v62  ;;  %v382_v13 = vshll.u32 %v3847_v50, 16  ;;  %v531_v14 = vsel %vm4536_vm3, %v377_v53, %v530_v7  ;;  %v536_v39 = vld [vmem:[#allocation2 + $0x2c] sm:$0x1]  ;;  %v539_v45 = vld [vmem:[#allocation2 + $0x30] sm:$0xf] }
  0x31   :  { %4163 = vmatpush3.bf16.msra.mxu1 %v4336_v44  ;;  %v1016_v16 = vld [vmem:[#allocation2 + $0x18] sm:$0xe]  ;;  %v765_v19 = vor.u32 %v764_v2, %v761_v1  ;;  %v3848_v20 = vpack.c.bf16 %v135_v12, %v135_v12  ;;  %532 = vst [vmem:[#allocation2 + $0x24] sm:$0x1] %v531_v14  ;;  %v3873_v21 = vunpack.c.l.bf16 %v4663_v63  ;;  %v381_v29 = vrot.slane %v379_v6, 7  ;;  %v4330_v40 = vld [vmem:[%s5571_s3 + $0x108] sm:$0xff]  }
  0x32   :  { %v752_v59 = vrot.slane %v751_v51, 4  ;;  %v701_v18 = vld [vmem:[#allocation2 + $0x18] sm:$0xf]  ;;  %v3670_v22 = vrot.slane %v1016_v16, 9  ;;  %v1017_v31 = vld [vmem:[#allocation2 + $0x1c] sm:$0x1]  ;;  %v1088_v32 = vsel %vm4622_vm15, %v3669_v54, %v1087_v61  ;;  %v66_v2 = vmul.f32 %v3874_v4, %v4527_v34 }
  0x33   :  { %v773_v25 = vshrl.u32 %v701_v18, 16  ;;  %v776_v27 = vshll.u32 %v701_v18, 16  ;;  %v702_v17 = vld [vmem:[#allocation2 + $0x1c] sm:$0x1]  ;;  %v387_v33 = vshrl.u32 %v3848_v20, 16  ;;  %v1091_v24 = vrot.slane %v1017_v31, 5 }
  0x34   :  { %v757_v9 = vsel %vm4629_vm2, %v752_v59, %v756_v46  ;;  %v782_v37 = vshll.u32 %v702_v17, 16  ;;  %v384_v41 = vor.u32 %v382_v13, %v381_v29  ;;  %v385_v43 = vrot.slane %v381_v29, 4  ;;  %v4332_v46 = vld [vmem:[%s5571_s3 + $0x150] sm:$0xff]   ;;  %v4327_v48 = vld [vmem:[#allocation2 + $0x18] ss:$8 sps:$4 sm:$0xff]   ;;  %v4339_v59 = vld [vmem:[%s5571_s3 + $0x1c8] sm:$0xff]  }
  0x35   :  { %v3659_v15 = vcombine.low %v743_v23, %v757_v9  ;;  %v766_v23 = vrot.slane %v765_v19, 4  ;;  %v775_v28 = vrot.slane %v773_v25, 4  ;;  %v778_v36 = vrot.slane %v776_v27, 5  ;;  %v1018_v56 = vld [vmem:[#allocation2 + $0x20] sm:$0xe]  ;;  %v4335_v58 = vld [vmem:[%s5571_s3 + $0x110] sm:$0xff]   ;;  %3916 = vmatprep.mubr.msk.bf16.mxu1 %vm661_vm1, %v4327_v48  ;;  %4164 = vmatprep.subr.bf16.mxu1 %v4339_v59 }
  0x36   :  { %v4687_v44 = vrot.slane %v387_v33, 7  ;;  %v65_v47 = vmul.f32 %v3873_v21, %v4527_v34  ;;  %v1092_v49 = vsel %vm4622_vm15, %v3670_v22, %v1091_v24  ;;  %v784_v51 = vrot.slane %v782_v37, 5  ;;  %v703_v57 = vld [vmem:[#allocation2 + $0x20] sm:$0xf]  ;;  %v4329_v62 = vld [vmem:[#allocation2 + $0x10] ss:$8 sps:$4 sm:$0xff]  }
  0x37   :  { %3898 = vmatprep.mubr.msk.bf16.mxu0 %vm661_vm1, %v3659_v15  ;;  %v779_v50 = vor.u32 %v778_v36, %v775_v28  ;;  %v390_v52 = vshll.u32 %v3848_v20, 16  ;;  %v3684_v53 = vcombine.low %v1088_v32, %v1092_v49  ;;  %v534_v54 = vsel %vm4588_vm12, %v384_v41, %v533_v30  ;;  %v181_v6 = vld [vmem:[#allocation2 + $0x38] sm:$0x1]  ;;  %v184_v7 = vld [vmem:[#allocation2 + $0x40] sm:$0x1] }
  0x38   :  { %3899 = vmatmul.mubr.msk.bf16.vlgmr.msra.gmra.mrb[0].mxu0 %vm661_vm1, %v4325_v10  ;;  %v537_v55 = vsel %vm4536_vm3, %v385_v43, %v536_v39  ;;  %v771_v60 = vsel %vm4629_vm2, %v766_v23, %v4668_v5  ;;  %535 = vst [vmem:[#allocation2 + $0x28] sm:$0xf] %v534_v54  ;;  %v704_v1 = vld [vmem:[#allocation2 + $0x24] sm:$0x1]  ;;  %v4338_v9 = vld [vmem:[%s5571_s3 + $0x158] sm:$0xff]   ;;  %v3671_v5 = vrot.slane %v1018_v56, 9  ;;  %v88_v15 = vadd.f32 %v4532_v35, %v65_v47 }
  0x39   :  { %4099 = vmatpush3.bf16.msra.mxu0 %v4326_v0  ;;  %v780_v61 = vrot.slane %v779_v50, 4  ;;  %v392_v63 = vor.u32 %v390_v52, %v4687_v44  ;;  %538 = vst [vmem:[#allocation2 + $0x2c] sm:$0x1] %v537_v55  ;;  %v1019_v0 = vld [vmem:[#allocation2 + $0x24] sm:$0x1]  ;;  %3917 = vmatmul.mubr.msk.bf16.gmra.mrb[4].mxu1 %vm661_vm1, %v3684_v53  ;;  %v790_v12 = vshll.u32 %v703_v57, 16  ;;  %v89_v16 = vadd.f32 %v4532_v35, %v66_v2 }
  0x3a   :  { %4100 = vmatprep.subr.bf16.mxu0 %v4328_v11  ;;  %v1095_v10 = vrot.slane %v1019_v0, 5  ;;  %v787_v11 = vshrl.u32 %v703_v57, 16  ;;  %v240_v18 = vld [vmem:[#allocation2 + $0x34] sm:$0x1]  ;;  %v243_v19 = vld [vmem:[#allocation2 + $0x3c] sm:$0x1] }
  0x3b   :  { %v785_v13 = vsel %vm4629_vm2, %v780_v61, %v784_v51  ;;  %v540_v14 = vsel %vm4588_vm12, %v392_v63, %v539_v45  ;;  %v792_v22 = vrot.slane %v790_v12, 5  ;;  %v796_v25 = vshll.u32 %v704_v1, 16  ;;  %v4341_v29 = vld [vmem:[%s5571_s3 + $0x118] sm:$0xff]  }
  0x3c   :  { %v3660_v20 = vcombine.low %v771_v60, %v785_v13  ;;  %541 = vst [vmem:[#allocation2 + $0x30] sm:$0xf] %v540_v14  ;;  %v789_v21 = vrot.slane %v787_v11, 4  ;;  %vm104_vm7 = vcmp.gt.f32.partialorder %v88_v15, 0.0  ;;  %vm105_vm8 = vcmp.gt.f32.partialorder %v89_v16, 0.0  ;;  %v4342_v14 = vld [vmem:[%s5571_s3 + $0x188] sm:$0xff]  }
  0x3d   :  { %4101 = vmatpush3.bf16.msra.mxu0 %v4330_v40  ;;  %v120_v27 = vmul.f32 0.01, %v88_v15  ;;  %v121_v30 = vmul.f32 0.01, %v89_v16  ;;  %v182_v31 = vsel %vm4536_vm3, 0, %v181_v6  ;;  %v185_v32 = vsel %vm4536_vm3, 0, %v184_v7  ;;  %4165 = vmatpush3.bf16.msra.mxu1 %v4342_v14 }
  0x3e   :  { %4102 = vmatprep.subr.bf16.mxu0 %v4332_v46  ;;  %3900 = vmatprep.mubr.msk.bf16.mxu0 %vm661_vm1, %v3660_v20  ;;  %183 = vst [vmem:[#allocation2 + $0x38] sm:$0x1] %v182_v31  ;;  %186 = vst [vmem:[#allocation2 + $0x40] sm:$0x1] %v185_v32  ;;  %v241_v23 = vsel %vm4546_vm5, 0, %v240_v18  ;;  %v244_v33 = vsel %vm4546_vm5, 0, %v243_v19  ;;  %v1096_v28 = vsel %vm4622_vm15, %v3671_v5, %v1095_v10 }
  0x3f   :  { %v136_v17 = vsel %vm104_vm7, %v88_v15, %v120_v27  ;;  %v1020_v4 = vld [vmem:[#allocation2 + $0x28] sm:$0xe]  ;;  %v793_v36 = vor.u32 %v792_v22, %v789_v21  ;;  %v137_v37 = vsel %vm105_vm8, %v89_v16, %v121_v30  ;;  %242 = vst [vmem:[#allocation2 + $0x34] sm:$0x1] %v241_v23  ;;  %245 = vst [vmem:[#allocation2 + $0x3c] sm:$0x1] %v244_v33 }
  0x40   :  { %3901 = vmatmul.mubr.msk.bf16.gmra.mrb[4].mxu0 %vm661_vm1, %v4329_v62  ;;  %v1021_v24 = vld [vmem:[#allocation2 + $0x2c] sm:$0x1]  ;;  %v3672_v39 = vrot.slane %v1020_v4, 9  ;;  %v705_v41 = vld [vmem:[#allocation2 + $0x28] sm:$0xf]  ;;  %v3849_v45 = vpack.c.bf16 %v136_v17, %v136_v17  ;;  %v3850_v46 = vpack.c.bf16 %v137_v37, %v137_v37  ;;  %v393_v50 = vrot.slane %v4687_v44, 4 }
  0x41   :  { %4103 = vmatpush3.bf16.msra.mxu0 %v4335_v58  ;;  %v1099_v40 = vrot.slane %v1021_v24, 5  ;;  %v706_v43 = vld [vmem:[#allocation2 + $0x2c] sm:$0x1]  ;;  %v801_v47 = vshrl.u32 %v705_v41, 16  ;;  %v804_v48 = vshll.u32 %v705_v41, 16  ;;  %v798_v53 = vrot.slane %v796_v25, 5 }
  0x42   :  { %4104 = vmatprep.subr.bf16.mxu0 %v4338_v9  ;;  %v810_v49 = vshll.u32 %v706_v43, 16  ;;  %v794_v55 = vrot.slane %v793_v36, 4  ;;  %v395_v58 = vshrl.u32 %v3849_v45, 16  ;;  %v398_v59 = vshll.u32 %v3849_v45, 16  ;;  %v4334_v11 = vld [vmem:[#allocation2 + $0x20] ss:$8 sps:$4 sm:$0xff]  }
  0x43   :  { %v4331_v51 = vld [vmem:[#allocation2 + $0x28] ss:$8 sps:$4 sm:$0xff]   ;;  %v1100_v52 = vsel %vm4622_vm15, %v3672_v39, %v1099_v40  ;;  %v803_v56 = vrot.slane %v801_v47, 4  ;;  %v806_v57 = vrot.slane %v804_v48, 5  ;;  %v403_v60 = vshrl.u32 %v3850_v46, 16  ;;  %v3894_v20 = vld [vmem:[%s5572_s0 + $0x20] sm:$0xff]  }
  0x44   :  { %v3685_v54 = vcombine.low %v1096_v28, %v1100_v52  ;;  %3918 = vmatprep.mubr.msk.bf16.mxu1 %vm661_vm1, %v4331_v51  ;;  %v4741_v61 = vld [vmem:[#allocation2 + $0x30] sm:$0xe]  ;;  %v812_v44 = vrot.slane %v810_v49, 5  ;;  %v406_v63 = vshll.u32 %v3850_v46, 16  ;;  %v397_v2 = vrot.slane %v395_v58, 7  ;;  %v4344_v21 = vld [vmem:[%s5571_s3 + $0x160] sm:$0xff]  }
  0x45   :  { %4105 = vmatpush3.bf16.msra.mxu0 %v4341_v29  ;;  %v807_v62 = vor.u32 %v806_v57, %v803_v56  ;;  %v545_v0 = vld [vmem:[#allocation2 + $0x38] sm:$0xf]  ;;  %v707_v1 = vld [vmem:[#allocation2 + $0x30] sm:$0xf]  ;;  %v4744_v6 = vrot.slane %v403_v60, 7  ;;  %v799_v5 = vsel %vm4629_vm2, %v794_v55, %v798_v53  ;;  %v3673_v25 = vrot.slane %v4741_v61, 9 }
  0x46   :  { %3919 = vmatmul.mubr.msk.bf16.gmra.mrb[8].mxu1 %vm661_vm1, %v3685_v54  ;;  %v551_v7 = vld [vmem:[#allocation2 + $0x40] sm:$0xf]  ;;  %v542_v9 = vld [vmem:[#allocation2 + $0x34] sm:$0x1]  ;;  %v548_v13 = vld [vmem:[#allocation2 + $0x3c] sm:$0x1]  ;;  %v400_v15 = vor.u32 %v398_v59, %v397_v2  ;;  %v3877_v29 = vunpack.c.l.bf16 %v3894_v20  ;;  %4106 = vmatprep.subr.bf16.mxu0 %v4344_v21  ;;  %v3878_v36 = vunpack.c.h.bf16 %v3894_v20 }
  0x47   :  { %v808_v10 = vrot.slane %v807_v62, 4  ;;  %v543_v12 = vsel %vm4536_vm3, %v393_v50, %v542_v9  ;;  %v401_v16 = vrot.slane %v397_v2, 4  ;;  %v408_v18 = vor.u32 %v406_v63, %v4744_v6  ;;  %v193_v30 = vld [vmem:[#allocation2 + $0x58] sm:$0x1]  ;;  %v196_v31 = vld [vmem:[#allocation2 + $0x60] sm:$0x1] }
  0x48   :  { %544 = vst [vmem:[#allocation2 + $0x34] sm:$0x1] %v543_v12  ;;  %v815_v19 = vshrl.u32 %v707_v1, 16  ;;  %v818_v27 = vshll.u32 %v707_v1, 16  ;;  %v546_v17 = vsel %vm4588_vm12, %v400_v15, %v545_v0  ;;  %v252_v4 = vld [vmem:[#allocation2 + $0x54] sm:$0x1]  ;;  %v67_v37 = vmul.f32 %v3877_v29, %v4527_v34 }
  0x49   :  { %v813_v22 = vsel %vm4629_vm2, %v808_v10, %v812_v44  ;;  %v552_v23 = vsel %vm4588_vm12, %v408_v18, %v551_v7  ;;  %v549_v33 = vsel %vm4536_vm3, %v401_v16, %v548_v13  ;;  %v255_v24 = vld [vmem:[#allocation2 + $0x5c] sm:$0x1]  ;;  %v4769_v28 = vld [vmem:[#allocation2 + $0x50] sm:$0xe]  ;;  %547 = vst [vmem:[#allocation2 + $0x38] sm:$0xf] %v546_v17  ;;  %v68_v49 = vmul.f32 %v3878_v36, %v4527_v34 }
  0x4a   :  { %v3661_v32 = vcombine.low %v799_v5, %v813_v22  ;;  %553 = vst [vmem:[#allocation2 + $0x40] sm:$0xf] %v552_v23  ;;  %550 = vst [vmem:[#allocation2 + $0x3c] sm:$0x1] %v549_v33  ;;  %v194_v39 = vsel %vm4536_vm3, 0, %v193_v30  ;;  %v4345_v41 = vld [vmem:[%s5571_s3 + $0x1d0] sm:$0xff]   ;;  %v90_v50 = vadd.f32 %v4532_v35, %v67_v37 }
  0x4b   :  { %v190_v40 = vld [vmem:[#allocation2 + $0x50] sm:$0x1]  ;;  %v817_v43 = vrot.slane %v815_v19, 4  ;;  %195 = vst [vmem:[#allocation2 + $0x58] sm:$0x1] %v194_v39  ;;  %v197_v45 = vsel %vm4536_vm3, 0, %v196_v31  ;;  %4166 = vmatprep.subr.bf16.mxu1 %v4345_v41  ;;  %v91_v56 = vadd.f32 %v4532_v35, %v68_v49 }
  0x4c   :  { %3902 = vmatprep.mubr.msk.bf16.mxu0 %vm661_vm1, %v3661_v32  ;;  %v253_v46 = vsel %vm4546_vm5, 0, %v252_v4  ;;  %v256_v47 = vsel %vm4546_vm5, 0, %v255_v24  ;;  %v820_v48 = vrot.slane %v818_v27, 5  ;;  %198 = vst [vmem:[#allocation2 + $0x60] sm:$0x1] %v197_v45  ;;  %v191_v51 = vsel %vm4536_vm3, 0, %v190_v40 }
  0x4d   :  { %3903 = vmatmul.mubr.msk.bf16.gmra.mrb[8].mxu0 %vm661_vm1, %v4334_v11  ;;  %254 = vst [vmem:[#allocation2 + $0x54] sm:$0x1] %v253_v46  ;;  %257 = vst [vmem:[#allocation2 + $0x5c] sm:$0x1] %v256_v47  ;;  %v3675_v52 = vrot.slane %v4769_v28, 9  ;;  %v4347_v53 = vld [vmem:[%s5571_s3 + $0x120] sm:$0xff]  }
  0x4e   :  { %192 = vst [vmem:[#allocation2 + $0x50] sm:$0x1] %v191_v51  ;;  %vm106_vm9 = vcmp.gt.f32.partialorder %v90_v50, 0.0  ;;  %v4348_v57 = vld [vmem:[%s5571_s3 + $0x190] sm:$0xff]   ;;  %v122_v60 = vmul.f32 0.01, %v90_v50  ;;  %4107 = vmatpush3.bf16.msra.mxu0 %v4347_v53  ;;  %v821_v63 = vor.u32 %v820_v48, %v817_v43 }
  0x4f   :  { %v1023_v54 = vld [vmem:[#allocation2 + $0x34] sm:$0x1]  ;;  %vm107_vm10 = vcmp.gt.f32.partialorder %v91_v56, 0.0  ;;  %v123_v61 = vmul.f32 0.01, %v91_v56  ;;  %4167 = vmatpush3.bf16.msra.mxu1 %v4348_v57  ;;  %v3895_v62 = vld [vmem:[%s5572_s0 + $0x28] sm:$0xff]  }
  0x50   :  { %v708_v55 = vld [vmem:[#allocation2 + $0x34] sm:$0x1]  ;;  %v1103_v58 = vrot.slane %v1023_v54, 5  ;;  %v138_v0 = vsel %vm106_vm9, %v90_v50, %v122_v60  ;;  %v3881_v1 = vunpack.c.l.bf16 %v3895_v62  ;;  %v1024_v2 = vld [vmem:[#allocation2 + $0x38] sm:$0xe]  ;;  %v3882_v16 = vunpack.c.h.bf16 %v3895_v62  ;;  %v4350_v33 = vld [vmem:[%s5571_s3 + $0x168] sm:$0xff]  }
  0x51   :  { %v824_v59 = vshll.u32 %v708_v55, 16  ;;  %v4337_v44 = vld [vmem:[#allocation2 + $0x38] ss:$8 sps:$4 sm:$0xff]   ;;  %v1025_v7 = vld [vmem:[#allocation2 + $0x3c] sm:$0x1]  ;;  %v139_v10 = vsel %vm107_vm10, %v91_v56, %v123_v61  ;;  %v3851_v11 = vpack.c.bf16 %v138_v0, %v138_v0  ;;  %v3674_v12 = vrot.slane %v1024_v2, 9  ;;  %4108 = vmatprep.subr.bf16.mxu0 %v4350_v33 }
  0x52   :  { %v1104_v9 = vsel %vm4622_vm15, %v3673_v25, %v1103_v58  ;;  %v709_v5 = vld [vmem:[#allocation2 + $0x38] sm:$0xf]  ;;  %3920 = vmatprep.mubr.msk.bf16.mxu1 %vm661_vm1, %v4337_v44  ;;  %v1107_v13 = vrot.slane %v1025_v7, 5  ;;  %v710_v14 = vld [vmem:[#allocation2 + $0x3c] sm:$0x1]  ;;  %v3852_v20 = vpack.c.bf16 %v139_v10, %v139_v10  ;;  %v69_v21 = vmul.f32 %v3881_v1, %v4527_v34  ;;  %v4353_v48 = vld [vmem:[%s5571_s3 + $0x128] sm:$0xff]  }
  0x53   :  { %v829_v15 = vshrl.u32 %v709_v5, 16  ;;  %v832_v18 = vshll.u32 %v709_v5, 16  ;;  %v838_v19 = vshll.u32 %v710_v14, 16  ;;  %v822_v27 = vrot.slane %v821_v63, 4  ;;  %v557_v23 = vld [vmem:[#allocation2 + $0x58] sm:$0xf]  ;;  %4109 = vmatpush3.bf16.msra.mxu0 %v4353_v48 }
  0x54   :  { %v1108_v22 = vsel %vm4622_vm15, %v3674_v12, %v1107_v13  ;;  %v411_v29 = vshrl.u32 %v3851_v11, 16  ;;  %v826_v31 = vrot.slane %v824_v59, 5  ;;  %v414_v17 = vshll.u32 %v3851_v11, 16  ;;  %v560_v37 = vld [vmem:[#allocation2 + $0x5c] sm:$0x1]  ;;  %v4356_v1 = vld [vmem:[%s5571_s3 + $0x1e0] sm:$0xff]  }
  0x55   :  { %v831_v25 = vrot.slane %v829_v15, 4  ;;  %v3686_v30 = vcombine.low %v1104_v9, %v1108_v22  ;;  %v834_v32 = vrot.slane %v832_v18, 5  ;;  %v419_v24 = vshrl.u32 %v3852_v20, 16  ;;  %v4351_v39 = vld [vmem:[%s5571_s3 + $0x1d8] sm:$0xff]   ;;  %v711_v43 = vld [vmem:[#allocation2 + $0x50] sm:$0xf] }
  0x56   :  { %v413_v4 = vrot.slane %v411_v29, 7  ;;  %v422_v36 = vshll.u32 %v3852_v20, 16  ;;  %v840_v41 = vrot.slane %v838_v19, 5  ;;  %v4813_v45 = vld [vmem:[#allocation2 + $0x54] sm:$0x1]  ;;  %v70_v46 = vmul.f32 %v3882_v16, %v4527_v34  ;;  %4168 = vmatprep.subr.bf16.mxu1 %v4351_v39  ;;  %v4354_v54 = vld [vmem:[%s5571_s3 + $0x198] sm:$0xff]  }
  0x57   :  { %3921 = vmatmul.mubr.msk.bf16.gmra.mrb[12].mxu1 %vm661_vm1, %v3686_v30  ;;  %v835_v40 = vor.u32 %v834_v32, %v831_v25  ;;  %v92_v47 = vadd.f32 %v4532_v35, %v69_v21  ;;  %v4820_v51 = vrot.slane %v419_v24, 7  ;;  %v843_v53 = vshrl.u32 %v711_v43, 16  ;;  %v4340_v35 = vld [vmem:[#allocation2 + $0x30] ss:$8 sps:$4 sm:$0xff]   ;;  %v563_v56 = vld [vmem:[#allocation2 + $0x60] sm:$0xf] }
  0x58   :  { %v416_v49 = vor.u32 %v414_v17, %v413_v4  ;;  %v417_v50 = vrot.slane %v413_v4, 4  ;;  %v827_v34 = vsel %vm4629_vm2, %v822_v27, %v826_v31  ;;  %v846_v57 = vshll.u32 %v711_v43, 16  ;;  %v199_v58 = vld [vmem:[#allocation2 + $0x68] sm:$0x1]  ;;  %v1027_v62 = vld [vmem:[#allocation2 + $0x54] sm:$0x1]  ;;  %4169 = vmatpush3.bf16.msra.mxu1 %v4354_v54 }
  0x59   :  { %v836_v55 = vrot.slane %v835_v40, 4  ;;  %v424_v59 = vor.u32 %v422_v36, %v4820_v51  ;;  %v852_v44 = vshll.u32 %v4813_v45, 16  ;;  %v202_v63 = vld [vmem:[#allocation2 + $0x70] sm:$0x1]  ;;  %v258_v0 = vld [vmem:[#allocation2 + $0x64] sm:$0x1]  ;;  %4170 = vmatprep.subr.bf16.mxu1 %v4356_v1 }
  0x5a   :  { %v558_v60 = vsel %vm4588_vm12, %v416_v49, %v557_v23  ;;  %v561_v61 = vsel %vm4536_vm3, %v417_v50, %v560_v37  ;;  %v845_v7 = vrot.slane %v843_v53, 4  ;;  %v848_v9 = vrot.slane %v846_v57, 5  ;;  %v261_v5 = vld [vmem:[#allocation2 + $0x6c] sm:$0x1]  ;;  %v3896_v10 = vld [vmem:[%s5572_s0 + $0x30] sm:$0xff]   ;;  %v4357_v11 = vld [vmem:[%s5571_s3 + $0x1a0] sm:$0xff]  }
  0x5b   :  { %v841_v2 = vsel %vm4629_vm2, %v836_v55, %v840_v41  ;;  %559 = vst [vmem:[#allocation2 + $0x58] sm:$0xf] %v558_v60  ;;  %562 = vst [vmem:[#allocation2 + $0x5c] sm:$0x1] %v561_v61  ;;  %v564_v13 = vsel %vm4588_vm12, %v424_v59, %v563_v56  ;;  %v4849_v14 = vld [vmem:[%s5574_s2] ss:$0 sm:$0xff]  ;;  %v3885_v17 = vunpack.c.l.bf16 %v3896_v10  ;;  %v3886_v23 = vunpack.c.h.bf16 %v3896_v10 }
  0x5c   :  { %v3662_v12 = vcombine.low %v827_v34, %v841_v2  ;;  %v93_v15 = vadd.f32 %v4849_v14, %v70_v46  ;;  %vm108_vm11 = vcmp.gt.f32.partialorder %v92_v47, 0.0  ;;  %v4358_v16 = vld [vmem:[%s5571_s3 + $0x170] sm:$0xff]   ;;  %565 = vst [vmem:[#allocation2 + $0x60] sm:$0xf] %v564_v13  ;;  %v124_v18 = vmul.f32 0.01, %v92_v47  ;;  %4171 = vmatpush3.bf16.msra.mxu1 %v4357_v11 }
  0x5d   :  { %v200_v19 = vsel %vm4536_vm3, 0, %v199_v58  ;;  %v203_v20 = vsel %vm4536_vm3, 0, %v202_v63  ;;  %v259_v22 = vsel %vm4546_vm5, 0, %v258_v0  ;;  %v262_v27 = vsel %vm4546_vm5, 0, %v261_v5  ;;  %v4360_v25 = vld [vmem:[%s5571_s3 + $0x130] sm:$0xff]   ;;  %4110 = vmatprep.subr.bf16.mxu0 %v4358_v16  ;;  %v4361_v31 = vld [vmem:[%s5571_s3 + $0x1e8] sm:$0xff]  }
  0x5e   :  { %3904 = vmatprep.mubr.msk.bf16.mxu0 %vm661_vm1, %v3662_v12  ;;  %vm109_vm13 = vcmp.gt.f32.partialorder %v93_v15, 0.0  ;;  %v125_v21 = vmul.f32 0.01, %v93_v15  ;;  %201 = vst [vmem:[#allocation2 + $0x68] sm:$0x1] %v200_v19  ;;  %v1111_v29 = vrot.slane %v1027_v62, 5  ;;  %v140_v30 = vsel %vm108_vm11, %v92_v47, %v124_v18  ;;  %4111 = vmatpush3.bf16.msra.mxu0 %v4360_v25 }
  0x5f   :  { %204 = vst [vmem:[#allocation2 + $0x70] sm:$0x1] %v203_v20  ;;  %3905 = vmatmul.mubr.msk.bf16.gmra.mrb[12].mxu0 %vm661_vm1, %v4340_v35  ;;  %260 = vst [vmem:[#allocation2 + $0x64] sm:$0x1] %v259_v22  ;;  %v425_v33 = vrot.slane %v4820_v51, 4  ;;  %v849_v4 = vor.u32 %v848_v9, %v845_v7  ;;  %v4873_v24 = vrot.slane %v852_v44, 5  ;;  %v3853_v36 = vpack.c.bf16 %v140_v30, %v140_v30 }
  0x60   :  { %263 = vst [vmem:[#allocation2 + $0x6c] sm:$0x1] %v262_v27  ;;  %v141_v32 = vsel %vm109_vm13, %v93_v15, %v125_v21  ;;  %4172 = vmatprep.subr.bf16.mxu1 %v4361_v31  ;;  %v1112_v40 = vsel %vm4622_vm15, %v3675_v52, %v1111_v29  ;;  %v4882_v51 = vld [vmem:[%s5573_s1] ss:$0 sm:$0xff]  ;;  %v4362_v59 = vld [vmem:[%s5571_s3 + $0x1a8] sm:$0xff]  }
  0x61   :  { %v3854_v47 = vpack.c.bf16 %v141_v32, %v141_v32  ;;  %v71_v53 = vmul.f32 %v4882_v51, %v3885_v17  ;;  %v72_v28 = vmul.f32 %v4882_v51, %v3886_v23  ;;  %v850_v54 = vrot.slane %v849_v4, 4  ;;  %v205_v18 = vld [vmem:[#allocation2 + $0x78] sm:$0x1]  ;;  %v208_v19 = vld [vmem:[#allocation2 + $0x80] sm:$0x1]  ;;  %4173 = vmatpush3.bf16.msra.mxu1 %v4362_v59 }
  0x62   :  { %v1028_v37 = vld [vmem:[#allocation2 + $0x58] sm:$0xe]  ;;  %v1029_v39 = vld [vmem:[#allocation2 + $0x5c] sm:$0x1]  ;;  %v427_v55 = vshrl.u32 %v3853_v36, 16  ;;  %v430_v58 = vshll.u32 %v3853_v36, 16 }
  0x63   :  { %v3676_v41 = vrot.slane %v1028_v37, 9  ;;  %v1115_v43 = vrot.slane %v1029_v39, 5  ;;  %v713_v45 = vld [vmem:[#allocation2 + $0x58] sm:$0xf]  ;;  %v714_v46 = vld [vmem:[#allocation2 + $0x5c] sm:$0x1]  ;;  %v94_v5 = vadd.f32 %v4849_v14, %v71_v53  ;;  %v95_v10 = vadd.f32 %v4849_v14, %v72_v28 }
  0x64   :  { %v4343_v48 = vld [vmem:[#allocation2 + $0x58] ss:$8 sps:$4 sm:$0xff]   ;;  %v857_v49 = vshrl.u32 %v713_v45, 16  ;;  %v860_v50 = vshll.u32 %v713_v45, 16  ;;  %v866_v34 = vshll.u32 %v714_v46, 16  ;;  %v429_v61 = vrot.slane %v427_v55, 7 }
  0x65   :  { %v1116_v52 = vsel %vm4622_vm15, %v3676_v41, %v1115_v43  ;;  %3922 = vmatprep.mubr.msk.bf16.mxu1 %vm661_vm1, %v4343_v48  ;;  %v435_v62 = vshrl.u32 %v3854_v47, 16  ;;  %v438_v44 = vshll.u32 %v3854_v47, 16  ;;  %v569_v63 = vld [vmem:[#allocation2 + $0x68] sm:$0xf]  ;;  %v4893_v9 = vld [vmem:[#allocation2 + $0x60] sm:$0xe]  ;;  %v855_v20 = vsel %vm4629_vm2, %v850_v54, %v4873_v24 }
  0x66   :  { %v3687_v35 = vcombine.low %v1112_v40, %v1116_v52  ;;  %v859_v56 = vrot.slane %v857_v49, 4  ;;  %v862_v57 = vrot.slane %v860_v50, 5  ;;  %v868_v60 = vrot.slane %v866_v34, 5  ;;  %v575_v1 = vld [vmem:[#allocation2 + $0x70] sm:$0xf] }
  0x67   :  { %v566_v2 = vld [vmem:[#allocation2 + $0x64] sm:$0x1]  ;;  %v572_v7 = vld [vmem:[#allocation2 + $0x6c] sm:$0x1]  ;;  %v432_v11 = vor.u32 %v430_v58, %v429_v61  ;;  %v433_v12 = vrot.slane %v429_v61, 4  ;;  %v4897_v13 = vrot.slane %v435_v62, 7 }
  0x68   :  { %3923 = vmatmul.mubr.msk.bf16.gmra.mrb[16].mxu1 %vm661_vm1, %v3687_v35  ;;  %v863_v0 = vor.u32 %v862_v57, %v859_v56  ;;  %v567_v15 = vsel %vm4536_vm3, %v425_v33, %v566_v2  ;;  %v715_v16 = vld [vmem:[#allocation2 + $0x60] sm:$0xf]  ;;  %v4346_v22 = vld [vmem:[#allocation2 + $0x50] ss:$8 sps:$4 sm:$0xff]   ;;  %v264_v29 = vld [vmem:[#allocation2 + $0x74] sm:$0x1] }
  0x69   :  { %568 = vst [vmem:[#allocation2 + $0x64] sm:$0x1] %v567_v15  ;;  %v871_v27 = vshrl.u32 %v715_v16, 16  ;;  %v874_v25 = vshll.u32 %v715_v16, 16  ;;  %v267_v30 = vld [vmem:[#allocation2 + $0x7c] sm:$0x1]  ;;  %v440_v31 = vor.u32 %v438_v44, %v4897_v13  ;;  %v570_v32 = vsel %vm4588_vm12, %v432_v11, %v569_v63 }
  0x6a   :  { %v864_v21 = vrot.slane %v863_v0, 4  ;;  %v573_v17 = vsel %vm4536_vm3, %v433_v12, %v572_v7  ;;  %v3677_v23 = vrot.slane %v4893_v9, 9  ;;  %v3897_v33 = vld [vmem:[%s5572_s0 + $0x38] sm:$0xff]   ;;  %571 = vst [vmem:[#allocation2 + $0x68] sm:$0xf] %v570_v32  ;;  %vm110_vm14 = vcmp.gt.f32.partialorder %v94_v5, 0.0 }
  0x6b   :  { %574 = vst [vmem:[#allocation2 + $0x6c] sm:$0x1] %v573_v17  ;;  %v873_v24 = vrot.slane %v871_v27, 4  ;;  %v876_v36 = vrot.slane %v874_v25, 5  ;;  %v4364_v37 = vld [vmem:[%s5571_s3 + $0x1f0] sm:$0xff]   ;;  %v576_v40 = vsel %vm4588_vm12, %v440_v31, %v575_v1  ;;  %vm111_vm4 = vcmp.gt.f32.partialorder %v95_v10, 0.0 }
  0x6c   :  { %v869_v4 = vsel %vm4629_vm2, %v864_v21, %v868_v60  ;;  %v126_v41 = vmul.f32 0.01, %v94_v5  ;;  %v4365_v43 = vld [vmem:[%s5571_s3 + $0x1b0] sm:$0xff]   ;;  %577 = vst [vmem:[#allocation2 + $0x70] sm:$0xf] %v576_v40  ;;  %v206_v47 = vsel %vm4536_vm3, 0, %v205_v18  ;;  %4174 = vmatprep.subr.bf16.mxu1 %v4364_v37  ;;  %v3889_v28 = vunpack.c.l.bf16 %v3897_v33 }
  0x6d   :  { %v3663_v39 = vcombine.low %v855_v20, %v869_v4  ;;  %v877_v45 = vor.u32 %v876_v36, %v873_v24  ;;  %v127_v46 = vmul.f32 0.01, %v95_v10  ;;  %v209_v48 = vsel %vm4536_vm3, 0, %v208_v19  ;;  %207 = vst [vmem:[#allocation2 + $0x78] sm:$0x1] %v206_v47  ;;  %4175 = vmatpush3.bf16.msra.mxu1 %v4365_v43  ;;  %v4366_v35 = vld [vmem:[%s5571_s3 + $0x178] sm:$0xff]  }
  0x6e   :  { %v142_v49 = vsel %vm110_vm14, %v94_v5, %v126_v41  ;;  %210 = vst [vmem:[#allocation2 + $0x80] sm:$0x1] %v209_v48  ;;  %v265_v50 = vsel %vm4546_vm5, 0, %v264_v29  ;;  %v268_v53 = vsel %vm4546_vm5, 0, %v267_v30  ;;  %v441_v52 = vrot.slane %v4897_v13, 4  ;;  %4112 = vmatprep.subr.bf16.mxu0 %v4366_v35 }
  0x6f   :  { %3906 = vmatprep.mubr.msk.bf16.mxu0 %vm661_vm1, %v3663_v39  ;;  %v143_v54 = vsel %vm111_vm4, %v95_v10, %v127_v46  ;;  %v3855_v34 = vpack.c.bf16 %v142_v49, %v142_v49  ;;  %266 = vst [vmem:[#allocation2 + $0x74] sm:$0x1] %v265_v50  ;;  %269 = vst [vmem:[#allocation2 + $0x7c] sm:$0x1] %v268_v53  ;;  %v3890_v55 = vunpack.c.h.bf16 %v3897_v33  ;;  %v4939_v60 = vrot.slane %v877_v45, 4 }
  0x70   :  { %3907 = vmatmul.mubr.msk.bf16.gmra.mrb[16].mxu0 %vm661_vm1, %v4346_v22  ;;  %v1031_v56 = vld [vmem:[#allocation2 + $0x64] sm:$0x1]  ;;  %v73_v58 = vmul.f32 %v4882_v51, %v3889_v28  ;;  %v3856_v0 = vpack.c.bf16 %v143_v54, %v143_v54  ;;  %v211_v48 = vld [vmem:[#allocation2 + $0x88] sm:$0x1]  ;;  %v4368_v54 = vld [vmem:[%s5571_s3 + $0x138] sm:$0xff]  }
  0x71   :  { %v716_v57 = vld [vmem:[#allocation2 + $0x64] sm:$0x1]  ;;  %v1119_v59 = vrot.slane %v1031_v56, 5  ;;  %v443_v62 = vshrl.u32 %v3855_v34, 16  ;;  %v1032_v44 = vld [vmem:[#allocation2 + $0x68] sm:$0xe]  ;;  %v74_v10 = vmul.f32 %v4882_v51, %v3890_v55  ;;  %4113 = vmatpush3.bf16.msra.mxu0 %v4368_v54 }
  0x72   :  { %v880_v61 = vshll.u32 %v716_v57, 16  ;;  %v1033_v63 = vld [vmem:[#allocation2 + $0x6c] sm:$0x1]  ;;  %v3678_v2 = vrot.slane %v1032_v44, 9  ;;  %v717_v9 = vld [vmem:[#allocation2 + $0x68] sm:$0xf]  ;;  %v96_v15 = vadd.f32 %v4849_v14, %v73_v58 }
  0x73   :  { %v1120_v1 = vsel %vm4622_vm15, %v3677_v23, %v1119_v59  ;;  %v1123_v7 = vrot.slane %v1033_v63, 5  ;;  %v718_v5 = vld [vmem:[#allocation2 + $0x6c] sm:$0x1]  ;;  %v4349_v11 = vld [vmem:[#allocation2 + $0x68] ss:$8 sps:$4 sm:$0xff]   ;;  %v885_v12 = vshrl.u32 %v717_v9, 16  ;;  %v97_v32 = vadd.f32 %v4849_v14, %v74_v10 }
  0x74   :  { %v446_v13 = vshll.u32 %v3855_v34, 16  ;;  %v882_v18 = vrot.slane %v880_v61, 5  ;;  %v888_v19 = vshll.u32 %v717_v9, 16  ;;  %v894_v20 = vshll.u32 %v718_v5, 16  ;;  %3924 = vmatprep.mubr.msk.bf16.mxu1 %vm661_vm1, %v4349_v11  ;;  %v581_v25 = vld [vmem:[#allocation2 + $0x78] sm:$0xf] }
  0x75   :  { %v1124_v16 = vsel %vm4622_vm15, %v3678_v2, %v1123_v7  ;;  %v887_v22 = vrot.slane %v885_v12, 4  ;;  %v445_v27 = vrot.slane %v443_v62, 7  ;;  %v451_v30 = vshrl.u32 %v3856_v0, 16  ;;  %v587_v4 = vld [vmem:[#allocation2 + $0x80] sm:$0xf]  ;;  %v4369_v10 = vld [vmem:[%s5571_s3 + $0x1f8] sm:$0xff]  }
  0x76   :  { %v3688_v21 = vcombine.low %v1120_v1, %v1124_v16  ;;  %v890_v29 = vrot.slane %v888_v19, 5  ;;  %v454_v51 = vshll.u32 %v3856_v0, 16  ;;  %v578_v31 = vld [vmem:[#allocation2 + $0x74] sm:$0x1]  ;;  %v896_v17 = vrot.slane %v894_v20, 5  ;;  %4176 = vmatprep.subr.bf16.mxu1 %v4369_v10  ;;  %v4370_v54 = vld [vmem:[%s5571_s3 + $0x1b8] sm:$0xff]  }
  0x77   :  { %v448_v23 = vor.u32 %v446_v13, %v445_v27  ;;  %v449_v33 = vrot.slane %v445_v27, 4  ;;  %v579_v24 = vsel %vm4536_vm3, %v441_v52, %v578_v31  ;;  %v584_v36 = vld [vmem:[#allocation2 + $0x7c] sm:$0x1]  ;;  %v1034_v37 = vld [vmem:[#allocation2 + $0x70] sm:$0xe]  ;;  %v883_v39 = vsel %vm4629_vm2, %v4939_v60, %v882_v18  ;;  %4177 = vmatpush3.bf16.msra.mxu1 %v4370_v54 }
  0x78   :  { %3925 = vmatmul.mubr.msk.bf16.gmra.mrb[20].mxu1 %vm661_vm1, %v3688_v21  ;;  %v891_v40 = vor.u32 %v890_v29, %v887_v22  ;;  %v4955_v41 = vrot.slane %v451_v30, 7  ;;  %580 = vst [vmem:[#allocation2 + $0x74] sm:$0x1] %v579_v24  ;;  %v719_v14 = vld [vmem:[#allocation2 + $0x70] sm:$0xf]  ;;  %vm112_vm6 = vcmp.gt.f32.partialorder %v96_v15, 0.0 }
  0x79   :  { %v582_v43 = vsel %vm4588_vm12, %v448_v23, %v581_v25  ;;  %v585_v45 = vsel %vm4536_vm3, %v449_v33, %v584_v36  ;;  %v899_v46 = vshrl.u32 %v719_v14, 16  ;;  %v902_v47 = vshll.u32 %v719_v14, 16  ;;  %v4352_v50 = vld [vmem:[#allocation2 + $0x60] ss:$8 sps:$4 sm:$0xff]   ;;  %v214_v52 = vld [vmem:[#allocation2 + $0x90] sm:$0x1] }
  0x7a   :  { %v892_v49 = vrot.slane %v891_v40, 4  ;;  %v456_v53 = vor.u32 %v454_v51, %v4955_v41  ;;  %583 = vst [vmem:[#allocation2 + $0x78] sm:$0xf] %v582_v43  ;;  %586 = vst [vmem:[#allocation2 + $0x7c] sm:$0x1] %v585_v45  ;;  %v3679_v28 = vrot.slane %v1034_v37, 9 }
  0x7b   :  { %vm113_vm7 = vcmp.gt.f32.partialorder %v97_v32, 0.0  ;;  %v901_v34 = vrot.slane %v899_v46, 4  ;;  %v904_v55 = vrot.slane %v902_v47, 5  ;;  %v128_v35 = vmul.f32 0.01, %v96_v15 }
  0x7c   :  { %v129_v56 = vmul.f32 0.01, %v97_v32  ;;  %v897_v57 = vsel %vm4629_vm2, %v892_v49, %v896_v17  ;;  %v588_v58 = vsel %vm4588_vm12, %v456_v53, %v587_v4  ;;  %v212_v59 = vsel %vm4536_vm3, 0, %v211_v48  ;;  %v270_v61 = vld [vmem:[#allocation2 + $0x84] sm:$0x1] }
  0x7d   :  { %v215_v60 = vsel %vm4536_vm3, 0, %v214_v52  ;;  %v273_v62 = vld [vmem:[#allocation2 + $0x8c] sm:$0x1]  ;;  %v3664_v44 = vcombine.low %v883_v39, %v897_v57  ;;  %589 = vst [vmem:[#allocation2 + $0x80] sm:$0xf] %v588_v58  ;;  %v144_v63 = vsel %vm112_vm6, %v96_v15, %v128_v35  ;;  %v271_v1 = vsel %vm4546_vm5, 0, %v270_v61 }
  0x7e   :  { %213 = vst [vmem:[#allocation2 + $0x88] sm:$0x1] %v212_v59  ;;  %216 = vst [vmem:[#allocation2 + $0x90] sm:$0x1] %v215_v60  ;;  %v3857_v0 = vpack.c.bf16 %v144_v63, %v144_v63  ;;  %v274_v2 = vsel %vm4546_vm5, 0, %v273_v62  ;;  %v145_v5 = vsel %vm113_vm7, %v97_v32, %v129_v56  ;;  %v905_v12 = vor.u32 %v904_v55, %v901_v34  ;;  %v5003_v58 = vld [vmem:[%s5571_s3 + $0x200] sm:$0xff]  }
  0x7f   :  { %3908 = vmatprep.mubr.msk.bf16.mxu0 %vm661_vm1, %v3664_v44  ;;  %v1035_v7 = vld [vmem:[#allocation2 + $0x74] sm:$0x1]  ;;  %272 = vst [vmem:[#allocation2 + $0x84] sm:$0x1] %v271_v1  ;;  %275 = vst [vmem:[#allocation2 + $0x8c] sm:$0x1] %v274_v2  ;;  %v3858_v25 = vpack.c.bf16 %v145_v5, %v145_v5  ;;  %4242 = vmatprep.subr.bf16.mxu0 %v5003_v58 }
  0x80   :  { %v720_v9 = vld [vmem:[#allocation2 + $0x74] sm:$0x1]  ;;  %3909 = vmatmul.mubr.msk.bf16.gmra.mrb[20].mxu0 %vm661_vm1, %v4352_v50  ;;  %v1127_v11 = vrot.slane %v1035_v7, 5  ;;  %v459_v15 = vshrl.u32 %v3857_v0, 16  ;;  %v457_v29 = vrot.slane %v4955_v41, 4  ;;  %v906_v23 = vrot.slane %v905_v12, 4  ;;  %4274 = vmatprep.subr.bf16.mxu1 %v5003_v58 }
  0x81   :  { %v908_v13 = vshll.u32 %v720_v9, 16  ;;  %v1036_v16 = vld [vmem:[#allocation2 + $0x78] sm:$0xe]  ;;  %v1037_v18 = vld [vmem:[#allocation2 + $0x7c] sm:$0x1]  ;;  %v462_v33 = vshll.u32 %v3857_v0, 16 }
  0x82   :  { %v1128_v19 = vsel %vm4622_vm15, %v3679_v28, %v1127_v11  ;;  %v3680_v20 = vrot.slane %v1036_v16, 9  ;;  %v1131_v21 = vrot.slane %v1037_v18, 5  ;;  %v721_v22 = vld [vmem:[#allocation2 + $0x78] sm:$0xf]  ;;  %v722_v27 = vld [vmem:[#allocation2 + $0x7c] sm:$0x1] }
  0x83   :  { %v913_v30 = vshrl.u32 %v721_v22, 16  ;;  %v916_v51 = vshll.u32 %v721_v22, 16  ;;  %v922_v31 = vshll.u32 %v722_v27, 16  ;;  %v910_v24 = vrot.slane %v908_v13, 5  ;;  %v4359_v35 = vld [vmem:[#allocation2 + $0x70] ss:$8 sps:$4 sm:$0xff]  }
  0x84   :  { %v4355_v32 = vld [vmem:[#allocation2 + $0x78] ss:$8 sps:$4 sm:$0xff]   ;;  %v1132_v17 = vsel %vm4622_vm15, %v3680_v20, %v1131_v21  ;;  %v461_v40 = vrot.slane %v459_v15, 7  ;;  %v467_v14 = vshrl.u32 %v3858_v25, 16  ;;  %v470_v43 = vshll.u32 %v3858_v25, 16 }
  0x85   :  { %v3689_v4 = vcombine.low %v1128_v19, %v1132_v17  ;;  %v915_v36 = vrot.slane %v913_v30, 4  ;;  %v918_v37 = vrot.slane %v916_v51, 5  ;;  %v593_v39 = vld [vmem:[#allocation2 + $0x88] sm:$0xf]  ;;  %3926 = vmatprep.mubr.msk.bf16.mxu1 %vm661_vm1, %v4355_v32  ;;  %v924_v46 = vrot.slane %v922_v31, 5 }
  0x86   :  { %v590_v41 = vld [vmem:[#allocation2 + $0x84] sm:$0x1]  ;;  %v599_v47 = vld [vmem:[#allocation2 + $0x90] sm:$0xf]  ;;  %v596_v49 = vld [vmem:[#allocation2 + $0x8c] sm:$0x1]  ;;  %v464_v53 = vor.u32 %v462_v33, %v461_v40  ;;  %v911_v34 = vsel %vm4629_vm2, %v906_v23, %v910_v24 }
  0x87   :  { %3927 = vmatmul.mubr.msk.bf16.gmra.mrb[24].mxu1 %vm661_vm1, %v3689_v4  ;;  %v919_v45 = vor.u32 %v918_v37, %v915_v36  ;;  %v591_v48 = vsel %vm4536_vm3, %v457_v29, %v590_v41  ;;  %v723_v50 = vld [vmem:[#allocation2 + $0x80] sm:$0xf]  ;;  %v465_v28 = vrot.slane %v461_v40, 4  ;;  %v4993_v52 = vrot.slane %v467_v14, 7  ;;  %v1870_v7 = vld [vmem:[#allocation2 + $0x10] sm:$0xf] }
  0x88   :  { %592 = vst [vmem:[#allocation2 + $0x84] sm:$0x1] %v591_v48  ;;  %v927_v56 = vshrl.u32 %v723_v50, 16  ;;  %v930_v57 = vshll.u32 %v723_v50, 16  ;;  %v594_v60 = vsel %vm4588_vm12, %v464_v53, %v593_v39  ;;  %v1038_v62 = vld [vmem:[#allocation2 + $0x80] sm:$0xe] }
  0x89   :  { %v920_v55 = vrot.slane %v919_v45, 4  ;;  %v472_v59 = vor.u32 %v470_v43, %v4993_v52  ;;  %v597_v61 = vsel %vm4536_vm3, %v465_v28, %v596_v49  ;;  %595 = vst [vmem:[#allocation2 + $0x88] sm:$0xf] %v594_v60  ;;  %v1871_v9 = vld [vmem:[#allocation2 + $0x14] sm:$0x1]  ;;  %v1903_v12 = vshrl.u32 %v1870_v7, 16 }
  0x8a   :  { %598 = vst [vmem:[#allocation2 + $0x8c] sm:$0x1] %v597_v61  ;;  %v929_v63 = vrot.slane %v927_v56, 4  ;;  %v932_v0 = vrot.slane %v930_v57, 5  ;;  %v1872_v10 = vld [vmem:[#allocation2 + $0x18] sm:$0xf] }
  0x8b   :  { %v925_v44 = vsel %vm4629_vm2, %v920_v55, %v924_v46  ;;  %v600_v2 = vsel %vm4588_vm12, %v472_v59, %v599_v47  ;;  %v1873_v11 = vld [vmem:[#allocation2 + $0x1c] sm:$0x1]  ;;  %v1906_v13 = vshll.u32 %v1870_v7, 16  ;;  %v1912_v15 = vshll.u32 %v1871_v9, 16  ;;  %v1597_v28 = vld [vmem:[#allocation2 + $0x8] sm:$0xe] }
  0x8c   :  { %v3665_v1 = vcombine.low %v911_v34, %v925_v44  ;;  %601 = vst [vmem:[#allocation2 + $0x90] sm:$0xf] %v600_v2  ;;  %v933_v5 = vor.u32 %v932_v0, %v929_v63  ;;  %v1917_v16 = vshrl.u32 %v1872_v10, 16  ;;  %v1920_v18 = vshll.u32 %v1872_v10, 16  ;;  %v1598_v54 = vld [vmem:[#allocation2 + $0xc] sm:$0x1] }
  0x8d   :  { %v3681_v20 = vrot.slane %v1038_v62, 9  ;;  %v1905_v26 = vrot.slane %v1903_v12, 4  ;;  %v1908_v25 = vrot.slane %v1906_v13, 5  ;;  %v1926_v29 = vshll.u32 %v1873_v11, 16  ;;  %v1600_v59 = vld [vmem:[#allocation2 + $0x14] sm:$0x1] }
  0x8e   :  { %3910 = vmatprep.mubr.msk.bf16.mxu0 %vm661_vm1, %v3665_v1  ;;  %v5018_v27 = vrot.slane %v933_v5, 4  ;;  %v1914_v51 = vrot.slane %v1912_v15, 5  ;;  %v1919_v31 = vrot.slane %v1917_v16, 4  ;;  %v1922_v32 = vrot.slane %v1920_v18, 5  ;;  %v1285_v1 = vld [vmem:[#allocation2 + $0x8] sm:$0xf] }
  0x8f   :  { %3911 = vmatmul.mubr.msk.bf16.gmra.mrb[24].mxu0 %vm661_vm1, %v4359_v35  ;;  %v1039_v19 = vld [vmem:[#allocation2 + $0x84] sm:$0x1]  ;;  %v1909_v33 = vor.u32 %v1908_v25, %v1905_v26  ;;  %v1928_v41 = vrot.slane %v1926_v29, 5  ;;  %v1599_v35 = vld [vmem:[#allocation2 + $0x10] sm:$0xe]  ;;  %v3707_v56 = vrot.slane %v1597_v28, 9 }
  0x90   :  { %v724_v21 = vld [vmem:[#allocation2 + $0x84] sm:$0x1]  ;;  %v1135_v22 = vrot.slane %v1039_v19, 5  ;;  %v1040_v17 = vld [vmem:[#allocation2 + $0x88] sm:$0xe]  ;;  %v1923_v40 = vor.u32 %v1922_v32, %v1919_v31  ;;  %v1663_v60 = vrot.slane %v1598_v54, 5 }
  0x91   :  { %v936_v30 = vshll.u32 %v724_v21, 16  ;;  %v1041_v23 = vld [vmem:[#allocation2 + $0x8c] sm:$0x1]  ;;  %v3682_v24 = vrot.slane %v1040_v17, 9  ;;  %v725_v37 = vld [vmem:[#allocation2 + $0x88] sm:$0xf] }
  0x92   :  { %v1136_v4 = vsel %vm4622_vm15, %v3681_v20, %v1135_v22  ;;  %v1139_v36 = vrot.slane %v1041_v23, 5  ;;  %v726_v39 = vld [vmem:[#allocation2 + $0x8c] sm:$0x1]  ;;  %v941_v43 = vshrl.u32 %v725_v37, 16  ;;  %v944_v47 = vshll.u32 %v725_v37, 16 }
  0x93   :  { %v4363_v14 = vld [vmem:[#allocation2 + $0x88] ss:$8 sps:$4 sm:$0xff]   ;;  %v938_v46 = vrot.slane %v936_v30, 5  ;;  %v950_v48 = vshll.u32 %v726_v39, 16  ;;  %v1910_v53 = vrot.slane %v1909_v33, 4  ;;  %v1924_v55 = vrot.slane %v1923_v40, 4 }
  0x94   :  { %v1140_v45 = vsel %vm4622_vm15, %v3682_v24, %v1139_v36  ;;  %3928 = vmatprep.mubr.msk.bf16.mxu1 %vm661_vm1, %v4363_v14  ;;  %v943_v50 = vrot.slane %v941_v43, 4  ;;  %v946_v34 = vrot.slane %v944_v47, 5  ;;  %v3708_v61 = vrot.slane %v1599_v35, 9  ;;  %v4371_v9 = vld [vmem:[#allocation2 + $0x10] ss:$8 sps:$4 sm:$0xff]   ;;  %v5043_v36 = vld [vmem:[%s5571_s3 + $0x208] sm:$0xff]  }
  0x95   :  { %v3690_v49 = vcombine.low %v1136_v4, %v1140_v45  ;;  %v1915_v57 = vsel %vm4629_vm2, %v1910_v53, %v1914_v51  ;;  %v952_v44 = vrot.slane %v950_v48, 5  ;;  %v1929_v63 = vsel %vm4629_vm2, %v1924_v55, %v1928_v41  ;;  %v1286_v10 = vld [vmem:[#allocation2 + $0xc] sm:$0x1]  ;;  %v1287_v11 = vld [vmem:[#allocation2 + $0x10] sm:$0xf] }
  0x96   :  { %v947_v62 = vor.u32 %v946_v34, %v943_v50  ;;  %v1667_v0 = vrot.slane %v1600_v59, 5  ;;  %v939_v2 = vsel %vm4629_vm2, %v5018_v27, %v938_v46  ;;  %v3739_v7 = vcombine.low %v1915_v57, %v1929_v63  ;;  %v1288_v12 = vld [vmem:[#allocation2 + $0x14] sm:$0x1]  ;;  %v4367_v15 = vld [vmem:[#allocation2 + $0x80] ss:$8 sps:$4 sm:$0xff]  }
  0x97   :  { %3929 = vmatmul.mubr.msk.bf16.gmra.mrb[28].mxu1 %vm661_vm1, %v3690_v49  ;;  %v1664_v5 = vsel %vm4622_vm15, %v3707_v56, %v1663_v60  ;;  %v1318_v18 = vshrl.u32 %v1285_v1, 16  ;;  %v1321_v19 = vshll.u32 %v1285_v1, 16  ;;  %v1874_v20 = vld [vmem:[#allocation2 + $0x20] sm:$0xf]  ;;  %v1327_v26 = vshll.u32 %v1286_v10, 16  ;;  %v5051_v53 = vld [vmem:[%s5571_s3 + $0x210] sm:$0xff]  }
  0x98   :  { %v948_v13 = vrot.slane %v947_v62, 4  ;;  %v1668_v16 = vsel %vm4622_vm15, %v3708_v61, %v1667_v0  ;;  %3946 = vmatprep.mubr.msk.bf16.mxu1 %vm661_vm1, %v3739_v7  ;;  %v1332_v22 = vshrl.u32 %v1287_v11, 16  ;;  %v1335_v27 = vshll.u32 %v1287_v11, 16  ;;  %v1875_v25 = vld [vmem:[#allocation2 + $0x24] sm:$0x1] }
  0x99   :  { %v3723_v21 = vcombine.low %v1664_v5, %v1668_v16  ;;  %v1320_v30 = vrot.slane %v1318_v18, 4  ;;  %v1323_v51 = vrot.slane %v1321_v19, 5  ;;  %v1341_v31 = vshll.u32 %v1288_v12, 16  ;;  %v1876_v32 = vld [vmem:[#allocation2 + $0x28] sm:$0xf]  ;;  %v5066_v19 = vld [vmem:[%s5571_s3 + $0x218] sm:$0xff]  }
  0x9a   :  { %v953_v29 = vsel %vm4629_vm2, %v948_v13, %v952_v44  ;;  %v1329_v23 = vrot.slane %v1327_v26, 5  ;;  %v1334_v33 = vrot.slane %v1332_v22, 4  ;;  %v1337_v4 = vrot.slane %v1335_v27, 5  ;;  %v1877_v24 = vld [vmem:[#allocation2 + $0x2c] sm:$0x1] }
  0x9b   :  { %v3666_v17 = vcombine.low %v939_v2, %v953_v29  ;;  %v1324_v37 = vor.u32 %v1323_v51, %v1320_v30  ;;  %v1343_v39 = vrot.slane %v1341_v31, 5  ;;  %v1931_v40 = vshrl.u32 %v1874_v20, 16  ;;  %v1601_v35 = vld [vmem:[#allocation2 + $0x18] sm:$0xe]  ;;  %v1602_v60 = vld [vmem:[#allocation2 + $0x1c] sm:$0x1] }
  0x9c   :  { %v1934_v14 = vshll.u32 %v1874_v20, 16  ;;  %v1338_v43 = vor.u32 %v1337_v4, %v1334_v33  ;;  %v1940_v41 = vshll.u32 %v1875_v25, 16  ;;  %v1945_v45 = vshrl.u32 %v1876_v32, 16  ;;  %v1603_v61 = vld [vmem:[#allocation2 + $0x20] sm:$0xe] }
  0x9d   :  { %3912 = vmatprep.mubr.msk.bf16.mxu0 %vm661_vm1, %v3666_v17  ;;  %v1948_v46 = vshll.u32 %v1876_v32, 16  ;;  %v1325_v47 = vrot.slane %v1324_v37, 4  ;;  %v1933_v48 = vrot.slane %v1931_v40, 4  ;;  %v1954_v50 = vshll.u32 %v1877_v24, 16  ;;  %v1604_v0 = vld [vmem:[#allocation2 + $0x24] sm:$0x1] }
  0x9e   :  { %3913 = vmatmul.mubr.msk.bf16.gmra.mrb[28].mxu0 %vm661_vm1, %v4367_v15  ;;  %v1936_v49 = vrot.slane %v1934_v14, 5  ;;  %v1339_v28 = vrot.slane %v1338_v43, 4  ;;  %v1942_v54 = vrot.slane %v1940_v41, 5  ;;  %v1947_v34 = vrot.slane %v1945_v45, 4  ;;  %v1289_v10 = vld [vmem:[#allocation2 + $0x18] sm:$0xf] }
  0x9f   :  { %3947 = vmatmul.mubr.msk.bf16.vlgmr.msra.gmra.mrb[32].mxu1 %vm661_vm1, %v4371_v9  ;;  %3930 = vmatprep.mubr.msk.bf16.mxu0 %vm661_vm1, %v3723_v21  ;;  %v1950_v55 = vrot.slane %v1948_v46, 5  ;;  %v1330_v56 = vsel %vm4629_vm2, %v1325_v47, %v1329_v23  ;;  %v1956_v59 = vrot.slane %v1954_v50, 5  ;;  %v3709_v62 = vrot.slane %v1601_v35, 9  ;;  %v4373_v12 = vld [vmem:[#allocation2 + $0x20] ss:$8 sps:$4 sm:$0xff]  }
  0xa0   :  { %4282 = vmatpush3.bf16.msra.mxu1 %v5003_v58  ;;  %v1937_v57 = vor.u32 %v1936_v49, %v1933_v48  ;;  %v1344_v44 = vsel %vm4629_vm2, %v1339_v28, %v1343_v39  ;;  %v1671_v1 = vrot.slane %v1602_v60, 5  ;;  %v3710_v2 = vrot.slane %v1603_v61, 9  ;;  %v1290_v15 = vld [vmem:[#allocation2 + $0x1c] sm:$0x1]  ;;  %v1291_v16 = vld [vmem:[#allocation2 + $0x20] sm:$0xf] }
  0xa1   :  { %4275 = vmatprep.subr.bf16.mxu1 %v5043_v36  ;;  %v1951_v63 = vor.u32 %v1950_v55, %v1947_v34  ;;  %v3699_v7 = vcombine.low %v1330_v56, %v1344_v44  ;;  %v1675_v5 = vrot.slane %v1604_v0, 5  ;;  %v1346_v18 = vshrl.u32 %v1289_v10, 16  ;;  %v1292_v26 = vld [vmem:[#allocation2 + $0x24] sm:$0x1]  ;;  %v1878_v25 = vld [vmem:[#allocation2 + $0x30] sm:$0xf] }
  0xa2   :  { %v1938_v9 = vrot.slane %v1937_v57, 4  ;;  %v1672_v13 = vsel %vm4622_vm15, %v3709_v62, %v1671_v1  ;;  %v1349_v22 = vshll.u32 %v1289_v10, 16  ;;  %v1355_v27 = vshll.u32 %v1290_v15, 16  ;;  %v1879_v32 = vld [vmem:[#allocation2 + $0x34] sm:$0x1]  ;;  %v5079_v39 = vld [vmem:[%s5571_s3 + $0x220] sm:$0xff]  }
  0xa3   :  { %v1952_v11 = vrot.slane %v1951_v63, 4  ;;  %v1676_v21 = vsel %vm4622_vm15, %v3710_v2, %v1675_v5  ;;  %v1348_v51 = vrot.slane %v1346_v18, 4  ;;  %v1360_v31 = vshrl.u32 %v1291_v16, 16  ;;  %v1880_v17 = vld [vmem:[#allocation2 + $0x38] sm:$0xf]  ;;  %v5091_v57 = vld [vmem:[%s5571_s3 + $0x228] sm:$0xff]  }
  0xa4   :  { %4283 = vmatpush3.bf16.msra.mxu1 %v5043_v36  ;;  %v1943_v20 = vsel %vm4629_vm2, %v1938_v9, %v1942_v54  ;;  %v3724_v30 = vcombine.low %v1672_v13, %v1676_v21  ;;  %v1351_v33 = vrot.slane %v1349_v22, 5  ;;  %v1357_v4 = vrot.slane %v1355_v27, 5  ;;  %v1881_v37 = vld [vmem:[#allocation2 + $0x3c] sm:$0x1]  ;;  %v1605_v56 = vld [vmem:[#allocation2 + $0x28] sm:$0xe] }
  0xa5   :  { %4276 = vmatprep.subr.bf16.mxu1 %v5051_v53  ;;  %v1957_v29 = vsel %vm4629_vm2, %v1952_v11, %v1956_v59  ;;  %v1363_v24 = vshll.u32 %v1291_v16, 16  ;;  %v1362_v40 = vrot.slane %v1360_v31, 4  ;;  %v1369_v14 = vshll.u32 %v1292_v26, 16  ;;  %v1606_v62 = vld [vmem:[#allocation2 + $0x2c] sm:$0x1] }
  0xa6   :  { %3931 = vmatmul.mubr.msk.bf16.vlgmr.msra.gmra.mrb[32].mxu0 %vm661_vm1, %v3699_v7  ;;  %v3740_v23 = vcombine.low %v1943_v20, %v1957_v29  ;;  %v1959_v43 = vshrl.u32 %v1878_v25, 16  ;;  %v1962_v41 = vshll.u32 %v1878_v25, 16  ;;  %v1352_v45 = vor.u32 %v1351_v33, %v1348_v51  ;;  %v1607_v44 = vld [vmem:[#allocation2 + $0x30] sm:$0xe]  ;;  %v1608_v1 = vld [vmem:[#allocation2 + $0x34] sm:$0x1] }
  0xa7   :  { %4243 = vmatpush3.bf16.msra.mxu0 %v5003_v58  ;;  %3932 = vmatprep.mubr.msk.bf16.mxu0 %vm661_vm1, %v3724_v30  ;;  %v1365_v46 = vrot.slane %v1363_v24, 5  ;;  %v1968_v47 = vshll.u32 %v1879_v32, 16  ;;  %v1973_v48 = vshrl.u32 %v1880_v17, 16  ;;  %v1371_v49 = vrot.slane %v1369_v14, 5  ;;  %v1293_v15 = vld [vmem:[#allocation2 + $0x28] sm:$0xf] }
  0xa8   :  { %4284 = vmatpush3.bf16.msra.mxu1 %v5051_v53  ;;  %3948 = vmatprep.mubr.msk.bf16.mxu1 %vm661_vm1, %v3740_v23  ;;  %v1961_v50 = vrot.slane %v1959_v43, 4  ;;  %v1964_v28 = vrot.slane %v1962_v41, 5  ;;  %v1976_v58 = vshll.u32 %v1880_v17, 16  ;;  %v1353_v54 = vrot.slane %v1352_v45, 4  ;;  %v4375_v21 = vld [vmem:[#allocation2 + $0x30] ss:$8 sps:$4 sm:$0xff]  }
  0xa9   :  { %4244 = vmatprep.subr.bf16.mxu0 %v5043_v36  ;;  %3949 = vmatmul.mubr.msk.bf16.gmra.mrb[36].mxu1 %vm661_vm1, %v4373_v12  ;;  %v1366_v34 = vor.u32 %v1365_v46, %v1362_v40  ;;  %v1970_v55 = vrot.slane %v1968_v47, 5  ;;  %v1975_v35 = vrot.slane %v1973_v48, 4  ;;  %v1982_v61 = vshll.u32 %v1881_v37, 16  ;;  %v1294_v26 = vld [vmem:[#allocation2 + $0x2c] sm:$0x1]  ;;  %v5114_v32 = vld [vmem:[%s5571_s3 + $0x230] sm:$0xff]  }
  0xaa   :  { %4277 = vmatprep.subr.bf16.mxu1 %v5066_v19  ;;  %v1965_v59 = vor.u32 %v1964_v28, %v1961_v50  ;;  %v1978_v60 = vrot.slane %v1976_v58, 5  ;;  %v1358_v63 = vsel %vm4629_vm2, %v1353_v54, %v1357_v4  ;;  %v3711_v2 = vrot.slane %v1605_v56, 9  ;;  %v1295_v22 = vld [vmem:[#allocation2 + $0x30] sm:$0xf]  ;;  %v1296_v29 = vld [vmem:[#allocation2 + $0x34] sm:$0x1] }
  0xab   :  { %4245 = vmatpush3.bf16.msra.mxu0 %v5043_v36  ;;  %v1367_v0 = vrot.slane %v1366_v34, 4  ;;  %v1679_v7 = vrot.slane %v1606_v62, 5  ;;  %v1984_v10 = vrot.slane %v1982_v61, 5  ;;  %v3712_v36 = vrot.slane %v1607_v44, 9  ;;  %v187_v4 = vld [vmem:[#allocation2 + $0x48] sm:$0x1] }
  0xac   :  { %4285 = vmatpush3.bf16.msra.mxu1 %v5066_v19  ;;  %4246 = vmatprep.subr.bf16.mxu0 %v5051_v53  ;;  %v1966_v9 = vrot.slane %v1965_v59, 4  ;;  %v1979_v5 = vor.u32 %v1978_v60, %v1975_v35  ;;  %v1683_v13 = vrot.slane %v1608_v1, 5  ;;  %v1374_v27 = vshrl.u32 %v1293_v15, 16  ;;  %v246_v24 = vld [vmem:[#allocation2 + $0x44] sm:$0x1]  ;;  %v5123_v45 = vld [vmem:[%s5571_s3 + $0x238] sm:$0xff]  }
  0xad   :  { %4278 = vmatprep.subr.bf16.mxu1 %v5079_v39  ;;  %v1372_v11 = vsel %vm4629_vm2, %v1367_v0, %v1371_v49  ;;  %v1680_v12 = vsel %vm4622_vm15, %v3711_v2, %v1679_v7  ;;  %v1377_v30 = vshll.u32 %v1293_v15, 16  ;;  %v1383_v51 = vshll.u32 %v1294_v26, 16  ;;  %v249_v41 = vld [vmem:[#allocation2 + $0x4c] sm:$0x1]  ;;  %v1882_v50 = vld [vmem:[#allocation2 + $0x40] sm:$0xf] }
  0xae   :  { %v3700_v16 = vcombine.low %v1358_v63, %v1372_v11  ;;  %v1971_v18 = vsel %vm4629_vm2, %v1966_v9, %v1970_v55  ;;  %v1980_v20 = vrot.slane %v1979_v5, 4  ;;  %v1684_v25 = vsel %vm4622_vm15, %v3712_v36, %v1683_v13  ;;  %v5136_v56 = vld [vmem:[#allocation2 + $0x38] sm:$0xe]  ;;  %v5141_v62 = vld [vmem:[#allocation2 + $0x40] sm:$0xe] }
  0xaf   :  { %4247 = vmatpush3.bf16.msra.mxu0 %v5051_v53  ;;  %v1388_v31 = vshrl.u32 %v1295_v22, 16  ;;  %v3725_v17 = vcombine.low %v1680_v12, %v1684_v25  ;;  %v1376_v23 = vrot.slane %v1374_v27, 4  ;;  %v1391_v33 = vshll.u32 %v1295_v22, 16  ;;  %v1297_v9 = vld [vmem:[#allocation2 + $0x38] sm:$0xf] }
  0xb0   :  { %4286 = vmatpush3.bf16.msra.mxu1 %v5079_v39  ;;  %4248 = vmatprep.subr.bf16.mxu0 %v5066_v19  ;;  %v1985_v53 = vsel %vm4629_vm2, %v1980_v20, %v1984_v10  ;;  %v1379_v40 = vrot.slane %v1377_v30, 5  ;;  %v1385_v14 = vrot.slane %v1383_v51, 5  ;;  %v1397_v47 = vshll.u32 %v1296_v29, 16  ;;  %v1298_v5 = vld [vmem:[#allocation2 + $0x3c] sm:$0x1] }
  0xb1   :  { %4279 = vmatprep.subr.bf16.mxu1 %v5091_v57  ;;  %3933 = vmatmul.mubr.msk.bf16.gmra.mrb[36].mxu0 %vm661_vm1, %v3700_v16  ;;  %v3741_v37 = vcombine.low %v1971_v18, %v1985_v53  ;;  %v1390_v43 = vrot.slane %v1388_v31, 4  ;;  %v1393_v46 = vrot.slane %v1391_v33, 5  ;;  %v188_v48 = vsel %vm4536_vm3, 0, %v187_v4  ;;  %v1299_v36 = vld [vmem:[#allocation2 + $0x40] sm:$0xf] }
  0xb2   :  { %3934 = vmatprep.mubr.msk.bf16.mxu0 %vm661_vm1, %v3725_v17  ;;  %v247_v49 = vsel %vm4546_vm5, 0, %v246_v24  ;;  %v1380_v28 = vor.u32 %v1379_v40, %v1376_v23  ;;  %189 = vst [vmem:[#allocation2 + $0x48] sm:$0x1] %v188_v48  ;;  %v250_v58 = vsel %vm4546_vm5, 0, %v249_v41  ;;  %v1987_v54 = vshrl.u32 %v1882_v50, 16 }
  0xb3   :  { %4249 = vmatpush3.bf16.msra.mxu0 %v5066_v19  ;;  %3950 = vmatprep.mubr.msk.bf16.mxu1 %vm661_vm1, %v3741_v37  ;;  %248 = vst [vmem:[#allocation2 + $0x44] sm:$0x1] %v247_v49  ;;  %v1990_v34 = vshll.u32 %v1882_v50, 16  ;;  %v1394_v55 = vor.u32 %v1393_v46, %v1390_v43  ;;  %v1399_v35 = vrot.slane %v1397_v47, 5  ;;  %251 = vst [vmem:[#allocation2 + $0x4c] sm:$0x1] %v250_v58 }
  0xb4   :  { %4287 = vmatpush3.bf16.msra.mxu1 %v5091_v57  ;;  %4250 = vmatprep.subr.bf16.mxu0 %v5079_v39  ;;  %v5138_v19 = vld [vmem:[#allocation2 + $0x3c] sm:$0x1]  ;;  %v1381_v59 = vrot.slane %v1380_v28, 4  ;;  %v1989_v60 = vrot.slane %v1987_v54, 4  ;;  %v409_v44 = vrot.slane %v4744_v6, 4  ;;  %v3713_v0 = vrot.slane %v5136_v56, 9 }
  0xb5   :  { %3951 = vmatmul.mubr.msk.bf16.gmra.mrb[40].mxu1 %vm661_vm1, %v4375_v21  ;;  %4280 = vmatprep.subr.bf16.mxu1 %v5114_v32  ;;  %v1992_v61 = vrot.slane %v1990_v34, 5  ;;  %v1395_v63 = vrot.slane %v1394_v55, 4  ;;  %v1687_v1 = vrot.slane %v5138_v19, 5  ;;  %v3714_v10 = vrot.slane %v5141_v62, 9  ;;  %v1886_v18 = vld [vmem:[#allocation2 + $0x60] sm:$0xf] }
  0xb6   :  { %v1386_v2 = vsel %vm4629_vm2, %v1381_v59, %v1385_v14  ;;  %v1402_v11 = vshrl.u32 %v1297_v9, 16  ;;  %v1405_v12 = vshll.u32 %v1297_v9, 16  ;;  %v1411_v15 = vshll.u32 %v1298_v5, 16  ;;  %v1887_v29 = vld [vmem:[#allocation2 + $0x64] sm:$0x1] }
  0xb7   :  { %4251 = vmatpush3.bf16.msra.mxu0 %v5079_v39  ;;  %v1993_v7 = vor.u32 %v1992_v61, %v1989_v60  ;;  %v1400_v6 = vsel %vm4629_vm2, %v1395_v63, %v1399_v35  ;;  %v1416_v16 = vshrl.u32 %v1299_v36, 16  ;;  %v1888_v17 = vld [vmem:[#allocation2 + $0x68] sm:$0xf]  ;;  %v1419_v4 = vshll.u32 %v1299_v36, 16  ;;  %v1889_v24 = vld [vmem:[#allocation2 + $0x6c] sm:$0x1] }
  0xb8   :  { %4288 = vmatpush3.bf16.msra.mxu1 %v5114_v32  ;;  %4252 = vmatprep.subr.bf16.mxu0 %v5091_v57  ;;  %v3701_v13 = vcombine.low %v1386_v2, %v1400_v6  ;;  %v1404_v51 = vrot.slane %v1402_v11, 4  ;;  %v1407_v31 = vrot.slane %v1405_v12, 5  ;;  %v5163_v53 = vrot.slane %v1411_v15, 5  ;;  %v1613_v59 = vld [vmem:[#allocation2 + $0x58] sm:$0xe] }
  0xb9   :  { %4281 = vmatprep.subr.bf16.mxu1 %v5123_v45  ;;  %v5155_v39 = vrot.slane %v1993_v7, 4  ;;  %v1884_v21 = vld [vmem:[#allocation2 + $0x48] sm:$0xf]  ;;  %v1418_v33 = vrot.slane %v1416_v16, 4  ;;  %v2015_v14 = vshrl.u32 %v1886_v18, 16  ;;  %v2018_v43 = vshll.u32 %v1886_v18, 16 }
  0xba   :  { %v554_v20 = vld [vmem:[#allocation2 + $0x44] sm:$0x1]  ;;  %3935 = vmatmul.mubr.msk.bf16.gmra.mrb[40].mxu0 %vm661_vm1, %v3701_v13  ;;  %v1885_v22 = vld [vmem:[#allocation2 + $0x4c] sm:$0x1]  ;;  %v2001_v27 = vshrl.u32 %v1884_v21, 16  ;;  %v2004_v25 = vshll.u32 %v1884_v21, 16  ;;  %v1408_v40 = vor.u32 %v1407_v31, %v1404_v51  ;;  %v1688_v5 = vsel %vm4622_vm15, %v3713_v0, %v1687_v1 }
  0xbb   :  { %4253 = vmatpush3.bf16.msra.mxu0 %v5091_v57  ;;  %v555_v26 = vsel %vm4536_vm3, %v409_v44, %v554_v20  ;;  %v2010_v30 = vshll.u32 %v1885_v22, 16  ;;  %v1421_v46 = vrot.slane %v1419_v4, 5  ;;  %v2024_v47 = vshll.u32 %v1887_v29, 16  ;;  %v1614_v63 = vld [vmem:[#allocation2 + $0x5c] sm:$0x1] }
  0xbc   :  { %4289 = vmatpush3.bf16.msra.mxu1 %v5123_v45  ;;  %4254 = vmatprep.subr.bf16.mxu0 %v5114_v32  ;;  %556 = vst [vmem:[#allocation2 + $0x44] sm:$0x1] %v555_v26  ;;  %v2003_v23 = vrot.slane %v2001_v27, 4  ;;  %v2006_v57 = vrot.slane %v2004_v25, 5  ;;  %v2029_v48 = vshrl.u32 %v1888_v17, 16  ;;  %v1409_v49 = vrot.slane %v1408_v40, 4 }
  0xbd   :  { %v2012_v37 = vrot.slane %v2010_v30, 5  ;;  %v2017_v50 = vrot.slane %v2015_v14, 4  ;;  %v2020_v28 = vrot.slane %v2018_v43, 5  ;;  %v2032_v58 = vshll.u32 %v1888_v17, 16  ;;  %v1616_v15 = vld [vmem:[#allocation2 + $0x64] sm:$0x1] }
  0xbe   :  { %v2007_v41 = vor.u32 %v2006_v57, %v2003_v23  ;;  %v1422_v34 = vor.u32 %v1421_v46, %v1418_v33  ;;  %v2026_v55 = vrot.slane %v2024_v47, 5  ;;  %v2031_v35 = vrot.slane %v2029_v48, 4  ;;  %v1301_v29 = vld [vmem:[#allocation2 + $0x58] sm:$0xf]  ;;  %v1302_v30 = vld [vmem:[#allocation2 + $0x5c] sm:$0x1] }
  0xbf   :  { %4255 = vmatpush3.bf16.msra.mxu0 %v5114_v32  ;;  %v2021_v60 = vor.u32 %v2020_v28, %v2017_v50  ;;  %v2034_v61 = vrot.slane %v2032_v58, 5  ;;  %v2038_v44 = vshll.u32 %v1889_v24, 16  ;;  %v1615_v32 = vld [vmem:[#allocation2 + $0x60] sm:$0xe]  ;;  %v1414_v36 = vsel %vm4629_vm2, %v1409_v49, %v5163_v53  ;;  %v1304_v4 = vld [vmem:[#allocation2 + $0x64] sm:$0x1] }
  0xc0   :  { %4256 = vmatprep.subr.bf16.mxu0 %v5123_v45  ;;  %v2008_v54 = vrot.slane %v2007_v41, 4  ;;  %v3715_v21 = vrot.slane %v1613_v59, 9  ;;  %v1695_v1 = vrot.slane %v1614_v63, 5  ;;  %v3716_v25 = vrot.slane %v1615_v32, 9  ;;  %v4377_v31 = vld [vmem:[#allocation2 + $0x40] ss:$8 sps:$4 sm:$0xff]  }
  0xc1   :  { %v2022_v16 = vrot.slane %v2021_v60, 4  ;;  %v2035_v18 = vor.u32 %v2034_v61, %v2031_v35  ;;  %v2040_v20 = vrot.slane %v2038_v44, 5  ;;  %v1699_v53 = vrot.slane %v1616_v15, 5  ;;  %v1303_v17 = vld [vmem:[#allocation2 + $0x60] sm:$0xf] }
  0xc2   :  { %v2013_v7 = vsel %vm4629_vm2, %v2008_v54, %v2012_v37  ;;  %v1430_v24 = vshrl.u32 %v1301_v29, 16  ;;  %v1890_v37 = vld [vmem:[#allocation2 + $0x70] sm:$0xf]  ;;  %v1433_v14 = vshll.u32 %v1301_v29, 16  ;;  %v1439_v43 = vshll.u32 %v1302_v30, 16 }
  0xc3   :  { %4257 = vmatpush3.bf16.msra.mxu0 %v5123_v45  ;;  %v1883_v2 = vld [vmem:[#allocation2 + $0x44] sm:$0x1]  ;;  %v1423_v45 = vrot.slane %v1422_v34, 4  ;;  %v2027_v22 = vsel %vm4629_vm2, %v2022_v16, %v2026_v55  ;;  %v2036_v27 = vrot.slane %v2035_v18, 4  ;;  %v1700_v40 = vsel %vm4622_vm15, %v3716_v25, %v1699_v53  ;;  %v1891_v41 = vld [vmem:[#allocation2 + $0x74] sm:$0x1] }
  0xc4   :  { %v1612_v9 = vld [vmem:[#allocation2 + $0x44] sm:$0x1]  ;;  %v1996_v11 = vshll.u32 %v1883_v2, 16  ;;  %v1892_v46 = vld [vmem:[#allocation2 + $0x78] sm:$0xf]  ;;  %v1432_v48 = vrot.slane %v1430_v24, 4 }
  0xc5   :  { %v1300_v6 = vld [vmem:[#allocation2 + $0x44] sm:$0x1]  ;;  %v1691_v12 = vrot.slane %v1612_v9, 5  ;;  %v2041_v33 = vsel %vm4629_vm2, %v2036_v27, %v2040_v20  ;;  %v1444_v49 = vshrl.u32 %v1303_v17, 16  ;;  %v1447_v50 = vshll.u32 %v1303_v17, 16 }
  0xc6   :  { %v1425_v13 = vshll.u32 %v1300_v6, 16  ;;  %v1998_v19 = vrot.slane %v1996_v11, 5  ;;  %v1435_v28 = vrot.slane %v1433_v14, 5  ;;  %v1441_v58 = vrot.slane %v1439_v43, 5  ;;  %v1893_v59 = vld [vmem:[#allocation2 + $0x7c] sm:$0x1] }
  0xc7   :  { %v1692_v56 = vsel %vm4622_vm15, %v3714_v10, %v1691_v12  ;;  %v1696_v10 = vsel %vm4622_vm15, %v3715_v21, %v1695_v1  ;;  %v1453_v54 = vshll.u32 %v1304_v4, 16  ;;  %v2043_v34 = vshrl.u32 %v1890_v37, 16  ;;  %v4379_v44 = vld [vmem:[#allocation2 + $0x60] ss:$8 sps:$4 sm:$0xff]   ;;  %v1618_v12 = vld [vmem:[#allocation2 + $0x6c] sm:$0x1] }
  0xc8   :  { %v1427_v0 = vrot.slane %v1425_v13, 5  ;;  %v3726_v26 = vcombine.low %v1688_v5, %v1692_v56  ;;  %v1999_v51 = vsel %vm4629_vm2, %v5155_v39, %v1998_v19  ;;  %v3743_v39 = vcombine.low %v2027_v22, %v2041_v33  ;;  %v1617_v9 = vld [vmem:[#allocation2 + $0x68] sm:$0xe]  ;;  %v1619_v16 = vld [vmem:[#allocation2 + $0x70] sm:$0xe] }
  0xc9   :  { %v3742_v23 = vcombine.low %v1999_v51, %v2013_v7  ;;  %v3727_v47 = vcombine.low %v1696_v10, %v1700_v40  ;;  %v1446_v55 = vrot.slane %v1444_v49, 4  ;;  %v1449_v35 = vrot.slane %v1447_v50, 5  ;;  %v1620_v56 = vld [vmem:[#allocation2 + $0x74] sm:$0x1]  ;;  %v1306_v53 = vld [vmem:[#allocation2 + $0x6c] sm:$0x1] }
  0xca   :  { %v1428_v62 = vsel %vm4629_vm2, %v1423_v45, %v1427_v0  ;;  %3936 = vmatprep.mubr.msk.bf16.mxu0 %vm661_vm1, %v3726_v26  ;;  %v2046_v60 = vshll.u32 %v1890_v37, 16  ;;  %v2052_v61 = vshll.u32 %v1891_v41, 16  ;;  %v1436_v63 = vor.u32 %v1435_v28, %v1432_v48  ;;  %v1307_v17 = vld [vmem:[#allocation2 + $0x70] sm:$0xf]  ;;  %v1894_v37 = vld [vmem:[#allocation2 + $0x80] sm:$0xf] }
  0xcb   :  { %v3702_v57 = vcombine.low %v1414_v36, %v1428_v62  ;;  %3952 = vmatprep.mubr.msk.bf16.mxu1 %vm661_vm1, %v3742_v23  ;;  %v1455_v32 = vrot.slane %v1453_v54, 5  ;;  %v2045_v2 = vrot.slane %v2043_v34, 4  ;;  %v2057_v7 = vshrl.u32 %v1892_v46, 16  ;;  %v1308_v23 = vld [vmem:[#allocation2 + $0x74] sm:$0x1] }
  0xcc   :  { %3953 = vmatmul.mubr.msk.bf16.gmra.mrb[44].mxu1 %vm661_vm1, %v4377_v31  ;;  %v1450_v5 = vor.u32 %v1449_v35, %v1446_v55  ;;  %v2048_v6 = vrot.slane %v2046_v60, 5  ;;  %v2054_v36 = vrot.slane %v2052_v61, 5  ;;  %v2060_v11 = vshll.u32 %v1892_v46, 16  ;;  %v1305_v31 = vld [vmem:[#allocation2 + $0x68] sm:$0xf] }
  0xcd   :  { %3937 = vmatmul.mubr.msk.bf16.gmra.mrb[44].mxu0 %vm661_vm1, %v3702_v57  ;;  %3954 = vmatprep.mubr.msk.bf16.mxu1 %vm661_vm1, %v3743_v39  ;;  %v1437_v45 = vrot.slane %v1436_v63, 4  ;;  %v2059_v13 = vrot.slane %v2057_v7, 4  ;;  %v2066_v15 = vshll.u32 %v1893_v59, 16  ;;  %v3717_v18 = vrot.slane %v1617_v9, 9  ;;  %v1895_v39 = vld [vmem:[#allocation2 + $0x84] sm:$0x1] }
  0xce   :  { %3938 = vmatprep.mubr.msk.bf16.mxu0 %vm661_vm1, %v3727_v47  ;;  %v1451_v20 = vrot.slane %v1450_v5, 4  ;;  %v2049_v21 = vor.u32 %v2048_v6, %v2045_v2  ;;  %v2062_v19 = vrot.slane %v2060_v11, 5  ;;  %v1703_v0 = vrot.slane %v1618_v12, 5  ;;  %v4381_v40 = vld [vmem:[#allocation2 + $0x70] ss:$8 sps:$4 sm:$0xff]  }
  0xcf   :  { %v1442_v1 = vsel %vm4629_vm2, %v1437_v45, %v1441_v58  ;;  %v2068_v26 = vrot.slane %v2066_v15, 5  ;;  %v3718_v22 = vrot.slane %v1619_v16, 9  ;;  %v1707_v27 = vrot.slane %v1620_v56, 5  ;;  %v1896_v47 = vld [vmem:[#allocation2 + $0x88] sm:$0xf] }
  0xd0   :  { %v1456_v25 = vsel %vm4629_vm2, %v1451_v20, %v1455_v32  ;;  %v2050_v29 = vrot.slane %v2049_v21, 4  ;;  %v2063_v30 = vor.u32 %v2062_v19, %v2059_v13  ;;  %v1704_v51 = vsel %vm4622_vm15, %v3717_v18, %v1703_v0  ;;  %v1897_v28 = vld [vmem:[#allocation2 + $0x8c] sm:$0x1]  ;;  %v1622_v11 = vld [vmem:[#allocation2 + $0x7c] sm:$0x1] }
  0xd1   :  { %v3703_v62 = vcombine.low %v1442_v1, %v1456_v25  ;;  %v1708_v10 = vsel %vm4622_vm15, %v3718_v22, %v1707_v27  ;;  %v1458_v24 = vshrl.u32 %v1305_v31, 16  ;;  %v1461_v14 = vshll.u32 %v1305_v31, 16  ;;  %v1623_v16 = vld [vmem:[#allocation2 + $0x80] sm:$0xe]  ;;  %v1624_v19 = vld [vmem:[#allocation2 + $0x84] sm:$0x1] }
  0xd2   :  { %v2055_v57 = vsel %vm4629_vm2, %v2050_v29, %v2054_v36  ;;  %v2064_v33 = vrot.slane %v2063_v30, 4  ;;  %v3728_v4 = vcombine.low %v1704_v51, %v1708_v10  ;;  %v1467_v43 = vshll.u32 %v1306_v53, 16  ;;  %v1621_v36 = vld [vmem:[#allocation2 + $0x78] sm:$0xe]  ;;  %v1310_v51 = vld [vmem:[#allocation2 + $0x7c] sm:$0x1] }
  0xd3   :  { %v1472_v41 = vshrl.u32 %v1307_v17, 16  ;;  %v1475_v46 = vshll.u32 %v1307_v17, 16  ;;  %v1460_v49 = vrot.slane %v1458_v24, 4  ;;  %v1481_v50 = vshll.u32 %v1308_v23, 16  ;;  %v1309_v30 = vld [vmem:[#allocation2 + $0x78] sm:$0xf] }
  0xd4   :  { %3955 = vmatmul.mubr.msk.bf16.gmra.mrb[48].mxu1 %vm661_vm1, %v4379_v44  ;;  %v2069_v48 = vsel %vm4629_vm2, %v2064_v33, %v2068_v26  ;;  %v2071_v58 = vshrl.u32 %v1894_v37, 16  ;;  %v1463_v34 = vrot.slane %v1461_v14, 5  ;;  %v1469_v55 = vrot.slane %v1467_v43, 5  ;;  %v4383_v10 = vld [vmem:[#allocation2 + $0x80] ss:$8 sps:$4 sm:$0xff]  }
  0xd5   :  { %3939 = vmatmul.mubr.msk.bf16.gmra.mrb[48].mxu0 %vm661_vm1, %v3703_v62  ;;  %v3744_v54 = vcombine.low %v2055_v57, %v2069_v48  ;;  %v1474_v35 = vrot.slane %v1472_v41, 4  ;;  %v1477_v59 = vrot.slane %v1475_v46, 5  ;;  %v1483_v60 = vrot.slane %v1481_v50, 5  ;;  %v1311_v17 = vld [vmem:[#allocation2 + $0x80] sm:$0xf] }
  0xd6   :  { %3940 = vmatprep.mubr.msk.bf16.mxu0 %vm661_vm1, %v3728_v4  ;;  %v2073_v61 = vrot.slane %v2071_v58, 4  ;;  %v2074_v44 = vshll.u32 %v1894_v37, 16  ;;  %v1464_v63 = vor.u32 %v1463_v34, %v1460_v49  ;;  %v2080_v32 = vshll.u32 %v1895_v39, 16  ;;  %v1312_v23 = vld [vmem:[#allocation2 + $0x84] sm:$0x1] }
  0xd7   :  { %3956 = vmatprep.mubr.msk.bf16.mxu1 %vm661_vm1, %v3744_v54  ;;  %v2085_v2 = vshrl.u32 %v1896_v47, 16  ;;  %v2088_v7 = vshll.u32 %v1896_v47, 16  ;;  %v1478_v9 = vor.u32 %v1477_v59, %v1474_v35  ;;  %v2094_v6 = vshll.u32 %v1897_v28, 16  ;;  %v217_v39 = vld [vmem:[#allocation2 + $0x98] sm:$0x1] }
  0xd8   :  { %v2076_v5 = vrot.slane %v2074_v44, 5  ;;  %v1465_v12 = vrot.slane %v1464_v63, 4  ;;  %v2082_v45 = vrot.slane %v2080_v32, 5  ;;  %v3719_v56 = vrot.slane %v1621_v36, 9  ;;  %v279_v47 = vld [vmem:[#allocation2 + $0x9c] sm:$0x1] }
  0xd9   :  { %v2087_v13 = vrot.slane %v2085_v2, 4  ;;  %v2090_v15 = vrot.slane %v2088_v7, 5  ;;  %v1479_v18 = vrot.slane %v1478_v9, 4  ;;  %v2096_v21 = vrot.slane %v2094_v6, 5  ;;  %v1898_v48 = vld [vmem:[#allocation2 + $0x90] sm:$0xf] }
  0xda   :  { %v2077_v20 = vor.u32 %v2076_v5, %v2073_v61  ;;  %v1470_v0 = vsel %vm4629_vm2, %v1465_v12, %v1469_v55  ;;  %v1711_v26 = vrot.slane %v1622_v11, 5  ;;  %v3720_v22 = vrot.slane %v1623_v16, 9  ;;  %v5237_v59 = vld [vmem:[#allocation2 + $0x88] sm:$0xe]  ;;  %v5242_v32 = vld [vmem:[#allocation2 + $0x8c] sm:$0x1] }
  0xdb   :  { %v2091_v1 = vor.u32 %v2090_v15, %v2087_v13  ;;  %v1484_v27 = vsel %vm4629_vm2, %v1479_v18, %v1483_v60  ;;  %v1715_v29 = vrot.slane %v1624_v19, 5  ;;  %v1486_v57 = vshrl.u32 %v1309_v30, 16  ;;  %v5246_v5 = vld [vmem:[#allocation2 + $0x90] sm:$0xe]  ;;  %v1313_v15 = vld [vmem:[#allocation2 + $0x88] sm:$0xf] }
  0xdc   :  { %3957 = vmatmul.mubr.msk.bf16.gmra.mrb[52].mxu1 %vm661_vm1, %v4381_v40  ;;  %v2078_v25 = vrot.slane %v2077_v20, 4  ;;  %v3704_v31 = vcombine.low %v1470_v0, %v1484_v27  ;;  %v1712_v53 = vsel %vm4622_vm15, %v3719_v56, %v1711_v26  ;;  %v1489_v24 = vshll.u32 %v1309_v30, 16  ;;  %v276_v40 = vld [vmem:[#allocation2 + $0x94] sm:$0x1]  ;;  %v1314_v18 = vld [vmem:[#allocation2 + $0x8c] sm:$0x1] }
  0xdd   :  { %v2092_v62 = vrot.slane %v2091_v1, 4  ;;  %v1716_v4 = vsel %vm4622_vm15, %v3720_v22, %v1715_v29  ;;  %v1495_v37 = vshll.u32 %v1310_v51, 16  ;;  %v1488_v41 = vrot.slane %v1486_v57, 4  ;;  %v1315_v20 = vld [vmem:[#allocation2 + $0x90] sm:$0xf] }
  0xde   :  { %v2083_v33 = vsel %vm4629_vm2, %v2078_v25, %v2082_v45  ;;  %3941 = vmatmul.mubr.msk.bf16.gmra.mrb[52].mxu0 %vm661_vm1, %v3704_v31  ;;  %v3729_v43 = vcombine.low %v1712_v53, %v1716_v4  ;;  %v1500_v46 = vshrl.u32 %v1311_v17, 16  ;;  %v1491_v50 = vrot.slane %v1489_v24, 5  ;;  %v2198_v26 = vld [vmem:[#allocation2 + $0x60] sm:$0xe]  ;;  %v2199_v29 = vld [vmem:[#allocation2 + $0x64] sm:$0x1] }
  0xdf   :  { %v2097_v14 = vsel %vm4629_vm2, %v2092_v62, %v2096_v21  ;;  %v1497_v28 = vrot.slane %v1495_v37, 5  ;;  %v1503_v58 = vshll.u32 %v1311_v17, 16  ;;  %v1509_v34 = vshll.u32 %v1312_v23, 16  ;;  %v2200_v30 = vld [vmem:[#allocation2 + $0x68] sm:$0xe] }
  0xe0   :  { %v3745_v49 = vcombine.low %v2083_v33, %v2097_v14  ;;  %3942 = vmatprep.mubr.msk.bf16.mxu0 %vm661_vm1, %v3729_v43  ;;  %v1502_v54 = vrot.slane %v1500_v46, 4  ;;  %v218_v55 = vsel %vm4536_vm3, 0, %v217_v39  ;;  %v277_v35 = vsel %vm4546_vm5, 0, %v276_v40 }
  0xe1   :  { %v1492_v60 = vor.u32 %v1491_v50, %v1488_v41  ;;  %v1505_v61 = vrot.slane %v1503_v58, 5  ;;  %219 = vst [vmem:[#allocation2 + $0x98] sm:$0x1] %v218_v55  ;;  %278 = vst [vmem:[#allocation2 + $0x94] sm:$0x1] %v277_v35  ;;  %v280_v44 = vsel %vm4546_vm5, 0, %v279_v47 }
  0xe2   :  { %3958 = vmatprep.mubr.msk.bf16.mxu1 %vm661_vm1, %v3745_v49  ;;  %v2099_v63 = vshrl.u32 %v1898_v48, 16  ;;  %v473_v2 = vrot.slane %v4993_v52, 4  ;;  %v1511_v7 = vrot.slane %v1509_v34, 5  ;;  %281 = vst [vmem:[#allocation2 + $0x9c] sm:$0x1] %v280_v44  ;;  %v2102_v9 = vshll.u32 %v1898_v48, 16 }
  0xe3   :  { %v3721_v6 = vrot.slane %v5237_v59, 9  ;;  %v1493_v36 = vrot.slane %v1492_v60, 4  ;;  %v1506_v11 = vor.u32 %v1505_v61, %v1502_v54  ;;  %v1719_v42 = vrot.slane %v5242_v32, 5  ;;  %v2201_v41 = vld [vmem:[#allocation2 + $0x6c] sm:$0x1] }
  0xe4   :  { %3959 = vmatmul.mubr.msk.bf16.gmra.mrb[56].mxu1 %vm661_vm1, %v4383_v10  ;;  %v2101_v12 = vrot.slane %v2099_v63, 4  ;;  %v2104_v45 = vrot.slane %v2102_v9, 5  ;;  %v3722_v13 = vrot.slane %v5246_v5, 9  ;;  %v1514_v21 = vshrl.u32 %v1313_v15, 16  ;;  %v2202_v50 = vld [vmem:[#allocation2 + $0x70] sm:$0xe] }
  0xe5   :  { %v1498_v52 = vsel %vm4629_vm2, %v1493_v36, %v1497_v28  ;;  %v1507_v16 = vrot.slane %v1506_v11, 4  ;;  %v1517_v56 = vshll.u32 %v1313_v15, 16  ;;  %v1523_v0 = vshll.u32 %v1314_v18, 16  ;;  %v2203_v34 = vld [vmem:[#allocation2 + $0x74] sm:$0x1] }
  0xe6   :  { %v2105_v19 = vor.u32 %v2104_v45, %v2101_v12  ;;  %v1528_v1 = vshrl.u32 %v1315_v20, 16  ;;  %v1516_v27 = vrot.slane %v1514_v21, 4  ;;  %v1531_v25 = vshll.u32 %v1315_v20, 16  ;;  %v2204_v55 = vld [vmem:[#allocation2 + $0x78] sm:$0xe] }
  0xe7   :  { %v1512_v22 = vsel %vm4629_vm2, %v1507_v16, %v1511_v7  ;;  %v1519_v53 = vrot.slane %v1517_v56, 5  ;;  %v5260_v37 = vrot.slane %v1523_v0, 5  ;;  %v3755_v46 = vrot.slane %v2198_v26, 9  ;;  %v2205_v61 = vld [vmem:[#allocation2 + $0x7c] sm:$0x1] }
  0xe8   :  { %v3705_v51 = vcombine.low %v1498_v52, %v1512_v22  ;;  %v602_v31 = vld [vmem:[#allocation2 + $0x94] sm:$0x1]  ;;  %v1900_v62 = vld [vmem:[#allocation2 + $0x98] sm:$0xf]  ;;  %v5255_v10 = vrot.slane %v2105_v19, 4  ;;  %v1530_v39 = vrot.slane %v1528_v1, 4  ;;  %v1720_v21 = vsel %vm4622_vm15, %v3721_v6, %v1719_v42 }
  0xe9   :  { %v603_v17 = vsel %vm4536_vm3, %v473_v2, %v602_v31  ;;  %v1901_v23 = vld [vmem:[#allocation2 + $0x9c] sm:$0x1]  ;;  %v2113_v57 = vshrl.u32 %v1900_v62, 16  ;;  %v2116_v33 = vshll.u32 %v1900_v62, 16  ;;  %v1520_v24 = vor.u32 %v1519_v53, %v1516_v27  ;;  %v2182_v2 = vld [vmem:[#allocation2 + $0x10] sm:$0xe] }
  0xea   :  { %3943 = vmatmul.mubr.msk.bf16.gmra.mrb[56].mxu0 %vm661_vm1, %v3705_v51  ;;  %604 = vst [vmem:[#allocation2 + $0x94] sm:$0x1] %v603_v17  ;;  %v2122_v4 = vshll.u32 %v1901_v23, 16  ;;  %v1533_v43 = vrot.slane %v1531_v25, 5  ;;  %v2280_v38 = vrot.slane %v2199_v29, 5  ;;  %v3756_v49 = vrot.slane %v2200_v30, 9 }
  0xeb   :  { %v2115_v40 = vrot.slane %v2113_v57, 4  ;;  %v2118_v14 = vrot.slane %v2116_v33, 5  ;;  %v5262_v48 = vrot.slane %v1520_v24, 4  ;;  %v2284_v54 = vrot.slane %v2201_v41, 5  ;;  %v2183_v12 = vld [vmem:[#allocation2 + $0x14] sm:$0x1] }
  0xec   :  { %v2124_v47 = vrot.slane %v2122_v4, 5  ;;  %v1534_v58 = vor.u32 %v1533_v43, %v1530_v39  ;;  %v3757_v35 = vrot.slane %v2202_v50, 9  ;;  %v5266_v60 = vsel %vm4622_vm15, %v3755_v46, %v2280_v38  ;;  %v2184_v45 = vld [vmem:[#allocation2 + $0x18] sm:$0xe]  ;;  %v2185_v15 = vld [vmem:[#allocation2 + $0x1c] sm:$0x1] }
  0xed   :  { %v2119_v28 = vor.u32 %v2118_v14, %v2115_v40  ;;  %v2288_v44 = vrot.slane %v2203_v34, 5  ;;  %v3758_v63 = vrot.slane %v2204_v55, 9  ;;  %v5270_v36 = vsel %vm4622_vm15, %v3756_v49, %v2284_v54  ;;  %v2186_v27 = vld [vmem:[#allocation2 + $0x20] sm:$0xe]  ;;  %v2187_v25 = vld [vmem:[#allocation2 + $0x24] sm:$0x1] }
  0xee   :  { %v1535_v9 = vrot.slane %v1534_v58, 4  ;;  %v2292_v11 = vrot.slane %v2205_v61, 5  ;;  %v3747_v52 = vrot.slane %v2182_v2, 9  ;;  %v2248_v16 = vrot.slane %v2183_v12, 5  ;;  %v2188_v29 = vld [vmem:[#allocation2 + $0x28] sm:$0xe] }
  0xef   :  { %v2120_v7 = vrot.slane %v2119_v28, 4  ;;  %v1526_v56 = vsel %vm4629_vm2, %v5262_v48, %v5260_v37  ;;  %v3767_v22 = vcombine.low %v5266_v60, %v5270_v36  ;;  %v3748_v6 = vrot.slane %v2184_v45, 9  ;;  %v4385_v51 = vld [vmem:[#allocation2 + $0x90] ss:$8 sps:$4 sm:$0xff]   ;;  %v2189_v53 = vld [vmem:[#allocation2 + $0x2c] sm:$0x1] }
  0xf0   :  { %v2249_v59 = vsel %vm4622_vm15, %v3747_v52, %v2248_v16  ;;  %v2252_v42 = vrot.slane %v2185_v15, 5  ;;  %v3749_v17 = vrot.slane %v2186_v27, 9  ;;  %v2256_v4 = vrot.slane %v2187_v25, 5  ;;  %v2206_v37 = vld [vmem:[#allocation2 + $0x80] sm:$0xe] }
  0xf1   :  { %v1899_v18 = vld [vmem:[#allocation2 + $0x94] sm:$0x1]  ;;  %v2125_v32 = vsel %vm4629_vm2, %v2120_v7, %v2124_v47  ;;  %v3750_v24 = vrot.slane %v2188_v29, 9  ;;  %v2207_v39 = vld [vmem:[#allocation2 + $0x84] sm:$0x1]  ;;  %v2260_v14 = vrot.slane %v2189_v53, 5  ;;  %v2289_v38 = vsel %vm4622_vm15, %v3757_v35, %v2288_v44 }
  0xf2   :  { %v1628_v20 = vld [vmem:[#allocation2 + $0x94] sm:$0x1]  ;;  %v2108_v0 = vshll.u32 %v1899_v18, 16  ;;  %v2253_v33 = vsel %vm4622_vm15, %v3748_v6, %v2252_v42  ;;  %v2208_v43 = vld [vmem:[#allocation2 + $0x88] sm:$0xe]  ;;  %v3759_v49 = vrot.slane %v2206_v37, 9  ;;  %v2293_v8 = vsel %vm4622_vm15, %v3758_v63, %v2292_v11 }
  0xf3   :  { %v1316_v19 = vld [vmem:[#allocation2 + $0x94] sm:$0x1]  ;;  %v1723_v1 = vrot.slane %v1628_v20, 5  ;;  %v2209_v41 = vld [vmem:[#allocation2 + $0x8c] sm:$0x1]  ;;  %v3760_v58 = vrot.slane %v2208_v43, 9  ;;  %v2257_v35 = vsel %vm4622_vm15, %v3749_v17, %v2256_v4  ;;  %v2261_v60 = vsel %vm4622_vm15, %v3750_v24, %v2260_v14 }
  0xf4   :  { %v1537_v26 = vshll.u32 %v1316_v19, 16  ;;  %v2110_v30 = vrot.slane %v2108_v0, 5  ;;  %v5302_v50 = vld [vmem:[#allocation2 + $0x90] sm:$0xe]  ;;  %v2300_v54 = vrot.slane %v2209_v41, 5  ;;  %v3768_v36 = vcombine.low %v2289_v38, %v2293_v8 }
  0xf5   :  { %v1724_v31 = vsel %vm4622_vm15, %v3722_v13, %v1723_v1  ;;  %v3763_v13 = vcombine.low %v2249_v59, %v2253_v33  ;;  %v2211_v55 = vld [vmem:[#allocation2 + $0x94] sm:$0x1]  ;;  %v2212_v61 = vld [vmem:[#allocation2 + $0x98] sm:$0xe]  ;;  %v2213_v44 = vld [vmem:[#allocation2 + $0x9c] sm:$0x1]  ;;  %v3764_v0 = vcombine.low %v2257_v35, %v2261_v60 }
  0xf6   :  { %v1539_v62 = vrot.slane %v1537_v26, 5  ;;  %v3730_v57 = vcombine.low %v1720_v21, %v1724_v31  ;;  %v2111_v40 = vsel %vm4629_vm2, %v5255_v10, %v2110_v30  ;;  %v2296_v10 = vrot.slane %v2207_v39, 5  ;;  %v2190_v2 = vld [vmem:[#allocation2 + $0x30] sm:$0xe]  ;;  %v2191_v7 = vld [vmem:[#allocation2 + $0x34] sm:$0x1] }
  0xf7   :  { %v3746_v47 = vcombine.low %v2111_v40, %v2125_v32  ;;  %v3761_v63 = vrot.slane %v5302_v50, 9  ;;  %v2192_v12 = vld [vmem:[#allocation2 + $0x38] sm:$0xe]  ;;  %v2193_v45 = vld [vmem:[#allocation2 + $0x3c] sm:$0x1]  ;;  %v3751_v15 = vrot.slane %v2190_v2, 9  ;;  %v2301_v16 = vsel %vm4622_vm15, %v3760_v58, %v2300_v54 }
  0xf8   :  { %v1540_v5 = vsel %vm4629_vm2, %v1535_v9, %v1539_v62  ;;  %3944 = vmatprep.mubr.msk.bf16.mxu0 %vm661_vm1, %v3730_v57  ;;  %v2297_v11 = vsel %vm4622_vm15, %v3759_v49, %v2296_v10  ;;  %v2264_v52 = vrot.slane %v2191_v7, 5  ;;  %v3752_v18 = vrot.slane %v2192_v12, 9  ;;  %v2194_v21 = vld [vmem:[#allocation2 + $0x40] sm:$0xe]  ;;  %v2195_v19 = vld [vmem:[#allocation2 + $0x44] sm:$0x1] }
  0xf9   :  { %v3706_v48 = vcombine.low %v1526_v56, %v1540_v5  ;;  %3960 = vmatprep.mubr.msk.bf16.mxu1 %vm661_vm1, %v3746_v47  ;;  %v2268_v20 = vrot.slane %v2193_v45, 5  ;;  %v2196_v26 = vld [vmem:[#allocation2 + $0x48] sm:$0xe]  ;;  %v3753_v27 = vrot.slane %v2194_v21, 9  ;;  %v2272_v32 = vrot.slane %v2195_v19, 5 }
  0xfa   :  { %3961 = vmatmul.mubr.msk.bf16.gmra.mrb[60].mxu1 %vm661_vm1, %v4385_v51  ;;  %v2265_v1 = vsel %vm4622_vm15, %v3751_v15, %v2264_v52  ;;  %v2304_v59 = vrot.slane %v2211_v55, 5  ;;  %v3754_v42 = vrot.slane %v2196_v26, 9  ;;  %v3769_v30 = vcombine.low %v2297_v11, %v2301_v16 }
  0xfb   :  { %3945 = vmatmul.mubr.msk.bf16.gmra.mrb[60].mxu0 %vm661_vm1, %v3706_v48  ;;  %4266 = vmatprep.mubr.msk.bf16.mxu1 %vm661_vm1, %v3767_v22  ;;  %v2197_v22 = vld [vmem:[#allocation2 + $0x4c] sm:$0x1]  ;;  %v2269_v6 = vsel %vm4622_vm15, %v3752_v18, %v2268_v20  ;;  %v3762_v51 = vrot.slane %v2212_v61, 9  ;;  %v2308_v31 = vrot.slane %v2213_v44, 5  ;;  %v2273_v33 = vsel %vm4622_vm15, %v3753_v27, %v2272_v32 }
  0xfc   :  { %4258 = vmatprep.mubr.msk.bf16.mxu0 %vm661_vm1, %v3763_v13  ;;  %v2276_v25 = vrot.slane %v2197_v22, 5  ;;  %v3765_v62 = vcombine.low %v2265_v1, %v2269_v6  ;;  %v2305_v14 = vsel %vm4622_vm15, %v3761_v63, %v2304_v59  ;;  %vm3623_vm3 = vcmask 58368  }
  0xfd   :  { %v2309_v43 = vsel %vm4622_vm15, %v3762_v51, %v2308_v31 }
  0xfe   :  { %v2277_v4 = vsel %vm4622_vm15, %v3754_v42, %v2276_v25  ;;  %v3770_v49 = vcombine.low %v2305_v14, %v2309_v43 }
  0xff   :  { %v3766_v48 = vcombine.low %v2273_v33, %v2277_v4 }
 0x102   :  { %4267 = vmatmul.mubr.msk.bf16.vlgmr.msra.gmra.mrb[64].mxu1 %vm661_vm1, %v3768_v36 }
 0x103   :  { %v4050_v23 = vpop.f32.mrb[0].mxu1  ;;  %4259 = vmatmul.mubr.msk.bf16.vlgmr.msra.gmra.mrb[64].mxu0 %vm661_vm1, %v3764_v0  ;;  %4270 = vmatprep.mubr.msk.bf16.mxu1 %vm661_vm1, %v3769_v30 }
 0x104   :  { %v4051_v46 = vpop.f32.mrb[1].mxu1  ;;  %4262 = vmatprep.mubr.msk.bf16.mxu0 %vm661_vm1, %v3765_v62 }
 0x105   :  { %v4053_v28 = vpop.f32.mrb[2].mxu1  ;;  %v4052_v9 = vadd.f32 %v4051_v46, %v4050_v23 }
 0x106   :  { %v4054_v34 = vpop.f32.mrb[3].mxu1 }
 0x107   :  { %v4055_v56 = vadd.f32 %v4054_v34, %v4053_v28 }
 0x10a   :  { %4271 = vmatmul.mubr.msk.bf16.gmra.mrb[68].mxu1 %vm661_vm1, %v3770_v49 }
 0x10b   :  { %v3986_v29 = vpop.f32.mrb[0].mxu0  ;;  %4263 = vmatmul.mubr.msk.bf16.gmra.mrb[68].mxu0 %vm661_vm1, %v3766_v48 }
 0x10c   :  { %v3987_v53 = vpop.f32.mrb[1].mxu0  ;;  %v4056_v57 = vpop.f32.mrb[4].mxu1 }
 0x10d   :  { %v3988_v17 = vadd.f32 %v3987_v53, %v3986_v29  ;;  %v3989_v23 = vpop.f32.mrb[2].mxu0  ;;  %v4057_v37 = vpop.f32.mrb[5].mxu1 }
 0x10e   :  { %v3990_v24 = vpop.f32.mrb[3].mxu0  ;;  %v4058_v5 = vadd.f32 %v4057_v37, %v4056_v57  ;;  %v4059_v13 = vpop.f32.mrb[6].mxu1 }
 0x10f   :  { %v5331_v39 = vadd.f32 %v4052_v9, %v3988_v17  ;;  %v3991_v40 = vadd.f32 %v3990_v24, %v3989_v23  ;;  %v4060_v41 = vpop.f32.mrb[7].mxu1 }
 0x110   :  { %v4061_v47 = vadd.f32 %v4060_v41, %v4059_v13 }
 0x111   :  { %v5338_v46 = vadd.f32 %v4055_v56, %v3991_v40 }
 0x113   :  { %v3992_v38 = vpop.f32.mrb[4].mxu0 }
 0x114   :  { %v3993_v50 = vpop.f32.mrb[5].mxu0 }
 0x115   :  { %v3994_v28 = vadd.f32 %v3993_v50, %v3992_v38  ;;  %v3995_v8 = vpop.f32.mrb[6].mxu0 }
 0x116   :  { %v3996_v10 = vpop.f32.mrb[7].mxu0 }
 0x117   :  { %v5341_v58 = vadd.f32 %v4058_v5, %v3994_v28  ;;  %v3997_v54 = vadd.f32 %v3996_v10, %v3995_v8 }
 0x119   :  { %v5344_v3 = vadd.f32 %v4061_v47, %v3997_v54  ;;  %v4062_v34 = vpop.f32.mrb[8].mxu1 }
 0x11a   :  { %v4063_v55 = vpop.f32.mrb[9].mxu1 }
 0x11b   :  { %v4064_v35 = vadd.f32 %v4063_v55, %v4062_v34  ;;  %v4065_v60 = vpop.f32.mrb[10].mxu1 }
 0x11c   :  { %v4066_v61 = vpop.f32.mrb[11].mxu1 }
 0x11d   :  { %v4067_v44 = vadd.f32 %v4066_v61, %v4065_v60 }
 0x120   :  { %v3998_v63 = vpop.f32.mrb[8].mxu0 }
 0x121   :  { %v3999_v2 = vpop.f32.mrb[9].mxu0 }
 0x122   :  { %v4000_v7 = vadd.f32 %v3999_v2, %v3998_v63  ;;  %v4001_v9 = vpop.f32.mrb[10].mxu0 }
 0x123   :  { %v4002_v36 = vpop.f32.mrb[11].mxu0 }
 0x124   :  { %v5346_v11 = vadd.f32 %v4064_v35, %v4000_v7  ;;  %v4003_v12 = vadd.f32 %v4002_v36, %v4001_v9 }
 0x126   :  { %v5348_v45 = vadd.f32 %v4067_v44, %v4003_v12 }
 0x12a   :  { %v4068_v15 = vpop.f32.mrb[12].mxu1 }
 0x12b   :  { %v4069_v52 = vpop.f32.mrb[13].mxu1 }
 0x12c   :  { %v4070_v16 = vadd.f32 %v4069_v52, %v4068_v15  ;;  %v4071_v18 = vpop.f32.mrb[14].mxu1 }
 0x12d   :  { %v4072_v20 = vpop.f32.mrb[15].mxu1 }
 0x12e   :  { %v4073_v21 = vadd.f32 %v4072_v20, %v4071_v18 }
 0x132   :  { %v4004_v19 = vpop.f32.mrb[12].mxu0 }
 0x133   :  { %v4005_v56 = vpop.f32.mrb[13].mxu0 }
 0x134   :  { %v4006_v0 = vadd.f32 %v4005_v56, %v4004_v19  ;;  %v4007_v1 = vpop.f32.mrb[14].mxu0 }
 0x135   :  { %v4008_v26 = vpop.f32.mrb[15].mxu0 }
 0x136   :  { %v5350_v22 = vadd.f32 %v4070_v16, %v4006_v0  ;;  %v4009_v27 = vadd.f32 %v4008_v26, %v4007_v1 }
 0x138   :  { %v5352_v32 = vadd.f32 %v4073_v21, %v4009_v27 }
 0x13b   :  { %v4074_v59 = vpop.f32.mrb[16].mxu1 }
 0x13c   :  { %v4075_v6 = vpop.f32.mrb[17].mxu1 }
 0x13d   :  { %v4076_v42 = vadd.f32 %v4075_v6, %v4074_v59  ;;  %v4077_v25 = vpop.f32.mrb[18].mxu1 }
 0x13e   :  { %v4078_v29 = vpop.f32.mrb[19].mxu1 }
 0x13f   :  { %v4079_v30 = vadd.f32 %v4078_v29, %v4077_v25 }
 0x143   :  { %v4010_v51 = vpop.f32.mrb[16].mxu0 }
 0x144   :  { %v4011_v31 = vpop.f32.mrb[17].mxu0 }
 0x145   :  { %v4012_v62 = vadd.f32 %v4011_v31, %v4010_v51  ;;  %v4013_v53 = vpop.f32.mrb[18].mxu0 }
 0x146   :  { %v4014_v17 = vpop.f32.mrb[19].mxu0 }
 0x147   :  { %v5354_v23 = vadd.f32 %v4076_v42, %v4012_v62  ;;  %v4015_v57 = vadd.f32 %v4014_v17, %v4013_v53 }
 0x149   :  { %v5356_v33 = vadd.f32 %v4079_v30, %v4015_v57 }
 0x14b   :  { %v4080_v4 = vpop.f32.mrb[20].mxu1 }
 0x14c   :  { %v4081_v24 = vpop.f32.mrb[21].mxu1 }
 0x14d   :  { %v4082_v37 = vadd.f32 %v4081_v24, %v4080_v4  ;;  %v4083_v40 = vpop.f32.mrb[22].mxu1 }
 0x14e   :  { %v4084_v5 = vpop.f32.mrb[23].mxu1 }
 0x14f   :  { %v4085_v13 = vadd.f32 %v4084_v5, %v4083_v40 }
 0x153   :  { %v4016_v14 = vpop.f32.mrb[20].mxu0 }
 0x154   :  { %v4017_v43 = vpop.f32.mrb[21].mxu0 }
 0x155   :  { %v4018_v41 = vadd.f32 %v4017_v43, %v4016_v14  ;;  %v4019_v47 = vpop.f32.mrb[22].mxu0 }
 0x156   :  { %v4020_v48 = vpop.f32.mrb[23].mxu0 }
 0x157   :  { %v5358_v38 = vadd.f32 %v4082_v37, %v4018_v41  ;;  %v4021_v49 = vadd.f32 %v4020_v48, %v4019_v47 }
 0x159   :  { %v5360_v50 = vadd.f32 %v4085_v13, %v4021_v49 }
 0x15a   :  { %v4086_v28 = vpop.f32.mrb[24].mxu1 }
 0x15b   :  { %v4087_v8 = vpop.f32.mrb[25].mxu1 }
 0x15c   :  { %v4088_v10 = vadd.f32 %v4087_v8, %v4086_v28  ;;  %v4089_v54 = vpop.f32.mrb[26].mxu1 }
 0x15d   :  { %v4090_v34 = vpop.f32.mrb[27].mxu1 }
 0x15e   :  { %v4091_v55 = vadd.f32 %v4090_v34, %v4089_v54 }
 0x162   :  { %v4022_v35 = vpop.f32.mrb[24].mxu0 }
 0x163   :  { %v4023_v60 = vpop.f32.mrb[25].mxu0 }
 0x164   :  { %v4024_v61 = vadd.f32 %v4023_v60, %v4022_v35  ;;  %v4025_v44 = vpop.f32.mrb[26].mxu0 }
 0x165   :  { %v4026_v63 = vpop.f32.mrb[27].mxu0 }
 0x166   :  { %v5362_v2 = vadd.f32 %v4088_v10, %v4024_v61  ;;  %v4027_v7 = vadd.f32 %v4026_v63, %v4025_v44 }
 0x168   :  { %v5364_v9 = vadd.f32 %v4091_v55, %v4027_v7 }
 0x16a   :  { %v4092_v36 = vpop.f32.mrb[28].mxu1 }
 0x16b   :  { %v4093_v12 = vpop.f32.mrb[29].mxu1 }
 0x16c   :  { %v4094_v15 = vadd.f32 %v4093_v12, %v4092_v36  ;;  %v4095_v52 = vpop.f32.mrb[30].mxu1 }
 0x16d   :  { %v4096_v16 = vpop.f32.mrb[31].mxu1 }
 0x16e   :  { %v4097_v18 = vadd.f32 %v4096_v16, %v4095_v52 }
 0x171   :  { %v4028_v21 = vpop.f32.mrb[28].mxu0 }
 0x172   :  { %v4178_v20 = vpop.f32.mrb[32].mxu1  ;;  %v4029_v56 = vpop.f32.mrb[29].mxu0 }
 0x173   :  { %v4179_v19 = vpop.f32.mrb[33].mxu1  ;;  %v4030_v26 = vadd.f32 %v4029_v56, %v4028_v21  ;;  %v4031_v27 = vpop.f32.mrb[30].mxu0 }
 0x174   :  { %v4180_v0 = vadd.f32 %v4179_v19, %v4178_v20  ;;  %v4181_v1 = vpop.f32.mrb[34].mxu1  ;;  %v4032_v6 = vpop.f32.mrb[31].mxu0 }
 0x175   :  { %v4182_v59 = vpop.f32.mrb[35].mxu1  ;;  %v5366_v25 = vadd.f32 %v4094_v15, %v4030_v26  ;;  %v4033_v29 = vadd.f32 %v4032_v6, %v4031_v27 }
 0x176   :  { %v4183_v42 = vadd.f32 %v4182_v59, %v4181_v1 }
 0x177   :  { %v5368_v30 = vadd.f32 %v4097_v18, %v4033_v29 }
 0x179   :  { %v4114_v51 = vpop.f32.mrb[32].mxu0 }
 0x17a   :  { %v4115_v31 = vpop.f32.mrb[33].mxu0 }
 0x17b   :  { %v4116_v62 = vadd.f32 %v4115_v31, %v4114_v51  ;;  %v4117_v53 = vpop.f32.mrb[34].mxu0 }
 0x17c   :  { %v4118_v17 = vpop.f32.mrb[35].mxu0  ;;  %v4184_v57 = vpop.f32.mrb[36].mxu1 }
 0x17d   :  { %v3243_v4 = vadd.f32 %v4116_v62, %v5331_v39  ;;  %v4119_v24 = vadd.f32 %v4118_v17, %v4117_v53  ;;  %v4185_v37 = vpop.f32.mrb[37].mxu1 }
 0x17e   :  { %v4186_v40 = vadd.f32 %v4185_v37, %v4184_v57  ;;  %v4187_v5 = vpop.f32.mrb[38].mxu1 }
 0x17f   :  { %v3246_v13 = vadd.f32 %v4119_v24, %v5338_v46  ;;  %v4188_v14 = vpop.f32.mrb[39].mxu1  ;;  %v5372_v43 = vadd.f32 %v4180_v0, %v3243_v4 }
 0x180   :  { %v4189_v41 = vadd.f32 %v4188_v14, %v4187_v5 }
 0x181   :  { %v5374_v47 = vadd.f32 %v4183_v42, %v3246_v13 }
 0x184   :  { %v4120_v48 = vpop.f32.mrb[36].mxu0 }
 0x185   :  { %v4121_v49 = vpop.f32.mrb[37].mxu0 }
 0x186   :  { %v4122_v28 = vadd.f32 %v4121_v49, %v4120_v48  ;;  %v4123_v8 = vpop.f32.mrb[38].mxu0 }
 0x187   :  { %v4124_v10 = vpop.f32.mrb[39].mxu0 }
 0x188   :  { %v3251_v54 = vadd.f32 %v4122_v28, %v5341_v58  ;;  %v4125_v39 = vadd.f32 %v4124_v10, %v4123_v8  ;;  %v4190_v34 = vpop.f32.mrb[40].mxu1 }
 0x189   :  { %v4191_v55 = vpop.f32.mrb[41].mxu1 }
 0x18a   :  { %v3254_v35 = vadd.f32 %v4125_v39, %v5344_v3  ;;  %v4192_v60 = vadd.f32 %v4191_v55, %v4190_v34  ;;  %v4193_v46 = vpop.f32.mrb[42].mxu1  ;;  %v5378_v61 = vadd.f32 %v4186_v40, %v3251_v54 }
 0x18b   :  { %v4194_v44 = vpop.f32.mrb[43].mxu1 }
 0x18c   :  { %v4195_v63 = vadd.f32 %v4194_v44, %v4193_v46  ;;  %v5380_v7 = vadd.f32 %v4189_v41, %v3254_v35 }
 0x18d   :  { %v4126_v36 = vpop.f32.mrb[40].mxu0 }
 0x18e   :  { %v4127_v12 = vpop.f32.mrb[41].mxu0 }
 0x18f   :  { %v4128_v15 = vadd.f32 %v4127_v12, %v4126_v36  ;;  %v4129_v52 = vpop.f32.mrb[42].mxu0 }
 0x190   :  { %v4130_v16 = vpop.f32.mrb[43].mxu0 }
 0x191   :  { %v3259_v58 = vadd.f32 %v4128_v15, %v5346_v11  ;;  %v4131_v18 = vadd.f32 %v4130_v16, %v4129_v52 }
 0x193   :  { %v3262_v20 = vadd.f32 %v4131_v18, %v5348_v45  ;;  %v5384_v21 = vadd.f32 %v4192_v60, %v3259_v58 }
 0x195   :  { %v5386_v3 = vadd.f32 %v4195_v63, %v3262_v20 }
 0x19f   :  { %v4196_v0 = vpop.f32.mrb[44].mxu1 }
 0x1a0   :  { %v4132_v19 = vpop.f32.mrb[44].mxu0  ;;  %v4197_v27 = vpop.f32.mrb[45].mxu1 }
 0x1a1   :  { %v4133_v56 = vpop.f32.mrb[45].mxu0  ;;  %v4198_v6 = vadd.f32 %v4197_v27, %v4196_v0  ;;  %v4199_v42 = vpop.f32.mrb[46].mxu1 }
 0x1a2   :  { %v4134_v1 = vadd.f32 %v4133_v56, %v4132_v19  ;;  %v4135_v26 = vpop.f32.mrb[46].mxu0  ;;  %v4200_v11 = vpop.f32.mrb[47].mxu1 }
 0x1a3   :  { %v4136_v59 = vpop.f32.mrb[47].mxu0  ;;  %v4201_v31 = vadd.f32 %v4200_v11, %v4199_v42 }
 0x1a4   :  { %v3267_v29 = vadd.f32 %v4134_v1, %v5350_v22  ;;  %v4137_v51 = vadd.f32 %v4136_v59, %v4135_v26 }
 0x1a6   :  { %v3270_v45 = vadd.f32 %v4137_v51, %v5352_v32  ;;  %v5390_v62 = vadd.f32 %v4198_v6, %v3267_v29 }
 0x1a7   :  { %v4202_v17 = vpop.f32.mrb[48].mxu1 }
 0x1a8   :  { %v5392_v53 = vadd.f32 %v4201_v31, %v3270_v45  ;;  %v4203_v57 = vpop.f32.mrb[49].mxu1  ;;  %v4138_v4 = vpop.f32.mrb[48].mxu0 }
 0x1a9   :  { %v4204_v24 = vadd.f32 %v4203_v57, %v4202_v17  ;;  %v4205_v37 = vpop.f32.mrb[50].mxu1  ;;  %v4139_v40 = vpop.f32.mrb[49].mxu0 }
 0x1aa   :  { %v4206_v5 = vpop.f32.mrb[51].mxu1  ;;  %v4140_v13 = vadd.f32 %v4139_v40, %v4138_v4  ;;  %v4141_v14 = vpop.f32.mrb[50].mxu0 }
 0x1ab   :  { %v4207_v41 = vadd.f32 %v4206_v5, %v4205_v37  ;;  %v4142_v22 = vpop.f32.mrb[51].mxu0 }
 0x1ac   :  { %v3275_v48 = vadd.f32 %v4140_v13, %v5354_v23  ;;  %v4143_v49 = vadd.f32 %v4142_v22, %v4141_v14 }
 0x1ae   :  { %v3278_v32 = vadd.f32 %v4143_v49, %v5356_v33  ;;  %v3372_v8 = vadd.f32 %v4204_v24, %v3275_v48 }
 0x1af   :  { %v4208_v28 = vpop.f32.mrb[52].mxu1 }
 0x1b0   :  { %v4209_v10 = vpop.f32.mrb[53].mxu1  ;;  %v3375_v34 = vadd.f32 %v4207_v41, %v3278_v32 }
 0x1b1   :  { %v4210_v54 = vadd.f32 %v4209_v10, %v4208_v28  ;;  %v4211_v39 = vpop.f32.mrb[54].mxu1  ;;  %v4144_v60 = vpop.f32.mrb[52].mxu0 }
 0x1b2   :  { %v4212_v55 = vpop.f32.mrb[55].mxu1  ;;  %v4145_v46 = vpop.f32.mrb[53].mxu0 }
 0x1b3   :  { %v4213_v35 = vadd.f32 %v4212_v55, %v4211_v39  ;;  %v4146_v44 = vadd.f32 %v4145_v46, %v4144_v60  ;;  %v4147_v63 = vpop.f32.mrb[54].mxu0 }
 0x1b4   :  { %v4148_v36 = vpop.f32.mrb[55].mxu0 }
 0x1b5   :  { %v3283_v12 = vadd.f32 %v4146_v44, %v5358_v38  ;;  %v4149_v15 = vadd.f32 %v4148_v36, %v4147_v63 }
 0x1b7   :  { %v4214_v23 = vpop.f32.mrb[56].mxu1  ;;  %v3286_v33 = vadd.f32 %v4149_v15, %v5360_v50  ;;  %v3380_v18 = vadd.f32 %v4210_v54, %v3283_v12 }
 0x1b8   :  { %v4215_v52 = vpop.f32.mrb[57].mxu1 }
 0x1b9   :  { %v4216_v16 = vadd.f32 %v4215_v52, %v4214_v23  ;;  %v4217_v58 = vpop.f32.mrb[58].mxu1  ;;  %v3383_v56 = vadd.f32 %v4213_v35, %v3286_v33 }
 0x1ba   :  { %v4218_v20 = vpop.f32.mrb[59].mxu1 }
 0x1bb   :  { %v4219_v19 = vadd.f32 %v4218_v20, %v4217_v58 }
 0x1bd   :  { %v4150_v0 = vpop.f32.mrb[56].mxu0 }
 0x1be   :  { %v4151_v1 = vpop.f32.mrb[57].mxu0 }
 0x1bf   :  { %v4152_v26 = vadd.f32 %v4151_v1, %v4150_v0  ;;  %v4153_v27 = vpop.f32.mrb[58].mxu0 }
 0x1c0   :  { %v4154_v59 = vpop.f32.mrb[59].mxu0 }
 0x1c1   :  { %v3291_v6 = vadd.f32 %v4152_v26, %v5362_v2  ;;  %v4155_v42 = vadd.f32 %v4154_v59, %v4153_v27 }
 0x1c3   :  { %v3294_v38 = vadd.f32 %v4155_v42, %v5364_v9  ;;  %v5400_v29 = vadd.f32 %v4216_v16, %v3291_v6 }
 0x1c5   :  { %v5402_v51 = vadd.f32 %v4219_v19, %v3294_v38 }
 0x1cd   :  { %v4220_v11 = vpop.f32.mrb[60].mxu1 }
 0x1ce   :  { %v4156_v50 = vpop.f32.mrb[60].mxu0  ;;  %v4221_v17 = vpop.f32.mrb[61].mxu1 }
 0x1cf   :  { %v4157_v31 = vpop.f32.mrb[61].mxu0  ;;  %v4222_v4 = vadd.f32 %v4221_v17, %v4220_v11  ;;  %v4223_v24 = vpop.f32.mrb[62].mxu1 }
 0x1d0   :  { %v4158_v45 = vadd.f32 %v4157_v31, %v4156_v50  ;;  %v4159_v57 = vpop.f32.mrb[62].mxu0  ;;  %v4224_v2 = vpop.f32.mrb[63].mxu1 }
 0x1d1   :  { %v4160_v37 = vpop.f32.mrb[63].mxu0  ;;  %v4225_v13 = vadd.f32 %v4224_v2, %v4223_v24 }
 0x1d2   :  { %v3299_v40 = vadd.f32 %v4158_v45, %v5366_v25  ;;  %v4161_v5 = vadd.f32 %v4160_v37, %v4159_v57 }
 0x1d4   :  { %v3302_v9 = vadd.f32 %v4161_v5, %v5368_v30  ;;  %v3396_v14 = vadd.f32 %v4222_v4, %v3299_v40 }
 0x1d5   :  { %v4268_v48 = vpop.f32.mrb[64].mxu1 }
 0x1d6   :  { %v4260_v41 = vpop.f32.mrb[64].mxu0  ;;  %v3399_v22 = vadd.f32 %v4225_v13, %v3302_v9  ;;  %v5407_v28 = vadd.f32 %v4268_v48, %v3380_v18  ;;  %v3468_v10 = vpop.f32.mrb[65].mxu1 }
 0x1d7   :  { %v3445_v49 = vadd.f32 %v4260_v41, %v5378_v61  ;;  %v3436_v32 = vpop.f32.mrb[65].mxu0  ;;  %v5410_v55 = vadd.f32 %v3468_v10, %v3372_v8  ;;  %v4269_v25 = vpop.f32.mrb[66].mxu1 }
 0x1d8   :  { %v3437_v54 = vadd.f32 %v3436_v32, %v5372_v43  ;;  %v4261_v39 = vpop.f32.mrb[66].mxu0  ;;  %v3509_v30 = vpack.c.bf16 %v5407_v28, %v5407_v28  ;;  %v5414_v46 = vadd.f32 %v4269_v25, %v3383_v56  ;;  %v3471_v44 = vpop.f32.mrb[67].mxu1 }
 0x1d9   :  { %v3501_v35 = vpack.c.bf16 %v3445_v49, %v3445_v49  ;;  %v3439_v60 = vpop.f32.mrb[67].mxu0  ;;  %v3507_v61 = vpack.c.bf16 %v5410_v55, %v5410_v55  ;;  %v5418_v63 = vadd.f32 %v3471_v44, %v3375_v34  ;;  %v3448_v15 = vadd.f32 %v4261_v39, %v5380_v7 }
 0x1da   :  { %3525 = vst.msk [vmem:[%s5575_s4 + $0x28] sm:$0xf] %vm146_vm0, %v3509_v30  ;;  %v3510_v43 = vpack.c.bf16 %v5414_v46, %v5414_v46  ;;  %v3499_v34 = vpack.c.bf16 %v3437_v54, %v3437_v54  ;;  %v3568_v12 = vmul.f32 %v3437_v54, %v3437_v54  ;;  %v3440_v23 = vadd.f32 %v3439_v60, %v5374_v47 }
 0x1db   :  { %3517 = vst.msk [vmem:[%s5575_s4 + $0x8] sm:$0xf] %vm146_vm0, %v3501_v35  ;;  %3523 = vst.msk [vmem:[%s5575_s4 + $0x20] sm:$0xf] %vm146_vm0, %v3507_v61  ;;  %v3508_v8 = vpack.c.bf16 %v5418_v63, %v5418_v63  ;;  %v3570_v56 = vmul.f32 %v3445_v49, %v3445_v49  ;;  %v3531_v7 = vsel %vm661_vm1, %v3437_v54, 0.0  ;;  %v3502_v0 = vpack.c.bf16 %v3448_v15, %v3448_v15 }
 0x1dc   :  { %3526 = vst.msk [vmem:[%s5575_s4 + $0x2c] sm:$0xf] %vm146_vm0, %v3510_v43  ;;  %3515 = vst.msk [vmem:[%s5575_s4] sm:$0xf] %vm146_vm0, %v3499_v34  ;;  %v3500_v26 = vpack.c.bf16 %v3440_v23, %v3440_v23  ;;  %v3532_v27 = vsel %vm661_vm1, %v3440_v23, 0.0  ;;  %v3569_v59 = vmul.f32 %v3440_v23, %v3440_v23  ;;  %v3534_v38 = vsel %vm661_vm1, %v3445_v49, 0.0 }
 0x1dd   :  { %3524 = vst.msk [vmem:[%s5575_s4 + $0x24] sm:$0xf] %vm146_vm0, %v3508_v8  ;;  %v4272_v52 = vpop.f32.mrb[68].mxu1  ;;  %3518 = vst.msk [vmem:[%s5575_s4 + $0xc] sm:$0xf] %vm146_vm0, %v3502_v0  ;;  %v3571_v17 = vmul.f32 %v3448_v15, %v3448_v15  ;;  %v3587_v37 = vsel %vm661_vm1, %v3570_v56, 0.0  ;;  %v3578_v56 = vmul.f32 %v5407_v28, %v5407_v28 }
 0x1de   :  { %v4264_v36 = vpop.f32.mrb[68].mxu0  ;;  %v5450_v16 = vadd.f32 %v4272_v52, %v3396_v14  ;;  %v3484_v58 = vpop.f32.mrb[69].mxu1  ;;  %3516 = vst.msk [vmem:[%s5575_s4 + $0x4] sm:$0xf] %vm146_vm0, %v3500_v26  ;;  %v3585_v50 = vsel %vm661_vm1, %v3569_v59, 0.0  ;;  %v3548_v0 = vsel %vm661_vm1, %v5418_v63, 0.0  ;;  %v3579_v26 = vmul.f32 %v5414_v46, %v5414_v46 }
 0x1df   :  { %v3452_v33 = vpop.f32.mrb[69].mxu0  ;;  %v3461_v18 = vadd.f32 %v4264_v36, %v5390_v62  ;;  %v4273_v47 = vpop.f32.mrb[70].mxu1  ;;  %v3584_v62 = vsel %vm661_vm1, %v3568_v12, 0.0  ;;  %v5474_v11 = vadd.f32 %v3484_v58, %v5400_v29  ;;  %v3589_v13 = vsel %vm661_vm1, %v3571_v17, 0.0 }
 0x1e0   :  { %v3453_v20 = vadd.f32 %v3452_v33, %v5384_v21  ;;  %v4265_v19 = vpop.f32.mrb[70].mxu0  ;;  %v3513_v6 = vpack.c.bf16 %v5450_v16, %v5450_v16  ;;  %v3487_v42 = vpop.f32.mrb[71].mxu1  ;;  %v3533_v21 = vadd.f32 %v3532_v27, %v3531_v7  ;;  %v5476_v31 = vadd.f32 %v4273_v47, %v3399_v22 }
 0x1e1   :  { %v3455_v1 = vpop.f32.mrb[71].mxu0  ;;  %v5479_v45 = vadd.f32 %v3487_v42, %v5402_v51  ;;  %v3586_v4 = vadd.f32 %v3585_v50, %v3584_v62  ;;  %v3505_v24 = vpack.c.bf16 %v3461_v18, %v3461_v18  ;;  %v3511_v40 = vpack.c.bf16 %v5474_v11, %v5474_v11 }
 0x1e2   :  { %3529 = vst.msk [vmem:[%s5575_s4 + $0x38] sm:$0xf] %vm146_vm0, %v3513_v6  ;;  %v3535_v57 = vadd.f32 %v3534_v38, %v3533_v21  ;;  %v3514_v5 = vpack.c.bf16 %v5476_v31, %v5476_v31  ;;  %v3536_v51 = vsel %vm661_vm1, %v3448_v15, 0.0  ;;  %v3503_v9 = vpack.c.bf16 %v3453_v20, %v3453_v20 }
 0x1e3   :  { %v3588_v2 = vadd.f32 %v3587_v37, %v3586_v4  ;;  %v3512_v29 = vpack.c.bf16 %v5479_v45, %v5479_v45  ;;  %3521 = vst.msk [vmem:[%s5575_s4 + $0x18] sm:$0xf] %vm146_vm0, %v3505_v24  ;;  %3527 = vst.msk [vmem:[%s5575_s4 + $0x30] sm:$0xf] %vm146_vm0, %v3511_v40  ;;  %v3538_v41 = vsel %vm661_vm1, %v3453_v20, 0.0  ;;  %v3572_v22 = vmul.f32 %v3453_v20, %v3453_v20 }
 0x1e4   :  { %3530 = vst.msk [vmem:[%s5575_s4 + $0x3c] sm:$0xf] %vm146_vm0, %v3514_v5  ;;  %v3537_v14 = vadd.f32 %v3536_v51, %v3535_v57  ;;  %3519 = vst.msk [vmem:[%s5575_s4 + $0x10] sm:$0xf] %vm146_vm0, %v3503_v9  ;;  %v3464_v32 = vadd.f32 %v4265_v19, %v5392_v53  ;;  %v3456_v10 = vadd.f32 %v3455_v1, %v5386_v3  ;;  %v3542_v43 = vsel %vm661_vm1, %v3461_v18, 0.0 }
 0x1e5   :  { %3528 = vst.msk [vmem:[%s5575_s4 + $0x34] sm:$0xf] %vm146_vm0, %v3512_v29  ;;  %v3590_v48 = vadd.f32 %v3589_v13, %v3588_v2  ;;  %v3591_v54 = vsel %vm661_vm1, %v3572_v22, 0.0  ;;  %v3574_v35 = vmul.f32 %v3461_v18, %v3461_v18  ;;  %v3576_v36 = vmul.f32 %v5410_v55, %v5410_v55 }
 0x1e6   :  { %v3539_v49 = vadd.f32 %v3538_v41, %v3537_v14  ;;  %v3506_v25 = vpack.c.bf16 %v3464_v32, %v3464_v32  ;;  %v3504_v60 = vpack.c.bf16 %v3456_v10, %v3456_v10  ;;  %v3540_v30 = vsel %vm661_vm1, %v3456_v10, 0.0 }
 0x1e7   :  { %v3592_v39 = vadd.f32 %v3591_v54, %v3590_v48  ;;  %v3573_v44 = vmul.f32 %v3456_v10, %v3456_v10  ;;  %v3575_v53 = vmul.f32 %v3464_v32, %v3464_v32  ;;  %v3595_v12 = vsel %vm661_vm1, %v3574_v35, 0.0 }
 0x1e8   :  { %3522 = vst.msk [vmem:[%s5575_s4 + $0x1c] sm:$0xf] %vm146_vm0, %v3506_v25  ;;  %v3541_v61 = vadd.f32 %v3540_v30, %v3539_v49  ;;  %3520 = vst.msk [vmem:[%s5575_s4 + $0x14] sm:$0xf] %vm146_vm0, %v3504_v60  ;;  %v3544_v15 = vsel %vm661_vm1, %v3464_v32, 0.0  ;;  %v3546_v33 = vsel %vm661_vm1, %v5410_v55, 0.0  ;;  %v3577_v58 = vmul.f32 %v5418_v63, %v5418_v63 }
 0x1e9   :  { %v3593_v3 = vsel %vm661_vm1, %v3573_v44, 0.0  ;;  %v3597_v18 = vsel %vm661_vm1, %v3575_v53, 0.0  ;;  %v3599_v7 = vsel %vm661_vm1, %v3576_v36, 0.0  ;;  %v3550_v55 = vsel %vm661_vm1, %v5407_v28, 0.0 }
 0x1ea   :  { %v3543_v8 = vadd.f32 %v3542_v43, %v3541_v61  ;;  %v3594_v34 = vadd.f32 %v3593_v3, %v3592_v39  ;;  %v3601_v27 = vsel %vm661_vm1, %v3577_v58, 0.0  ;;  %v3603_v42 = vsel %vm661_vm1, %v3578_v56, 0.0 }
 0x1eb   :  { %v3552_v38 = vsel %vm661_vm1, %v5414_v46, 0.0  ;;  %v3580_v63 = vmul.f32 %v5474_v11, %v5474_v11  ;;  %v3605_v50 = vsel %vm661_vm1, %v3579_v26, 0.0  ;;  %v3554_v28 = vsel %vm661_vm1, %v5474_v11, 0.0 }
 0x1ec   :  { %v3545_v23 = vadd.f32 %v3544_v15, %v3543_v8  ;;  %v3596_v52 = vadd.f32 %v3595_v12, %v3594_v34  ;;  %v3581_v17 = vmul.f32 %v5479_v45, %v5479_v45  ;;  %v3582_v24 = vmul.f32 %v5450_v16, %v5450_v16 }
 0x1ed   :  { %v3607_v46 = vsel %vm661_vm1, %v3580_v63, 0.0  ;;  %v3556_v37 = vsel %vm661_vm1, %v5479_v45, 0.0  ;;  %v3558_v2 = vsel %vm661_vm1, %v5450_v16, 0.0  ;;  %v3583_v11 = vmul.f32 %v5476_v31, %v5476_v31 }
 0x1ee   :  { %v3547_v20 = vadd.f32 %v3546_v33, %v3545_v23  ;;  %v3598_v19 = vadd.f32 %v3597_v18, %v3596_v52  ;;  %v3609_v29 = vsel %vm661_vm1, %v3581_v17, 0.0  ;;  %v3611_v9 = vsel %vm661_vm1, %v3582_v24, 0.0 }
 0x1ef   :  { %v3560_v14 = vsel %vm661_vm1, %v5476_v31, 0.0  ;;  %v3613_v45 = vsel %vm661_vm1, %v3583_v11, 0.0  ;;  %vm3621_vm0 = vcmask 1040384  }
 0x1f0   :  { %v3549_v47 = vadd.f32 %v3548_v0, %v3547_v20  ;;  %v3600_v1 = vadd.f32 %v3599_v7, %v3598_v19 }
 0x1f2   :  { %v3551_v59 = vadd.f32 %v3550_v55, %v3549_v47  ;;  %v3602_v6 = vadd.f32 %v3601_v27, %v3600_v1 }
 0x1f4   :  { %v3553_v62 = vadd.f32 %v3552_v38, %v3551_v59  ;;  %v3604_v21 = vadd.f32 %v3603_v42, %v3602_v6 }
 0x1f6   :  { %v3555_v57 = vadd.f32 %v3554_v28, %v3553_v62  ;;  %v3606_v4 = vadd.f32 %v3605_v50, %v3604_v21 }
 0x1f8   :  { %v3557_v40 = vadd.f32 %v3556_v37, %v3555_v57  ;;  %v3608_v5 = vadd.f32 %v3607_v46, %v3606_v4 }
 0x1fa   :  { %v3559_v51 = vadd.f32 %v3558_v2, %v3557_v40  ;;  %v3610_v13 = vadd.f32 %v3609_v29, %v3608_v5 }
 0x1fc   :  { %v3561_v41 = vadd.f32 %v3560_v14, %v3559_v51  ;;  %v3612_v22 = vadd.f32 %v3611_v9, %v3610_v13 }
 0x1fe   :  { %v3562_v48 = vrot.slane %v3561_v41, 4  ;;  %v3614_v49 = vadd.f32 %v3613_v45, %v3612_v22 }
 0x200   :  { %v3563_v32 = vadd.f32 %v3562_v48, %v3561_v41  ;;  %v3615_v16 = vrot.slane %v3614_v49, 4 }
 0x202   :  { %v3564_v10 = vrot.slane %v3563_v32, 2  ;;  %v3616_v54 = vadd.f32 %v3615_v16, %v3614_v49 }
 0x204   :  { %v3565_v39 = vadd.f32 %v3564_v10, %v3563_v32  ;;  %v3617_v25 = vrot.slane %v3616_v54, 2 }
 0x206   :  { %v3566_v35 = vrot.slane %v3565_v39, 1  ;;  %v3618_v60 = vadd.f32 %v3617_v25, %v3616_v54 }
 0x208   :  { %v3619_v30 = vrot.slane %v3618_v60, 1  ;;  %v3567_v44 = vadd.f32 %v3566_v35, %v3565_v39 }
 0x20a   :  { %v3620_v61 = vadd.f32 %v3619_v30, %v3618_v60 }
 0x20c   :  { %v3622_v31 = vsel %vm3621_vm0, %v3567_v44, %v3620_v61 }
 0x20d   :  { %3624 = vst.msk [vmem:[%s5576_s5] sm:$0x3] %vm3623_vm3, %v3622_v31 }

// kernel: down_forward.3
= control target key start
LH: loop header
LB: loop body
LE: loop exit
PB: predicated region body
PF: predicated region fallthrough
CT: control target
= control target key end

     0   :  { %vm142_vm0 = vcmask 27648   ;;  %vm144_vm1 = vcmask 24576   ;;  %v4375_v3 = vmov 0   ;;  %s4376_s30 = smov 124   ;;  %vm154_vm2 = vsmask.f32 256  ;;  %s5582_s0 = inlined_call_operand.vmem [shape: f32[2,8,2,8,8], index: 0, kind: input, shape index: {}]   ;;  %s5583_s1 = inlined_call_operand.vmem [shape: bf16[1152,8], index: 1, kind: input, shape index: {}]   ;;  %s5584_s2 = inlined_call_operand.vmem [shape: bf16[2,8,8,8], index: 2, kind: output, shape index: {0}]   ;;  %s5585_s3 = inlined_call_operand.vmem [shape: f32[1,2,8], index: 3, kind: output, shape index: {1}]  }
   0x1   :  { %v14_v0 = vld [vmem:[%s5582_s0] sm:$0xff]  ;;  %v15_v1 = vld [vmem:[%s5582_s0 + $0x8] sm:$0xff]  ;;  %v20_v2 = vld [vmem:[%s5582_s0 + $0x30] sm:$0xff]  ;;  %143 = vst.msk [vmem:[#allocation2] sm:$0xf] %vm142_vm0, %v4375_v3  ;;  %vm1070_vm7 = vcmask 1042432  }
   0x2   :  { %145 = vst.msk [vmem:[#allocation2 + $0x4] sm:$0x1] %vm144_vm1, %v4375_v3  ;;  %147 = vst.msk [vmem:[#allocation2 + $0x54] sm:$0x1] %vm144_vm1, %v4375_v3  ;;  %v4414_v4 = vmax.f32 %v14_v0, %v15_v1  ;;  %v21_v5 = vld [vmem:[%s5582_s0 + $0x38] sm:$0xff]  ;;  %v22_v6 = vld [vmem:[%s5582_s0 + $0x40] sm:$0xff] }
   0x3   :  { %146 = vst.msk [vmem:[#allocation2 + $0x50] sm:$0xf] %vm142_vm0, %v4375_v3  ;;  %149 = vst.msk [vmem:[#allocation2 + $0x48] sm:$0xf] %vm142_vm0, %v4375_v3  ;;  %v23_v7 = vld [vmem:[%s5582_s0 + $0x48] sm:$0xff]  ;;  %v4425_v8 = vmax.f32 %v20_v2, %v21_v5  ;;  %v16_v10 = vld [vmem:[%s5582_s0 + $0x10] sm:$0xff] }
   0x4   :  { %150 = vst.msk [vmem:[#allocation2 + $0x4c] sm:$0x1] %vm144_vm1, %v4375_v3  ;;  %152 = vst.msk [vmem:[#allocation2 + $0x9c] sm:$0x1] %vm144_vm1, %v4375_v3  ;;  %v4427_v9 = vmax.f32 %v22_v6, %v23_v7  ;;  %v17_v11 = vld [vmem:[%s5582_s0 + $0x18] sm:$0xff]  ;;  %v18_v12 = vld [vmem:[%s5582_s0 + $0x20] sm:$0xff]  ;;  %78 = vrot.lane.b32.xlu0 %v4414_v4, %s4376_s30 }
   0x5   :  { %151 = vst.msk [vmem:[#allocation2 + $0x98] sm:$0xf] %vm142_vm0, %v4375_v3  ;;  %v19_v13 = vld [vmem:[%s5582_s0 + $0x28] sm:$0xff]  ;;  %v4443_v14 = vmax.f32 %v16_v10, %v17_v11  ;;  %v24_v15 = vld [vmem:[%s5582_s0 + $0x50] sm:$0xff]  ;;  %v25_v16 = vld [vmem:[%s5582_s0 + $0x58] sm:$0xff]  ;;  %vm1071_vm8 = vcmask 1046532  }
   0x6   :  { %v4254_v17 = vpack.i.bf16 %v4427_v9, %v4425_v8  ;;  %v4453_v18 = vmax.f32 %v18_v12, %v19_v13  ;;  %v26_v19 = vld [vmem:[%s5582_s0 + $0x60] sm:$0xff]  ;;  %v27_v20 = vld [vmem:[%s5582_s0 + $0x68] sm:$0xff]  ;;  %v4461_v21 = vmax.f32 %v24_v15, %v25_v16  ;;  %v32_v22 = vld [vmem:[%s5582_s0 + $0x90] sm:$0xff]  ;;  %vm216_vm3 = vsmask.f32 7938 }
   0x7   :  { %v4466_v23 = vmax.f32 %v26_v19, %v27_v20  ;;  %v33_v24 = vld [vmem:[%s5582_s0 + $0x98] sm:$0xff]  ;;  %v34_v25 = vld [vmem:[%s5582_s0 + $0xa0] sm:$0xff]  ;;  %v35_v26 = vld [vmem:[%s5582_s0 + $0xa8] sm:$0xff]  ;;  %vm723_vm9 = vsmask.f32 3328  ;;  %vm657_vm13 = vcmask 31744  }
   0x8   :  { %4255 = vrot.lane.b32.xlu1 %v4254_v17, %s4376_s30  ;;  %v4249_v27 = vpack.i.bf16 %v4453_v18, %v4443_v14  ;;  %v4480_v28 = vmax.f32 %v32_v22, %v33_v24  ;;  %v4482_v29 = vmax.f32 %v34_v25, %v35_v26  ;;  %v30_v30 = vld [vmem:[%s5582_s0 + $0x80] sm:$0xff]  ;;  %v31_v32 = vld [vmem:[%s5582_s0 + $0x88] sm:$0xff]  ;;  %v36_v33 = vld [vmem:[%s5582_s0 + $0xb0] sm:$0xff]  ;;  %vm724_vm10 = vsmask.f32 7440 }
   0x9   :  { %v4259_v31 = vpack.i.bf16 %v4466_v23, %v4461_v21  ;;  %v37_v34 = vld [vmem:[%s5582_s0 + $0xb8] sm:$0xff]  ;;  %v4499_v35 = vmax.f32 %v30_v30, %v31_v32  ;;  %v38_v36 = vld [vmem:[%s5582_s0 + $0xc0] sm:$0xff]  ;;  %v39_v37 = vld [vmem:[%s5582_s0 + $0xc8] sm:$0xff]  ;;  %vm3511_vm14 = vcmask 60416   ;;  %vm3528_vm15 = vcmask 64512  }
   0xa   :  { %4250 = vrot.lane.b32.xlu0 %v4249_v27, %s4376_s30  ;;  %v4507_v38 = vmax.f32 %v36_v33, %v37_v34  ;;  %v40_v39 = vld [vmem:[%s5582_s0 + $0xd0] sm:$0xff]  ;;  %v4512_v40 = vmax.f32 %v38_v36, %v39_v37  ;;  %v41_v41 = vld [vmem:[%s5582_s0 + $0xd8] sm:$0xff]  ;;  %v42_v42 = vld [vmem:[%s5582_s0 + $0xe0] sm:$0xff]  ;;  %v4264_v44 = vpack.i.bf16 %v4482_v29, %v4480_v28 }
   0xb   :  { %v43_v43 = vld [vmem:[%s5582_s0 + $0xe8] sm:$0xff]  ;;  %v28_v45 = vld [vmem:[%s5582_s0 + $0x70] sm:$0xff]  ;;  %v29_v46 = vld [vmem:[%s5582_s0 + $0x78] sm:$0xff]  ;;  %v4539_v49 = vmax.f32 %v40_v39, %v41_v41 }
   0xc   :  { %4260 = vrot.lane.b32.xlu1 %v4259_v31, %s4376_s30  ;;  %v4279_v47 = vld [vmem:[%s5583_s1 + $0xc0] sm:$0xff]   ;;  %v4269_v48 = vpack.i.bf16 %v4512_v40, %v4507_v38  ;;  %v4541_v50 = vmax.f32 %v42_v42, %v43_v43  ;;  %v44_v52 = vld [vmem:[%s5582_s0 + $0xf0] sm:$0xff]  ;;  %v45_v53 = vld [vmem:[%s5582_s0 + $0xf8] sm:$0xff]  ;;  %v4556_v55 = vmax.f32 %v28_v45, %v29_v46 }
   0xd   :  { %v4280_v51 = vld [vmem:[%s5583_s1 + $0x80] sm:$0xff]   ;;  %3991 = vmatprep.subr.bf16.mxu1 %v4279_v47  ;;  %vm4563_vm4 = vmand %vm144_vm1, %vm154_vm2  ;;  %v159_v58 = vld [vmem:[#allocation2 + $0x8] sm:$0x1]  ;;  %v4591_v2 = vmax.f32 %v44_v52, %v45_v53 }
   0xe   :  { %94 = vrot.lane.b32.xlu0 %v4499_v35, %s4376_s30  ;;  %v4281_v54 = vld [vmem:[%s5583_s1 + $0x40] sm:$0xff]   ;;  %3992 = vmatpush3.bf16.msra.mxu1 %v4280_v51  ;;  %vm4569_vm5 = vmand %vm144_vm1, %vm216_vm3  ;;  %v221_v60 = vld [vmem:[#allocation2 + $0xc] sm:$0x1]  ;;  %v4274_v61 = vpack.i.bf16 %v4541_v50, %v4539_v49  ;;  %v160_v62 = vsel %vm4563_vm4, 0, %v159_v58  ;;  %vm3621_vm1 = vcmask 58368  }
   0xf   :  { %v4282_v56 = vld [vmem:[%s5583_s1] sm:$0xff]   ;;  %3927 = vmatprep.subr.bf16.mxu0 %v4281_v54  ;;  %v222_v63 = vsel %vm4569_vm5, 0, %v221_v60  ;;  %vm4582_vm6 = vmand %vm142_vm0, %vm216_vm3  ;;  %161 = vst [vmem:[#allocation2 + $0x8] sm:$0x1] %v160_v62  ;;  %v4283_v1 = vld [vmem:[%s5583_s1 + $0xc8] sm:$0xff]   ;;  %vm3619_vm0 = vcmask 1040384  }
  0x10   :  { %4265 = vrot.lane.b32.xlu1 %v4264_v44, %s4376_s30  ;;  %3928 = vmatpush3.bf16.msra.mxu0 %v4282_v56  ;;  %223 = vst [vmem:[#allocation2 + $0xc] sm:$0x1] %v222_v63  ;;  %v4284_v3 = vld [vmem:[%s5583_s1 + $0x88] sm:$0xff]   ;;  %v168_v7 = vld [vmem:[#allocation2 + $0x20] sm:$0x1]  ;;  %v4287_v31 = vld [vmem:[%s5583_s1 + $0xd0] sm:$0xff]  }
  0x11   :  { %3993 = vmatprep.subr.bf16.mxu1 %v4283_v1  ;;  %v4285_v5 = vld [vmem:[%s5583_s1 + $0x48] sm:$0xff]   ;;  %v169_v11 = vsel %vm4563_vm4, 0, %v168_v7  ;;  %v230_v13 = vld [vmem:[#allocation2 + $0x24] sm:$0x1]  ;;  %v162_v19 = vld [vmem:[#allocation2 + $0x10] sm:$0x1] }
  0x12   :  { %4270 = vrot.lane.b32.xlu0 %v4269_v48, %s4376_s30  ;;  %3994 = vmatpush3.bf16.msra.mxu1 %v4284_v3  ;;  %v4286_v6 = vld [vmem:[%s5583_s1 + $0x8] sm:$0xff]   ;;  %170 = vst [vmem:[#allocation2 + $0x20] sm:$0x1] %v169_v11  ;;  %v231_v16 = vsel %vm4569_vm5, 0, %v230_v13  ;;  %v165_v20 = vld [vmem:[#allocation2 + $0x18] sm:$0x1]  ;;  %vm4757_vm11 = vmor %vm1070_vm7, %vm1071_vm8 }
  0x13   :  { %v171_v10 = vld [vmem:[#allocation2 + $0x28] sm:$0x1]  ;;  %3929 = vmatprep.subr.bf16.mxu0 %v4285_v5  ;;  %v233_v15 = vld [vmem:[#allocation2 + $0x2c] sm:$0x1]  ;;  %232 = vst [vmem:[#allocation2 + $0x24] sm:$0x1] %v231_v16  ;;  %3995 = vmatprep.subr.bf16.mxu1 %v4287_v31  ;;  %vm4768_vm12 = vmor %vm723_vm9, %vm724_vm10 }
  0x14   :  { %92 = vrot.lane.b32.xlu1 %v4556_v55, %s4376_s30  ;;  %v172_v12 = vsel %vm4563_vm4, 0, %v171_v10  ;;  %3930 = vmatpush3.bf16.msra.mxu0 %v4286_v6  ;;  %v234_v17 = vsel %vm4569_vm5, 0, %v233_v15  ;;  %v163_v22 = vsel %vm4563_vm4, 0, %v162_v19  ;;  %v166_v24 = vsel %vm4563_vm4, 0, %v165_v20  ;;  %v224_v25 = vld [vmem:[#allocation2 + $0x14] sm:$0x1] }
  0x15   :  { %173 = vst [vmem:[#allocation2 + $0x28] sm:$0x1] %v172_v12  ;;  %235 = vst [vmem:[#allocation2 + $0x2c] sm:$0x1] %v234_v17  ;;  %v227_v26 = vld [vmem:[#allocation2 + $0x1c] sm:$0x1] }
  0x16   :  { %4275 = vrot.lane.b32.xlu0 %v4274_v61, %s4376_s30  ;;  %164 = vst [vmem:[#allocation2 + $0x10] sm:$0x1] %v163_v22  ;;  %167 = vst [vmem:[#allocation2 + $0x18] sm:$0x1] %v166_v24  ;;  %v225_v27 = vsel %vm4569_vm5, 0, %v224_v25  ;;  %v228_v30 = vsel %vm4569_vm5, 0, %v227_v26 }
  0x17   :  { %226 = vst [vmem:[#allocation2 + $0x14] sm:$0x1] %v225_v27  ;;  %229 = vst [vmem:[#allocation2 + $0x1c] sm:$0x1] %v228_v30  ;;  %v4288_v32 = vld [vmem:[%s5583_s1 + $0x90] sm:$0xff]   ;;  %v4291_v36 = vld [vmem:[%s5583_s1 + $0xd8] sm:$0xff]  }
  0x18   :  { %108 = vrot.lane.b32.xlu1 %v4591_v2, %s4376_s30  ;;  %v4289_v33 = vld [vmem:[%s5583_s1 + $0x50] sm:$0xff]   ;;  %3996 = vmatpush3.bf16.msra.mxu1 %v4288_v32  ;;  %v4292_v37 = vld [vmem:[%s5583_s1 + $0x98] sm:$0xff]   ;;  %v4295_v52 = vld [vmem:[%s5583_s1 + $0xe0] sm:$0xff]  }
  0x19   :  { %v4290_v34 = vld [vmem:[%s5583_s1 + $0x10] sm:$0xff]   ;;  %3931 = vmatprep.subr.bf16.mxu0 %v4289_v33  ;;  %3997 = vmatprep.subr.bf16.mxu1 %v4291_v36  ;;  %v177_v42 = vld [vmem:[#allocation2 + $0x38] sm:$0x1]  ;;  %v239_v47 = vld [vmem:[#allocation2 + $0x3c] sm:$0x1] }
  0x1a   :  { %3932 = vmatpush3.bf16.msra.mxu0 %v4290_v34  ;;  %v174_v39 = vld [vmem:[#allocation2 + $0x30] sm:$0x1]  ;;  %v236_v43 = vld [vmem:[#allocation2 + $0x34] sm:$0x1]  ;;  %v4293_v44 = vld [vmem:[%s5583_s1 + $0x58] sm:$0xff]   ;;  %v178_v45 = vsel %vm4563_vm4, 0, %v177_v42 }
  0x1b   :  { %v175_v41 = vsel %vm4563_vm4, 0, %v174_v39  ;;  %v237_v46 = vsel %vm4569_vm5, 0, %v236_v43  ;;  %179 = vst [vmem:[#allocation2 + $0x38] sm:$0x1] %v178_v45  ;;  %v240_v48 = vsel %vm4569_vm5, 0, %v239_v47  ;;  %3933 = vmatprep.subr.bf16.mxu0 %v4293_v44  ;;  %v4294_v51 = vld [vmem:[%s5583_s1 + $0x18] sm:$0xff]  }
  0x1c   :  { %3998 = vmatpush3.bf16.msra.mxu1 %v4292_v37  ;;  %176 = vst [vmem:[#allocation2 + $0x30] sm:$0x1] %v175_v41  ;;  %238 = vst [vmem:[#allocation2 + $0x34] sm:$0x1] %v237_v46  ;;  %v4296_v53 = vld [vmem:[%s5583_s1 + $0xa0] sm:$0xff]   ;;  %v4299_v3 = vld [vmem:[%s5583_s1 + $0xe8] sm:$0xff]  }
  0x1d   :  { %241 = vst [vmem:[#allocation2 + $0x3c] sm:$0x1] %v240_v48  ;;  %3999 = vmatprep.subr.bf16.mxu1 %v4295_v52  ;;  %v4297_v54 = vld [vmem:[%s5583_s1 + $0x60] sm:$0xff]   ;;  %v195_v60 = vld [vmem:[#allocation2 + $0x68] sm:$0x1]  ;;  %v4303_v17 = vld [vmem:[%s5583_s1 + $0xf0] sm:$0xff]  }
  0x1e   :  { %3934 = vmatpush3.bf16.msra.mxu0 %v4294_v51  ;;  %v4298_v56 = vld [vmem:[%s5583_s1 + $0x20] sm:$0xff]   ;;  %v196_v62 = vsel %vm4563_vm4, 0, %v195_v60  ;;  %v257_v5 = vld [vmem:[#allocation2 + $0x6c] sm:$0x1]  ;;  %v4304_v19 = vld [vmem:[%s5583_s1 + $0xb0] sm:$0xff]  }
  0x1f   :  { %v192_v58 = vld [vmem:[#allocation2 + $0x60] sm:$0x1]  ;;  %3935 = vmatprep.subr.bf16.mxu0 %v4297_v54  ;;  %v254_v63 = vld [vmem:[#allocation2 + $0x64] sm:$0x1]  ;;  %197 = vst [vmem:[#allocation2 + $0x68] sm:$0x1] %v196_v62 }
  0x20   :  { %4000 = vmatpush3.bf16.msra.mxu1 %v4296_v53  ;;  %v193_v61 = vsel %vm4563_vm4, 0, %v192_v58  ;;  %v255_v1 = vsel %vm4569_vm5, 0, %v254_v63  ;;  %v258_v6 = vsel %vm4569_vm5, 0, %v257_v5  ;;  %v4300_v7 = vld [vmem:[%s5583_s1 + $0xa8] sm:$0xff]   ;;  %v180_v12 = vld [vmem:[#allocation2 + $0x40] sm:$0x1] }
  0x21   :  { %194 = vst [vmem:[#allocation2 + $0x60] sm:$0x1] %v193_v61  ;;  %256 = vst [vmem:[#allocation2 + $0x64] sm:$0x1] %v255_v1  ;;  %4001 = vmatprep.subr.bf16.mxu1 %v4299_v3  ;;  %v4301_v10 = vld [vmem:[%s5583_s1 + $0x68] sm:$0xff]   ;;  %v181_v15 = vsel %vm4563_vm4, 0, %v180_v12 }
  0x22   :  { %3936 = vmatpush3.bf16.msra.mxu0 %v4298_v56  ;;  %259 = vst [vmem:[#allocation2 + $0x6c] sm:$0x1] %v258_v6  ;;  %v4302_v11 = vld [vmem:[%s5583_s1 + $0x28] sm:$0xff]   ;;  %v242_v13 = vld [vmem:[#allocation2 + $0x44] sm:$0x1]  ;;  %v4305_v20 = vld [vmem:[%s5583_s1 + $0x70] sm:$0xff]  }
  0x23   :  { %3937 = vmatprep.subr.bf16.mxu0 %v4301_v10  ;;  %v243_v16 = vsel %vm4569_vm5, 0, %v242_v13  ;;  %182 = vst [vmem:[#allocation2 + $0x40] sm:$0x1] %v181_v15  ;;  %v4306_v22 = vld [vmem:[%s5583_s1 + $0x30] sm:$0xff]   ;;  %v4307_v24 = vld [vmem:[%s5583_s1 + $0xf8] sm:$0xff]   ;;  %v4313_v41 = vld [vmem:[%s5583_s1 + $0x140] sm:$0xff]  }
  0x24   :  { %4002 = vmatpush3.bf16.msra.mxu1 %v4300_v7  ;;  %244 = vst [vmem:[#allocation2 + $0x44] sm:$0x1] %v243_v16  ;;  %v4308_v25 = vld [vmem:[%s5583_s1 + $0xb8] sm:$0xff]   ;;  %v218_v34 = vld [vmem:[#allocation2 + $0x4] sm:$0x1] }
  0x25   :  { %4003 = vmatprep.subr.bf16.mxu1 %v4303_v17  ;;  %v4309_v26 = vld [vmem:[%s5583_s1 + $0x78] sm:$0xff]   ;;  %v219_v36 = vsel %vm4569_vm5, 0, %v218_v34  ;;  %v156_v37 = vld [vmem:[#allocation2] sm:$0x1]  ;;  %v198_v42 = vld [vmem:[#allocation2 + $0x70] sm:$0x1] }
  0x26   :  { %3938 = vmatpush3.bf16.msra.mxu0 %v4302_v11  ;;  %v4310_v27 = vld [vmem:[%s5583_s1 + $0x38] sm:$0xff]   ;;  %220 = vst [vmem:[#allocation2 + $0x4] sm:$0x1] %v219_v36  ;;  %v157_v39 = vsel %vm4563_vm4, 0, %v156_v37  ;;  %v199_v43 = vsel %vm4563_vm4, 0, %v198_v42  ;;  %v4322_v63 = vld [vmem:[%s5583_s1 + $0x1c0] sm:$0xff]  }
  0x27   :  { %3939 = vmatprep.subr.bf16.mxu0 %v4305_v20  ;;  %v189_v30 = vld [vmem:[#allocation2 + $0x58] sm:$0x1]  ;;  %v251_v31 = vld [vmem:[#allocation2 + $0x5c] sm:$0x1]  ;;  %158 = vst [vmem:[#allocation2] sm:$0x1] %v157_v39 }
  0x28   :  { %4004 = vmatpush3.bf16.msra.mxu1 %v4304_v19  ;;  %v190_v32 = vsel %vm4563_vm4, 0, %v189_v30  ;;  %v252_v33 = vsel %vm4569_vm5, 0, %v251_v31  ;;  %v201_v44 = vld [vmem:[#allocation2 + $0x78] sm:$0x1]  ;;  %v260_v45 = vld [vmem:[#allocation2 + $0x74] sm:$0x1] }
  0x29   :  { %4005 = vmatprep.subr.bf16.mxu1 %v4307_v24  ;;  %191 = vst [vmem:[#allocation2 + $0x58] sm:$0x1] %v190_v32  ;;  %253 = vst [vmem:[#allocation2 + $0x5c] sm:$0x1] %v252_v33  ;;  %v202_v46 = vsel %vm4563_vm4, 0, %v201_v44  ;;  %v261_v47 = vsel %vm4569_vm5, 0, %v260_v45 }
  0x2a   :  { %3940 = vmatpush3.bf16.msra.mxu0 %v4306_v22  ;;  %200 = vst [vmem:[#allocation2 + $0x70] sm:$0x1] %v199_v43  ;;  %v263_v48 = vld [vmem:[#allocation2 + $0x7c] sm:$0x1]  ;;  %203 = vst [vmem:[#allocation2 + $0x78] sm:$0x1] %v202_v46 }
  0x2b   :  { %3941 = vmatprep.subr.bf16.mxu0 %v4309_v26  ;;  %262 = vst [vmem:[#allocation2 + $0x74] sm:$0x1] %v261_v47  ;;  %v264_v51 = vsel %vm4569_vm5, 0, %v263_v48  ;;  %v204_v52 = vld [vmem:[#allocation2 + $0x80] sm:$0x1] }
  0x2c   :  { %4006 = vmatpush3.bf16.msra.mxu1 %v4308_v25  ;;  %265 = vst [vmem:[#allocation2 + $0x7c] sm:$0x1] %v264_v51  ;;  %v205_v53 = vsel %vm4563_vm4, 0, %v204_v52  ;;  %v207_v54 = vld [vmem:[#allocation2 + $0x88] sm:$0x1] }
  0x2d   :  { %206 = vst [vmem:[#allocation2 + $0x80] sm:$0x1] %v205_v53  ;;  %v208_v56 = vsel %vm4563_vm4, 0, %v207_v54  ;;  %v266_v58 = vld [vmem:[#allocation2 + $0x84] sm:$0x1]  ;;  %4119 = vmatprep.subr.bf16.mxu1 %v4322_v63 }
  0x2e   :  { %3942 = vmatpush3.bf16.msra.mxu0 %v4310_v27  ;;  %v269_v60 = vld [vmem:[#allocation2 + $0x8c] sm:$0x1]  ;;  %209 = vst [vmem:[#allocation2 + $0x88] sm:$0x1] %v208_v56  ;;  %v267_v61 = vsel %vm4569_vm5, 0, %v266_v58 }
  0x2f   :  { %4055 = vmatprep.subr.bf16.mxu0 %v4313_v41  ;;  %v270_v62 = vsel %vm4569_vm5, 0, %v269_v60  ;;  %268 = vst [vmem:[#allocation2 + $0x84] sm:$0x1] %v267_v61  ;;  %v210_v1 = vld [vmem:[#allocation2 + $0x90] sm:$0x1] }
  0x30   :  { %271 = vst [vmem:[#allocation2 + $0x8c] sm:$0x1] %v270_v62  ;;  %v211_v3 = vsel %vm4563_vm4, 0, %v210_v1  ;;  %v272_v5 = vld [vmem:[#allocation2 + $0x94] sm:$0x1] }
  0x31   :  { %212 = vst [vmem:[#allocation2 + $0x90] sm:$0x1] %v211_v3  ;;  %v273_v6 = vsel %vm4569_vm5, 0, %v272_v5  ;;  %v186_v7 = vld [vmem:[#allocation2 + $0x50] sm:$0x1] }
  0x32   :  { %274 = vst [vmem:[#allocation2 + $0x94] sm:$0x1] %v273_v6  ;;  %v187_v10 = vsel %vm4563_vm4, 0, %v186_v7  ;;  %v248_v11 = vld [vmem:[#allocation2 + $0x54] sm:$0x1] }
  0x33   :  { %188 = vst [vmem:[#allocation2 + $0x50] sm:$0x1] %v187_v10  ;;  %v249_v12 = vsel %vm4569_vm5, 0, %v248_v11  ;;  %v691_v13 = vld [vmem:[#allocation2] sm:$0xf] }
  0x34   :  { %250 = vst [vmem:[#allocation2 + $0x54] sm:$0x1] %v249_v12  ;;  %v692_v15 = vld [vmem:[#allocation2 + $0x4] sm:$0x1]  ;;  %v727_v17 = vshrl.u32 %v691_v13, 16  ;;  %v730_v19 = vshll.u32 %v691_v13, 16 }
  0x35   :  { %v736_v26 = vshll.u32 %v692_v15, 16  ;;  %v1006_v33 = vld [vmem:[#allocation2] sm:$0xe]  ;;  %v1007_v34 = vld [vmem:[#allocation2 + $0x4] sm:$0x1] }
  0x36   :  { %v729_v25 = vrot.slane %v727_v17, 4  ;;  %v732_v27 = vrot.slane %v730_v19, 5  ;;  %v1022_v36 = vld [vmem:[#allocation2 + $0x50] sm:$0xe]  ;;  %v183_v41 = vld [vmem:[#allocation2 + $0x48] sm:$0x1] }
  0x37   :  { %v245_v42 = vld [vmem:[#allocation2 + $0x4c] sm:$0x1]  ;;  %v184_v44 = vsel %vm4563_vm4, 0, %v183_v41  ;;  %v3663_v46 = vrot.slane %v1006_v33, 9  ;;  %v1075_v51 = vrot.slane %v1007_v34, 5  ;;  %v4763_v53 = vrot.slane %v736_v26, 5 }
  0x38   :  { %v733_v37 = vor.u32 %v732_v27, %v729_v25  ;;  %v246_v45 = vsel %vm4569_vm5, 0, %v245_v42  ;;  %185 = vst [vmem:[#allocation2 + $0x48] sm:$0x1] %v184_v44  ;;  %v3671_v54 = vrot.slane %v1022_v36, 9 }
  0x39   :  { %247 = vst [vmem:[#allocation2 + $0x4c] sm:$0x1] %v246_v45  ;;  %v4778_v6 = vsel %vm4757_vm11, %v3663_v46, %v1075_v51  ;;  %v523_v51 = vld [vmem:[#allocation2 + $0x20] sm:$0xf] }
  0x3a   :  { %v707_v16 = vld [vmem:[#allocation2 + $0x50] sm:$0xf]  ;;  %v4761_v52 = vrot.slane %v733_v37, 4 }
  0x3b   :  { %v708_v20 = vld [vmem:[#allocation2 + $0x54] sm:$0x1]  ;;  %v839_v22 = vshrl.u32 %v707_v16, 16  ;;  %v842_v24 = vshll.u32 %v707_v16, 16 }
  0x3c   :  { %v848_v30 = vshll.u32 %v708_v20, 16  ;;  %v1023_v43 = vld [vmem:[#allocation2 + $0x54] sm:$0x1] }
  0x3d   :  { %v841_v31 = vrot.slane %v839_v22, 4  ;;  %v844_v32 = vrot.slane %v842_v24, 5  ;;  %v1107_v62 = vrot.slane %v1023_v43, 5 }
  0x3e   :  { %v4774_v61 = vrot.slane %v848_v30, 5 }
  0x3f   :  { %v845_v39 = vor.u32 %v844_v32, %v841_v31  ;;  %v4790_v13 = vsel %vm4757_vm11, %v3671_v54, %v1107_v62  ;;  %v4794_v20 = vld [vmem:[#allocation2 + $0x48] sm:$0xf]  ;;  %v508_v32 = vld [vmem:[#allocation2 + $0xc] sm:$0x1] }
  0x40   :  { %v4796_v22 = vld [vmem:[#allocation2 + $0x4c] sm:$0x1]  ;;  %v1997_v26 = vshrl.u32 %v4794_v20, 16  ;;  %v2000_v27 = vshll.u32 %v4794_v20, 16  ;;  %v505_v31 = vld [vmem:[#allocation2 + $0x8] sm:$0xf] }
  0x41   :  { %v4772_v60 = vrot.slane %v845_v39, 4  ;;  %v2006_v30 = vshll.u32 %v4796_v22, 16 }
  0x43   :  { %v851_v12 = vsel %vm4768_vm12, %v4772_v60, %v4774_v61 }
  0x76   :  { %v79_v47 = vpop.permute.xlu0 %78 }
  0x77   :  { %v126_v56 = vmax.f32 %v4414_v4, %v79_v47  ;;  %v739_v4 = vsel %vm4768_vm12, %v4761_v52, %v4763_v53  ;;  %v4344_v52 = vld [vmem:[%s5583_s1 + $0x1e0] sm:$0xff]   ;;  %v574_v53 = vld [vmem:[#allocation2 + $0x74] sm:$0x1] }
  0x79   :  { %v3839_v63 = vpack.c.bf16 %v126_v56, %v126_v56 }
  0x7a   :  { %v4256_v1 = vpop.permute.xlu1 %4255 }
  0x7b   :  { %v4258_v3 = vunpack.i.h.bf16 %v4256_v1  ;;  %v4257_v5 = vunpack.i.l.bf16 %v4256_v1  ;;  %v343_v7 = vshrl.u32 %v3839_v63, 16  ;;  %v346_v10 = vshll.u32 %v3839_v63, 16 }
  0x7c   :  { %v4251_v11 = vpop.permute.xlu0 %4250 }
  0x7d   :  { %v130_v15 = vmax.f32 %v4427_v9, %v4258_v3  ;;  %v129_v16 = vmax.f32 %v4425_v8, %v4257_v5  ;;  %v4253_v17 = vunpack.i.h.bf16 %v4251_v11  ;;  %v4252_v19 = vunpack.i.l.bf16 %v4251_v11 }
  0x7e   :  { %v345_v24 = vrot.slane %v343_v7, 7  ;;  %v4261_v25 = vpop.permute.xlu1 %4260  ;;  %v532_v7 = vld [vmem:[#allocation2 + $0x2c] sm:$0x1] }
  0x7f   :  { %v3843_v33 = vpack.c.bf16 %v130_v15, %v130_v15  ;;  %v3842_v9 = vpack.c.bf16 %v129_v16, %v129_v16  ;;  %v128_v8 = vmax.f32 %v4453_v18, %v4253_v17  ;;  %v127_v34 = vmax.f32 %v4443_v14, %v4252_v19  ;;  %v526_v14 = vld [vmem:[#allocation2 + $0x24] sm:$0x1]  ;;  %v529_v18 = vld [vmem:[#allocation2 + $0x28] sm:$0xf] }
  0x80   :  { %v348_v36 = vor.u32 %v346_v10, %v345_v24  ;;  %v349_v37 = vrot.slane %v345_v24, 4  ;;  %v4263_v39 = vunpack.i.h.bf16 %v4261_v25  ;;  %v4262_v41 = vunpack.i.l.bf16 %v4261_v25 }
  0x81   :  { %v375_v42 = vshrl.u32 %v3843_v33, 16  ;;  %v378_v43 = vshll.u32 %v3843_v33, 16  ;;  %v367_v44 = vshrl.u32 %v3842_v9, 16  ;;  %v370_v45 = vshll.u32 %v3842_v9, 16 }
  0x82   :  { %v506_v46 = vsel %vm4582_vm6, %v348_v36, %v505_v31  ;;  %v509_v47 = vsel %vm4563_vm4, %v349_v37, %v508_v32  ;;  %v3841_v54 = vpack.c.bf16 %v128_v8, %v128_v8  ;;  %v3840_v56 = vpack.c.bf16 %v127_v34, %v127_v34  ;;  %v4809_v5 = vpop.permute.xlu1 %4265  ;;  %v511_v31 = vld [vmem:[#allocation2 + $0x10] sm:$0xf]  ;;  %v514_v37 = vld [vmem:[#allocation2 + $0x14] sm:$0x1] }
  0x83   :  { %507 = vst [vmem:[#allocation2 + $0x8] sm:$0xf] %v506_v46  ;;  %510 = vst [vmem:[#allocation2 + $0xc] sm:$0x1] %v509_v47  ;;  %v377_v62 = vrot.slane %v375_v42, 7  ;;  %v369_v63 = vrot.slane %v367_v44, 7  ;;  %v132_v1 = vmax.f32 %v4466_v23, %v4263_v39  ;;  %v131_v3 = vmax.f32 %v4461_v21, %v4262_v41 }
  0x84   :  { %v359_v10 = vshrl.u32 %v3841_v54, 16  ;;  %v362_v11 = vshll.u32 %v3841_v54, 16  ;;  %v351_v15 = vshrl.u32 %v3840_v56, 16  ;;  %v354_v16 = vshll.u32 %v3840_v56, 16  ;;  %v517_v39 = vld [vmem:[#allocation2 + $0x18] sm:$0xf] }
  0x85   :  { %v380_v17 = vor.u32 %v378_v43, %v377_v62  ;;  %v381_v19 = vrot.slane %v377_v62, 4  ;;  %v372_v24 = vor.u32 %v370_v45, %v369_v63  ;;  %v373_v25 = vrot.slane %v369_v63, 4  ;;  %v520_v41 = vld [vmem:[#allocation2 + $0x1c] sm:$0x1] }
  0x86   :  { %v361_v32 = vrot.slane %v359_v10, 7  ;;  %v353_v33 = vrot.slane %v351_v15, 7  ;;  %v3845_v9 = vpack.c.bf16 %v132_v1, %v132_v1  ;;  %v3844_v8 = vpack.c.bf16 %v131_v3, %v131_v3  ;;  %v535_v3 = vld [vmem:[#allocation2 + $0x30] sm:$0xf]  ;;  %v541_v15 = vld [vmem:[#allocation2 + $0x38] sm:$0xf] }
  0x87   :  { %v530_v23 = vsel %vm4582_vm6, %v380_v17, %v529_v18  ;;  %v533_v21 = vsel %vm4563_vm4, %v381_v19, %v532_v7  ;;  %v524_v34 = vsel %vm4582_vm6, %v372_v24, %v523_v51  ;;  %v527_v36 = vsel %vm4563_vm4, %v373_v25, %v526_v14  ;;  %v93_v18 = vpop.permute.xlu1 %92  ;;  %v95_v51 = vpop.permute.xlu0 %94  ;;  %v544_v25 = vld [vmem:[#allocation2 + $0x3c] sm:$0x1] }
  0x88   :  { %531 = vst [vmem:[#allocation2 + $0x28] sm:$0xf] %v530_v23  ;;  %534 = vst [vmem:[#allocation2 + $0x2c] sm:$0x1] %v533_v21  ;;  %v364_v42 = vor.u32 %v362_v11, %v361_v32  ;;  %v365_v43 = vrot.slane %v361_v32, 4  ;;  %v356_v44 = vor.u32 %v354_v16, %v353_v33  ;;  %v357_v45 = vrot.slane %v353_v33, 4 }
  0x89   :  { %525 = vst [vmem:[#allocation2 + $0x20] sm:$0xf] %v524_v34  ;;  %528 = vst [vmem:[#allocation2 + $0x24] sm:$0x1] %v527_v36  ;;  %v391_v46 = vshrl.u32 %v3845_v9, 16  ;;  %v394_v47 = vshll.u32 %v3845_v9, 16  ;;  %v4268_v19 = vunpack.i.h.bf16 %v4809_v5  ;;  %v4267_v24 = vunpack.i.l.bf16 %v4809_v5 }
  0x8a   :  { %v383_v54 = vshrl.u32 %v3844_v8, 16  ;;  %v386_v56 = vshll.u32 %v3844_v8, 16  ;;  %v518_v14 = vsel %vm4582_vm6, %v364_v42, %v517_v39  ;;  %v521_v62 = vsel %vm4563_vm4, %v365_v43, %v520_v41  ;;  %v1008_v7 = vld [vmem:[#allocation2 + $0x8] sm:$0xe]  ;;  %v1009_v10 = vld [vmem:[#allocation2 + $0xc] sm:$0x1] }
  0x8b   :  { %v512_v63 = vsel %vm4582_vm6, %v356_v44, %v511_v31  ;;  %v515_v1 = vsel %vm4563_vm4, %v357_v45, %v514_v37  ;;  %519 = vst [vmem:[#allocation2 + $0x18] sm:$0xf] %v518_v14  ;;  %522 = vst [vmem:[#allocation2 + $0x1c] sm:$0x1] %v521_v62  ;;  %v538_v11 = vld [vmem:[#allocation2 + $0x34] sm:$0x1]  ;;  %v133_v31 = vmax.f32 %v4556_v55, %v93_v18 }
  0x8c   :  { %513 = vst [vmem:[#allocation2 + $0x10] sm:$0xf] %v512_v63  ;;  %516 = vst [vmem:[#allocation2 + $0x14] sm:$0x1] %v515_v1  ;;  %v393_v16 = vrot.slane %v391_v46, 7  ;;  %v385_v17 = vrot.slane %v383_v54, 7  ;;  %v134_v32 = vmax.f32 %v4499_v35, %v95_v51  ;;  %v136_v36 = vmax.f32 %v4482_v29, %v4268_v19 }
  0x8d   :  { %v3664_v33 = vrot.slane %v1008_v7, 9  ;;  %v1079_v9 = vrot.slane %v1009_v10, 5  ;;  %v135_v37 = vmax.f32 %v4480_v28, %v4267_v24  ;;  %v3846_v39 = vpack.c.bf16 %v133_v31, %v133_v31  ;;  %v4833_v42 = vld [vmem:[#allocation2 + $0x8] sm:$0xf]  ;;  %v547_v63 = vld [vmem:[#allocation2 + $0x40] sm:$0xf]  ;;  %v4846_v10 = vpop.permute.xlu0 %4270 }
  0x8e   :  { %v396_v8 = vor.u32 %v394_v47, %v393_v16  ;;  %v397_v23 = vrot.slane %v393_v16, 4  ;;  %v388_v21 = vor.u32 %v386_v56, %v385_v17  ;;  %v389_v34 = vrot.slane %v385_v17, 4  ;;  %v550_v1 = vld [vmem:[#allocation2 + $0x44] sm:$0x1]  ;;  %v556_v7 = vld [vmem:[#allocation2 + $0x5c] sm:$0x1] }
  0x8f   :  { %v3847_v41 = vpack.c.bf16 %v134_v32, %v134_v32  ;;  %v3849_v28 = vpack.c.bf16 %v136_v36, %v136_v36  ;;  %v3848_v29 = vpack.c.bf16 %v135_v37, %v135_v37  ;;  %v399_v44 = vshrl.u32 %v3846_v39, 16  ;;  %v565_v16 = vld [vmem:[#allocation2 + $0x68] sm:$0xf]  ;;  %v568_v17 = vld [vmem:[#allocation2 + $0x6c] sm:$0x1] }
  0x90   :  { %v542_v5 = vsel %vm4582_vm6, %v396_v8, %v541_v15  ;;  %v545_v35 = vsel %vm4563_vm4, %v397_v23, %v544_v25  ;;  %v536_v55 = vsel %vm4582_vm6, %v388_v21, %v535_v3  ;;  %v539_v43 = vsel %vm4563_vm4, %v389_v34, %v538_v11  ;;  %v553_v3 = vld [vmem:[#allocation2 + $0x58] sm:$0xf]  ;;  %v559_v11 = vld [vmem:[#allocation2 + $0x60] sm:$0xf]  ;;  %v562_v15 = vld [vmem:[#allocation2 + $0x64] sm:$0x1] }
  0x91   :  { %543 = vst [vmem:[#allocation2 + $0x38] sm:$0xf] %v542_v5  ;;  %546 = vst [vmem:[#allocation2 + $0x3c] sm:$0x1] %v545_v35  ;;  %v402_v45 = vshll.u32 %v3846_v39, 16  ;;  %v407_v46 = vshrl.u32 %v3847_v41, 16  ;;  %v1080_v54 = vsel %vm4757_vm11, %v3664_v33, %v1079_v9  ;;  %v4273_v32 = vunpack.i.h.bf16 %v4846_v10 }
  0x92   :  { %537 = vst [vmem:[#allocation2 + $0x30] sm:$0xf] %v536_v55  ;;  %540 = vst [vmem:[#allocation2 + $0x34] sm:$0x1] %v539_v43  ;;  %v410_v47 = vshll.u32 %v3847_v41, 16  ;;  %v741_v56 = vshrl.u32 %v4833_v42, 16  ;;  %v3679_v31 = vcombine.low %v4778_v6, %v1080_v54 }
  0x93   :  { %v423_v18 = vshrl.u32 %v3849_v28, 16  ;;  %v426_v51 = vshll.u32 %v3849_v28, 16  ;;  %v415_v14 = vshrl.u32 %v3848_v29, 16  ;;  %v418_v62 = vshll.u32 %v3848_v29, 16  ;;  %v4311_v25 = vld [vmem:[#allocation2 + $0x8] ss:$8 sps:$4 sm:$0xff]  }
  0x94   :  { %v401_v19 = vrot.slane %v399_v44, 7  ;;  %v409_v24 = vrot.slane %v407_v46, 7  ;;  %v743_v8 = vrot.slane %v741_v56, 4  ;;  %v744_v23 = vshll.u32 %v4833_v42, 16  ;;  %v4325_v21 = vld [vmem:[%s5583_s1 + $0x180] sm:$0xff]   ;;  %3871 = vmatprep.mubr.msk.bf16.mxu1 %vm657_vm13, %v4311_v25  ;;  %v4328_v6 = vld [vmem:[%s5583_s1 + $0x1c8] sm:$0xff]  }
  0x95   :  { %v425_v33 = vrot.slane %v423_v18, 7  ;;  %v417_v9 = vrot.slane %v415_v14, 7  ;;  %v4312_v41 = vld [vmem:[#allocation2 + $0x18] ss:$8 sps:$4 sm:$0xff]   ;;  %3872 = vmatmul.mubr.msk.bf16.vlgmr.msra.gmra.mrb[0].mxu1 %vm657_vm13, %v3679_v31  ;;  %v694_v42 = vld [vmem:[#allocation2 + $0xc] sm:$0x1] }
  0x96   :  { %v404_v34 = vor.u32 %v402_v45, %v401_v19  ;;  %v405_v36 = vrot.slane %v401_v19, 4  ;;  %v412_v37 = vor.u32 %v410_v47, %v409_v24  ;;  %v413_v39 = vrot.slane %v409_v24, 4  ;;  %3873 = vmatprep.mubr.msk.bf16.mxu1 %vm657_vm13, %v4312_v41  ;;  %v695_v46 = vld [vmem:[#allocation2 + $0x10] sm:$0xf]  ;;  %v696_v47 = vld [vmem:[#allocation2 + $0x14] sm:$0x1]  ;;  %4120 = vmatpush3.bf16.msra.mxu1 %v4325_v21 }
  0x97   :  { %v428_v5 = vor.u32 %v426_v51, %v425_v33  ;;  %v429_v35 = vrot.slane %v425_v33, 4  ;;  %v420_v55 = vor.u32 %v418_v62, %v417_v9  ;;  %v421_v43 = vrot.slane %v417_v9, 4  ;;  %v697_v54 = vld [vmem:[#allocation2 + $0x18] sm:$0xf]  ;;  %v4331_v62 = vld [vmem:[%s5583_s1 + $0x188] sm:$0xff]   ;;  %4121 = vmatprep.subr.bf16.mxu1 %v4328_v6 }
  0x98   :  { %v548_v28 = vsel %vm4582_vm6, %v404_v34, %v547_v63  ;;  %v551_v29 = vsel %vm4563_vm4, %v405_v36, %v550_v1  ;;  %v554_v44 = vsel %vm4582_vm6, %v412_v37, %v553_v3  ;;  %v557_v45 = vsel %vm4563_vm4, %v413_v39, %v556_v7  ;;  %v4334_v63 = vld [vmem:[%s5583_s1 + $0x1d0] sm:$0xff]   ;;  %v698_v9 = vld [vmem:[#allocation2 + $0x1c] sm:$0x1]  ;;  %v1012_v6 = vld [vmem:[#allocation2 + $0x18] sm:$0xe] }
  0x99   :  { %v566_v56 = vsel %vm4582_vm6, %v428_v5, %v565_v16  ;;  %v569_v18 = vsel %vm4563_vm4, %v429_v35, %v568_v17  ;;  %v560_v51 = vsel %vm4582_vm6, %v420_v55, %v559_v11  ;;  %v563_v14 = vsel %vm4563_vm4, %v421_v43, %v562_v15  ;;  %549 = vst [vmem:[#allocation2 + $0x40] sm:$0xf] %v548_v28  ;;  %v4885_v21 = vld [vmem:[#allocation2 + $0x10] sm:$0xe]  ;;  %v1011_v36 = vld [vmem:[#allocation2 + $0x14] sm:$0x1] }
  0x9a   :  { %552 = vst [vmem:[#allocation2 + $0x44] sm:$0x1] %v551_v29  ;;  %555 = vst [vmem:[#allocation2 + $0x58] sm:$0xf] %v554_v44  ;;  %v746_v1 = vrot.slane %v744_v23, 5  ;;  %v750_v3 = vshll.u32 %v694_v42, 16  ;;  %v138_v7 = vmax.f32 %v4512_v40, %v4273_v32  ;;  %v4272_v11 = vunpack.i.l.bf16 %v4846_v10  ;;  %4122 = vmatpush3.bf16.msra.mxu1 %v4331_v62 }
  0x9b   :  { %558 = vst [vmem:[#allocation2 + $0x5c] sm:$0x1] %v557_v45  ;;  %567 = vst [vmem:[#allocation2 + $0x68] sm:$0xf] %v566_v56  ;;  %v755_v15 = vshrl.u32 %v695_v46, 16  ;;  %v758_v16 = vshll.u32 %v695_v46, 16  ;;  %4123 = vmatprep.subr.bf16.mxu1 %v4334_v63 }
  0x9c   :  { %570 = vst [vmem:[#allocation2 + $0x6c] sm:$0x1] %v569_v18  ;;  %561 = vst [vmem:[#allocation2 + $0x60] sm:$0xf] %v560_v51  ;;  %v764_v17 = vshll.u32 %v696_v47, 16  ;;  %v769_v19 = vshrl.u32 %v697_v54, 16  ;;  %v747_v24 = vor.u32 %v746_v1, %v743_v8  ;;  %v3851_v31 = vpack.c.bf16 %v138_v7, %v138_v7 }
  0x9d   :  { %564 = vst [vmem:[#allocation2 + $0x64] sm:$0x1] %v563_v14  ;;  %v752_v25 = vrot.slane %v750_v3, 5  ;;  %v137_v33 = vmax.f32 %v4507_v38, %v4272_v11  ;;  %v4337_v23 = vld [vmem:[%s5583_s1 + $0x190] sm:$0xff]   ;;  %v757_v40 = vrot.slane %v755_v15, 4  ;;  %v760_v32 = vrot.slane %v758_v16, 5 }
  0x9e   :  { %v4890_v10 = vrot.slane %v764_v17, 5  ;;  %v771_v34 = vrot.slane %v769_v19, 4  ;;  %v748_v37 = vrot.slane %v747_v24, 4  ;;  %v439_v8 = vshrl.u32 %v3851_v31, 16  ;;  %v1013_v38 = vld [vmem:[#allocation2 + $0x1c] sm:$0x1]  ;;  %4124 = vmatpush3.bf16.msra.mxu1 %v4337_v23 }
  0x9f   :  { %v442_v39 = vshll.u32 %v3851_v31, 16  ;;  %v3850_v41 = vpack.c.bf16 %v137_v33, %v137_v33  ;;  %v4340_v5 = vld [vmem:[%s5583_s1 + $0x1d8] sm:$0xff]   ;;  %v4315_v35 = vld [vmem:[%s5583_s1 + $0x100] sm:$0xff]   ;;  %v761_v42 = vor.u32 %v760_v32, %v757_v40  ;;  %v772_v28 = vshll.u32 %v697_v54, 16  ;;  %v4317_v18 = vld [vmem:[%s5583_s1 + $0x148] sm:$0xff]  }
  0xa0   :  { %v577_v55 = vld [vmem:[#allocation2 + $0x78] sm:$0xf]  ;;  %v580_v43 = vld [vmem:[#allocation2 + $0x7c] sm:$0x1]  ;;  %v778_v29 = vshll.u32 %v698_v9, 16  ;;  %v3665_v44 = vrot.slane %v4885_v21, 9  ;;  %v753_v45 = vsel %vm4768_vm12, %v748_v37, %v752_v25  ;;  %4125 = vmatprep.subr.bf16.mxu1 %v4340_v5  ;;  %v4276_v25 = vpop.permute.xlu0 %4275 }
  0xa1   :  { %v441_v46 = vrot.slane %v439_v8, 7  ;;  %v431_v47 = vshrl.u32 %v3850_v41, 16  ;;  %v434_v56 = vshll.u32 %v3850_v41, 16  ;;  %v3655_v51 = vcombine.low %v739_v4, %v753_v45  ;;  %v4314_v54 = vld [vmem:[#allocation2] ss:$8 sps:$4 sm:$0xff]   ;;  %v4343_v3 = vld [vmem:[%s5583_s1 + $0x198] sm:$0xff]  }
  0xa2   :  { %v571_v14 = vld [vmem:[#allocation2 + $0x70] sm:$0xf]  ;;  %v762_v62 = vrot.slane %v761_v42, 4  ;;  %v774_v63 = vrot.slane %v772_v28, 5  ;;  %v780_v1 = vrot.slane %v778_v29, 5  ;;  %v1083_v16 = vrot.slane %v1011_v36, 5  ;;  %4126 = vmatpush3.bf16.msra.mxu1 %v4343_v3 }
  0xa3   :  { %v444_v7 = vor.u32 %v442_v39, %v441_v46  ;;  %v445_v11 = vrot.slane %v441_v46, 4  ;;  %v433_v15 = vrot.slane %v431_v47, 7  ;;  %3855 = vmatprep.mubr.msk.bf16.mxu0 %vm657_vm13, %v3655_v51  ;;  %v3666_v19 = vrot.slane %v1012_v6, 9  ;;  %v4319_v23 = vld [vmem:[%s5583_s1 + $0x108] sm:$0xff]   ;;  %v699_v40 = vld [vmem:[#allocation2 + $0x20] sm:$0xf]  ;;  %4127 = vmatprep.subr.bf16.mxu1 %v4344_v52 }
  0xa4   :  { %v767_v4 = vsel %vm4768_vm12, %v762_v62, %v4890_v10  ;;  %v775_v17 = vor.u32 %v774_v63, %v771_v34  ;;  %v1087_v24 = vrot.slane %v1013_v38, 5  ;;  %3856 = vmatmul.mubr.msk.bf16.vlgmr.msra.gmra.mrb[0].mxu0 %vm657_vm13, %v4314_v54  ;;  %v4321_v32 = vld [vmem:[%s5583_s1 + $0x150] sm:$0xff]   ;;  %v1084_v34 = vsel %vm4757_vm11, %v3665_v44, %v1083_v16  ;;  %v700_v8 = vld [vmem:[#allocation2 + $0x24] sm:$0x1]  ;;  %v701_v39 = vld [vmem:[#allocation2 + $0x28] sm:$0xf] }
  0xa5   :  { %v578_v31 = vsel %vm4582_vm6, %v444_v7, %v577_v55  ;;  %v581_v33 = vsel %vm4563_vm4, %v445_v11, %v580_v43  ;;  %v436_v9 = vor.u32 %v434_v56, %v433_v15  ;;  %v437_v21 = vrot.slane %v433_v15, 4  ;;  %4056 = vmatpush3.bf16.msra.mxu0 %v4315_v35  ;;  %v4346_v41 = vld [vmem:[%s5583_s1 + $0x1a0] sm:$0xff]   ;;  %v4316_v35 = vld [vmem:[#allocation2 + $0x28] ss:$8 sps:$4 sm:$0xff]   ;;  %v702_v43 = vld [vmem:[#allocation2 + $0x2c] sm:$0x1] }
  0xa6   :  { %579 = vst [vmem:[#allocation2 + $0x78] sm:$0xf] %v578_v31  ;;  %582 = vst [vmem:[#allocation2 + $0x7c] sm:$0x1] %v581_v33  ;;  %v776_v10 = vrot.slane %v775_v17, 4  ;;  %v1088_v36 = vsel %vm4757_vm11, %v3666_v19, %v1087_v24  ;;  %v4278_v37 = vunpack.i.h.bf16 %v4276_v25  ;;  %4057 = vmatprep.subr.bf16.mxu0 %v4317_v18  ;;  %v4277_v55 = vunpack.i.l.bf16 %v4276_v25  ;;  %v4350_v42 = vld [vmem:[%s5583_s1 + $0x1e8] sm:$0xff]   ;;  %4128 = vmatpush3.bf16.msra.mxu1 %v4346_v41 }
  0xa7   :  { %v572_v6 = vsel %vm4582_vm6, %v436_v9, %v571_v14  ;;  %v575_v38 = vsel %vm4563_vm4, %v437_v21, %v574_v53  ;;  %v3680_v5 = vcombine.low %v1084_v34, %v1088_v36  ;;  %v783_v44 = vshrl.u32 %v699_v40, 16  ;;  %v4947_v46 = vld [vmem:[#allocation2 + $0x20] sm:$0xe]  ;;  %v4318_v56 = vld [vmem:[#allocation2 + $0x10] ss:$8 sps:$4 sm:$0xff]   ;;  %v4351_v31 = vld [vmem:[%s5583_s1 + $0x1a8] sm:$0xff]   ;;  %4129 = vmatprep.subr.bf16.mxu1 %v4350_v42 }
  0xa8   :  { %573 = vst [vmem:[#allocation2 + $0x70] sm:$0xf] %v572_v6  ;;  %576 = vst [vmem:[#allocation2 + $0x74] sm:$0x1] %v575_v38  ;;  %v781_v28 = vsel %vm4768_vm12, %v776_v10, %v780_v1  ;;  %v140_v29 = vmax.f32 %v4541_v50, %v4278_v37  ;;  %v786_v45 = vshll.u32 %v699_v40, 16  ;;  %v139_v18 = vmax.f32 %v4539_v49, %v4277_v55  ;;  %v4324_v11 = vld [vmem:[%s5583_s1 + $0x110] sm:$0xff]  }
  0xa9   :  { %v3656_v47 = vcombine.low %v767_v4, %v781_v28  ;;  %3874 = vmatmul.mubr.msk.bf16.gmra.mrb[4].mxu1 %vm657_vm13, %v3680_v5  ;;  %v792_v51 = vshll.u32 %v700_v8, 16  ;;  %v797_v54 = vshrl.u32 %v701_v39, 16  ;;  %v1015_v14 = vld [vmem:[#allocation2 + $0x24] sm:$0x1]  ;;  %4058 = vmatpush3.bf16.msra.mxu0 %v4319_v23  ;;  %v785_v63 = vrot.slane %v783_v44, 4  ;;  %v4327_v53 = vld [vmem:[%s5583_s1 + $0x158] sm:$0xff]  }
  0xaa   :  { %3875 = vmatprep.mubr.msk.bf16.mxu1 %vm657_vm13, %v4316_v35  ;;  %v3853_v62 = vpack.c.bf16 %v140_v29, %v140_v29  ;;  %v788_v1 = vrot.slane %v786_v45, 5  ;;  %v800_v50 = vshll.u32 %v701_v39, 16  ;;  %v1016_v3 = vld [vmem:[#allocation2 + $0x28] sm:$0xe]  ;;  %v1017_v7 = vld [vmem:[#allocation2 + $0x2c] sm:$0x1]  ;;  %v3852_v15 = vpack.c.bf16 %v139_v18, %v139_v18  ;;  %4059 = vmatprep.subr.bf16.mxu0 %v4321_v32 }
  0xab   :  { %3857 = vmatprep.mubr.msk.bf16.mxu0 %vm657_vm13, %v3656_v47  ;;  %v4956_v49 = vrot.slane %v792_v51, 5  ;;  %v799_v16 = vrot.slane %v797_v54, 4  ;;  %v806_v52 = vshll.u32 %v702_v43, 16  ;;  %v4961_v25 = vld [vmem:[#allocation2 + $0x30] sm:$0xf]  ;;  %v3667_v32 = vrot.slane %v4947_v46, 9  ;;  %4130 = vmatpush3.bf16.msra.mxu1 %v4351_v31 }
  0xac   :  { %v455_v4 = vshrl.u32 %v3853_v62, 16  ;;  %v458_v17 = vshll.u32 %v3853_v62, 16  ;;  %v789_v19 = vor.u32 %v788_v1, %v785_v63  ;;  %v802_v24 = vrot.slane %v800_v50, 5  ;;  %3858 = vmatmul.mubr.msk.bf16.gmra.mrb[4].mxu0 %vm657_vm13, %v4318_v56  ;;  %v589_v33 = vld [vmem:[#allocation2 + $0x88] sm:$0xf]  ;;  %v4352_v10 = vld [vmem:[%s5583_s1 + $0x1f0] sm:$0xff]  }
  0xad   :  { %v592_v9 = vld [vmem:[#allocation2 + $0x8c] sm:$0x1]  ;;  %v447_v21 = vshrl.u32 %v3852_v15, 16  ;;  %v450_v23 = vshll.u32 %v3852_v15, 16  ;;  %v808_v40 = vrot.slane %v806_v52, 5  ;;  %v1091_v41 = vrot.slane %v1015_v14, 5  ;;  %4060 = vmatpush3.bf16.msra.mxu0 %v4324_v11  ;;  %4131 = vmatprep.subr.bf16.mxu1 %v4352_v10  ;;  %v109_v11 = vpop.permute.xlu1 %108 }
  0xae   :  { %v583_v34 = vld [vmem:[#allocation2 + $0x80] sm:$0xf]  ;;  %v586_v36 = vld [vmem:[#allocation2 + $0x84] sm:$0x1]  ;;  %v457_v37 = vrot.slane %v455_v4, 7  ;;  %v790_v8 = vrot.slane %v789_v19, 4  ;;  %v803_v39 = vor.u32 %v802_v24, %v799_v16  ;;  %4061 = vmatprep.subr.bf16.mxu0 %v4327_v53 }
  0xaf   :  { %v4330_v6 = vld [vmem:[%s5583_s1 + $0x118] sm:$0xff]   ;;  %v4333_v38 = vld [vmem:[%s5583_s1 + $0x160] sm:$0xff]   ;;  %v449_v5 = vrot.slane %v447_v21, 7  ;;  %v3668_v35 = vrot.slane %v1016_v3, 9  ;;  %v1095_v55 = vrot.slane %v1017_v7, 5  ;;  %v811_v42 = vshrl.u32 %v4961_v25, 16 }
  0xb0   :  { %v704_v43 = vld [vmem:[#allocation2 + $0x34] sm:$0x1]  ;;  %v460_v28 = vor.u32 %v458_v17, %v457_v37  ;;  %v461_v29 = vrot.slane %v457_v37, 4  ;;  %v795_v44 = vsel %vm4768_vm12, %v790_v8, %v4956_v49  ;;  %v804_v45 = vrot.slane %v803_v39, 4  ;;  %v705_v46 = vld [vmem:[#allocation2 + $0x38] sm:$0xf] }
  0xb1   :  { %v452_v47 = vor.u32 %v450_v23, %v449_v5  ;;  %v453_v56 = vrot.slane %v449_v5, 4  ;;  %v1092_v18 = vsel %vm4757_vm11, %v3667_v32, %v1091_v41  ;;  %v1096_v51 = vsel %vm4757_vm11, %v3668_v35, %v1095_v55  ;;  %v4320_v54 = vld [vmem:[#allocation2 + $0x38] ss:$8 sps:$4 sm:$0xff]   ;;  %v706_v14 = vld [vmem:[#allocation2 + $0x3c] sm:$0x1]  ;;  %v4353_v63 = vld [vmem:[%s5583_s1 + $0x1b0] sm:$0xff]   ;;  %4062 = vmatpush3.bf16.msra.mxu0 %v4330_v6 }
  0xb2   :  { %v4336_v62 = vld [vmem:[%s5583_s1 + $0x120] sm:$0xff]   ;;  %v590_v1 = vsel %vm4582_vm6, %v460_v28, %v589_v33  ;;  %v593_v50 = vsel %vm4563_vm4, %v461_v29, %v592_v9  ;;  %v809_v3 = vsel %vm4768_vm12, %v804_v45, %v808_v40  ;;  %v3681_v7 = vcombine.low %v1092_v18, %v1096_v51  ;;  %v1018_v15 = vld [vmem:[#allocation2 + $0x30] sm:$0xe]  ;;  %v1019_v49 = vld [vmem:[#allocation2 + $0x34] sm:$0x1]  ;;  %4063 = vmatprep.subr.bf16.mxu0 %v4333_v38 }
  0xb3   :  { %v4339_v16 = vld [vmem:[%s5583_s1 + $0x168] sm:$0xff]   ;;  %591 = vst [vmem:[#allocation2 + $0x88] sm:$0xf] %v590_v1  ;;  %594 = vst [vmem:[#allocation2 + $0x8c] sm:$0x1] %v593_v50  ;;  %v584_v52 = vsel %vm4582_vm6, %v452_v47, %v583_v34  ;;  %v587_v53 = vsel %vm4563_vm4, %v453_v56, %v586_v36  ;;  %v3657_v4 = vcombine.low %v795_v44, %v809_v3  ;;  %v813_v19 = vrot.slane %v811_v42, 4 }
  0xb4   :  { %v4323_v17 = vld [vmem:[#allocation2 + $0x20] ss:$8 sps:$4 sm:$0xff]   ;;  %v1020_v24 = vld [vmem:[#allocation2 + $0x38] sm:$0xe]  ;;  %585 = vst [vmem:[#allocation2 + $0x80] sm:$0xf] %v584_v52  ;;  %3876 = vmatmul.mubr.msk.bf16.gmra.mrb[8].mxu1 %vm657_vm13, %v3681_v7  ;;  %v141_v34 = vmax.f32 %v4591_v2, %v109_v11 }
  0xb5   :  { %v4357_v31 = vld [vmem:[%s5583_s1 + $0x1f8] sm:$0xff]   ;;  %588 = vst [vmem:[#allocation2 + $0x84] sm:$0x1] %v587_v53  ;;  %v814_v33 = vshll.u32 %v4961_v25, 16  ;;  %v820_v9 = vshll.u32 %v704_v43, 16  ;;  %v825_v21 = vshrl.u32 %v705_v46, 16  ;;  %3859 = vmatprep.mubr.msk.bf16.mxu0 %vm657_vm13, %v3657_v4  ;;  %3877 = vmatprep.mubr.msk.bf16.mxu1 %vm657_vm13, %v4320_v54 }
  0xb6   :  { %v828_v23 = vshll.u32 %v705_v46, 16  ;;  %v1021_v40 = vld [vmem:[#allocation2 + $0x3c] sm:$0x1]  ;;  %v834_v10 = vshll.u32 %v706_v14, 16  ;;  %v3669_v36 = vrot.slane %v1018_v15, 9  ;;  %v1099_v37 = vrot.slane %v1019_v49, 5  ;;  %3860 = vmatmul.mubr.msk.bf16.gmra.mrb[8].mxu0 %vm657_vm13, %v4323_v17  ;;  %4132 = vmatpush3.bf16.msra.mxu1 %v4353_v63 }
  0xb7   :  { %v4358_v32 = vld [vmem:[%s5583_s1 + $0x1b8] sm:$0xff]   ;;  %v4342_v25 = vld [vmem:[%s5583_s1 + $0x128] sm:$0xff]   ;;  %v5021_v39 = vld [vmem:[%s5583_s1 + $0x200] sm:$0xff]   ;;  %v816_v41 = vrot.slane %v814_v33, 5  ;;  %v822_v6 = vrot.slane %v820_v9, 5  ;;  %v827_v38 = vrot.slane %v825_v21, 4  ;;  %v3854_v43 = vpack.c.bf16 %v141_v34, %v141_v34  ;;  %4064 = vmatpush3.bf16.msra.mxu0 %v4336_v62  ;;  %4133 = vmatprep.subr.bf16.mxu1 %v4357_v31 }
  0xb8   :  { %v709_v8 = vld [vmem:[#allocation2 + $0x58] sm:$0xf]  ;;  %v830_v5 = vrot.slane %v828_v23, 5  ;;  %v710_v35 = vld [vmem:[#allocation2 + $0x5c] sm:$0x1]  ;;  %v4347_v2 = vld [vmem:[%s5583_s1 + $0x170] sm:$0xff]   ;;  %v1100_v42 = vsel %vm4757_vm11, %v3669_v36, %v1099_v37  ;;  %4065 = vmatprep.subr.bf16.mxu0 %v4339_v16 }
  0xb9   :  { %v836_v55 = vrot.slane %v834_v10, 5  ;;  %v3670_v28 = vrot.slane %v1020_v24, 9  ;;  %v1024_v29 = vld [vmem:[#allocation2 + $0x58] sm:$0xe]  ;;  %v1025_v44 = vld [vmem:[#allocation2 + $0x5c] sm:$0x1]  ;;  %v817_v45 = vor.u32 %v816_v41, %v813_v19 }
  0xba   :  { %v831_v46 = vor.u32 %v830_v5, %v827_v38  ;;  %v1103_v47 = vrot.slane %v1021_v40, 5  ;;  %v853_v56 = vshrl.u32 %v709_v8, 16  ;;  %v463_v18 = vshrl.u32 %v3854_v43, 16  ;;  %v711_v63 = vld [vmem:[#allocation2 + $0x60] sm:$0xf]  ;;  %v4349_v52 = vld [vmem:[%s5583_s1 + $0x130] sm:$0xff]   ;;  %4134 = vmatpush3.bf16.msra.mxu1 %v4358_v32 }
  0xbb   :  { %v466_v51 = vshll.u32 %v3854_v43, 16  ;;  %v856_v54 = vshll.u32 %v709_v8, 16  ;;  %v862_v14 = vshll.u32 %v710_v35, 16  ;;  %v818_v1 = vrot.slane %v817_v45, 4  ;;  %v595_v3 = vld [vmem:[#allocation2 + $0x90] sm:$0xf]  ;;  %4066 = vmatpush3.bf16.msra.mxu0 %v4342_v25  ;;  %4231 = vmatprep.subr.bf16.mxu1 %v5021_v39 }
  0xbc   :  { %v832_v50 = vrot.slane %v831_v46, 4  ;;  %v598_v7 = vld [vmem:[#allocation2 + $0x94] sm:$0x1]  ;;  %v1104_v11 = vsel %vm4757_vm11, %v3670_v28, %v1103_v47  ;;  %v4326_v15 = vld [vmem:[#allocation2 + $0x58] ss:$8 sps:$4 sm:$0xff]   ;;  %v855_v62 = vrot.slane %v853_v56, 4  ;;  %4067 = vmatprep.subr.bf16.mxu0 %v4347_v2 }
  0xbd   :  { %v712_v49 = vld [vmem:[#allocation2 + $0x64] sm:$0x1]  ;;  %v465_v16 = vrot.slane %v463_v18, 7  ;;  %v3682_v53 = vcombine.low %v1100_v42, %v1104_v11  ;;  %v858_v4 = vrot.slane %v856_v54, 5  ;;  %v864_v17 = vrot.slane %v862_v14, 5  ;;  %v4354_v19 = vld [vmem:[%s5583_s1 + $0x178] sm:$0xff]  }
  0xbe   :  { %v823_v24 = vsel %vm4768_vm12, %v818_v1, %v822_v6  ;;  %v837_v31 = vsel %vm4768_vm12, %v832_v50, %v836_v55  ;;  %v4329_v33 = vld [vmem:[#allocation2 + $0x30] ss:$8 sps:$4 sm:$0xff]   ;;  %v3672_v9 = vrot.slane %v1024_v29, 9  ;;  %v1111_v21 = vrot.slane %v1025_v44, 5  ;;  %v713_v23 = vld [vmem:[#allocation2 + $0x68] sm:$0xf] }
  0xbf   :  { %v714_v40 = vld [vmem:[#allocation2 + $0x6c] sm:$0x1]  ;;  %v3658_v32 = vcombine.low %v823_v24, %v837_v31  ;;  %v468_v10 = vor.u32 %v466_v51, %v465_v16  ;;  %v469_v34 = vrot.slane %v465_v16, 4  ;;  %3878 = vmatmul.mubr.msk.bf16.gmra.mrb[12].mxu1 %vm657_vm13, %v3682_v53  ;;  %v859_v36 = vor.u32 %v858_v4, %v855_v62  ;;  %v1026_v37 = vld [vmem:[#allocation2 + $0x60] sm:$0xe]  ;;  %4068 = vmatpush3.bf16.msra.mxu0 %v4349_v52  ;;  %v4356_v29 = vld [vmem:[%s5583_s1 + $0x138] sm:$0xff]  }
  0xc0   :  { %v1027_v8 = vld [vmem:[#allocation2 + $0x64] sm:$0x1]  ;;  %3879 = vmatprep.mubr.msk.bf16.mxu1 %vm657_vm13, %v4326_v15  ;;  %v1112_v25 = vsel %vm4757_vm11, %v3672_v9, %v1111_v21  ;;  %v867_v41 = vshrl.u32 %v711_v63, 16  ;;  %v870_v6 = vshll.u32 %v711_v63, 16  ;;  %v876_v38 = vshll.u32 %v712_v49, 16  ;;  %4069 = vmatprep.subr.bf16.mxu0 %v4354_v19 }
  0xc1   :  { %v1028_v5 = vld [vmem:[#allocation2 + $0x68] sm:$0xe]  ;;  %3861 = vmatprep.mubr.msk.bf16.mxu0 %vm657_vm13, %v3658_v32  ;;  %v596_v35 = vsel %vm4582_vm6, %v468_v10, %v595_v3  ;;  %v599_v2 = vsel %vm4563_vm4, %v469_v34, %v598_v7  ;;  %v860_v55 = vrot.slane %v859_v36, 4  ;;  %v3683_v43 = vcombine.low %v4790_v13, %v1112_v25  ;;  %v1029_v42 = vld [vmem:[#allocation2 + $0x6c] sm:$0x1] }
  0xc2   :  { %v715_v28 = vld [vmem:[#allocation2 + $0x70] sm:$0xf]  ;;  %597 = vst [vmem:[#allocation2 + $0x90] sm:$0xf] %v596_v35  ;;  %600 = vst [vmem:[#allocation2 + $0x94] sm:$0x1] %v599_v2  ;;  %3862 = vmatmul.mubr.msk.bf16.gmra.mrb[12].mxu0 %vm657_vm13, %v4329_v33 }
  0xc3   :  { %v869_v44 = vrot.slane %v867_v41, 4  ;;  %v872_v0 = vrot.slane %v870_v6, 5  ;;  %v878_v45 = vrot.slane %v876_v38, 5  ;;  %v881_v46 = vshrl.u32 %v713_v23, 16  ;;  %v716_v47 = vld [vmem:[#allocation2 + $0x74] sm:$0x1]  ;;  %4070 = vmatpush3.bf16.msra.mxu0 %v4356_v29 }
  0xc4   :  { %v865_v13 = vsel %vm4768_vm12, %v860_v55, %v864_v17  ;;  %v884_v56 = vshll.u32 %v713_v23, 16  ;;  %v890_v18 = vshll.u32 %v714_v40, 16  ;;  %v3673_v51 = vrot.slane %v1026_v37, 9  ;;  %v717_v54 = vld [vmem:[#allocation2 + $0x78] sm:$0xf]  ;;  %4199 = vmatprep.subr.bf16.mxu0 %v5021_v39 }
  0xc5   :  { %v3659_v14 = vcombine.low %v851_v12, %v865_v13  ;;  %v4332_v63 = vld [vmem:[#allocation2 + $0x68] ss:$8 sps:$4 sm:$0xff]   ;;  %v873_v1 = vor.u32 %v872_v0, %v869_v44  ;;  %v883_v50 = vrot.slane %v881_v46, 4  ;;  %v1115_v3 = vrot.slane %v1027_v8, 5  ;;  %v718_v49 = vld [vmem:[#allocation2 + $0x7c] sm:$0x1] }
  0xc6   :  { %v886_v7 = vrot.slane %v884_v56, 5  ;;  %v892_v11 = vrot.slane %v890_v18, 5  ;;  %v3674_v15 = vrot.slane %v1028_v5, 9  ;;  %v1119_v62 = vrot.slane %v1029_v42, 5  ;;  %v4335_v52 = vld [vmem:[#allocation2 + $0x50] ss:$8 sps:$4 sm:$0xff]  }
  0xc7   :  { %3863 = vmatprep.mubr.msk.bf16.mxu0 %vm657_vm13, %v3659_v14  ;;  %v874_v16 = vrot.slane %v873_v1, 4  ;;  %v1116_v53 = vsel %vm4757_vm11, %v3673_v51, %v1115_v3  ;;  %v895_v4 = vshrl.u32 %v715_v28, 16  ;;  %v898_v60 = vshll.u32 %v715_v28, 16  ;;  %v1030_v61 = vld [vmem:[#allocation2 + $0x70] sm:$0xe]  ;;  %3880 = vmatmul.mubr.msk.bf16.gmra.mrb[16].mxu1 %vm657_vm13, %v3683_v43 }
  0xc8   :  { %v887_v12 = vor.u32 %v886_v7, %v883_v50  ;;  %v1120_v17 = vsel %vm4757_vm11, %v3674_v15, %v1119_v62  ;;  %v904_v19 = vshll.u32 %v716_v47, 16  ;;  %v909_v24 = vshrl.u32 %v717_v54, 16  ;;  %v1031_v31 = vld [vmem:[#allocation2 + $0x74] sm:$0x1]  ;;  %v1032_v33 = vld [vmem:[#allocation2 + $0x78] sm:$0xe]  ;;  %3881 = vmatprep.mubr.msk.bf16.mxu1 %vm657_vm13, %v4332_v63 }
  0xc9   :  { %v879_v9 = vsel %vm4768_vm12, %v874_v16, %v878_v45  ;;  %v3684_v21 = vcombine.low %v1116_v53, %v1120_v17  ;;  %v897_v23 = vrot.slane %v895_v4, 4  ;;  %v900_v40 = vrot.slane %v898_v60, 5  ;;  %v1033_v32 = vld [vmem:[#allocation2 + $0x7c] sm:$0x1]  ;;  %v719_v10 = vld [vmem:[#allocation2 + $0x80] sm:$0xf] }
  0xca   :  { %v888_v34 = vrot.slane %v887_v12, 4  ;;  %v906_v36 = vrot.slane %v904_v19, 5  ;;  %v911_v37 = vrot.slane %v909_v24, 4  ;;  %v912_v8 = vshll.u32 %v717_v54, 16  ;;  %3864 = vmatmul.mubr.msk.bf16.gmra.mrb[16].mxu0 %vm657_vm13, %v4335_v52  ;;  %v720_v5 = vld [vmem:[#allocation2 + $0x84] sm:$0x1] }
  0xcb   :  { %v901_v25 = vor.u32 %v900_v40, %v897_v23  ;;  %v918_v41 = vshll.u32 %v718_v49, 16  ;;  %v3675_v6 = vrot.slane %v1030_v61, 9  ;;  %v1123_v38 = vrot.slane %v1031_v31, 5  ;;  %v721_v42 = vld [vmem:[#allocation2 + $0x88] sm:$0xf] }
  0xcc   :  { %v893_v35 = vsel %vm4768_vm12, %v888_v34, %v892_v11  ;;  %v914_v2 = vrot.slane %v912_v8, 5  ;;  %v3676_v55 = vrot.slane %v1032_v33, 9  ;;  %v1127_v43 = vrot.slane %v1033_v32, 5  ;;  %v4338_v29 = vld [vmem:[#allocation2 + $0x78] ss:$8 sps:$4 sm:$0xff]  }
  0xcd   :  { %v3660_v28 = vcombine.low %v879_v9, %v893_v35  ;;  %v902_v44 = vrot.slane %v901_v25, 4  ;;  %v920_v0 = vrot.slane %v918_v41, 5  ;;  %v5078_v45 = vsel %vm4757_vm11, %v3675_v6, %v1123_v38  ;;  %v722_v46 = vld [vmem:[#allocation2 + $0x8c] sm:$0x1]  ;;  %v1034_v47 = vld [vmem:[#allocation2 + $0x80] sm:$0xe] }
  0xce   :  { %v915_v13 = vor.u32 %v914_v2, %v911_v37  ;;  %v1128_v56 = vsel %vm4757_vm11, %v3676_v55, %v1127_v43  ;;  %v923_v18 = vshrl.u32 %v719_v10, 16  ;;  %v926_v51 = vshll.u32 %v719_v10, 16  ;;  %v1035_v54 = vld [vmem:[#allocation2 + $0x84] sm:$0x1]  ;;  %v1036_v14 = vld [vmem:[#allocation2 + $0x88] sm:$0xe] }
  0xcf   :  { %3865 = vmatprep.mubr.msk.bf16.mxu0 %vm657_vm13, %v3660_v28  ;;  %v4341_v63 = vld [vmem:[#allocation2 + $0x60] ss:$8 sps:$4 sm:$0xff]   ;;  %v907_v1 = vsel %vm4768_vm12, %v902_v44, %v906_v36  ;;  %v3685_v50 = vcombine.low %v5078_v45, %v1128_v56  ;;  %v932_v3 = vshll.u32 %v720_v5, 16  ;;  %v937_v7 = vshrl.u32 %v721_v42, 16  ;;  %v1037_v11 = vld [vmem:[#allocation2 + $0x8c] sm:$0x1]  ;;  %3882 = vmatmul.mubr.msk.bf16.gmra.mrb[20].mxu1 %vm657_vm13, %v3684_v21 }
  0xd0   :  { %v1866_v15 = vld [vmem:[#allocation2 + $0x10] sm:$0xf]  ;;  %v916_v62 = vrot.slane %v915_v13, 4  ;;  %v925_v49 = vrot.slane %v923_v18, 4  ;;  %v928_v52 = vrot.slane %v926_v51, 5  ;;  %v940_v16 = vshll.u32 %v721_v42, 16  ;;  %3883 = vmatprep.mubr.msk.bf16.mxu1 %vm657_vm13, %v4338_v29 }
  0xd1   :  { %v1867_v53 = vld [vmem:[#allocation2 + $0x14] sm:$0x1]  ;;  %v934_v4 = vrot.slane %v932_v3, 5  ;;  %v939_v60 = vrot.slane %v937_v7, 4  ;;  %v946_v61 = vshll.u32 %v722_v46, 16  ;;  %v3677_v12 = vrot.slane %v1034_v47, 9 }
  0xd2   :  { %v921_v17 = vsel %vm4768_vm12, %v916_v62, %v920_v0  ;;  %v929_v19 = vor.u32 %v928_v52, %v925_v49  ;;  %v942_v24 = vrot.slane %v940_v16, 5  ;;  %v1131_v31 = vrot.slane %v1035_v54, 5  ;;  %v1868_v33 = vld [vmem:[#allocation2 + $0x18] sm:$0xf]  ;;  %3866 = vmatmul.mubr.msk.bf16.gmra.mrb[20].mxu0 %vm657_vm13, %v4341_v63  ;;  %v1593_v32 = vld [vmem:[#allocation2 + $0x8] sm:$0xe] }
  0xd3   :  { %v3661_v9 = vcombine.low %v907_v1, %v921_v17  ;;  %v948_v21 = vrot.slane %v946_v61, 5  ;;  %v3678_v23 = vrot.slane %v1036_v14, 9  ;;  %v1135_v40 = vrot.slane %v1037_v11, 5  ;;  %v1594_v10 = vld [vmem:[#allocation2 + $0xc] sm:$0x1] }
  0xd4   :  { %v930_v34 = vrot.slane %v929_v19, 4  ;;  %v943_v36 = vor.u32 %v942_v24, %v939_v60  ;;  %v5093_v37 = vsel %vm4757_vm11, %v3677_v12, %v1131_v31  ;;  %v1869_v8 = vld [vmem:[#allocation2 + $0x1c] sm:$0x1]  ;;  %v1899_v25 = vshrl.u32 %v1866_v15, 16  ;;  %v4345_v41 = vld [vmem:[#allocation2 + $0x88] ss:$8 sps:$4 sm:$0xff]  }
  0xd5   :  { %3867 = vmatprep.mubr.msk.bf16.mxu0 %vm657_vm13, %v3661_v9  ;;  %v1136_v6 = vsel %vm4757_vm11, %v3678_v23, %v1135_v40  ;;  %v1902_v38 = vshll.u32 %v1866_v15, 16  ;;  %v1908_v5 = vshll.u32 %v1867_v53, 16  ;;  %v1913_v35 = vshrl.u32 %v1868_v33, 16  ;;  %v1595_v28 = vld [vmem:[#allocation2 + $0x10] sm:$0xe] }
  0xd6   :  { %v935_v2 = vsel %vm4768_vm12, %v930_v34, %v934_v4  ;;  %v944_v55 = vrot.slane %v943_v36, 4  ;;  %v3686_v43 = vcombine.low %v5093_v37, %v1136_v6  ;;  %v1901_v42 = vrot.slane %v1899_v25, 4  ;;  %v1596_v29 = vld [vmem:[#allocation2 + $0x14] sm:$0x1]  ;;  %v1870_v47 = vld [vmem:[#allocation2 + $0x20] sm:$0xf] }
  0xd7   :  { %v1904_v44 = vrot.slane %v1902_v38, 5  ;;  %v1910_v0 = vrot.slane %v1908_v5, 5  ;;  %v1915_v45 = vrot.slane %v1913_v35, 4  ;;  %v1916_v46 = vshll.u32 %v1868_v33, 16  ;;  %3884 = vmatmul.mubr.msk.bf16.gmra.mrb[24].mxu1 %vm657_vm13, %v3685_v50  ;;  %v1871_v54 = vld [vmem:[#allocation2 + $0x24] sm:$0x1] }
  0xd8   :  { %v949_v13 = vsel %vm4768_vm12, %v944_v55, %v948_v21  ;;  %v1922_v56 = vshll.u32 %v1869_v8, 16  ;;  %v3703_v18 = vrot.slane %v1593_v32, 9  ;;  %v1659_v51 = vrot.slane %v1594_v10, 5  ;;  %3885 = vmatprep.mubr.msk.bf16.mxu1 %vm657_vm13, %v4345_v41  ;;  %v4348_v14 = vld [vmem:[#allocation2 + $0x70] ss:$8 sps:$4 sm:$0xff]  }
  0xd9   :  { %v3662_v63 = vcombine.low %v935_v2, %v949_v13  ;;  %v1905_v1 = vor.u32 %v1904_v44, %v1901_v42  ;;  %v1918_v3 = vrot.slane %v1916_v46, 5  ;;  %v3704_v7 = vrot.slane %v1595_v28, 9  ;;  %v1872_v11 = vld [vmem:[#allocation2 + $0x28] sm:$0xf]  ;;  %v1873_v53 = vld [vmem:[#allocation2 + $0x2c] sm:$0x1] }
  0xda   :  { %v1924_v15 = vrot.slane %v1922_v56, 5  ;;  %v1660_v62 = vsel %vm4757_vm11, %v3703_v18, %v1659_v51  ;;  %v1663_v50 = vrot.slane %v1596_v29, 5  ;;  %v1927_v49 = vshrl.u32 %v1870_v47, 16  ;;  %3868 = vmatmul.mubr.msk.bf16.gmra.mrb[24].mxu0 %vm657_vm13, %v4348_v14  ;;  %v1281_v24 = vld [vmem:[#allocation2 + $0x8] sm:$0xf] }
  0xdb   :  { %v1906_v52 = vrot.slane %v1905_v1, 4  ;;  %v1919_v16 = vor.u32 %v1918_v3, %v1915_v45  ;;  %v1930_v4 = vshll.u32 %v1870_v47, 16  ;;  %v1936_v60 = vshll.u32 %v1871_v54, 16  ;;  %3869 = vmatprep.mubr.msk.bf16.mxu0 %vm657_vm13, %v3662_v63  ;;  %v1282_v23 = vld [vmem:[#allocation2 + $0xc] sm:$0x1] }
  0xdc   :  { %v1664_v61 = vsel %vm4757_vm11, %v3704_v7, %v1663_v50  ;;  %v1929_v12 = vrot.slane %v1927_v49, 4  ;;  %v1941_v17 = vshrl.u32 %v1872_v11, 16  ;;  %v1944_v19 = vshll.u32 %v1872_v11, 16  ;;  %v1283_v40 = vld [vmem:[#allocation2 + $0x10] sm:$0xf] }
  0xdd   :  { %v1911_v31 = vsel %vm4768_vm12, %v1906_v52, %v1910_v0  ;;  %v1920_v33 = vrot.slane %v1919_v16, 4  ;;  %v3719_v9 = vcombine.low %v1660_v62, %v1664_v61  ;;  %v1932_v21 = vrot.slane %v1930_v4, 5  ;;  %v4355_v8 = vld [vmem:[#allocation2 + $0x80] ss:$8 sps:$4 sm:$0xff]   ;;  %v1284_v41 = vld [vmem:[#allocation2 + $0x14] sm:$0x1] }
  0xde   :  { %v1938_v32 = vrot.slane %v1936_v60, 5  ;;  %v1943_v10 = vrot.slane %v1941_v17, 4  ;;  %v1946_v34 = vrot.slane %v1944_v19, 5  ;;  %v1950_v36 = vshll.u32 %v1873_v53, 16  ;;  %v1597_v42 = vld [vmem:[#allocation2 + $0x18] sm:$0xe] }
  0xdf   :  { %v1925_v37 = vsel %vm4768_vm12, %v1920_v33, %v1924_v15  ;;  %v1933_v25 = vor.u32 %v1932_v21, %v1929_v12  ;;  %v1314_v6 = vshrl.u32 %v1281_v24, 16  ;;  %v1317_v38 = vshll.u32 %v1281_v24, 16  ;;  %3886 = vmatmul.mubr.msk.bf16.gmra.mrb[28].mxu1 %vm657_vm13, %v3686_v43  ;;  %v1598_v28 = vld [vmem:[#allocation2 + $0x1c] sm:$0x1]  ;;  %v1599_v46 = vld [vmem:[#allocation2 + $0x20] sm:$0xe] }
  0xe0   :  { %v3735_v5 = vcombine.low %v1911_v31, %v1925_v37  ;;  %v1947_v35 = vor.u32 %v1946_v34, %v1943_v10  ;;  %v1952_v2 = vrot.slane %v1950_v36, 5  ;;  %v1323_v55 = vshll.u32 %v1282_v23, 16  ;;  %v1600_v51 = vld [vmem:[#allocation2 + $0x24] sm:$0x1]  ;;  %v1874_v1 = vld [vmem:[#allocation2 + $0x30] sm:$0xf] }
  0xe1   :  { %v1934_v29 = vrot.slane %v1933_v25, 4  ;;  %v1316_v44 = vrot.slane %v1314_v6, 4  ;;  %v1319_v0 = vrot.slane %v1317_v38, 5  ;;  %v1328_v45 = vshrl.u32 %v1283_v40, 16  ;;  %v1875_v3 = vld [vmem:[#allocation2 + $0x34] sm:$0x1] }
  0xe2   :  { %3903 = vmatprep.mubr.msk.bf16.mxu1 %vm657_vm13, %v3735_v5  ;;  %v1948_v47 = vrot.slane %v1947_v35, 4  ;;  %v1325_v13 = vrot.slane %v1323_v55, 5  ;;  %v1331_v56 = vshll.u32 %v1283_v40, 16  ;;  %v1337_v18 = vshll.u32 %v1284_v41, 16  ;;  %3870 = vmatmul.mubr.msk.bf16.gmra.mrb[28].mxu0 %vm657_vm13, %v4355_v8  ;;  %v1876_v50 = vld [vmem:[#allocation2 + $0x38] sm:$0xf] }
  0xe3   :  { %v1939_v43 = vsel %vm4768_vm12, %v1934_v29, %v1938_v32  ;;  %v1320_v54 = vor.u32 %v1319_v0, %v1316_v44  ;;  %v1330_v14 = vrot.slane %v1328_v45, 4  ;;  %v3705_v63 = vrot.slane %v1597_v42, 9  ;;  %3887 = vmatprep.mubr.msk.bf16.mxu0 %vm657_vm13, %v3719_v9  ;;  %v4359_v49 = vld [vmem:[#allocation2 + $0x10] ss:$8 sps:$4 sm:$0xff]   ;;  %v5126_v60 = vld [vmem:[%s5583_s1 + $0x208] sm:$0xff]  }
  0xe4   :  { %v1953_v7 = vsel %vm4768_vm12, %v1948_v47, %v1952_v2  ;;  %v1333_v11 = vrot.slane %v1331_v56, 5  ;;  %v1339_v15 = vrot.slane %v1337_v18, 5  ;;  %v1667_v62 = vrot.slane %v1598_v28, 5  ;;  %v1877_v17 = vld [vmem:[#allocation2 + $0x3c] sm:$0x1]  ;;  %v5143_v47 = vld [vmem:[%s5583_s1 + $0x210] sm:$0xff]  }
  0xe5   :  { %v3736_v52 = vcombine.low %v1939_v43, %v1953_v7  ;;  %v1321_v16 = vrot.slane %v1320_v54, 4  ;;  %v3706_v53 = vrot.slane %v1599_v46, 9  ;;  %v1671_v4 = vrot.slane %v1600_v51, 5  ;;  %v1285_v31 = vld [vmem:[#allocation2 + $0x18] sm:$0xf] }
  0xe6   :  { %v1334_v61 = vor.u32 %v1333_v11, %v1330_v14  ;;  %v1668_v12 = vsel %vm4757_vm11, %v3705_v63, %v1667_v62  ;;  %v1955_v19 = vshrl.u32 %v1874_v1, 16  ;;  %v1958_v24 = vshll.u32 %v1874_v1, 16  ;;  %v1286_v40 = vld [vmem:[#allocation2 + $0x1c] sm:$0x1]  ;;  %v1287_v32 = vld [vmem:[#allocation2 + $0x20] sm:$0xf] }
  0xe7   :  { %v1326_v33 = vsel %vm4768_vm12, %v1321_v16, %v1325_v13  ;;  %v1672_v9 = vsel %vm4757_vm11, %v3706_v53, %v1671_v4  ;;  %v1964_v21 = vshll.u32 %v1875_v3, 16  ;;  %v1969_v23 = vshrl.u32 %v1876_v50, 16  ;;  %3904 = vmatmul.mubr.msk.bf16.vlgmr.msra.gmra.mrb[32].mxu1 %vm657_vm13, %v4359_v49  ;;  %v1288_v8 = vld [vmem:[#allocation2 + $0x24] sm:$0x1]  ;;  %v1601_v42 = vld [vmem:[#allocation2 + $0x28] sm:$0xe] }
  0xe8   :  { %v1335_v10 = vrot.slane %v1334_v61, 4  ;;  %v3720_v34 = vcombine.low %v1668_v12, %v1672_v9  ;;  %v1957_v36 = vrot.slane %v1955_v19, 4  ;;  %v1960_v37 = vrot.slane %v1958_v24, 5  ;;  %3905 = vmatprep.mubr.msk.bf16.mxu1 %vm657_vm13, %v3736_v52  ;;  %4239 = vmatpush3.bf16.msra.mxu1 %v5021_v39  ;;  %v1602_v28 = vld [vmem:[#allocation2 + $0x2c] sm:$0x1]  ;;  %v5154_v49 = vld [vmem:[%s5583_s1 + $0x218] sm:$0xff]  }
  0xe9   :  { %v1966_v25 = vrot.slane %v1964_v21, 5  ;;  %v1971_v41 = vrot.slane %v1969_v23, 4  ;;  %v1972_v6 = vshll.u32 %v1876_v50, 16  ;;  %v1978_v38 = vshll.u32 %v1877_v17, 16  ;;  %4232 = vmatprep.subr.bf16.mxu1 %v5126_v60  ;;  %v1603_v46 = vld [vmem:[#allocation2 + $0x30] sm:$0xe] }
  0xea   :  { %v1340_v5 = vsel %vm4768_vm12, %v1335_v10, %v1339_v15  ;;  %v1961_v35 = vor.u32 %v1960_v37, %v1957_v36  ;;  %v1342_v2 = vshrl.u32 %v1285_v31, 16  ;;  %v1345_v55 = vshll.u32 %v1285_v31, 16  ;;  %v1604_v43 = vld [vmem:[#allocation2 + $0x34] sm:$0x1]  ;;  %v1878_v3 = vld [vmem:[#allocation2 + $0x40] sm:$0xf] }
  0xeb   :  { %v3695_v29 = vcombine.low %v1326_v33, %v1340_v5  ;;  %v1974_v44 = vrot.slane %v1972_v6, 5  ;;  %v1980_v0 = vrot.slane %v1978_v38, 5  ;;  %v1351_v45 = vshll.u32 %v1286_v40, 16  ;;  %v4361_v7 = vld [vmem:[#allocation2 + $0x20] ss:$8 sps:$4 sm:$0xff]  }
  0xec   :  { %v1962_v13 = vrot.slane %v1961_v35, 4  ;;  %v1344_v56 = vrot.slane %v1342_v2, 4  ;;  %v1347_v18 = vrot.slane %v1345_v55, 5  ;;  %v1356_v51 = vshrl.u32 %v1287_v32, 16  ;;  %4240 = vmatpush3.bf16.msra.mxu1 %v5126_v60  ;;  %v1879_v17 = vld [vmem:[#allocation2 + $0x44] sm:$0x1] }
  0xed   :  { %3888 = vmatmul.mubr.msk.bf16.vlgmr.msra.gmra.mrb[32].mxu0 %vm657_vm13, %v3695_v29  ;;  %v1975_v54 = vor.u32 %v1974_v44, %v1971_v41  ;;  %v1353_v14 = vrot.slane %v1351_v45, 5  ;;  %v1359_v63 = vshll.u32 %v1287_v32, 16  ;;  %v1365_v1 = vshll.u32 %v1288_v8, 16  ;;  %4233 = vmatprep.subr.bf16.mxu1 %v5143_v47  ;;  %v1289_v21 = vld [vmem:[#allocation2 + $0x28] sm:$0xf] }
  0xee   :  { %4200 = vmatpush3.bf16.msra.mxu0 %v5021_v39  ;;  %3889 = vmatprep.mubr.msk.bf16.mxu0 %vm657_vm13, %v3720_v34  ;;  %v1967_v11 = vsel %vm4768_vm12, %v1962_v13, %v1966_v25  ;;  %v1348_v15 = vor.u32 %v1347_v18, %v1344_v56  ;;  %v1358_v62 = vrot.slane %v1356_v51, 4  ;;  %v3707_v50 = vrot.slane %v1601_v42, 9  ;;  %v5172_v34 = vld [vmem:[%s5583_s1 + $0x220] sm:$0xff]   ;;  %v1290_v41 = vld [vmem:[#allocation2 + $0x2c] sm:$0x1] }
  0xef   :  { %v1976_v52 = vrot.slane %v1975_v54, 4  ;;  %4201 = vmatprep.subr.bf16.mxu0 %v5126_v60  ;;  %v1361_v16 = vrot.slane %v1359_v63, 5  ;;  %v1367_v53 = vrot.slane %v1365_v1, 5  ;;  %v1675_v39 = vrot.slane %v1602_v28, 5  ;;  %3906 = vmatmul.mubr.msk.bf16.gmra.mrb[36].mxu1 %vm657_vm13, %v4361_v7  ;;  %v1291_v5 = vld [vmem:[#allocation2 + $0x30] sm:$0xf] }
  0xf0   :  { %v1349_v4 = vrot.slane %v1348_v15, 4  ;;  %v3708_v61 = vrot.slane %v1603_v46, 9  ;;  %v1679_v12 = vrot.slane %v1604_v43, 5  ;;  %v1983_v19 = vshrl.u32 %v1878_v3, 16  ;;  %4241 = vmatpush3.bf16.msra.mxu1 %v5143_v47  ;;  %v5186_v2 = vld [vmem:[%s5583_s1 + $0x228] sm:$0xff]  }
  0xf1   :  { %v1981_v24 = vsel %vm4768_vm12, %v1976_v52, %v1980_v0  ;;  %v1362_v31 = vor.u32 %v1361_v16, %v1358_v62  ;;  %v1676_v33 = vsel %vm4757_vm11, %v3707_v50, %v1675_v39  ;;  %v1986_v9 = vshll.u32 %v1878_v3, 16  ;;  %4234 = vmatprep.subr.bf16.mxu1 %v5154_v49  ;;  %v1292_v29 = vld [vmem:[#allocation2 + $0x34] sm:$0x1]  ;;  %v1605_v44 = vld [vmem:[#allocation2 + $0x38] sm:$0xe] }
  0xf2   :  { %v3737_v23 = vcombine.low %v1967_v11, %v1981_v24  ;;  %v1354_v40 = vsel %vm4768_vm12, %v1349_v4, %v1353_v14  ;;  %4202 = vmatpush3.bf16.msra.mxu0 %v5126_v60  ;;  %v1680_v32 = vsel %vm4757_vm11, %v3708_v61, %v1679_v12  ;;  %v1985_v10 = vrot.slane %v1983_v19, 4  ;;  %v4363_v22 = vld [vmem:[#allocation2 + $0x30] ss:$8 sps:$4 sm:$0xff]   ;;  %v1606_v45 = vld [vmem:[#allocation2 + $0x3c] sm:$0x1] }
  0xf3   :  { %v1363_v36 = vrot.slane %v1362_v31, 4  ;;  %v3721_v37 = vcombine.low %v1676_v33, %v1680_v32  ;;  %v1988_v8 = vrot.slane %v1986_v9, 5  ;;  %v1992_v25 = vshll.u32 %v1879_v17, 16  ;;  %4203 = vmatprep.subr.bf16.mxu0 %v5143_v47  ;;  %v1607_v51 = vld [vmem:[#allocation2 + $0x40] sm:$0xe]  ;;  %v5206_v4 = vld [vmem:[%s5583_s1 + $0x230] sm:$0xff]  }
  0xf4   :  { %3907 = vmatprep.mubr.msk.bf16.mxu1 %vm657_vm13, %v3737_v23  ;;  %v1999_v60 = vrot.slane %v1997_v26, 4  ;;  %v2002_v6 = vrot.slane %v2000_v27, 5  ;;  %v2008_v38 = vrot.slane %v2006_v30, 5  ;;  %v1370_v35 = vshrl.u32 %v1289_v21, 16  ;;  %4242 = vmatpush3.bf16.msra.mxu1 %v5154_v49  ;;  %v1608_v63 = vld [vmem:[#allocation2 + $0x44] sm:$0x1] }
  0xf5   :  { %v1368_v55 = vsel %vm4768_vm12, %v1363_v36, %v1367_v53  ;;  %v1989_v42 = vor.u32 %v1988_v8, %v1985_v10  ;;  %v1994_v28 = vrot.slane %v1992_v25, 5  ;;  %v1373_v26 = vshll.u32 %v1289_v21, 16  ;;  %4235 = vmatprep.subr.bf16.mxu1 %v5172_v34  ;;  %v1882_v15 = vld [vmem:[#allocation2 + $0x60] sm:$0xf]  ;;  %v1883_v62 = vld [vmem:[#allocation2 + $0x64] sm:$0x1] }
  0xf6   :  { %v3696_v20 = vcombine.low %v1354_v40, %v1368_v55  ;;  %v2003_v27 = vor.u32 %v2002_v6, %v1999_v60  ;;  %v1372_v30 = vrot.slane %v1370_v35, 4  ;;  %v1379_v0 = vshll.u32 %v1290_v41, 16  ;;  %4204 = vmatpush3.bf16.msra.mxu0 %v5143_v47  ;;  %v1884_v39 = vld [vmem:[#allocation2 + $0x68] sm:$0xf]  ;;  %v1885_v24 = vld [vmem:[#allocation2 + $0x6c] sm:$0x1] }
  0xf7   :  { %v1990_v46 = vrot.slane %v1989_v42, 4  ;;  %v1375_v13 = vrot.slane %v1373_v26, 5  ;;  %v1384_v56 = vshrl.u32 %v1291_v5, 16  ;;  %v1387_v18 = vshll.u32 %v1291_v5, 16  ;;  %4205 = vmatprep.subr.bf16.mxu0 %v5154_v49  ;;  %3908 = vmatmul.mubr.msk.bf16.gmra.mrb[40].mxu1 %vm657_vm13, %v4363_v22  ;;  %v4365_v33 = vld [vmem:[#allocation2 + $0x40] ss:$8 sps:$4 sm:$0xff]  }
  0xf8   :  { %3890 = vmatmul.mubr.msk.bf16.gmra.mrb[36].mxu0 %vm657_vm13, %v3696_v20  ;;  %v2004_v43 = vrot.slane %v2003_v27, 4  ;;  %v1381_v54 = vrot.slane %v1379_v0, 5  ;;  %v1393_v14 = vshll.u32 %v1292_v29, 16  ;;  %v3709_v1 = vrot.slane %v1605_v44, 9  ;;  %4243 = vmatpush3.bf16.msra.mxu1 %v5172_v34  ;;  %v1293_v36 = vld [vmem:[#allocation2 + $0x38] sm:$0xf] }
  0xf9   :  { %3891 = vmatprep.mubr.msk.bf16.mxu0 %vm657_vm13, %v3721_v37  ;;  %v1995_v47 = vsel %vm4768_vm12, %v1990_v46, %v1994_v28  ;;  %v1376_v3 = vor.u32 %v1375_v13, %v1372_v30  ;;  %v1386_v7 = vrot.slane %v1384_v56, 4  ;;  %v1389_v11 = vrot.slane %v1387_v18, 5  ;;  %4236 = vmatprep.subr.bf16.mxu1 %v5186_v2  ;;  %v1294_v37 = vld [vmem:[#allocation2 + $0x3c] sm:$0x1]  ;;  %v1295_v6 = vld [vmem:[#allocation2 + $0x40] sm:$0xf] }
  0xfa   :  { %v2009_v50 = vsel %vm4768_vm12, %v2004_v43, %v2008_v38  ;;  %v1395_v52 = vrot.slane %v1393_v14, 5  ;;  %v1683_v16 = vrot.slane %v1606_v45, 5  ;;  %v3710_v53 = vrot.slane %v1607_v51, 9  ;;  %4206 = vmatpush3.bf16.msra.mxu0 %v5154_v49  ;;  %v5223_v38 = vld [vmem:[%s5583_s1 + $0x238] sm:$0xff]   ;;  %v1296_v28 = vld [vmem:[#allocation2 + $0x44] sm:$0x1] }
  0xfb   :  { %v3738_v61 = vcombine.low %v1995_v47, %v2009_v50  ;;  %v1377_v12 = vrot.slane %v1376_v3, 4  ;;  %v1390_v17 = vor.u32 %v1389_v11, %v1386_v7  ;;  %v1687_v19 = vrot.slane %v1608_v63, 5  ;;  %4207 = vmatprep.subr.bf16.mxu0 %v5172_v34  ;;  %v1609_v20 = vld [vmem:[#allocation2 + $0x58] sm:$0xe]  ;;  %v1610_v22 = vld [vmem:[#allocation2 + $0x5c] sm:$0x1] }
  0xfc   :  { %v1684_v31 = vsel %vm4757_vm11, %v3709_v1, %v1683_v16  ;;  %v2011_v9 = vshrl.u32 %v1882_v15, 16  ;;  %v2014_v49 = vshll.u32 %v1882_v15, 16  ;;  %v2020_v21 = vshll.u32 %v1883_v62, 16  ;;  %4244 = vmatpush3.bf16.msra.mxu1 %v5186_v2  ;;  %v1611_v46 = vld [vmem:[#allocation2 + $0x60] sm:$0xe] }
  0xfd   :  { %3909 = vmatprep.mubr.msk.bf16.mxu1 %vm657_vm13, %v3738_v61  ;;  %v1382_v23 = vsel %vm4768_vm12, %v1377_v12, %v1381_v54  ;;  %v1391_v40 = vrot.slane %v1390_v17, 4  ;;  %v1688_v32 = vsel %vm4757_vm11, %v3710_v53, %v1687_v19  ;;  %v2025_v10 = vshrl.u32 %v1884_v39, 16  ;;  %4237 = vmatprep.subr.bf16.mxu1 %v5206_v4  ;;  %v1612_v43 = vld [vmem:[#allocation2 + $0x64] sm:$0x1]  ;;  %v1886_v47 = vld [vmem:[#allocation2 + $0x70] sm:$0xf] }
  0xfe   :  { %v3722_v8 = vcombine.low %v1684_v31, %v1688_v32  ;;  %v2013_v25 = vrot.slane %v2011_v9, 4  ;;  %v2016_v41 = vrot.slane %v2014_v49, 5  ;;  %v2022_v60 = vrot.slane %v2020_v21, 5  ;;  %4208 = vmatpush3.bf16.msra.mxu0 %v5172_v34  ;;  %v1887_v62 = vld [vmem:[#allocation2 + $0x74] sm:$0x1] }
  0xff   :  { %v1396_v5 = vsel %vm4768_vm12, %v1391_v40, %v1395_v52  ;;  %v2027_v35 = vrot.slane %v2025_v10, 4  ;;  %v2028_v55 = vshll.u32 %v1884_v39, 16  ;;  %v2034_v42 = vshll.u32 %v1885_v24, 16  ;;  %4209 = vmatprep.subr.bf16.mxu0 %v5186_v2  ;;  %3910 = vmatmul.mubr.msk.bf16.gmra.mrb[44].mxu1 %vm657_vm13, %v4365_v33  ;;  %v1888_v39 = vld [vmem:[#allocation2 + $0x78] sm:$0xf] }
 0x100   :  { %v3697_v29 = vcombine.low %v1382_v23, %v1396_v5  ;;  %v2017_v34 = vor.u32 %v2016_v41, %v2013_v25  ;;  %v1398_v26 = vshrl.u32 %v1293_v36, 16  ;;  %v1401_v44 = vshll.u32 %v1293_v36, 16  ;;  %4245 = vmatpush3.bf16.msra.mxu1 %v5206_v4  ;;  %v4367_v33 = vld [vmem:[#allocation2 + $0x60] ss:$8 sps:$4 sm:$0xff]   ;;  %v1297_v10 = vld [vmem:[#allocation2 + $0x58] sm:$0xf] }
 0x101   :  { %v2030_v27 = vrot.slane %v2028_v55, 5  ;;  %v2036_v30 = vrot.slane %v2034_v42, 5  ;;  %v1407_v0 = vshll.u32 %v1294_v37, 16  ;;  %v1412_v45 = vshrl.u32 %v1295_v6, 16  ;;  %4238 = vmatprep.subr.bf16.mxu1 %v5223_v38  ;;  %v1298_v36 = vld [vmem:[#allocation2 + $0x5c] sm:$0x1] }
 0x102   :  { %3892 = vmatmul.mubr.msk.bf16.gmra.mrb[40].mxu0 %vm657_vm13, %v3697_v29  ;;  %v2018_v13 = vrot.slane %v2017_v34, 4  ;;  %v1400_v56 = vrot.slane %v1398_v26, 4  ;;  %v1403_v18 = vrot.slane %v1401_v44, 5  ;;  %v1415_v51 = vshll.u32 %v1295_v6, 16  ;;  %v1300_v55 = vld [vmem:[#allocation2 + $0x64] sm:$0x1] }
 0x103   :  { %3893 = vmatprep.mubr.msk.bf16.mxu0 %vm657_vm13, %v3722_v8  ;;  %v2031_v54 = vor.u32 %v2030_v27, %v2027_v35  ;;  %v1409_v14 = vrot.slane %v1407_v0, 5  ;;  %v1414_v63 = vrot.slane %v1412_v45, 4  ;;  %v1421_v1 = vshll.u32 %v1296_v28, 16  ;;  %4210 = vmatpush3.bf16.msra.mxu0 %v5186_v2  ;;  %v1889_v2 = vld [vmem:[#allocation2 + $0x7c] sm:$0x1] }
 0x104   :  { %v2023_v3 = vsel %vm4768_vm12, %v2018_v13, %v2022_v60  ;;  %v1404_v7 = vor.u32 %v1403_v18, %v1400_v56  ;;  %v1417_v11 = vrot.slane %v1415_v51, 5  ;;  %v3711_v15 = vrot.slane %v1609_v20, 9  ;;  %4211 = vmatprep.subr.bf16.mxu0 %v5206_v4  ;;  %4246 = vmatpush3.bf16.msra.mxu1 %v5223_v38  ;;  %v1299_v60 = vld [vmem:[#allocation2 + $0x60] sm:$0xf]  ;;  %v1613_v26 = vld [vmem:[#allocation2 + $0x68] sm:$0xe] }
 0x105   :  { %v2032_v50 = vrot.slane %v2031_v54, 4  ;;  %v1423_v52 = vrot.slane %v1421_v1, 5  ;;  %v1691_v16 = vrot.slane %v1610_v22, 5  ;;  %v3712_v53 = vrot.slane %v1611_v46, 9  ;;  %v1614_v44 = vld [vmem:[#allocation2 + $0x6c] sm:$0x1] }
 0x106   :  { %v1405_v61 = vrot.slane %v1404_v7, 4  ;;  %v1418_v12 = vor.u32 %v1417_v11, %v1414_v63  ;;  %v1695_v17 = vrot.slane %v1612_v43, 5  ;;  %v2039_v19 = vshrl.u32 %v1886_v47, 16  ;;  %v1615_v0 = vld [vmem:[#allocation2 + $0x70] sm:$0xe] }
 0x107   :  { %v2037_v24 = vsel %vm4768_vm12, %v2032_v50, %v2036_v30  ;;  %v1692_v31 = vsel %vm4757_vm11, %v3711_v15, %v1691_v16  ;;  %v2042_v9 = vshll.u32 %v1886_v47, 16  ;;  %v2048_v49 = vshll.u32 %v1887_v62, 16  ;;  %4212 = vmatpush3.bf16.msra.mxu0 %v5206_v4  ;;  %v1616_v18 = vld [vmem:[#allocation2 + $0x74] sm:$0x1]  ;;  %v1890_v63 = vld [vmem:[#allocation2 + $0x80] sm:$0xf] }
 0x108   :  { %v3739_v21 = vcombine.low %v2023_v3, %v2037_v24  ;;  %v1410_v23 = vsel %vm4768_vm12, %v1405_v61, %v1409_v14  ;;  %v1419_v40 = vrot.slane %v1418_v12, 4  ;;  %v1696_v32 = vsel %vm4757_vm11, %v3712_v53, %v1695_v17  ;;  %4213 = vmatprep.subr.bf16.mxu0 %v5223_v38  ;;  %v1891_v7 = vld [vmem:[#allocation2 + $0x84] sm:$0x1]  ;;  %v1893_v16 = vld [vmem:[#allocation2 + $0x8c] sm:$0x1] }
 0x109   :  { %v3723_v37 = vcombine.low %v1692_v31, %v1696_v32  ;;  %v2041_v8 = vrot.slane %v2039_v19, 4  ;;  %v2044_v25 = vrot.slane %v2042_v9, 5  ;;  %v2050_v41 = vrot.slane %v2048_v49, 5  ;;  %v1301_v17 = vld [vmem:[#allocation2 + $0x68] sm:$0xf] }
 0x10a   :  { %3911 = vmatprep.mubr.msk.bf16.mxu1 %vm657_vm13, %v3739_v21  ;;  %v1424_v4 = vsel %vm4768_vm12, %v1419_v40, %v1423_v52  ;;  %v2053_v6 = vshrl.u32 %v1888_v39, 16  ;;  %v2056_v5 = vshll.u32 %v1888_v39, 16  ;;  %v2062_v35 = vshll.u32 %v1889_v2, 16  ;;  %v1892_v52 = vld [vmem:[#allocation2 + $0x88] sm:$0xf] }
 0x10b   :  { %v3698_v42 = vcombine.low %v1410_v23, %v1424_v4  ;;  %3912 = vmatmul.mubr.msk.bf16.gmra.mrb[48].mxu1 %vm657_vm13, %v4367_v33  ;;  %v2045_v28 = vor.u32 %v2044_v25, %v2041_v8  ;;  %v1426_v29 = vshrl.u32 %v1297_v10, 16  ;;  %v1429_v34 = vshll.u32 %v1297_v10, 16  ;;  %4214 = vmatpush3.bf16.msra.mxu0 %v5223_v38  ;;  %v4369_v21 = vld [vmem:[#allocation2 + $0x70] ss:$8 sps:$4 sm:$0xff]   ;;  %v1308_v59 = vld [vmem:[#allocation2 + $0x84] sm:$0x1] }
 0x10c   :  { %v2055_v20 = vrot.slane %v2053_v6, 4  ;;  %v2058_v22 = vrot.slane %v2056_v5, 5  ;;  %v2064_v27 = vrot.slane %v2062_v35, 5  ;;  %v1435_v30 = vshll.u32 %v1298_v36, 16 }
 0x10d   :  { %3894 = vmatmul.mubr.msk.bf16.gmra.mrb[44].mxu0 %vm657_vm13, %v3698_v42  ;;  %v2046_v45 = vrot.slane %v2045_v28, 4  ;;  %v1428_v46 = vrot.slane %v1426_v29, 4  ;;  %v1431_v13 = vrot.slane %v1429_v34, 5  ;;  %v1440_v56 = vshrl.u32 %v1299_v60, 16  ;;  %v1617_v28 = vld [vmem:[#allocation2 + $0x78] sm:$0xe] }
 0x10e   :  { %3895 = vmatprep.mubr.msk.bf16.mxu0 %vm657_vm13, %v3723_v37  ;;  %v2059_v51 = vor.u32 %v2058_v22, %v2055_v20  ;;  %v1437_v43 = vrot.slane %v1435_v30, 5  ;;  %v1443_v54 = vshll.u32 %v1299_v60, 16  ;;  %v1449_v14 = vshll.u32 %v1300_v55, 16  ;;  %v1302_v37 = vld [vmem:[#allocation2 + $0x6c] sm:$0x1] }
 0x10f   :  { %v2051_v38 = vsel %vm4768_vm12, %v2046_v45, %v2050_v41  ;;  %v1432_v1 = vor.u32 %v1431_v13, %v1428_v46  ;;  %v1442_v47 = vrot.slane %v1440_v56, 4  ;;  %v3713_v3 = vrot.slane %v1613_v26, 9  ;;  %v1303_v60 = vld [vmem:[#allocation2 + $0x70] sm:$0xf]  ;;  %v1304_v55 = vld [vmem:[#allocation2 + $0x74] sm:$0x1] }
 0x110   :  { %v2060_v11 = vrot.slane %v2059_v51, 4  ;;  %v1445_v15 = vrot.slane %v1443_v54, 5  ;;  %v1451_v62 = vrot.slane %v1449_v14, 5  ;;  %v1699_v50 = vrot.slane %v1614_v44, 5  ;;  %v1618_v20 = vld [vmem:[#allocation2 + $0x7c] sm:$0x1] }
 0x111   :  { %v1433_v53 = vrot.slane %v1432_v1, 4  ;;  %v3714_v39 = vrot.slane %v1615_v0, 9  ;;  %v1703_v61 = vrot.slane %v1616_v18, 5  ;;  %v2067_v12 = vshrl.u32 %v1890_v63, 16  ;;  %v1619_v22 = vld [vmem:[#allocation2 + $0x80] sm:$0xe] }
 0x112   :  { %v2065_v2 = vsel %vm4768_vm12, %v2060_v11, %v2064_v27  ;;  %v1446_v19 = vor.u32 %v1445_v15, %v1442_v47  ;;  %v1700_v24 = vsel %vm4757_vm11, %v3713_v3, %v1699_v50  ;;  %v2070_v31 = vshll.u32 %v1890_v63, 16  ;;  %v1620_v46 = vld [vmem:[#allocation2 + $0x84] sm:$0x1]  ;;  %v275_v1 = vld [vmem:[#allocation2 + $0x9c] sm:$0x1] }
 0x113   :  { %v3740_v33 = vcombine.low %v2051_v38, %v2065_v2  ;;  %v1438_v9 = vsel %vm4768_vm12, %v1433_v53, %v1437_v43  ;;  %v1704_v49 = vsel %vm4757_vm11, %v3714_v39, %v1703_v61  ;;  %v2069_v23 = vrot.slane %v2067_v12, 4  ;;  %v213_v43 = vld [vmem:[#allocation2 + $0x98] sm:$0x1]  ;;  %v1894_v47 = vld [vmem:[#allocation2 + $0x90] sm:$0xf] }
 0x114   :  { %v1447_v40 = vrot.slane %v1446_v19, 4  ;;  %v3724_v32 = vcombine.low %v1700_v24, %v1704_v49  ;;  %v2072_v10 = vrot.slane %v2070_v31, 5  ;;  %v2076_v36 = vshll.u32 %v1891_v7, 16  ;;  %v1305_v39 = vld [vmem:[#allocation2 + $0x78] sm:$0xf] }
 0x115   :  { %3913 = vmatprep.mubr.msk.bf16.mxu1 %vm657_vm13, %v3740_v33  ;;  %v2081_v8 = vshrl.u32 %v1892_v52, 16  ;;  %v2084_v25 = vshll.u32 %v1892_v52, 16  ;;  %v2090_v41 = vshll.u32 %v1893_v16, 16  ;;  %v1454_v4 = vshrl.u32 %v1301_v17, 16  ;;  %v1306_v19 = vld [vmem:[#allocation2 + $0x7c] sm:$0x1] }
 0x116   :  { %v1452_v6 = vsel %vm4768_vm12, %v1447_v40, %v1451_v62  ;;  %3914 = vmatmul.mubr.msk.bf16.gmra.mrb[52].mxu1 %vm657_vm13, %v4369_v21  ;;  %v2073_v5 = vor.u32 %v2072_v10, %v2069_v23  ;;  %v2078_v35 = vrot.slane %v2076_v36, 5  ;;  %v1457_v42 = vshll.u32 %v1301_v17, 16  ;;  %v1895_v62 = vld [vmem:[#allocation2 + $0x94] sm:$0x1]  ;;  %v1307_v49 = vld [vmem:[#allocation2 + $0x80] sm:$0xf] }
 0x117   :  { %v3699_v29 = vcombine.low %v1438_v9, %v1452_v6  ;;  %v2083_v34 = vrot.slane %v2081_v8, 4  ;;  %v2086_v26 = vrot.slane %v2084_v25, 5  ;;  %v2092_v44 = vrot.slane %v2090_v41, 5  ;;  %v4371_v9 = vld [vmem:[#allocation2 + $0x80] ss:$8 sps:$4 sm:$0xff]  }
 0x118   :  { %v2074_v27 = vrot.slane %v2073_v5, 4  ;;  %v1456_v30 = vrot.slane %v1454_v4, 4  ;;  %v1459_v0 = vrot.slane %v1457_v42, 5  ;;  %v1463_v45 = vshll.u32 %v1302_v37, 16  ;;  %v1621_v8 = vld [vmem:[#allocation2 + $0x88] sm:$0xe] }
 0x119   :  { %3896 = vmatmul.mubr.msk.bf16.gmra.mrb[48].mxu0 %vm657_vm13, %v3699_v29  ;;  %v2087_v13 = vor.u32 %v2086_v26, %v2083_v34  ;;  %v1468_v56 = vshrl.u32 %v1303_v60, 16  ;;  %v1471_v18 = vshll.u32 %v1303_v60, 16  ;;  %v1477_v51 = vshll.u32 %v1304_v55, 16  ;;  %v1622_v6 = vld [vmem:[#allocation2 + $0x8c] sm:$0x1] }
 0x11a   :  { %3897 = vmatprep.mubr.msk.bf16.mxu0 %vm657_vm13, %v3724_v32  ;;  %v2079_v54 = vsel %vm4768_vm12, %v2074_v27, %v2078_v35  ;;  %v1460_v14 = vor.u32 %v1459_v0, %v1456_v30  ;;  %v1465_v63 = vrot.slane %v1463_v45, 5  ;;  %v3715_v38 = vrot.slane %v1617_v28, 9  ;;  %v1624_v27 = vld [vmem:[#allocation2 + $0x94] sm:$0x1]  ;;  %v2194_v45 = vld [vmem:[#allocation2 + $0x60] sm:$0xe] }
 0x11b   :  { %v2088_v3 = vrot.slane %v2087_v13, 4  ;;  %v1470_v7 = vrot.slane %v1468_v56, 4  ;;  %v1473_v11 = vrot.slane %v1471_v18, 5  ;;  %v1479_v15 = vrot.slane %v1477_v51, 5  ;;  %v2195_v51 = vld [vmem:[#allocation2 + $0x64] sm:$0x1] }
 0x11c   :  { %v1461_v50 = vrot.slane %v1460_v14, 4  ;;  %v1707_v52 = vrot.slane %v1618_v20, 5  ;;  %v3716_v16 = vrot.slane %v1619_v22, 9  ;;  %v1711_v53 = vrot.slane %v1620_v46, 5  ;;  %v1623_v22 = vld [vmem:[#allocation2 + $0x90] sm:$0xe] }
 0x11d   :  { %v2093_v61 = vsel %vm4768_vm12, %v2088_v3, %v2092_v44  ;;  %v1474_v12 = vor.u32 %v1473_v11, %v1470_v7  ;;  %v214_v17 = vsel %vm4563_vm4, 0, %v213_v43  ;;  %v276_v2 = vsel %vm4569_vm5, 0, %v275_v1  ;;  %v2196_v43 = vld [vmem:[#allocation2 + $0x68] sm:$0xe]  ;;  %v2197_v11 = vld [vmem:[#allocation2 + $0x6c] sm:$0x1] }
 0x11e   :  { %v3741_v24 = vcombine.low %v2079_v54, %v2093_v61  ;;  %v1466_v31 = vsel %vm4768_vm12, %v1461_v50, %v1465_v63  ;;  %v1708_v33 = vsel %vm4757_vm11, %v3715_v38, %v1707_v52  ;;  %215 = vst [vmem:[#allocation2 + $0x98] sm:$0x1] %v214_v17  ;;  %277 = vst [vmem:[#allocation2 + $0x9c] sm:$0x1] %v276_v2  ;;  %v2095_v23 = vshrl.u32 %v1894_v47, 16 }
 0x11f   :  { %v1475_v21 = vrot.slane %v1474_v12, 4  ;;  %v1712_v57 = vsel %vm4757_vm11, %v3716_v16, %v1711_v53  ;;  %v2098_v40 = vshll.u32 %v1894_v47, 16  ;;  %v2104_v32 = vshll.u32 %v1895_v62, 16  ;;  %v1310_v53 = vld [vmem:[#allocation2 + $0x8c] sm:$0x1] }
 0x120   :  { %3915 = vmatprep.mubr.msk.bf16.mxu1 %vm657_vm13, %v3741_v24  ;;  %v1482_v10 = vshrl.u32 %v1305_v39, 16  ;;  %v1485_v36 = vshll.u32 %v1305_v39, 16  ;;  %v1491_v37 = vshll.u32 %v1306_v19, 16  ;;  %v2097_v41 = vrot.slane %v2095_v23, 4  ;;  %v1311_v2 = vld [vmem:[#allocation2 + $0x90] sm:$0xf] }
 0x121   :  { %v1480_v25 = vsel %vm4768_vm12, %v1475_v21, %v1479_v15  ;;  %3916 = vmatmul.mubr.msk.bf16.gmra.mrb[56].mxu1 %vm657_vm13, %v4371_v9  ;;  %v2100_v60 = vrot.slane %v2098_v40, 5  ;;  %v1496_v4 = vshrl.u32 %v1307_v49, 16  ;;  %v3725_v35 = vcombine.low %v1708_v33, %v1712_v57  ;;  %v1309_v15 = vld [vmem:[#allocation2 + $0x88] sm:$0xf]  ;;  %v1312_v9 = vld [vmem:[#allocation2 + $0x94] sm:$0x1] }
 0x122   :  { %v3700_v5 = vcombine.low %v1466_v31, %v1480_v25  ;;  %v1484_v55 = vrot.slane %v1482_v10, 4  ;;  %v1487_v42 = vrot.slane %v1485_v36, 5  ;;  %v1493_v29 = vrot.slane %v1491_v37, 5  ;;  %v2178_v40 = vld [vmem:[#allocation2 + $0x10] sm:$0xe] }
 0x123   :  { %v2101_v28 = vor.u32 %v2100_v60, %v2097_v41  ;;  %v1498_v34 = vrot.slane %v1496_v4, 4  ;;  %v1499_v26 = vshll.u32 %v1307_v49, 16  ;;  %v1505_v20 = vshll.u32 %v1308_v59, 16  ;;  %v2179_v59 = vld [vmem:[#allocation2 + $0x14] sm:$0x1] }
 0x124   :  { %3898 = vmatmul.mubr.msk.bf16.gmra.mrb[52].mxu0 %vm657_vm13, %v3700_v5  ;;  %v1488_v44 = vor.u32 %v1487_v42, %v1484_v55  ;;  %v3717_v30 = vrot.slane %v1621_v8, 9  ;;  %v1715_v0 = vrot.slane %v1622_v6, 5  ;;  %v2106_v56 = vrot.slane %v2104_v32, 5  ;;  %v2180_v8 = vld [vmem:[#allocation2 + $0x18] sm:$0xe] }
 0x125   :  { %3899 = vmatprep.mubr.msk.bf16.mxu0 %vm657_vm13, %v3725_v35  ;;  %v1896_v46 = vld [vmem:[#allocation2 + $0x98] sm:$0xf]  ;;  %v1897_v13 = vld [vmem:[#allocation2 + $0x9c] sm:$0x1]  ;;  %v1501_v18 = vrot.slane %v1499_v26, 5  ;;  %v2102_v1 = vrot.slane %v2101_v28, 4 }
 0x126   :  { %v2109_v54 = vshrl.u32 %v1896_v46, 16  ;;  %v2112_v14 = vshll.u32 %v1896_v46, 16  ;;  %v2118_v63 = vshll.u32 %v1897_v13, 16  ;;  %v1489_v38 = vrot.slane %v1488_v44, 4  ;;  %v2181_v25 = vld [vmem:[#allocation2 + $0x1c] sm:$0x1] }
 0x127   :  { %v1502_v47 = vor.u32 %v1501_v18, %v1498_v34  ;;  %v1507_v3 = vrot.slane %v1505_v20, 5  ;;  %v1716_v7 = vsel %vm4757_vm11, %v3717_v30, %v1715_v0  ;;  %v3718_v61 = vrot.slane %v1623_v22, 9  ;;  %v2198_v5 = vld [vmem:[#allocation2 + $0x70] sm:$0xe]  ;;  %v2199_v34 = vld [vmem:[#allocation2 + $0x74] sm:$0x1] }
 0x128   :  { %v2111_v62 = vrot.slane %v2109_v54, 4  ;;  %v2114_v50 = vrot.slane %v2112_v14, 5  ;;  %v2120_v52 = vrot.slane %v2118_v63, 5  ;;  %v1494_v16 = vsel %vm4768_vm12, %v1489_v38, %v1493_v29  ;;  %v4373_v55 = vld [vmem:[#allocation2 + $0x90] ss:$8 sps:$4 sm:$0xff]  }
 0x129   :  { %v1503_v39 = vrot.slane %v1502_v47, 4  ;;  %v1719_v12 = vrot.slane %v1624_v27, 5  ;;  %v3751_v17 = vrot.slane %v2194_v45, 9  ;;  %v2276_v24 = vrot.slane %v2195_v51, 5  ;;  %v2200_v26 = vld [vmem:[#allocation2 + $0x78] sm:$0xe] }
 0x12a   :  { %v2115_v19 = vor.u32 %v2114_v50, %v2111_v62  ;;  %v3752_v31 = vrot.slane %v2196_v43, 9  ;;  %v2280_v33 = vrot.slane %v2197_v11, 5  ;;  %v1510_v57 = vshrl.u32 %v1309_v15, 16  ;;  %v2201_v30 = vld [vmem:[#allocation2 + $0x7c] sm:$0x1] }
 0x12b   :  { %v1508_v49 = vsel %vm4768_vm12, %v1503_v39, %v1507_v3  ;;  %v1720_v21 = vsel %vm4757_vm11, %v3718_v61, %v1719_v12  ;;  %v1513_v23 = vshll.u32 %v1309_v15, 16  ;;  %v2107_v32 = vsel %vm4768_vm12, %v2102_v1, %v2106_v56  ;;  %v2202_v0 = vld [vmem:[#allocation2 + $0x80] sm:$0xe]  ;;  %v2203_v18 = vld [vmem:[#allocation2 + $0x84] sm:$0x1] }
 0x12c   :  { %v2116_v10 = vrot.slane %v2115_v19, 4  ;;  %v3701_v36 = vcombine.low %v1494_v16, %v1508_v49  ;;  %v3726_v37 = vcombine.low %v1716_v7, %v1720_v21  ;;  %v2277_v41 = vsel %vm4757_vm11, %v3751_v17, %v2276_v24  ;;  %v2204_v51 = vld [vmem:[#allocation2 + $0x88] sm:$0xe]  ;;  %v2205_v43 = vld [vmem:[#allocation2 + $0x8c] sm:$0x1] }
 0x12d   :  { %v1512_v60 = vrot.slane %v1510_v57, 4  ;;  %v1515_v4 = vrot.slane %v1513_v23, 5  ;;  %v1519_v6 = vshll.u32 %v1310_v53, 16  ;;  %v2281_v42 = vsel %vm4757_vm11, %v3752_v31, %v2280_v33  ;;  %v2182_v1 = vld [vmem:[#allocation2 + $0x20] sm:$0xe] }
 0x12e   :  { %v2121_v35 = vsel %vm4768_vm12, %v2116_v10, %v2120_v52  ;;  %3900 = vmatmul.mubr.msk.bf16.gmra.mrb[56].mxu0 %vm657_vm13, %v3701_v36  ;;  %v1524_v28 = vshrl.u32 %v1311_v2, 16  ;;  %v1527_v29 = vshll.u32 %v1311_v2, 16  ;;  %v1533_v27 = vshll.u32 %v1312_v9, 16  ;;  %v2183_v15 = vld [vmem:[#allocation2 + $0x24] sm:$0x1] }
 0x12f   :  { %v3742_v44 = vcombine.low %v2107_v32, %v2121_v35  ;;  %3901 = vmatprep.mubr.msk.bf16.mxu0 %vm657_vm13, %v3726_v37  ;;  %v1516_v20 = vor.u32 %v1515_v4, %v1512_v60  ;;  %v1521_v22 = vrot.slane %v1519_v6, 5  ;;  %v3743_v13 = vrot.slane %v2178_v40, 9  ;;  %v2184_v53 = vld [vmem:[#allocation2 + $0x28] sm:$0xe]  ;;  %v2185_v39 = vld [vmem:[#allocation2 + $0x2c] sm:$0x1] }
 0x130   :  { %v1526_v45 = vrot.slane %v1524_v28, 4  ;;  %v1529_v46 = vrot.slane %v1527_v29, 5  ;;  %v2244_v56 = vrot.slane %v2179_v59, 5  ;;  %v3763_v54 = vcombine.low %v2277_v41, %v2281_v42  ;;  %v2186_v61 = vld [vmem:[#allocation2 + $0x30] sm:$0xe] }
 0x131   :  { %3917 = vmatprep.mubr.msk.bf16.mxu1 %vm657_vm13, %v3742_v44  ;;  %v1517_v14 = vrot.slane %v1516_v20, 4  ;;  %v3744_v63 = vrot.slane %v2180_v8, 9  ;;  %v2248_v38 = vrot.slane %v2181_v25, 5  ;;  %v1535_v3 = vrot.slane %v1533_v27, 5  ;;  %v2187_v24 = vld [vmem:[#allocation2 + $0x34] sm:$0x1] }
 0x132   :  { %3918 = vmatmul.mubr.msk.bf16.gmra.mrb[60].mxu1 %vm657_vm13, %v4373_v55  ;;  %v1530_v47 = vor.u32 %v1529_v46, %v1526_v45  ;;  %v3753_v7 = vrot.slane %v2198_v5, 9  ;;  %v2284_v11 = vrot.slane %v2199_v34, 5  ;;  %v2245_v62 = vsel %vm4757_vm11, %v3743_v13, %v2244_v56  ;;  %v2188_v31 = vld [vmem:[#allocation2 + $0x38] sm:$0xe]  ;;  %v2189_v57 = vld [vmem:[#allocation2 + $0x3c] sm:$0x1] }
 0x133   :  { %4223 = vmatprep.mubr.msk.bf16.mxu1 %vm657_vm13, %v3763_v54  ;;  %v2249_v50 = vsel %vm4757_vm11, %v3744_v63, %v2248_v38  ;;  %v3754_v52 = vrot.slane %v2200_v26, 9  ;;  %v2288_v16 = vrot.slane %v2201_v30, 5  ;;  %v1522_v12 = vsel %vm4768_vm12, %v1517_v14, %v1521_v22  ;;  %v2206_v10 = vld [vmem:[#allocation2 + $0x90] sm:$0xe]  ;;  %v2207_v36 = vld [vmem:[#allocation2 + $0x94] sm:$0x1] }
 0x134   :  { %v1531_v17 = vrot.slane %v1530_v47, 4  ;;  %v2285_v2 = vsel %vm4757_vm11, %v3753_v7, %v2284_v11  ;;  %v3755_v19 = vrot.slane %v2202_v0, 9  ;;  %v2292_v9 = vrot.slane %v2203_v18, 5  ;;  %v2208_v60 = vld [vmem:[#allocation2 + $0x98] sm:$0xe] }
 0x135   :  { %v2289_v33 = vsel %vm4757_vm11, %v3754_v52, %v2288_v16  ;;  %v3756_v49 = vrot.slane %v2204_v51, 9  ;;  %v2296_v21 = vrot.slane %v2205_v43, 5  ;;  %v3759_v40 = vcombine.low %v2245_v62, %v2249_v50  ;;  %v2209_v4 = vld [vmem:[#allocation2 + $0x9c] sm:$0x1]  ;;  %v2190_v0 = vld [vmem:[#allocation2 + $0x40] sm:$0xe] }
 0x136   :  { %v1536_v23 = vsel %vm4768_vm12, %v1531_v17, %v1535_v3  ;;  %v3764_v59 = vcombine.low %v2285_v2, %v2289_v33  ;;  %v3745_v32 = vrot.slane %v2182_v1, 9  ;;  %v2293_v8 = vsel %vm4757_vm11, %v3755_v19, %v2292_v9  ;;  %v2191_v13 = vld [vmem:[#allocation2 + $0x44] sm:$0x1]  ;;  %v2192_v56 = vld [vmem:[#allocation2 + $0x48] sm:$0xe] }
 0x137   :  { %v3702_v37 = vcombine.low %v1522_v12, %v1536_v23  ;;  %v2297_v25 = vsel %vm4757_vm11, %v3756_v49, %v2296_v21  ;;  %v2252_v41 = vrot.slane %v2183_v15, 5  ;;  %v3746_v5 = vrot.slane %v2184_v53, 9  ;;  %v2193_v18 = vld [vmem:[#allocation2 + $0x4c] sm:$0x1] }
 0x138   :  { %v3765_v6 = vcombine.low %v2293_v8, %v2297_v25  ;;  %v2256_v35 = vrot.slane %v2185_v39, 5  ;;  %v3747_v58 = vrot.slane %v2186_v61, 9  ;;  %v2260_v55 = vrot.slane %v2187_v24, 5 }
 0x139   :  { %3902 = vmatmul.mubr.msk.bf16.gmra.mrb[60].mxu0 %vm657_vm13, %v3702_v37  ;;  %v3748_v42 = vrot.slane %v2188_v31, 9  ;;  %v2264_v28 = vrot.slane %v2189_v57, 5  ;;  %v3757_v29 = vrot.slane %v2206_v10, 9  ;;  %v2300_v34 = vrot.slane %v2207_v36, 5 }
 0x13a   :  { %4215 = vmatprep.mubr.msk.bf16.mxu0 %vm657_vm13, %v3759_v40  ;;  %4224 = vmatmul.mubr.msk.bf16.vlgmr.msra.gmra.mrb[64].mxu1 %vm657_vm13, %v3764_v59  ;;  %v3758_v26 = vrot.slane %v2208_v60, 9  ;;  %v2304_v44 = vrot.slane %v2209_v4, 5  ;;  %v2253_v20 = vsel %vm4757_vm11, %v3745_v32, %v2252_v41  ;;  %v2257_v22 = vsel %vm4757_vm11, %v3746_v5, %v2256_v35 }
 0x13b   :  { %4227 = vmatprep.mubr.msk.bf16.mxu1 %vm657_vm13, %v3765_v6  ;;  %v2261_v27 = vsel %vm4757_vm11, %v3747_v58, %v2260_v55  ;;  %v2265_v30 = vsel %vm4757_vm11, %v3748_v42, %v2264_v28  ;;  %v2301_v45 = vsel %vm4757_vm11, %v3757_v29, %v2300_v34  ;;  %v3760_v51 = vcombine.low %v2253_v20, %v2257_v22 }
 0x13c   :  { %v2305_v46 = vsel %vm4757_vm11, %v3758_v26, %v2304_v44  ;;  %v3761_v43 = vcombine.low %v2261_v27, %v2265_v30  ;;  %v3749_v54 = vrot.slane %v2190_v0, 9  ;;  %v2268_v63 = vrot.slane %v2191_v13, 5 }
 0x13d   :  { %v3766_v14 = vcombine.low %v2301_v45, %v2305_v46  ;;  %v3750_v38 = vrot.slane %v2192_v56, 9  ;;  %v2272_v1 = vrot.slane %v2193_v18, 5 }
 0x13e   :  { %v2269_v47 = vsel %vm4757_vm11, %v3749_v54, %v2268_v63 }
 0x13f   :  { %v2273_v3 = vsel %vm4757_vm11, %v3750_v38, %v2272_v1 }
 0x140   :  { %v3762_v7 = vcombine.low %v2269_v47, %v2273_v3 }
 0x141   :  { %4216 = vmatmul.mubr.msk.bf16.vlgmr.msra.gmra.mrb[64].mxu0 %vm657_vm13, %v3760_v51 }
 0x142   :  { %4219 = vmatprep.mubr.msk.bf16.mxu0 %vm657_vm13, %v3761_v43  ;;  %4228 = vmatmul.mubr.msk.bf16.gmra.mrb[68].mxu1 %vm657_vm13, %v3766_v14 }
 0x149   :  { %4220 = vmatmul.mubr.msk.bf16.gmra.mrb[68].mxu0 %vm657_vm13, %v3762_v7 }
 0x168   :  { %v4007_v11 = vpop.f32.mrb[0].mxu1 }
 0x169   :  { %v4008_v15 = vpop.f32.mrb[1].mxu1 }
 0x16a   :  { %v4009_v62 = vadd.f32 %v4008_v15, %v4007_v11  ;;  %v4010_v50 = vpop.f32.mrb[2].mxu1 }
 0x16b   :  { %v4011_v52 = vpop.f32.mrb[3].mxu1 }
 0x16c   :  { %v4012_v16 = vadd.f32 %v4011_v52, %v4010_v50 }
 0x177   :  { %v3943_v53 = vpop.f32.mrb[0].mxu0 }
 0x178   :  { %v3944_v39 = vpop.f32.mrb[1].mxu0 }
 0x179   :  { %v3945_v61 = vadd.f32 %v3944_v39, %v3943_v53  ;;  %v3946_v12 = vpop.f32.mrb[2].mxu0 }
 0x17a   :  { %v3947_v17 = vpop.f32.mrb[3].mxu0 }
 0x17b   :  { %v5352_v2 = vadd.f32 %v4009_v62, %v3945_v61  ;;  %v3948_v19 = vadd.f32 %v3947_v17, %v3946_v12 }
 0x17c   :  { %v4013_v24 = vpop.f32.mrb[4].mxu1 }
 0x17d   :  { %v4014_v48 = vpop.f32.mrb[5].mxu1  ;;  %v5354_v31 = vadd.f32 %v4012_v16, %v3948_v19 }
 0x17e   :  { %v4015_v33 = vadd.f32 %v4014_v48, %v4013_v24  ;;  %v4016_v9 = vpop.f32.mrb[6].mxu1 }
 0x17f   :  { %v4017_v49 = vpop.f32.mrb[7].mxu1  ;;  %v3949_v21 = vpop.f32.mrb[4].mxu0 }
 0x180   :  { %v4018_v57 = vadd.f32 %v4017_v49, %v4016_v9  ;;  %v3950_v23 = vpop.f32.mrb[5].mxu0 }
 0x181   :  { %v3951_v40 = vadd.f32 %v3950_v23, %v3949_v21  ;;  %v3952_v59 = vpop.f32.mrb[6].mxu0 }
 0x182   :  { %v3953_v32 = vpop.f32.mrb[7].mxu0 }
 0x183   :  { %v5356_v10 = vadd.f32 %v4015_v33, %v3951_v40  ;;  %v3954_v36 = vadd.f32 %v3953_v32, %v3952_v59 }
 0x185   :  { %v5358_v37 = vadd.f32 %v4018_v57, %v3954_v36 }
 0x187   :  { %v4019_v8 = vpop.f32.mrb[8].mxu1 }
 0x188   :  { %v4020_v25 = vpop.f32.mrb[9].mxu1 }
 0x189   :  { %v4021_v41 = vadd.f32 %v4020_v25, %v4019_v8  ;;  %v4022_v60 = vpop.f32.mrb[10].mxu1  ;;  %v3955_v4 = vpop.f32.mrb[8].mxu0 }
 0x18a   :  { %v4023_v6 = vpop.f32.mrb[11].mxu1  ;;  %v3956_v5 = vpop.f32.mrb[9].mxu0 }
 0x18b   :  { %v4024_v35 = vadd.f32 %v4023_v6, %v4022_v60  ;;  %v3957_v58 = vadd.f32 %v3956_v5, %v3955_v4  ;;  %v3958_v55 = vpop.f32.mrb[10].mxu0 }
 0x18c   :  { %v3959_v42 = vpop.f32.mrb[11].mxu0 }
 0x18d   :  { %v5360_v28 = vadd.f32 %v4021_v41, %v3957_v58  ;;  %v3960_v29 = vadd.f32 %v3959_v42, %v3958_v55 }
 0x18f   :  { %v5362_v34 = vadd.f32 %v4024_v35, %v3960_v29 }
 0x192   :  { %v4025_v26 = vpop.f32.mrb[12].mxu1 }
 0x193   :  { %v4026_v44 = vpop.f32.mrb[13].mxu1 }
 0x194   :  { %v4027_v20 = vadd.f32 %v4026_v44, %v4025_v26  ;;  %v4028_v22 = vpop.f32.mrb[14].mxu1 }
 0x195   :  { %v3961_v27 = vpop.f32.mrb[12].mxu0  ;;  %v4029_v30 = vpop.f32.mrb[15].mxu1 }
 0x196   :  { %v4030_v0 = vadd.f32 %v4029_v30, %v4028_v22  ;;  %v3962_v45 = vpop.f32.mrb[13].mxu0 }
 0x197   :  { %v3963_v46 = vadd.f32 %v3962_v45, %v3961_v27  ;;  %v3964_v13 = vpop.f32.mrb[14].mxu0 }
 0x198   :  { %v3965_v56 = vpop.f32.mrb[15].mxu0 }
 0x199   :  { %v5364_v18 = vadd.f32 %v4027_v20, %v3963_v46  ;;  %v3966_v51 = vadd.f32 %v3965_v56, %v3964_v13 }
 0x19a   :  { %v4031_v43 = vpop.f32.mrb[16].mxu1 }
 0x19b   :  { %v5366_v54 = vadd.f32 %v4030_v0, %v3966_v51  ;;  %v4032_v14 = vpop.f32.mrb[17].mxu1 }
 0x19c   :  { %v4033_v63 = vadd.f32 %v4032_v14, %v4031_v43  ;;  %v4034_v38 = vpop.f32.mrb[18].mxu1 }
 0x19d   :  { %v3967_v1 = vpop.f32.mrb[16].mxu0  ;;  %v4035_v47 = vpop.f32.mrb[19].mxu1 }
 0x19e   :  { %v4036_v3 = vadd.f32 %v4035_v47, %v4034_v38  ;;  %v3968_v7 = vpop.f32.mrb[17].mxu0 }
 0x19f   :  { %v3969_v11 = vadd.f32 %v3968_v7, %v3967_v1  ;;  %v3970_v15 = vpop.f32.mrb[18].mxu0 }
 0x1a0   :  { %v3971_v62 = vpop.f32.mrb[19].mxu0 }
 0x1a1   :  { %v5368_v50 = vadd.f32 %v4033_v63, %v3969_v11  ;;  %v3972_v52 = vadd.f32 %v3971_v62, %v3970_v15 }
 0x1a2   :  { %v4037_v16 = vpop.f32.mrb[20].mxu1 }
 0x1a3   :  { %v5370_v53 = vadd.f32 %v4036_v3, %v3972_v52  ;;  %v4038_v39 = vpop.f32.mrb[21].mxu1 }
 0x1a4   :  { %v4039_v61 = vadd.f32 %v4038_v39, %v4037_v16  ;;  %v4040_v12 = vpop.f32.mrb[22].mxu1 }
 0x1a5   :  { %v3973_v17 = vpop.f32.mrb[20].mxu0  ;;  %v4041_v19 = vpop.f32.mrb[23].mxu1 }
 0x1a6   :  { %v4042_v24 = vadd.f32 %v4041_v19, %v4040_v12  ;;  %v3974_v48 = vpop.f32.mrb[21].mxu0 }
 0x1a7   :  { %v3975_v33 = vadd.f32 %v3974_v48, %v3973_v17  ;;  %v3976_v9 = vpop.f32.mrb[22].mxu0 }
 0x1a8   :  { %v3977_v49 = vpop.f32.mrb[23].mxu0 }
 0x1a9   :  { %v5372_v21 = vadd.f32 %v4039_v61, %v3975_v33  ;;  %v3978_v57 = vadd.f32 %v3977_v49, %v3976_v9 }
 0x1aa   :  { %v4043_v23 = vpop.f32.mrb[24].mxu1 }
 0x1ab   :  { %v5374_v40 = vadd.f32 %v4042_v24, %v3978_v57  ;;  %v4044_v59 = vpop.f32.mrb[25].mxu1 }
 0x1ac   :  { %v4045_v32 = vadd.f32 %v4044_v59, %v4043_v23  ;;  %v4046_v36 = vpop.f32.mrb[26].mxu1 }
 0x1ad   :  { %v3979_v8 = vpop.f32.mrb[24].mxu0  ;;  %v4047_v25 = vpop.f32.mrb[27].mxu1 }
 0x1ae   :  { %v4048_v41 = vadd.f32 %v4047_v25, %v4046_v36  ;;  %v3980_v60 = vpop.f32.mrb[25].mxu0 }
 0x1af   :  { %v3981_v4 = vadd.f32 %v3980_v60, %v3979_v8  ;;  %v3982_v6 = vpop.f32.mrb[26].mxu0 }
 0x1b0   :  { %v3983_v5 = vpop.f32.mrb[27].mxu0 }
 0x1b1   :  { %v5376_v35 = vadd.f32 %v4045_v32, %v3981_v4  ;;  %v3984_v58 = vadd.f32 %v3983_v5, %v3982_v6 }
 0x1b2   :  { %v4049_v55 = vpop.f32.mrb[28].mxu1 }
 0x1b3   :  { %v5378_v42 = vadd.f32 %v4048_v41, %v3984_v58  ;;  %v4050_v29 = vpop.f32.mrb[29].mxu1 }
 0x1b4   :  { %v4051_v26 = vadd.f32 %v4050_v29, %v4049_v55  ;;  %v4052_v44 = vpop.f32.mrb[30].mxu1 }
 0x1b5   :  { %v3985_v20 = vpop.f32.mrb[28].mxu0  ;;  %v4053_v22 = vpop.f32.mrb[31].mxu1 }
 0x1b6   :  { %v4054_v27 = vadd.f32 %v4053_v22, %v4052_v44  ;;  %v3986_v30 = vpop.f32.mrb[29].mxu0 }
 0x1b7   :  { %v3987_v0 = vadd.f32 %v3986_v30, %v3985_v20  ;;  %v3988_v45 = vpop.f32.mrb[30].mxu0 }
 0x1b8   :  { %v3989_v46 = vpop.f32.mrb[31].mxu0 }
 0x1b9   :  { %v5380_v13 = vadd.f32 %v4051_v26, %v3987_v0  ;;  %v3990_v56 = vadd.f32 %v3989_v46, %v3988_v45 }
 0x1ba   :  { %v4135_v51 = vpop.f32.mrb[32].mxu1 }
 0x1bb   :  { %v5382_v43 = vadd.f32 %v4054_v27, %v3990_v56  ;;  %v4136_v14 = vpop.f32.mrb[33].mxu1 }
 0x1bc   :  { %v4137_v63 = vadd.f32 %v4136_v14, %v4135_v51  ;;  %v4138_v38 = vpop.f32.mrb[34].mxu1 }
 0x1bd   :  { %v4139_v1 = vpop.f32.mrb[35].mxu1 }
 0x1be   :  { %v4140_v47 = vadd.f32 %v4139_v1, %v4138_v38 }
 0x1c0   :  { %v4071_v3 = vpop.f32.mrb[32].mxu0 }
 0x1c1   :  { %v4072_v7 = vpop.f32.mrb[33].mxu0 }
 0x1c2   :  { %v4073_v11 = vadd.f32 %v4072_v7, %v4071_v3  ;;  %v4074_v15 = vpop.f32.mrb[34].mxu0  ;;  %v4141_v52 = vpop.f32.mrb[36].mxu1 }
 0x1c3   :  { %v4075_v62 = vpop.f32.mrb[35].mxu0  ;;  %v4142_v61 = vpop.f32.mrb[37].mxu1 }
 0x1c4   :  { %v3239_v16 = vadd.f32 %v4073_v11, %v5352_v2  ;;  %v4076_v39 = vadd.f32 %v4075_v62, %v4074_v15  ;;  %v4143_v12 = vadd.f32 %v4142_v61, %v4141_v52  ;;  %v4144_v17 = vpop.f32.mrb[38].mxu1 }
 0x1c5   :  { %v4145_v24 = vpop.f32.mrb[39].mxu1 }
 0x1c6   :  { %v3242_v19 = vadd.f32 %v4076_v39, %v5354_v31  ;;  %v5386_v48 = vadd.f32 %v4137_v63, %v3239_v16  ;;  %v4146_v33 = vadd.f32 %v4145_v24, %v4144_v17 }
 0x1c8   :  { %v5388_v9 = vadd.f32 %v4140_v47, %v3242_v19 }
 0x1ca   :  { %v4147_v57 = vpop.f32.mrb[40].mxu1 }
 0x1cb   :  { %v4077_v49 = vpop.f32.mrb[36].mxu0  ;;  %v4148_v59 = vpop.f32.mrb[41].mxu1 }
 0x1cc   :  { %v4078_v23 = vpop.f32.mrb[37].mxu0  ;;  %v4149_v8 = vadd.f32 %v4148_v59, %v4147_v57  ;;  %v4150_v2 = vpop.f32.mrb[42].mxu1 }
 0x1cd   :  { %v4079_v32 = vadd.f32 %v4078_v23, %v4077_v49  ;;  %v4080_v36 = vpop.f32.mrb[38].mxu0  ;;  %v4151_v41 = vpop.f32.mrb[43].mxu1 }
 0x1ce   :  { %v4081_v25 = vpop.f32.mrb[39].mxu0  ;;  %v4152_v31 = vadd.f32 %v4151_v41, %v4150_v2 }
 0x1cf   :  { %v3247_v60 = vadd.f32 %v4079_v32, %v5356_v10  ;;  %v4082_v4 = vadd.f32 %v4081_v25, %v4080_v36 }
 0x1d1   :  { %v3250_v6 = vadd.f32 %v4082_v4, %v5358_v37  ;;  %v5392_v5 = vadd.f32 %v4143_v12, %v3247_v60 }
 0x1d2   :  { %v4153_v58 = vpop.f32.mrb[44].mxu1 }
 0x1d3   :  { %v5394_v55 = vadd.f32 %v4146_v33, %v3250_v6  ;;  %v4154_v29 = vpop.f32.mrb[45].mxu1 }
 0x1d4   :  { %v4155_v44 = vadd.f32 %v4154_v29, %v4153_v58  ;;  %v4156_v20 = vpop.f32.mrb[46].mxu1 }
 0x1d5   :  { %v4083_v26 = vpop.f32.mrb[40].mxu0  ;;  %v4157_v27 = vpop.f32.mrb[47].mxu1 }
 0x1d6   :  { %v4084_v22 = vpop.f32.mrb[41].mxu0  ;;  %v4158_v45 = vadd.f32 %v4157_v27, %v4156_v20 }
 0x1d7   :  { %v4085_v30 = vadd.f32 %v4084_v22, %v4083_v26  ;;  %v4086_v0 = vpop.f32.mrb[42].mxu0 }
 0x1d8   :  { %v4087_v46 = vpop.f32.mrb[43].mxu0 }
 0x1d9   :  { %v3255_v10 = vadd.f32 %v4085_v30, %v5360_v28  ;;  %v4088_v56 = vadd.f32 %v4087_v46, %v4086_v0 }
 0x1db   :  { %v3258_v37 = vadd.f32 %v4088_v56, %v5362_v34  ;;  %v5398_v51 = vadd.f32 %v4149_v8, %v3255_v10 }
 0x1dd   :  { %v5400_v14 = vadd.f32 %v4152_v31, %v3258_v37 }
 0x1de   :  { %v4159_v63 = vpop.f32.mrb[48].mxu1 }
 0x1df   :  { %v4160_v38 = vpop.f32.mrb[49].mxu1 }
 0x1e0   :  { %v4089_v1 = vpop.f32.mrb[44].mxu0  ;;  %v4161_v47 = vadd.f32 %v4160_v38, %v4159_v63  ;;  %v4162_v3 = vpop.f32.mrb[50].mxu1 }
 0x1e1   :  { %v4090_v7 = vpop.f32.mrb[45].mxu0  ;;  %v4163_v11 = vpop.f32.mrb[51].mxu1 }
 0x1e2   :  { %v4091_v15 = vadd.f32 %v4090_v7, %v4089_v1  ;;  %v4092_v62 = vpop.f32.mrb[46].mxu0  ;;  %v4164_v52 = vadd.f32 %v4163_v11, %v4162_v3 }
 0x1e3   :  { %v4093_v16 = vpop.f32.mrb[47].mxu0 }
 0x1e4   :  { %v3263_v28 = vadd.f32 %v4091_v15, %v5364_v18  ;;  %v4094_v39 = vadd.f32 %v4093_v16, %v4092_v62 }
 0x1e6   :  { %v3266_v34 = vadd.f32 %v4094_v39, %v5366_v54  ;;  %v5404_v61 = vadd.f32 %v4155_v44, %v3263_v28 }
 0x1e8   :  { %v5406_v12 = vadd.f32 %v4158_v45, %v3266_v34 }
 0x1e9   :  { %v4165_v17 = vpop.f32.mrb[52].mxu1 }
 0x1ea   :  { %v4166_v19 = vpop.f32.mrb[53].mxu1 }
 0x1eb   :  { %v4167_v24 = vadd.f32 %v4166_v19, %v4165_v17  ;;  %v4168_v33 = vpop.f32.mrb[54].mxu1 }
 0x1ec   :  { %v4095_v49 = vpop.f32.mrb[48].mxu0  ;;  %v4169_v57 = vpop.f32.mrb[55].mxu1 }
 0x1ed   :  { %v4096_v23 = vpop.f32.mrb[49].mxu0  ;;  %v4170_v59 = vadd.f32 %v4169_v57, %v4168_v33 }
 0x1ee   :  { %v4097_v32 = vadd.f32 %v4096_v23, %v4095_v49  ;;  %v4098_v36 = vpop.f32.mrb[50].mxu0 }
 0x1ef   :  { %v4099_v8 = vpop.f32.mrb[51].mxu0 }
 0x1f0   :  { %v3271_v18 = vadd.f32 %v4097_v32, %v5368_v50  ;;  %v4100_v2 = vadd.f32 %v4099_v8, %v4098_v36 }
 0x1f2   :  { %v3274_v54 = vadd.f32 %v4100_v2, %v5370_v53  ;;  %v3368_v25 = vadd.f32 %v4161_v47, %v3271_v18 }
 0x1f4   :  { %v4171_v41 = vpop.f32.mrb[56].mxu1  ;;  %v3371_v60 = vadd.f32 %v4164_v52, %v3274_v54 }
 0x1f5   :  { %v4172_v4 = vpop.f32.mrb[57].mxu1 }
 0x1f6   :  { %v4173_v31 = vadd.f32 %v4172_v4, %v4171_v41  ;;  %v4174_v6 = vpop.f32.mrb[58].mxu1 }
 0x1f7   :  { %v4101_v58 = vpop.f32.mrb[52].mxu0  ;;  %v4175_v29 = vpop.f32.mrb[59].mxu1 }
 0x1f8   :  { %v4102_v26 = vpop.f32.mrb[53].mxu0  ;;  %v4176_v44 = vadd.f32 %v4175_v29, %v4174_v6 }
 0x1f9   :  { %v4103_v20 = vadd.f32 %v4102_v26, %v4101_v58  ;;  %v4104_v22 = vpop.f32.mrb[54].mxu0 }
 0x1fa   :  { %v4105_v27 = vpop.f32.mrb[55].mxu0 }
 0x1fb   :  { %v3279_v30 = vadd.f32 %v4103_v20, %v5372_v21  ;;  %v4106_v0 = vadd.f32 %v4105_v27, %v4104_v22 }
 0x1fd   :  { %v3282_v50 = vadd.f32 %v4106_v0, %v5374_v40  ;;  %v3376_v45 = vadd.f32 %v4167_v24, %v3279_v30 }
 0x1ff   :  { %v3379_v53 = vadd.f32 %v4170_v59, %v3282_v50 }
 0x201   :  { %v4107_v46 = vpop.f32.mrb[56].mxu0 }
 0x202   :  { %v4108_v10 = vpop.f32.mrb[57].mxu0 }
 0x203   :  { %v4109_v56 = vadd.f32 %v4108_v10, %v4107_v46  ;;  %v4110_v37 = vpop.f32.mrb[58].mxu0 }
 0x204   :  { %v4111_v63 = vpop.f32.mrb[59].mxu0 }
 0x205   :  { %v3287_v38 = vadd.f32 %v4109_v56, %v5376_v35  ;;  %v4112_v1 = vadd.f32 %v4111_v63, %v4110_v37  ;;  %v4177_v47 = vpop.f32.mrb[60].mxu1 }
 0x206   :  { %v4178_v3 = vpop.f32.mrb[61].mxu1 }
 0x207   :  { %v3290_v7 = vadd.f32 %v4112_v1, %v5378_v42  ;;  %v4179_v11 = vadd.f32 %v4178_v3, %v4177_v47  ;;  %v4180_v15 = vpop.f32.mrb[62].mxu1  ;;  %v3384_v21 = vadd.f32 %v4173_v31, %v3287_v38 }
 0x208   :  { %v4181_v62 = vpop.f32.mrb[63].mxu1 }
 0x209   :  { %v4182_v52 = vadd.f32 %v4181_v62, %v4180_v15  ;;  %v5414_v40 = vadd.f32 %v4176_v44, %v3290_v7 }
 0x20c   :  { %v4113_v16 = vpop.f32.mrb[60].mxu0 }
 0x20d   :  { %v4114_v28 = vpop.f32.mrb[61].mxu0  ;;  %v4225_v39 = vpop.f32.mrb[64].mxu1 }
 0x20e   :  { %v4115_v34 = vadd.f32 %v4114_v28, %v4113_v16  ;;  %v4116_v17 = vpop.f32.mrb[62].mxu0  ;;  %v5416_v19 = vadd.f32 %v4225_v39, %v3376_v45  ;;  %v3464_v35 = vpop.f32.mrb[65].mxu1 }
 0x20f   :  { %v4117_v24 = vpop.f32.mrb[63].mxu0  ;;  %v5418_v33 = vadd.f32 %v3464_v35, %v3368_v25  ;;  %v4226_v42 = vpop.f32.mrb[66].mxu1 }
 0x210   :  { %v3295_v49 = vadd.f32 %v4115_v34, %v5380_v13  ;;  %v4118_v57 = vadd.f32 %v4117_v24, %v4116_v17  ;;  %v3505_v23 = vpack.c.bf16 %v5416_v19, %v5416_v19  ;;  %v3467_v59 = vpop.f32.mrb[67].mxu1  ;;  %v5430_v8 = vadd.f32 %v4226_v42, %v3379_v53 }
 0x211   :  { %v3503_v32 = vpack.c.bf16 %v5418_v33, %v5418_v33  ;;  %v5432_v18 = vadd.f32 %v3467_v59, %v3371_v60 }
 0x212   :  { %v3298_v36 = vadd.f32 %v4118_v57, %v5382_v43  ;;  %3522 = vst.msk [vmem:[%s5584_s2 + $0x28] sm:$0xf] %vm3511_vm14, %v3505_v23  ;;  %v3392_v13 = vadd.f32 %v4179_v11, %v3295_v49  ;;  %v3506_v2 = vpack.c.bf16 %v5430_v8, %v5430_v8 }
 0x213   :  { %3520 = vst.msk [vmem:[%s5584_s2 + $0x20] sm:$0xf] %vm3511_vm14, %v3503_v32  ;;  %v3504_v43 = vpack.c.bf16 %v5432_v18, %v5432_v18 }
 0x214   :  { %v4217_v54 = vpop.f32.mrb[64].mxu0  ;;  %v3395_v31 = vadd.f32 %v4182_v52, %v3298_v36  ;;  %3523 = vst.msk [vmem:[%s5584_s2 + $0x2c] sm:$0xf] %vm3511_vm14, %v3506_v2 }
 0x215   :  { %v3441_v25 = vadd.f32 %v4217_v54, %v5392_v5  ;;  %v3432_v41 = vpop.f32.mrb[65].mxu0  ;;  %v4229_v4 = vpop.f32.mrb[68].mxu1  ;;  %3521 = vst.msk [vmem:[%s5584_s2 + $0x24] sm:$0xf] %vm3511_vm14, %v3504_v43 }
 0x216   :  { %v3433_v60 = vadd.f32 %v3432_v41, %v5386_v48  ;;  %v4218_v6 = vpop.f32.mrb[66].mxu0  ;;  %v5452_v58 = vadd.f32 %v4229_v4, %v3392_v13  ;;  %v3480_v29 = vpop.f32.mrb[69].mxu1 }
 0x217   :  { %v3497_v5 = vpack.c.bf16 %v3441_v25, %v3441_v25  ;;  %v3435_v26 = vpop.f32.mrb[67].mxu0  ;;  %v4230_v44 = vpop.f32.mrb[70].mxu1  ;;  %v3444_v22 = vadd.f32 %v4218_v6, %v5394_v55  ;;  %v3568_v50 = vmul.f32 %v3441_v25, %v3441_v25  ;;  %v5477_v37 = vadd.f32 %v3480_v29, %v3384_v21 }
 0x218   :  { %v3495_v20 = vpack.c.bf16 %v3433_v60, %v3433_v60  ;;  %v3483_v27 = vpop.f32.mrb[71].mxu1  ;;  %v3566_v30 = vmul.f32 %v3433_v60, %v3433_v60  ;;  %v3436_v0 = vadd.f32 %v3435_v26, %v5388_v9  ;;  %v3509_v48 = vpack.c.bf16 %v5452_v58, %v5452_v58 }
 0x219   :  { %3514 = vst.msk [vmem:[%s5584_s2 + $0x8] sm:$0xf] %vm3511_vm14, %v3497_v5  ;;  %v3498_v55 = vpack.c.bf16 %v3444_v22, %v3444_v22  ;;  %v3529_v45 = vsel %vm3528_vm15, %v3433_v60, 0.0  ;;  %v3532_v9 = vsel %vm3528_vm15, %v3441_v25, 0.0  ;;  %v5479_v63 = vadd.f32 %v4230_v44, %v3395_v31 }
 0x21a   :  { %3512 = vst.msk [vmem:[%s5584_s2] sm:$0xf] %vm3511_vm14, %v3495_v20  ;;  %v3496_v53 = vpack.c.bf16 %v3436_v0, %v3436_v0  ;;  %v3530_v46 = vsel %vm3528_vm15, %v3436_v0, 0.0  ;;  %v3567_v10 = vmul.f32 %v3436_v0, %v3436_v0  ;;  %3526 = vst.msk [vmem:[%s5584_s2 + $0x38] sm:$0xf] %vm3511_vm14, %v3509_v48  ;;  %v3582_v1 = vsel %vm3528_vm15, %v3566_v30, 0.0 }
 0x21b   :  { %3515 = vst.msk [vmem:[%s5584_s2 + $0xc] sm:$0xf] %vm3511_vm14, %v3498_v55  ;;  %v3531_v56 = vadd.f32 %v3530_v46, %v3529_v45  ;;  %v5489_v7 = vadd.f32 %v3483_v27, %v5414_v40  ;;  %v3569_v15 = vmul.f32 %v3444_v22, %v3444_v22  ;;  %v3507_v52 = vpack.c.bf16 %v5477_v37, %v5477_v37 }
 0x21c   :  { %v4221_v38 = vpop.f32.mrb[68].mxu0  ;;  %3513 = vst.msk [vmem:[%s5584_s2 + $0x4] sm:$0xf] %vm3511_vm14, %v3496_v53  ;;  %v3583_v47 = vsel %vm3528_vm15, %v3567_v10, 0.0  ;;  %v3585_v28 = vsel %vm3528_vm15, %v3568_v50, 0.0  ;;  %v3510_v39 = vpack.c.bf16 %v5479_v63, %v5479_v63  ;;  %v3534_v40 = vsel %vm3528_vm15, %v3444_v22, 0.0 }
 0x21d   :  { %v3457_v3 = vadd.f32 %v4221_v38, %v5404_v61  ;;  %v3448_v11 = vpop.f32.mrb[69].mxu0  ;;  %v3533_v21 = vadd.f32 %v3532_v9, %v3531_v56  ;;  %v3584_v62 = vadd.f32 %v3583_v47, %v3582_v1  ;;  %3524 = vst.msk [vmem:[%s5584_s2 + $0x30] sm:$0xf] %vm3511_vm14, %v3507_v52  ;;  %v3508_v35 = vpack.c.bf16 %v5489_v7, %v5489_v7 }
 0x21e   :  { %v4222_v16 = vpop.f32.mrb[70].mxu0  ;;  %3527 = vst.msk [vmem:[%s5584_s2 + $0x3c] sm:$0xf] %vm3511_vm14, %v3510_v39  ;;  %v3587_v24 = vsel %vm3528_vm15, %v3569_v15, 0.0  ;;  %v3449_v42 = vadd.f32 %v3448_v11, %v5398_v51  ;;  %v3574_v26 = vmul.f32 %v5418_v33, %v5418_v33  ;;  %v3544_v30 = vsel %vm3528_vm15, %v5418_v33, 0.0 }
 0x21f   :  { %v3451_v34 = vpop.f32.mrb[71].mxu0  ;;  %v3586_v17 = vadd.f32 %v3585_v28, %v3584_v62  ;;  %v3501_v61 = vpack.c.bf16 %v3457_v3, %v3457_v3  ;;  %v3535_v49 = vadd.f32 %v3534_v40, %v3533_v21  ;;  %3525 = vst.msk [vmem:[%s5584_s2 + $0x34] sm:$0xf] %vm3511_vm14, %v3508_v35  ;;  %v3460_v23 = vadd.f32 %v4222_v16, %v5406_v12 }
 0x220   :  { %v3452_v59 = vadd.f32 %v3451_v34, %v5400_v14  ;;  %v3499_v32 = vpack.c.bf16 %v3449_v42, %v3449_v42  ;;  %v3536_v36 = vsel %vm3528_vm15, %v3449_v42, 0.0  ;;  %v3570_v13 = vmul.f32 %v3449_v42, %v3449_v42 }
 0x221   :  { %3518 = vst.msk [vmem:[%s5584_s2 + $0x18] sm:$0xf] %vm3511_vm14, %v3501_v61  ;;  %v3588_v57 = vadd.f32 %v3587_v24, %v3586_v17  ;;  %v3572_v2 = vmul.f32 %v3457_v3, %v3457_v3  ;;  %v3537_v54 = vadd.f32 %v3536_v36, %v3535_v49  ;;  %v3502_v43 = vpack.c.bf16 %v3460_v23, %v3460_v23 }
 0x222   :  { %3516 = vst.msk [vmem:[%s5584_s2 + $0x10] sm:$0xf] %vm3511_vm14, %v3499_v32  ;;  %v3589_v51 = vsel %vm3528_vm15, %v3570_v13, 0.0  ;;  %v3500_v25 = vpack.c.bf16 %v3452_v59, %v3452_v59  ;;  %v3538_v41 = vsel %vm3528_vm15, %v3452_v59, 0.0  ;;  %v3571_v12 = vmul.f32 %v3452_v59, %v3452_v59 }
 0x223   :  { %v3590_v4 = vadd.f32 %v3589_v51, %v3588_v57  ;;  %3519 = vst.msk [vmem:[%s5584_s2 + $0x1c] sm:$0xf] %vm3511_vm14, %v3502_v43  ;;  %v3539_v14 = vadd.f32 %v3538_v41, %v3537_v54  ;;  %v3540_v31 = vsel %vm3528_vm15, %v3457_v3, 0.0  ;;  %v3573_v60 = vmul.f32 %v3460_v23, %v3460_v23 }
 0x224   :  { %3517 = vst.msk [vmem:[%s5584_s2 + $0x14] sm:$0xf] %vm3511_vm14, %v3500_v25  ;;  %v3591_v6 = vsel %vm3528_vm15, %v3571_v12, 0.0  ;;  %v3593_v44 = vsel %vm3528_vm15, %v3572_v2, 0.0  ;;  %v3542_v20 = vsel %vm3528_vm15, %v3460_v23, 0.0  ;;  %v3575_v0 = vmul.f32 %v5432_v18, %v5432_v18 }
 0x225   :  { %v3541_v29 = vadd.f32 %v3540_v31, %v3539_v14  ;;  %v3592_v5 = vadd.f32 %v3591_v6, %v3590_v4  ;;  %v3595_v48 = vsel %vm3528_vm15, %v3573_v60, 0.0  ;;  %v3576_v45 = vmul.f32 %v5416_v19, %v5416_v19 }
 0x226   :  { %v3597_v53 = vsel %vm3528_vm15, %v3574_v26, 0.0  ;;  %v3546_v46 = vsel %vm3528_vm15, %v5432_v18, 0.0  ;;  %v3548_v33 = vsel %vm3528_vm15, %v5416_v19, 0.0  ;;  %v3577_v56 = vmul.f32 %v5430_v8, %v5430_v8 }
 0x227   :  { %v3543_v22 = vadd.f32 %v3542_v20, %v3541_v29  ;;  %v3594_v27 = vadd.f32 %v3593_v44, %v3592_v5  ;;  %v3599_v38 = vsel %vm3528_vm15, %v3575_v0, 0.0  ;;  %v3601_v3 = vsel %vm3528_vm15, %v3576_v45, 0.0 }
 0x228   :  { %v3550_v11 = vsel %vm3528_vm15, %v5430_v8, 0.0  ;;  %v3578_v18 = vmul.f32 %v5477_v37, %v5477_v37  ;;  %v3603_v62 = vsel %vm3528_vm15, %v3577_v56, 0.0  ;;  %v3552_v19 = vsel %vm3528_vm15, %v5477_v37, 0.0 }
 0x229   :  { %v3545_v50 = vadd.f32 %v3544_v30, %v3543_v22  ;;  %v3596_v55 = vadd.f32 %v3595_v48, %v3594_v27  ;;  %v3579_v52 = vmul.f32 %v5489_v7, %v5489_v7  ;;  %v3580_v39 = vmul.f32 %v5452_v58, %v5452_v58 }
 0x22a   :  { %v3605_v8 = vsel %vm3528_vm15, %v3578_v18, 0.0  ;;  %v3554_v34 = vsel %vm3528_vm15, %v5489_v7, 0.0  ;;  %v3556_v40 = vsel %vm3528_vm15, %v5452_v58, 0.0  ;;  %v3581_v37 = vmul.f32 %v5479_v63, %v5479_v63 }
 0x22b   :  { %v3547_v10 = vadd.f32 %v3546_v46, %v3545_v50  ;;  %v3598_v9 = vadd.f32 %v3597_v53, %v3596_v55  ;;  %v3607_v35 = vsel %vm3528_vm15, %v3579_v52, 0.0  ;;  %v3609_v49 = vsel %vm3528_vm15, %v3580_v39, 0.0 }
 0x22c   :  { %v3558_v57 = vsel %vm3528_vm15, %v5479_v63, 0.0  ;;  %v3611_v7 = vsel %vm3528_vm15, %v3581_v37, 0.0 }
 0x22d   :  { %v3549_v1 = vadd.f32 %v3548_v33, %v3547_v10  ;;  %v3600_v47 = vadd.f32 %v3599_v38, %v3598_v9 }
 0x22f   :  { %v3551_v15 = vadd.f32 %v3550_v11, %v3549_v1  ;;  %v3602_v21 = vadd.f32 %v3601_v3, %v3600_v47 }
 0x231   :  { %v3553_v16 = vadd.f32 %v3552_v19, %v3551_v15  ;;  %v3604_v28 = vadd.f32 %v3603_v62, %v3602_v21 }
 0x233   :  { %v3555_v17 = vadd.f32 %v3554_v34, %v3553_v16  ;;  %v3606_v61 = vadd.f32 %v3605_v8, %v3604_v28 }
 0x235   :  { %v3557_v24 = vadd.f32 %v3556_v40, %v3555_v17  ;;  %v3608_v42 = vadd.f32 %v3607_v35, %v3606_v61 }
 0x237   :  { %v3559_v23 = vadd.f32 %v3558_v57, %v3557_v24  ;;  %v3610_v59 = vadd.f32 %v3609_v49, %v3608_v42 }
 0x239   :  { %v3560_v32 = vrot.slane %v3559_v23, 4  ;;  %v3612_v36 = vadd.f32 %v3611_v7, %v3610_v59 }
 0x23b   :  { %v3561_v13 = vadd.f32 %v3560_v32, %v3559_v23  ;;  %v3613_v58 = vrot.slane %v3612_v36, 4 }
 0x23d   :  { %v3562_v2 = vrot.slane %v3561_v13, 2  ;;  %v3614_v54 = vadd.f32 %v3613_v58, %v3612_v36 }
 0x23f   :  { %v3563_v43 = vadd.f32 %v3562_v2, %v3561_v13  ;;  %v3615_v51 = vrot.slane %v3614_v54, 2 }
 0x241   :  { %v3564_v25 = vrot.slane %v3563_v43, 1  ;;  %v3616_v41 = vadd.f32 %v3615_v51, %v3614_v54 }
 0x243   :  { %v3617_v12 = vrot.slane %v3616_v41, 1  ;;  %v3565_v4 = vadd.f32 %v3564_v25, %v3563_v43 }
 0x245   :  { %v3618_v14 = vadd.f32 %v3617_v12, %v3616_v41 }
 0x247   :  { %v3620_v63 = vsel %vm3619_vm0, %v3565_v4, %v3618_v14 }
 0x248   :  { %3622 = vst.msk [vmem:[%s5585_s3] sm:$0x3] %vm3621_vm1, %v3620_v63 }

</bundles_post_ra>
